<compile_context>
chip_gen: v7x
topology: tpu7x:2x2x1
jax: 0.10.0
libtpu: 0.0.40
codegen_flags: <defaults>
</compile_context>

<pallas_src>
import math
import numpy as np
import jax
import jax.numpy as jnp
from jax.experimental import pallas as pl
from jax.experimental.pallas import tpu as pltpu

TB = 8        # batch elements per grid step
A_PAD = 128   # lane-padded width of the fused head output / kernel output
HID = 512     # hidden width of each dueling head
C_MID = 32    # conv channel width


def _bmm(a3, w2):
    """Batched (tb, L, K) x (K, O) -> (tb, L, O) matmul on the MXU."""
    tb = a3.shape[0]
    wb = jnp.broadcast_to(w2, (tb,) + w2.shape)
    return jax.lax.dot_general(
        a3, wb,
        dimension_numbers=(((2,), (1,)), ((0,), (0,))),
        preferred_element_type=jnp.float32)


def _conv3(a, w_ref):
    """'valid' Conv1d, kernel size 3, no bias.  a: (tb, L, Cin), w_ref: (3*Cin, Cout)."""
    l_out = a.shape[1] - 2
    a_cat = jnp.concatenate(
        [a[:, 0:l_out, :], a[:, 1:1 + l_out, :], a[:, 2:2 + l_out, :]], axis=-1)
    return _bmm(a_cat, w_ref[...])


def _maxpool3_2(y, scratch):
    """MaxPool1d(kernel=3, stride=2, 'valid') along axis 1.  y: (tb, L, C)."""
    L = y.shape[1]
    m_len = L - 2                 # stride-1 window-max length
    p_len = (L - 3) // 2 + 1      # pooled length
    m = jnp.maximum(jnp.maximum(y[:, 0:m_len, :], y[:, 1:m_len + 1, :]),
                    y[:, 2:m_len + 2, :])
    scratch[:, 0:m_len, :] = m
    # stride-2 sublane read picks window-max rows 0, 2, ..., 2*(p_len-1)
    return scratch[:, pl.ds(0, p_len, stride=2), :]


def make_dqn_kernel(actions_n):
    def dqn_kernel(x_ref,
                   w1, b1, w2, b2, w3, b3, w4, b4, w5, b5, w6, b6,
                   wh1, bh1, wh2, bh2,
                   out_ref, mwin):
        a = x_ref[...]                                         # (TB, L0, C_in) f32

        # four conv -> maxpool(3,2) -> relu stages (bias added after the pool)
        for w_ref, b_ref in ((w1, b1), (w2, b2), (w3, b3), (w4, b4)):
            y = _conv3(a, w_ref)
            p = _maxpool3_2(y, mwin)
            a = jnp.maximum(p + b_ref[...], 0.0)

        # two conv -> relu stages (no pooling)
        for w_ref, b_ref in ((w5, b5), (w6, b6)):
            a = jnp.maximum(_conv3(a, w_ref) + b_ref[...], 0.0)

        # a: (TB, 1, 32).  Final conv length is 1, so the flatten is just these
        # 32 channels; bounce through the scratch to get a clean 2-D (TB, 32).
        mwin[:, 0:1, :] = a
        flat = mwin[:, 0, :]                                   # (TB, 32)

        # fused dueling heads: hidden columns [0:HID] = value, [HID:2*HID] = adv
        h = jnp.maximum(
            jnp.dot(flat, wh1[...], preferred_element_type=jnp.float32) + bh1[...],
            0.0)                                               # (TB, 1024)
        z = jnp.dot(h, wh2[...], preferred_element_type=jnp.float32) + bh2[...]
        # z: (TB, A_PAD); lane 0 = val, lanes 1..A = adv, rest 0 (padded weight)
        val = z[:, 0:1]
        adv = z[:, 1:1 + actions_n]
        mean_adv = jnp.mean(adv, axis=1, keepdims=True)
        # lanes 1..A now hold Q = val + adv - mean(adv); other lanes are junk
        # that the wrapper slices off.  Dense (TB, 128) store.
        out_ref[...] = z + (val - mean_adv)

    return dqn_kernel


def dqn_forward(x_ncl, kernel_params, actions_n, tb=TB):
    """x_ncl: (B, C_in, L0) float32 in PyTorch NCL layout -> (B, actions_n) Q."""
    B, c_in, L0 = x_ncl.shape
    assert B % tb == 0, "batch must be a multiple of TB"

    # Verify the conv stack ends at length 1 (flatten-order assumption).
    L = L0
    for _ in range(4):
        L = L - 2                 # conv k=3 'valid'
        L = (L - 3) // 2 + 1      # maxpool(3, 2) 'valid'
    L = L - 2 - 2                 # two final convs
    # TODO(synk): a final conv length > 1 would need an (L, C) -> (C, L)
    # transpose before flattening to match torch's channel-major flatten.
    assert L == 1, "kernel assumes the final conv length is exactly 1"

    x_blc = jnp.transpose(x_ncl, (0, 2, 1)).astype(jnp.float32)   # (B, L0, C_in)

    def full_spec(arr):
        nd = arr.ndim
        return pl.BlockSpec(arr.shape, lambda i, nd=nd: (0,) * nd)

    in_specs = [pl.BlockSpec((tb, L0, c_in), lambda i: (i, 0, 0))]
    in_specs += [full_spec(p) for p in kernel_params]

    out = pl.pallas_call(
        make_dqn_kernel(actions_n),
        out_shape=jax.ShapeDtypeStruct((B, A_PAD), jnp.float32),
        grid=(B // tb,),
        in_specs=in_specs,
        out_specs=pl.BlockSpec((tb, A_PAD), lambda i: (i, 0)),
        scratch_shapes=[pltpu.VMEM((tb, 128, C_MID), jnp.float32)],
        compiler_params=pltpu.CompilerParams(dimension_semantics=("parallel",)),
    )(x_blc, *kernel_params)
    return out[:, 1:1 + actions_n]


# ----------------------- deterministic parameter setup -----------------------

def init_params(key, c_in, actions_n, out_size):
    """PyTorch-default-style uniform(+-1/sqrt(fan_in)) init, in torch layouts."""
    def u(k, shape, fan_in):
        bound = 1.0 / math.sqrt(fan_in)
        return jax.random.uniform(k, shape, jnp.float32, -bound, bound)

    keys = iter(jax.random.split(key, 32))
    conv = []
    cin = c_in
    for _ in range(6):
        w = u(next(keys), (C_MID, cin, 3), cin * 3)  # torch Conv1d weight (Cout, Cin, K)
        b = u(next(keys), (C_MID,), cin * 3)
        conv.append((w, b))
        cin = C_MID
    fc = {
        "wv1": u(next(keys), (HID, out_size), out_size), "bv1": u(next(keys), (HID,), out_size),
        "wv2": u(next(keys), (1, HID), HID),             "bv2": u(next(keys), (1,), HID),
        "wa1": u(next(keys), (HID, out_size), out_size), "ba1": u(next(keys), (HID,), out_size),
        "wa2": u(next(keys), (actions_n, HID), HID),     "ba2": u(next(keys), (actions_n,), HID),
    }
    return conv, fc


def to_kernel_params(conv, fc, actions_n):
    """Convert torch-layout params to the layouts the kernel expects."""
    params = []
    for w, b in conv:
        # torch Conv1d weight (Cout, Cin, K) -> im2col weight (K*Cin, Cout),
        # row index = k*Cin + c, matching the tap concat order in _conv3.
        wk = jnp.transpose(w, (2, 1, 0)).reshape(3 * w.shape[1], w.shape[0])
        params.append(wk)
        params.append(b.reshape(1, -1))
    # fused head layer 1: columns [0:HID] value branch, [HID:2*HID] adv branch
    wh1 = jnp.concatenate([fc["wv1"].T, fc["wa1"].T], axis=1)            # (32, 1024)
    bh1 = jnp.concatenate([fc["bv1"], fc["ba1"]]).reshape(1, -1)         # (1, 1024)
    # fused + lane-padded head layer 2: col 0 = val, cols 1..A = adv, rest 0
    wh2 = jnp.zeros((2 * HID, A_PAD), jnp.float32)
    wh2 = wh2.at[:HID, 0:1].set(fc["wv2"].T)
    wh2 = wh2.at[HID:, 1:1 + actions_n].set(fc["wa2"].T)
    bh2 = jnp.zeros((1, A_PAD), jnp.float32)
    bh2 = bh2.at[0, 0].set(fc["bv2"][0])
    bh2 = bh2.at[0, 1:1 + actions_n].set(fc["ba2"])
    params += [wh1, bh1, wh2, bh2]
    return params


def reference_forward(x, conv, fc):
    """Pure-JAX re-implementation of the PyTorch forward (NCL layout) for checking."""
    def conv1d(a, w, b):
        y = jax.lax.conv_general_dilated(a, w, window_strides=(1,), padding="VALID",
                                         dimension_numbers=("NCH", "OIH", "NCH"))
        return y + b[None, :, None]

    def maxpool(a):
        return jax.lax.reduce_window(a, -jnp.inf, jax.lax.max,
                                     (1, 1, 3), (1, 1, 2), "VALID")

    relu = lambda z: jnp.maximum(z, 0.0)
    a = x
    for i in range(4):
        a = relu(maxpool(conv1d(a, *conv[i])))
    a = relu(conv1d(a, *conv[4]))
    a = relu(conv1d(a, *conv[5]))
    flat = a.reshape(a.shape[0], -1)
    hv = relu(flat @ fc["wv1"].T + fc["bv1"])
    val = hv @ fc["wv2"].T + fc["bv2"]
    ha = relu(flat @ fc["wa1"].T + fc["ba1"])
    adv = ha @ fc["wa2"].T + fc["ba2"]
    return val + adv - adv.mean(axis=1, keepdims=True)


if __name__ == "__main__":
    # Conv length trace for L0 = 128:
    # 128 ->126 ->62 ->60 ->29 ->27 ->13 ->11 ->5 ->3 ->1  =>  out_size = 32.
    # B = 16 with TB = 8 gives grid=(2,) "parallel" steps (both TCs on v7x).
    B, C_IN, L0, ACTIONS = 16, 4, 128, 3
    OUT_SIZE = 32

    key = jax.random.PRNGKey(0)
    kx, kp = jax.random.split(key)
    x = jax.random.normal(kx, (B, C_IN, L0), jnp.float32)

    conv_p, fc_p = init_params(kp, C_IN, ACTIONS, OUT_SIZE)
    kparams = to_kernel_params(conv_p, fc_p, ACTIONS)

    q = dqn_forward(x, kparams, ACTIONS)
    q = jax.block_until_ready(q)

    q_ref = reference_forward(x, conv_p, fc_p)
    assert q.shape == (B, ACTIONS)
    np.testing.assert_allclose(np.asarray(q), np.asarray(q_ref), rtol=2e-2, atol=2e-2)
    print("KERNEL_OK")
</pallas_src>

<mosaic_0001>
module attributes {stable_mosaic.version = 11 : i64} {
  func.func @dqn_kernel(%arg0: i32, %arg1: memref<8x128x4xf32, #tpu.memory_space<vmem>>, %arg2: memref<12x32xf32, #tpu.memory_space<vmem>>, %arg3: memref<1x32xf32, #tpu.memory_space<vmem>>, %arg4: memref<96x32xf32, #tpu.memory_space<vmem>>, %arg5: memref<1x32xf32, #tpu.memory_space<vmem>>, %arg6: memref<96x32xf32, #tpu.memory_space<vmem>>, %arg7: memref<1x32xf32, #tpu.memory_space<vmem>>, %arg8: memref<96x32xf32, #tpu.memory_space<vmem>>, %arg9: memref<1x32xf32, #tpu.memory_space<vmem>>, %arg10: memref<96x32xf32, #tpu.memory_space<vmem>>, %arg11: memref<1x32xf32, #tpu.memory_space<vmem>>, %arg12: memref<96x32xf32, #tpu.memory_space<vmem>>, %arg13: memref<1x32xf32, #tpu.memory_space<vmem>>, %arg14: memref<32x1024xf32, #tpu.memory_space<vmem>>, %arg15: memref<1x1024xf32, #tpu.memory_space<vmem>>, %arg16: memref<1024x128xf32, #tpu.memory_space<vmem>>, %arg17: memref<1x128xf32, #tpu.memory_space<vmem>>, %arg18: memref<8x128xf32, #tpu.memory_space<vmem>>, %arg19: memref<8x128x32xf32, #tpu.memory_space<vmem>>) attributes {dimension_semantics = [#tpu.dimension_semantics<parallel>], iteration_bounds = array<i64: 2>, scalar_prefetch = 0 : i64, scratch_operands = 1 : i64, tpu.core_type = #tpu.core_type<tc>, window_params = [{transform_indices = @transform_0, window_bounds = array<i64: 8, 128, 4>}, {pipeline_mode = #tpu.pipeline_mode<synchronous>, transform_indices = @transform_1, window_bounds = array<i64: 12, 32>}, {pipeline_mode = #tpu.pipeline_mode<synchronous>, transform_indices = @transform_2, window_bounds = array<i64: 1, 32>}, {pipeline_mode = #tpu.pipeline_mode<synchronous>, transform_indices = @transform_3, window_bounds = array<i64: 96, 32>}, {pipeline_mode = #tpu.pipeline_mode<synchronous>, transform_indices = @transform_4, window_bounds = array<i64: 1, 32>}, {pipeline_mode = #tpu.pipeline_mode<synchronous>, transform_indices = @transform_5, window_bounds = array<i64: 96, 32>}, {pipeline_mode = #tpu.pipeline_mode<synchronous>, transform_indices = @transform_6, window_bounds = array<i64: 1, 32>}, {pipeline_mode = #tpu.pipeline_mode<synchronous>, transform_indices = @transform_7, window_bounds = array<i64: 96, 32>}, {pipeline_mode = #tpu.pipeline_mode<synchronous>, transform_indices = @transform_8, window_bounds = array<i64: 1, 32>}, {pipeline_mode = #tpu.pipeline_mode<synchronous>, transform_indices = @transform_9, window_bounds = array<i64: 96, 32>}, {pipeline_mode = #tpu.pipeline_mode<synchronous>, transform_indices = @transform_10, window_bounds = array<i64: 1, 32>}, {pipeline_mode = #tpu.pipeline_mode<synchronous>, transform_indices = @transform_11, window_bounds = array<i64: 96, 32>}, {pipeline_mode = #tpu.pipeline_mode<synchronous>, transform_indices = @transform_12, window_bounds = array<i64: 1, 32>}, {pipeline_mode = #tpu.pipeline_mode<synchronous>, transform_indices = @transform_13, window_bounds = array<i64: 32, 1024>}, {pipeline_mode = #tpu.pipeline_mode<synchronous>, transform_indices = @transform_14, window_bounds = array<i64: 1, 1024>}, {pipeline_mode = #tpu.pipeline_mode<synchronous>, transform_indices = @transform_15, window_bounds = array<i64: 1024, 128>}, {pipeline_mode = #tpu.pipeline_mode<synchronous>, transform_indices = @transform_16, window_bounds = array<i64: 1, 128>}, {transform_indices = @transform_17, window_bounds = array<i64: 8, 128>}]} {
    %c0 = arith.constant 0 : index
    %c0_0 = arith.constant 0 : index
    %c0_1 = arith.constant 0 : index
    %0 = vector.load %arg1[%c0, %c0_0, %c0_1] : memref<8x128x4xf32, #tpu.memory_space<vmem>>, vector<8x128x4xf32>
    %1 = vector.extract_strided_slice %0 {offsets = [0, 0, 0], sizes = [8, 126, 4], strides = [1, 1, 1]} : vector<8x128x4xf32> to vector<8x126x4xf32>
    %2 = vector.extract_strided_slice %0 {offsets = [0, 1, 0], sizes = [8, 126, 4], strides = [1, 1, 1]} : vector<8x128x4xf32> to vector<8x126x4xf32>
    %3 = vector.extract_strided_slice %0 {offsets = [0, 2, 0], sizes = [8, 126, 4], strides = [1, 1, 1]} : vector<8x128x4xf32> to vector<8x126x4xf32>
    %4 = tpu.concatenate %1, %2, %3 in 2 : vector<8x126x4xf32>, vector<8x126x4xf32>, vector<8x126x4xf32> -> vector<8x126x12xf32>
    %c0_2 = arith.constant 0 : index
    %c0_3 = arith.constant 0 : index
    %5 = vector.load %arg2[%c0_2, %c0_3] : memref<12x32xf32, #tpu.memory_space<vmem>>, vector<12x32xf32>
    %6 = vector.shape_cast %5 : vector<12x32xf32> to vector<1x12x32xf32>
    %7 = vector.broadcast %6 : vector<1x12x32xf32> to vector<8x12x32xf32>
    %cst = arith.constant dense<0.000000e+00> : vector<8x126x32xf32>
    %8 = tpu.matmul %4, %7, %cst {dimension_numbers = #tpu.dot_dimension_numbers<[2], [1], [1], [2], [0, 0, 0, 1, 1, 2], [0], [0]>} : vector<8x126x12xf32>, vector<8x12x32xf32>, vector<8x126x32xf32> -> vector<8x126x32xf32>
    %9 = vector.extract_strided_slice %8 {offsets = [0, 0, 0], sizes = [8, 124, 32], strides = [1, 1, 1]} : vector<8x126x32xf32> to vector<8x124x32xf32>
    %10 = vector.extract_strided_slice %8 {offsets = [0, 1, 0], sizes = [8, 124, 32], strides = [1, 1, 1]} : vector<8x126x32xf32> to vector<8x124x32xf32>
    %11 = arith.maximumf %9, %10 : vector<8x124x32xf32>
    %12 = vector.extract_strided_slice %8 {offsets = [0, 2, 0], sizes = [8, 124, 32], strides = [1, 1, 1]} : vector<8x126x32xf32> to vector<8x124x32xf32>
    %13 = arith.maximumf %11, %12 : vector<8x124x32xf32>
    %c0_4 = arith.constant 0 : index
    %c0_5 = arith.constant 0 : index
    %c0_6 = arith.constant 0 : index
    %14 = vector.load %arg19[%c0_4, %c0_5, %c0_6] : memref<8x128x32xf32, #tpu.memory_space<vmem>>, vector<8x124x32xf32>
    tpu.vector_store %arg19[%c0_4, %c0_5, %c0_6], %13 {strides = array<i32>} : memref<8x128x32xf32, #tpu.memory_space<vmem>>, vector<8x124x32xf32>,
    %c0_7 = arith.constant 0 : index
    %c0_8 = arith.constant 0 : index
    %c0_9 = arith.constant 0 : index
    %15 = tpu.strided_load %arg19[%c0_7, %c0_8, %c0_9] {strides = array<i32: 1, 2, 1>} : memref<8x128x32xf32, #tpu.memory_space<vmem>>, vector<8x62x32xf32>
    %c0_10 = arith.constant 0 : index
    %c0_11 = arith.constant 0 : index
    %16 = vector.load %arg3[%c0_10, %c0_11] : memref<1x32xf32, #tpu.memory_space<vmem>>, vector<1x32xf32>
    %17 = vector.shape_cast %16 : vector<1x32xf32> to vector<1x1x32xf32>
    %18 = vector.broadcast %17 : vector<1x1x32xf32> to vector<8x62x32xf32>
    %19 = arith.addf %15, %18 : vector<8x62x32xf32>
    %cst_12 = arith.constant 0.000000e+00 : f32
    %20 = vector.broadcast %cst_12 : f32 to vector<8x62x32xf32>
    %21 = arith.maximumf %19, %20 : vector<8x62x32xf32>
    %22 = vector.extract_strided_slice %21 {offsets = [0, 0, 0], sizes = [8, 60, 32], strides = [1, 1, 1]} : vector<8x62x32xf32> to vector<8x60x32xf32>
    %23 = vector.extract_strided_slice %21 {offsets = [0, 1, 0], sizes = [8, 60, 32], strides = [1, 1, 1]} : vector<8x62x32xf32> to vector<8x60x32xf32>
    %24 = vector.extract_strided_slice %21 {offsets = [0, 2, 0], sizes = [8, 60, 32], strides = [1, 1, 1]} : vector<8x62x32xf32> to vector<8x60x32xf32>
    %25 = tpu.concatenate %22, %23, %24 in 2 : vector<8x60x32xf32>, vector<8x60x32xf32>, vector<8x60x32xf32> -> vector<8x60x96xf32>
    %c0_13 = arith.constant 0 : index
    %c0_14 = arith.constant 0 : index
    %26 = vector.load %arg4[%c0_13, %c0_14] : memref<96x32xf32, #tpu.memory_space<vmem>>, vector<96x32xf32>
    %27 = vector.shape_cast %26 : vector<96x32xf32> to vector<1x96x32xf32>
    %28 = vector.broadcast %27 : vector<1x96x32xf32> to vector<8x96x32xf32>
    %cst_15 = arith.constant dense<0.000000e+00> : vector<8x60x32xf32>
    %29 = tpu.matmul %25, %28, %cst_15 {dimension_numbers = #tpu.dot_dimension_numbers<[2], [1], [1], [2], [0, 0, 0, 1, 1, 2], [0], [0]>} : vector<8x60x96xf32>, vector<8x96x32xf32>, vector<8x60x32xf32> -> vector<8x60x32xf32>
    %30 = vector.extract_strided_slice %29 {offsets = [0, 0, 0], sizes = [8, 58, 32], strides = [1, 1, 1]} : vector<8x60x32xf32> to vector<8x58x32xf32>
    %31 = vector.extract_strided_slice %29 {offsets = [0, 1, 0], sizes = [8, 58, 32], strides = [1, 1, 1]} : vector<8x60x32xf32> to vector<8x58x32xf32>
    %32 = arith.maximumf %30, %31 : vector<8x58x32xf32>
    %33 = vector.extract_strided_slice %29 {offsets = [0, 2, 0], sizes = [8, 58, 32], strides = [1, 1, 1]} : vector<8x60x32xf32> to vector<8x58x32xf32>
    %34 = arith.maximumf %32, %33 : vector<8x58x32xf32>
    %c0_16 = arith.constant 0 : index
    %c0_17 = arith.constant 0 : index
    %c0_18 = arith.constant 0 : index
    %35 = vector.load %arg19[%c0_16, %c0_17, %c0_18] : memref<8x128x32xf32, #tpu.memory_space<vmem>>, vector<8x58x32xf32>
    tpu.vector_store %arg19[%c0_16, %c0_17, %c0_18], %34 {strides = array<i32>} : memref<8x128x32xf32, #tpu.memory_space<vmem>>, vector<8x58x32xf32>,
    %c0_19 = arith.constant 0 : index
    %c0_20 = arith.constant 0 : index
    %c0_21 = arith.constant 0 : index
    %36 = tpu.strided_load %arg19[%c0_19, %c0_20, %c0_21] {strides = array<i32: 1, 2, 1>} : memref<8x128x32xf32, #tpu.memory_space<vmem>>, vector<8x29x32xf32>
    %c0_22 = arith.constant 0 : index
    %c0_23 = arith.constant 0 : index
    %37 = vector.load %arg5[%c0_22, %c0_23] : memref<1x32xf32, #tpu.memory_space<vmem>>, vector<1x32xf32>
    %38 = vector.shape_cast %37 : vector<1x32xf32> to vector<1x1x32xf32>
    %39 = vector.broadcast %38 : vector<1x1x32xf32> to vector<8x29x32xf32>
    %40 = arith.addf %36, %39 : vector<8x29x32xf32>
    %cst_24 = arith.constant 0.000000e+00 : f32
    %41 = vector.broadcast %cst_24 : f32 to vector<8x29x32xf32>
    %42 = arith.maximumf %40, %41 : vector<8x29x32xf32>
    %43 = vector.extract_strided_slice %42 {offsets = [0, 0, 0], sizes = [8, 27, 32], strides = [1, 1, 1]} : vector<8x29x32xf32> to vector<8x27x32xf32>
    %44 = vector.extract_strided_slice %42 {offsets = [0, 1, 0], sizes = [8, 27, 32], strides = [1, 1, 1]} : vector<8x29x32xf32> to vector<8x27x32xf32>
    %45 = vector.extract_strided_slice %42 {offsets = [0, 2, 0], sizes = [8, 27, 32], strides = [1, 1, 1]} : vector<8x29x32xf32> to vector<8x27x32xf32>
    %46 = tpu.concatenate %43, %44, %45 in 2 : vector<8x27x32xf32>, vector<8x27x32xf32>, vector<8x27x32xf32> -> vector<8x27x96xf32>
    %c0_25 = arith.constant 0 : index
    %c0_26 = arith.constant 0 : index
    %47 = vector.load %arg6[%c0_25, %c0_26] : memref<96x32xf32, #tpu.memory_space<vmem>>, vector<96x32xf32>
    %48 = vector.shape_cast %47 : vector<96x32xf32> to vector<1x96x32xf32>
    %49 = vector.broadcast %48 : vector<1x96x32xf32> to vector<8x96x32xf32>
    %cst_27 = arith.constant dense<0.000000e+00> : vector<8x27x32xf32>
    %50 = tpu.matmul %46, %49, %cst_27 {dimension_numbers = #tpu.dot_dimension_numbers<[2], [1], [1], [2], [0, 0, 0, 1, 1, 2], [0], [0]>} : vector<8x27x96xf32>, vector<8x96x32xf32>, vector<8x27x32xf32> -> vector<8x27x32xf32>
    %51 = vector.extract_strided_slice %50 {offsets = [0, 0, 0], sizes = [8, 25, 32], strides = [1, 1, 1]} : vector<8x27x32xf32> to vector<8x25x32xf32>
    %52 = vector.extract_strided_slice %50 {offsets = [0, 1, 0], sizes = [8, 25, 32], strides = [1, 1, 1]} : vector<8x27x32xf32> to vector<8x25x32xf32>
    %53 = arith.maximumf %51, %52 : vector<8x25x32xf32>
    %54 = vector.extract_strided_slice %50 {offsets = [0, 2, 0], sizes = [8, 25, 32], strides = [1, 1, 1]} : vector<8x27x32xf32> to vector<8x25x32xf32>
    %55 = arith.maximumf %53, %54 : vector<8x25x32xf32>
    %c0_28 = arith.constant 0 : index
    %c0_29 = arith.constant 0 : index
    %c0_30 = arith.constant 0 : index
    %56 = vector.load %arg19[%c0_28, %c0_29, %c0_30] : memref<8x128x32xf32, #tpu.memory_space<vmem>>, vector<8x25x32xf32>
    tpu.vector_store %arg19[%c0_28, %c0_29, %c0_30], %55 {strides = array<i32>} : memref<8x128x32xf32, #tpu.memory_space<vmem>>, vector<8x25x32xf32>,
    %c0_31 = arith.constant 0 : index
    %c0_32 = arith.constant 0 : index
    %c0_33 = arith.constant 0 : index
    %57 = tpu.strided_load %arg19[%c0_31, %c0_32, %c0_33] {strides = array<i32: 1, 2, 1>} : memref<8x128x32xf32, #tpu.memory_space<vmem>>, vector<8x13x32xf32>
    %c0_34 = arith.constant 0 : index
    %c0_35 = arith.constant 0 : index
    %58 = vector.load %arg7[%c0_34, %c0_35] : memref<1x32xf32, #tpu.memory_space<vmem>>, vector<1x32xf32>
    %59 = vector.shape_cast %58 : vector<1x32xf32> to vector<1x1x32xf32>
    %60 = vector.broadcast %59 : vector<1x1x32xf32> to vector<8x13x32xf32>
    %61 = arith.addf %57, %60 : vector<8x13x32xf32>
    %cst_36 = arith.constant 0.000000e+00 : f32
    %62 = vector.broadcast %cst_36 : f32 to vector<8x13x32xf32>
    %63 = arith.maximumf %61, %62 : vector<8x13x32xf32>
    %64 = vector.extract_strided_slice %63 {offsets = [0, 0, 0], sizes = [8, 11, 32], strides = [1, 1, 1]} : vector<8x13x32xf32> to vector<8x11x32xf32>
    %65 = vector.extract_strided_slice %63 {offsets = [0, 1, 0], sizes = [8, 11, 32], strides = [1, 1, 1]} : vector<8x13x32xf32> to vector<8x11x32xf32>
    %66 = vector.extract_strided_slice %63 {offsets = [0, 2, 0], sizes = [8, 11, 32], strides = [1, 1, 1]} : vector<8x13x32xf32> to vector<8x11x32xf32>
    %67 = tpu.concatenate %64, %65, %66 in 2 : vector<8x11x32xf32>, vector<8x11x32xf32>, vector<8x11x32xf32> -> vector<8x11x96xf32>
    %c0_37 = arith.constant 0 : index
    %c0_38 = arith.constant 0 : index
    %68 = vector.load %arg8[%c0_37, %c0_38] : memref<96x32xf32, #tpu.memory_space<vmem>>, vector<96x32xf32>
    %69 = vector.shape_cast %68 : vector<96x32xf32> to vector<1x96x32xf32>
    %70 = vector.broadcast %69 : vector<1x96x32xf32> to vector<8x96x32xf32>
    %cst_39 = arith.constant dense<0.000000e+00> : vector<8x11x32xf32>
    %71 = tpu.matmul %67, %70, %cst_39 {dimension_numbers = #tpu.dot_dimension_numbers<[2], [1], [1], [2], [0, 0, 0, 1, 1, 2], [0], [0]>} : vector<8x11x96xf32>, vector<8x96x32xf32>, vector<8x11x32xf32> -> vector<8x11x32xf32>
    %72 = vector.extract_strided_slice %71 {offsets = [0, 0, 0], sizes = [8, 9, 32], strides = [1, 1, 1]} : vector<8x11x32xf32> to vector<8x9x32xf32>
    %73 = vector.extract_strided_slice %71 {offsets = [0, 1, 0], sizes = [8, 9, 32], strides = [1, 1, 1]} : vector<8x11x32xf32> to vector<8x9x32xf32>
    %74 = arith.maximumf %72, %73 : vector<8x9x32xf32>
    %75 = vector.extract_strided_slice %71 {offsets = [0, 2, 0], sizes = [8, 9, 32], strides = [1, 1, 1]} : vector<8x11x32xf32> to vector<8x9x32xf32>
    %76 = arith.maximumf %74, %75 : vector<8x9x32xf32>
    %c0_40 = arith.constant 0 : index
    %c0_41 = arith.constant 0 : index
    %c0_42 = arith.constant 0 : index
    %77 = vector.load %arg19[%c0_40, %c0_41, %c0_42] : memref<8x128x32xf32, #tpu.memory_space<vmem>>, vector<8x9x32xf32>
    tpu.vector_store %arg19[%c0_40, %c0_41, %c0_42], %76 {strides = array<i32>} : memref<8x128x32xf32, #tpu.memory_space<vmem>>, vector<8x9x32xf32>,
    %c0_43 = arith.constant 0 : index
    %c0_44 = arith.constant 0 : index
    %c0_45 = arith.constant 0 : index
    %78 = tpu.strided_load %arg19[%c0_43, %c0_44, %c0_45] {strides = array<i32: 1, 2, 1>} : memref<8x128x32xf32, #tpu.memory_space<vmem>>, vector<8x5x32xf32>
    %c0_46 = arith.constant 0 : index
    %c0_47 = arith.constant 0 : index
    %79 = vector.load %arg9[%c0_46, %c0_47] : memref<1x32xf32, #tpu.memory_space<vmem>>, vector<1x32xf32>
    %80 = vector.shape_cast %79 : vector<1x32xf32> to vector<1x1x32xf32>
    %81 = vector.broadcast %80 : vector<1x1x32xf32> to vector<8x5x32xf32>
    %82 = arith.addf %78, %81 : vector<8x5x32xf32>
    %cst_48 = arith.constant 0.000000e+00 : f32
    %83 = vector.broadcast %cst_48 : f32 to vector<8x5x32xf32>
    %84 = arith.maximumf %82, %83 : vector<8x5x32xf32>
    %85 = vector.extract_strided_slice %84 {offsets = [0, 0, 0], sizes = [8, 3, 32], strides = [1, 1, 1]} : vector<8x5x32xf32> to vector<8x3x32xf32>
    %86 = vector.extract_strided_slice %84 {offsets = [0, 1, 0], sizes = [8, 3, 32], strides = [1, 1, 1]} : vector<8x5x32xf32> to vector<8x3x32xf32>
    %87 = vector.extract_strided_slice %84 {offsets = [0, 2, 0], sizes = [8, 3, 32], strides = [1, 1, 1]} : vector<8x5x32xf32> to vector<8x3x32xf32>
    %88 = tpu.concatenate %85, %86, %87 in 2 : vector<8x3x32xf32>, vector<8x3x32xf32>, vector<8x3x32xf32> -> vector<8x3x96xf32>
    %c0_49 = arith.constant 0 : index
    %c0_50 = arith.constant 0 : index
    %89 = vector.load %arg10[%c0_49, %c0_50] : memref<96x32xf32, #tpu.memory_space<vmem>>, vector<96x32xf32>
    %90 = vector.shape_cast %89 : vector<96x32xf32> to vector<1x96x32xf32>
    %91 = vector.broadcast %90 : vector<1x96x32xf32> to vector<8x96x32xf32>
    %cst_51 = arith.constant dense<0.000000e+00> : vector<8x3x32xf32>
    %92 = tpu.matmul %88, %91, %cst_51 {dimension_numbers = #tpu.dot_dimension_numbers<[2], [1], [1], [2], [0, 0, 0, 1, 1, 2], [0], [0]>} : vector<8x3x96xf32>, vector<8x96x32xf32>, vector<8x3x32xf32> -> vector<8x3x32xf32>
    %c0_52 = arith.constant 0 : index
    %c0_53 = arith.constant 0 : index
    %93 = vector.load %arg11[%c0_52, %c0_53] : memref<1x32xf32, #tpu.memory_space<vmem>>, vector<1x32xf32>
    %94 = vector.shape_cast %93 : vector<1x32xf32> to vector<1x1x32xf32>
    %95 = vector.broadcast %94 : vector<1x1x32xf32> to vector<8x3x32xf32>
    %96 = arith.addf %92, %95 : vector<8x3x32xf32>
    %cst_54 = arith.constant 0.000000e+00 : f32
    %97 = vector.broadcast %cst_54 : f32 to vector<8x3x32xf32>
    %98 = arith.maximumf %96, %97 : vector<8x3x32xf32>
    %99 = vector.extract_strided_slice %98 {offsets = [0, 0, 0], sizes = [8, 1, 32], strides = [1, 1, 1]} : vector<8x3x32xf32> to vector<8x1x32xf32>
    %100 = vector.extract_strided_slice %98 {offsets = [0, 1, 0], sizes = [8, 1, 32], strides = [1, 1, 1]} : vector<8x3x32xf32> to vector<8x1x32xf32>
    %101 = vector.extract_strided_slice %98 {offsets = [0, 2, 0], sizes = [8, 1, 32], strides = [1, 1, 1]} : vector<8x3x32xf32> to vector<8x1x32xf32>
    %102 = tpu.concatenate %99, %100, %101 in 2 : vector<8x1x32xf32>, vector<8x1x32xf32>, vector<8x1x32xf32> -> vector<8x1x96xf32>
    %c0_55 = arith.constant 0 : index
    %c0_56 = arith.constant 0 : index
    %103 = vector.load %arg12[%c0_55, %c0_56] : memref<96x32xf32, #tpu.memory_space<vmem>>, vector<96x32xf32>
    %104 = vector.shape_cast %103 : vector<96x32xf32> to vector<1x96x32xf32>
    %105 = vector.broadcast %104 : vector<1x96x32xf32> to vector<8x96x32xf32>
    %cst_57 = arith.constant dense<0.000000e+00> : vector<8x1x32xf32>
    %106 = tpu.matmul %102, %105, %cst_57 {dimension_numbers = #tpu.dot_dimension_numbers<[2], [1], [1], [2], [0, 0, 0, 1, 1, 2], [0], [0]>} : vector<8x1x96xf32>, vector<8x96x32xf32>, vector<8x1x32xf32> -> vector<8x1x32xf32>
    %c0_58 = arith.constant 0 : index
    %c0_59 = arith.constant 0 : index
    %107 = vector.load %arg13[%c0_58, %c0_59] : memref<1x32xf32, #tpu.memory_space<vmem>>, vector<1x32xf32>
    %108 = vector.shape_cast %107 : vector<1x32xf32> to vector<1x1x32xf32>
    %109 = vector.broadcast %108 : vector<1x1x32xf32> to vector<8x1x32xf32>
    %110 = arith.addf %106, %109 : vector<8x1x32xf32>
    %cst_60 = arith.constant 0.000000e+00 : f32
    %111 = vector.broadcast %cst_60 : f32 to vector<8x1x32xf32>
    %112 = arith.maximumf %110, %111 : vector<8x1x32xf32>
    %c0_61 = arith.constant 0 : index
    %c0_62 = arith.constant 0 : index
    %c0_63 = arith.constant 0 : index
    %113 = vector.load %arg19[%c0_61, %c0_62, %c0_63] : memref<8x128x32xf32, #tpu.memory_space<vmem>>, vector<8x1x32xf32>
    tpu.vector_store %arg19[%c0_61, %c0_62, %c0_63], %112 {strides = array<i32>} : memref<8x128x32xf32, #tpu.memory_space<vmem>>, vector<8x1x32xf32>,
    %c0_64 = arith.constant 0 : index
    %c0_65 = arith.constant 0 : index
    %c0_66 = arith.constant 0 : index
    %114 = vector.load %arg19[%c0_64, %c0_65, %c0_66] : memref<8x128x32xf32, #tpu.memory_space<vmem>>, vector<8x1x32xf32>
    %115 = vector.shape_cast %114 : vector<8x1x32xf32> to vector<8x32xf32>
    %c0_67 = arith.constant 0 : index
    %c0_68 = arith.constant 0 : index
    %116 = vector.load %arg14[%c0_67, %c0_68] : memref<32x1024xf32, #tpu.memory_space<vmem>>, vector<32x1024xf32>
    %cst_69 = arith.constant dense<0.000000e+00> : vector<8x1024xf32>
    %117 = tpu.matmul %115, %116, %cst_69 {dimension_numbers = #tpu.dot_dimension_numbers<[1], [0], [0], [1], [0, 0, 1, 1], [], []>} : vector<8x32xf32>, vector<32x1024xf32>, vector<8x1024xf32> -> vector<8x1024xf32>
    %c0_70 = arith.constant 0 : index
    %c0_71 = arith.constant 0 : index
    %118 = vector.load %arg15[%c0_70, %c0_71] : memref<1x1024xf32, #tpu.memory_space<vmem>>, vector<1x1024xf32>
    %119 = vector.broadcast %118 : vector<1x1024xf32> to vector<8x1024xf32>
    %120 = arith.addf %117, %119 : vector<8x1024xf32>
    %cst_72 = arith.constant 0.000000e+00 : f32
    %121 = vector.broadcast %cst_72 : f32 to vector<8x1024xf32>
    %122 = arith.maximumf %120, %121 : vector<8x1024xf32>
    %c0_73 = arith.constant 0 : index
    %c0_74 = arith.constant 0 : index
    %123 = vector.load %arg16[%c0_73, %c0_74] : memref<1024x128xf32, #tpu.memory_space<vmem>>, vector<1024x128xf32>
    %cst_75 = arith.constant dense<0.000000e+00> : vector<8x128xf32>
    %124 = tpu.matmul %122, %123, %cst_75 {dimension_numbers = #tpu.dot_dimension_numbers<[1], [0], [0], [1], [0, 0, 1, 1], [], []>} : vector<8x1024xf32>, vector<1024x128xf32>, vector<8x128xf32> -> vector<8x128xf32>
    %c0_76 = arith.constant 0 : index
    %c0_77 = arith.constant 0 : index
    %125 = vector.load %arg17[%c0_76, %c0_77] : memref<1x128xf32, #tpu.memory_space<vmem>>, vector<1x128xf32>
    %126 = vector.broadcast %125 : vector<1x128xf32> to vector<8x128xf32>
    %127 = arith.addf %124, %126 : vector<8x128xf32>
    %128 = vector.extract_strided_slice %127 {offsets = [0, 0], sizes = [8, 1], strides = [1, 1]} : vector<8x128xf32> to vector<8x1xf32>
    %129 = vector.extract_strided_slice %127 {offsets = [0, 1], sizes = [8, 3], strides = [1, 1]} : vector<8x128xf32> to vector<8x3xf32>
    %cst_78 = arith.constant dense<0.000000e+00> : vector<8xf32>
    %130 = vector.multi_reduction <add>, %129, %cst_78 [1] : vector<8x3xf32> to vector<8xf32>
    %131 = vector.shape_cast %130 : vector<8xf32> to vector<8x1xf32>
    %cst_79 = arith.constant 3.000000e+00 : f32
    %132 = vector.broadcast %cst_79 : f32 to vector<8x1xf32>
    %133 = arith.divf %131, %132 : vector<8x1xf32>
    %134 = arith.subf %128, %133 : vector<8x1xf32>
    %135 = vector.broadcast %134 : vector<8x1xf32> to vector<8x128xf32>
    %136 = arith.addf %127, %135 : vector<8x128xf32>
    %c0_80 = arith.constant 0 : index
    %c0_81 = arith.constant 0 : index
    %137 = vector.load %arg18[%c0_80, %c0_81] : memref<8x128xf32, #tpu.memory_space<vmem>>, vector<8x128xf32>
    tpu.vector_store %arg18[%c0_80, %c0_81], %136 {strides = array<i32>} : memref<8x128xf32, #tpu.memory_space<vmem>>, vector<8x128xf32>,
    return
  }
  func.func @transform_0(%arg0: i32) -> (i32, i32, i32) {
    %c0_i32 = arith.constant 0 : i32
    %c0_i32_0 = arith.constant 0 : i32
    %c0_i32_1 = arith.constant 0 : i32
    return %arg0, %c0_i32, %c0_i32_0 : i32, i32, i32
  }
  func.func @transform_1(%arg0: i32) -> (i32, i32) {
    %c0_i32 = arith.constant 0 : i32
    %c0_i32_0 = arith.constant 0 : i32
    %c0_i32_1 = arith.constant 0 : i32
    return %c0_i32, %c0_i32_0 : i32, i32
  }
  func.func @transform_2(%arg0: i32) -> (i32, i32) {
    %c0_i32 = arith.constant 0 : i32
    %c0_i32_0 = arith.constant 0 : i32
    %c0_i32_1 = arith.constant 0 : i32
    return %c0_i32, %c0_i32_0 : i32, i32
  }
  func.func @transform_3(%arg0: i32) -> (i32, i32) {
    %c0_i32 = arith.constant 0 : i32
    %c0_i32_0 = arith.constant 0 : i32
    %c0_i32_1 = arith.constant 0 : i32
    return %c0_i32, %c0_i32_0 : i32, i32
  }
  func.func @transform_4(%arg0: i32) -> (i32, i32) {
    %c0_i32 = arith.constant 0 : i32
    %c0_i32_0 = arith.constant 0 : i32
    %c0_i32_1 = arith.constant 0 : i32
    return %c0_i32, %c0_i32_0 : i32, i32
  }
  func.func @transform_5(%arg0: i32) -> (i32, i32) {
    %c0_i32 = arith.constant 0 : i32
    %c0_i32_0 = arith.constant 0 : i32
    %c0_i32_1 = arith.constant 0 : i32
    return %c0_i32, %c0_i32_0 : i32, i32
  }
  func.func @transform_6(%arg0: i32) -> (i32, i32) {
    %c0_i32 = arith.constant 0 : i32
    %c0_i32_0 = arith.constant 0 : i32
    %c0_i32_1 = arith.constant 0 : i32
    return %c0_i32, %c0_i32_0 : i32, i32
  }
  func.func @transform_7(%arg0: i32) -> (i32, i32) {
    %c0_i32 = arith.constant 0 : i32
    %c0_i32_0 = arith.constant 0 : i32
    %c0_i32_1 = arith.constant 0 : i32
    return %c0_i32, %c0_i32_0 : i32, i32
  }
  func.func @transform_8(%arg0: i32) -> (i32, i32) {
    %c0_i32 = arith.constant 0 : i32
    %c0_i32_0 = arith.constant 0 : i32
    %c0_i32_1 = arith.constant 0 : i32
    return %c0_i32, %c0_i32_0 : i32, i32
  }
  func.func @transform_9(%arg0: i32) -> (i32, i32) {
    %c0_i32 = arith.constant 0 : i32
    %c0_i32_0 = arith.constant 0 : i32
    %c0_i32_1 = arith.constant 0 : i32
    return %c0_i32, %c0_i32_0 : i32, i32
  }
  func.func @transform_10(%arg0: i32) -> (i32, i32) {
    %c0_i32 = arith.constant 0 : i32
    %c0_i32_0 = arith.constant 0 : i32
    %c0_i32_1 = arith.constant 0 : i32
    return %c0_i32, %c0_i32_0 : i32, i32
  }
  func.func @transform_11(%arg0: i32) -> (i32, i32) {
    %c0_i32 = arith.constant 0 : i32
    %c0_i32_0 = arith.constant 0 : i32
    %c0_i32_1 = arith.constant 0 : i32
    return %c0_i32, %c0_i32_0 : i32, i32
  }
  func.func @transform_12(%arg0: i32) -> (i32, i32) {
    %c0_i32 = arith.constant 0 : i32
    %c0_i32_0 = arith.constant 0 : i32
    %c0_i32_1 = arith.constant 0 : i32
    return %c0_i32, %c0_i32_0 : i32, i32
  }
  func.func @transform_13(%arg0: i32) -> (i32, i32) {
    %c0_i32 = arith.constant 0 : i32
    %c0_i32_0 = arith.constant 0 : i32
    %c0_i32_1 = arith.constant 0 : i32
    return %c0_i32, %c0_i32_0 : i32, i32
  }
  func.func @transform_14(%arg0: i32) -> (i32, i32) {
    %c0_i32 = arith.constant 0 : i32
    %c0_i32_0 = arith.constant 0 : i32
    %c0_i32_1 = arith.constant 0 : i32
    return %c0_i32, %c0_i32_0 : i32, i32
  }
  func.func @transform_15(%arg0: i32) -> (i32, i32) {
    %c0_i32 = arith.constant 0 : i32
    %c0_i32_0 = arith.constant 0 : i32
    %c0_i32_1 = arith.constant 0 : i32
    return %c0_i32, %c0_i32_0 : i32, i32
  }
  func.func @transform_16(%arg0: i32) -> (i32, i32) {
    %c0_i32 = arith.constant 0 : i32
    %c0_i32_0 = arith.constant 0 : i32
    %c0_i32_1 = arith.constant 0 : i32
    return %c0_i32, %c0_i32_0 : i32, i32
  }
  func.func @transform_17(%arg0: i32) -> (i32, i32) {
    %c0_i32 = arith.constant 0 : i32
    %c0_i32_0 = arith.constant 0 : i32
    return %arg0, %c0_i32 : i32, i32
  }
}

</mosaic_0001>

<bundles_post_ra>
// kernel: tpu_custom_call.1
= control target key start
LH: loop header
LB: loop body
LE: loop exit
PB: predicated region body
PF: predicated region fallthrough
CT: control target
= control target key end

     0   :  { %s23587_s0 = inlined_call_operand.vmem [shape: f32[16,128,4], index: 0, kind: input, shape index: {}]   ;;  %s23588_s1 = inlined_call_operand.vmem [shape: f32[12,32], index: 1, kind: input, shape index: {}]   ;;  %s23589_s2 = inlined_call_operand.vmem [shape: f32[1,32], index: 2, kind: input, shape index: {}]   ;;  %s23590_s3 = inlined_call_operand.vmem [shape: f32[96,32], index: 3, kind: input, shape index: {}]   ;;  %s23591_s4 = inlined_call_operand.vmem [shape: f32[1,32], index: 4, kind: input, shape index: {}]   ;;  %s23592_s5 = inlined_call_operand.vmem [shape: f32[96,32], index: 5, kind: input, shape index: {}]   ;;  %s23593_s6 = inlined_call_operand.vmem [shape: f32[1,32], index: 6, kind: input, shape index: {}]   ;;  %s23594_s7 = inlined_call_operand.vmem [shape: f32[96,32], index: 7, kind: input, shape index: {}]   ;;  %s23595_s8 = inlined_call_operand.vmem [shape: f32[1,32], index: 8, kind: input, shape index: {}]   ;;  %s23596_s9 = inlined_call_operand.vmem [shape: f32[96,32], index: 9, kind: input, shape index: {}]   ;;  %s23597_s10 = inlined_call_operand.vmem [shape: f32[1,32], index: 10, kind: input, shape index: {}]   ;;  %s23598_s11 = inlined_call_operand.vmem [shape: f32[96,32], index: 11, kind: input, shape index: {}]   ;;  %s23599_s12 = inlined_call_operand.vmem [shape: f32[1,32], index: 12, kind: input, shape index: {}]   ;;  %s23600_s13 = inlined_call_operand.vmem [shape: f32[32,1024], index: 13, kind: input, shape index: {}]   ;;  %s23601_s14 = inlined_call_operand.vmem [shape: f32[1,1024], index: 14, kind: input, shape index: {}]   ;;  %s23602_s15 = inlined_call_operand.vmem [shape: f32[1024,128], index: 15, kind: input, shape index: {}]   ;;  %s23603_s16 = inlined_call_operand.vmem [shape: f32[1,128], index: 16, kind: input, shape index: {}]   ;;  %s23604_s17 = inlined_call_operand.hbm [shape: f32[16,128], index: 17, kind: output, shape index: {}]  }
   0x1   :  { %23629 = sst [smem:[#allocation7_spill]] %s23587_s0 }
   0x2   :  { %23630 = sst [smem:[#allocation8_spill]] %s23588_s1 }
   0x3   :  { %23631 = sst [smem:[#allocation9_spill]] %s23589_s2 }
   0x4   :  { %23632 = sst [smem:[#allocation10_spill]] %s23590_s3 }
   0x5   :  { %23633 = sst [smem:[#allocation11_spill]] %s23591_s4 }
   0x6   :  { %23634 = sst [smem:[#allocation12_spill]] %s23592_s5 }
   0x7   :  { %23635 = sst [smem:[#allocation13_spill]] %s23593_s6 }
   0x8   :  { %22 = vsyncpa [#allocation4], 0 }
   0x9   :  { %24 = vsyncpa [#allocation4 + $0x1], 0  ;;  %s16815_s24 = smov 0   ;;  %s16817_s25 = smov 0  }
   0xa   :  { %s16819_s26 = smov 0   ;;  %s16821_s27 = smov 0  }
   0xb LB: > { %s16836_s28 = sadd.s32 4294967295, %s16712_s27   ;;  %s12887_s29 = sadd.s32 4294967294, %s16712_s27   ;;  %s16712_s27 = sphi %s16821_s27, %s23672_s27   ;;  %s16708_s26 = sphi %s16819_s26, %s23671_s26   ;;  %s16704_s25 = sphi %s16817_s25, %s23670_s25   ;;  %s16700_s24 = sphi %s16815_s24, %s23669_s24  }
   0xc   : > { %s16840_s0 = sadd.s32 1, %s16712_s27   ;;  %s399_s30 = sadd.s32 1, %s16708_s26 }
   0xd   : > { %s396_s18 = ssub.s32 %s16712_s27, %s16840_s0  ;;  %p409_p0 = scmp.ne.s32.totalorder %s16708_s26, %s16704_s25 }
   0xe   : > { %p397_p1 = scmp.eq.s32.totalorder %s396_s18, 0  ;;  %p410_p2 = scmp.eq.s32.totalorder %s16836_s28, 1 }
   0xf   : > { %p415_p3 = scmp.ne.s32.totalorder %s16704_s25, %s16700_s24  ;;  %p416_p4 = scmp.eq.s32.totalorder %s12887_s29, 1 }
  0x10   : > { %s16851_s19 = scalar_select %p397_p1, %s16708_s26, %s399_s30  }
  0x11   : > { %p16853_p5 = por %p410_p2, %p409_p0  ;;  %p16857_p6 = por %p416_p4, %p415_p3 }
  0x12   : > { %23636 = sst [smem:[#allocation6_spill]] %s16851_s19  ;;  %p12890_p7 = scmp.ge.s32.totalorder %s16712_s27, 1 }
  0x13   : > { %p492_p8 = scmp.lt.s32.totalorder %s16712_s27, 3 }
  0x15   : > { %p493_p9 = pnand %p12890_p7, %p492_p8 }
  0x16   : > { %s12892_s21 = sshll.u32 (!%p493_p9), %s16836_s28, 3  ;;  %s23639_s29 = sld [smem:[#allocation8_spill]] (!%p493_p9)  ;;  %vm2383_vm0 = vcmask (!%p493_p9), 1043456   ;;  %vm16714_vm1 = vmmov (!%p493_p9), 1   ;;  %vm808_vm3 = vcmask (!%p493_p9), 1046528   ;;  %vm1441_vm4 = vcmask (!%p493_p9), 1045504  }
  0x17   : > { %496 = sbr.rel (%p493_p9) target bundleno = 3571 (0xdf3), region = 88  ;;  %p546_p10 = scmp.lt.s32.totalorder (!%p493_p9), %s12892_s21, 15  ;;  %vm16872_vm2 = vmpackc.low (!%p493_p9), %vm2383_vm0, %vm16714_vm1  ;;  %vm2074_vm5 = vcmask (!%p493_p9), 31744   ;;  %vm2203_vm6 = vcmask (!%p493_p9), 64512   ;;  %vm2334_vm7 = vcmask (!%p493_p9), 97280   ;;  %vm5019_vm8 = vcmask (!%p493_p9), 261120  }
  0x18   : > { %s23642_s18 = sld [smem:[#allocation7_spill]] (!%p493_p9)  ;;  %vm5035_vm9 = vcmask (!%p493_p9), 257024   ;;  %s23643_s3 = sld [smem:[#allocation10_spill]] (!%p493_p9)  ;;  %vm6163_vm10 = vcmask (!%p493_p9), 523264   ;;  %vm6240_vm11 = vcmask (!%p493_p9), 785408   ;;  %vm7840_vm12 = vcmask (!%p493_p9), 254976  }
  0x19   : > { %s23645_s2 = sld [smem:[#allocation9_spill]] (!%p493_p9)  ;;  %s23646_s19 = smov (!%p493_p9), 8   ;;  %vm9464_vm13 = vcmask (!%p493_p9), 253952   ;;  %vm16720_vm14 = vmmov (!%p493_p9), 0   ;;  %vm12067_vm15 = vcmask (!%p493_p9), 1041409   ;;  %vm12070_vm0 = vcmask (!%p493_p9), 1042434  }
  0x1a   : > { %s23663_s4 = sld [smem:[#allocation11_spill]] (!%p493_p9)  ;;  %s23664_s5 = sld [smem:[#allocation12_spill]] (!%p493_p9)  ;;  %vm12073_vm1 = vcmask (!%p493_p9), 1043459  }
  0x1b   : > { %s23667_s6 = sld [smem:[#allocation13_spill]] (!%p493_p9)  ;;  %s13170_s30 = sshll.u32 (!%p493_p9), %s16836_s28, 7 }
  0x1c   : > { %v2332_v0 = vld [vmem:[%s23639_s29] sm:$0xff] (!%p493_p9)  ;;  %v2333_v1 = vld [vmem:[%s23639_s29 + $0x8] sm:$0xf] (!%p493_p9)  ;;  %s16724_s28 = smov (!%p493_p9), [#allocation3]  }
  0x1d   : > { %v16870_v2 = vpack.c.bf16 (!%p493_p9), %v2333_v1, %v2332_v0 }
  0x1e   : > { %s23674_s21 = smov (!%p546_p10, %s12892_s21), 15 }
  0x1f   : > { %15468 = vmatprep.subr.msk.bf16.mxu0 %vm16872_vm2, %v16870_v2  ;;  %15474 = vmatprep.subr.msk.bf16.mxu1 %vm16872_vm2, %v16870_v2  ;;  %s13173_s22 = sshll.u32 %s23674_s21, 7  ;;  %s23607_s21 = smov 4  }
  0x20   : > { %15471 = vmatpush3.bf16.msk.msra.mxu0 %vm16872_vm2, %v16870_v2  ;;  %15477 = vmatpush3.bf16.msk.msra.mxu1 %vm16872_vm2, %v16870_v2  ;;  %s16891_s29 = scalar_lea.vmem %s23642_s18, %s13173_s22  ;;  %s23609_s22 = smov 8  }
  0x21   : > { %15480 = vmatprep.subr.msk.bf16.mxu0 %vm16872_vm2, %v16870_v2  ;;  %15486 = vmatprep.subr.msk.bf16.mxu1 %vm16872_vm2, %v16870_v2  ;;  %v16900_v4 = vld [vmem:[%s16891_s29 + $0x80] sm:$0xff]  ;;  %v16903_v5 = vld [vmem:[%s16891_s29 + $0x88] sm:$0xff]  ;;  %v16916_v12 = vld [vmem:[%s16891_s29 + $0x10] sm:$0xff]  ;;  %s23625_s18 = smov 64  }
  0x22   : > { %v16906_v6 = vld [vmem:[%s16891_s29] sm:$0xff]  ;;  %v840_v7 = vrot.slane %v16900_v4, 1  ;;  %v841_v8 = vrot.slane %v16903_v5, 1  ;;  %v16911_v9 = vld [vmem:[%s16891_s29 + $0x8] sm:$0xff]  ;;  %v812_v15 = vrot.slane %v16916_v12, 1  ;;  %v16923_v17 = vld [vmem:[%s16891_s29 + $0x90] sm:$0xff] }
  0x23   : > { %v809_v10 = vrot.slane %v16906_v6, 1  ;;  %v1442_v11 = vrot.slane %v16906_v6, 2  ;;  %v810_v13 = vrot.slane %v16911_v9, 1  ;;  %v1443_v14 = vrot.slane %v16911_v9, 2  ;;  %v16940_v28 = vld [vmem:[%s16891_s29 + $0x18] sm:$0xff]  ;;  %v16943_v29 = vld [vmem:[%s16891_s29 + $0x20] sm:$0xff] }
  0x24   : > { %v842_v16 = vsel %vm808_vm3, %v840_v7, %v841_v8  ;;  %v1445_v20 = vrot.slane %v16916_v12, 2  ;;  %v843_v22 = vrot.slane %v16923_v17, 1  ;;  %v1474_v24 = vrot.slane %v16903_v5, 2  ;;  %v16952_v34 = vld [vmem:[%s16891_s29 + $0x98] sm:$0xff]  ;;  %v16961_v39 = vld [vmem:[%s16891_s29 + $0xa0] sm:$0xff]  ;;  %v16976_v48 = vld [vmem:[%s16891_s29 + $0x28] sm:$0xff] }
  0x25   : > { %1089 = vrot.lane.b32.xlu1 %v842_v16, %s23607_s21  ;;  %v811_v18 = vsel %vm808_vm3, %v809_v10, %v810_v13  ;;  %v1444_v19 = vsel %vm1441_vm4, %v1442_v11, %v1443_v14  ;;  %v813_v21 = vsel %vm808_vm3, %v810_v13, %v812_v15  ;;  %v1476_v25 = vrot.slane %v16923_v17, 2  ;;  %v16979_v49 = vld [vmem:[%s16891_s29 + $0x30] sm:$0xff]  ;;  %v16988_v54 = vld [vmem:[%s16891_s29 + $0xa8] sm:$0xff]  ;;  %v17012_v10 = vld [vmem:[%s16891_s29 + $0x38] sm:$0xff] }
  0x26   : > { %1057 = vrot.lane.b32.xlu0 %v811_v18, %s23607_s21  ;;  %v1446_v23 = vsel %vm1441_vm4, %v1443_v14, %v1445_v20  ;;  %v844_v26 = vsel %vm808_vm3, %v841_v8, %v843_v22  ;;  %v1473_v27 = vrot.slane %v16900_v4, 2  ;;  %v814_v31 = vrot.slane %v16940_v28, 1  ;;  %v16997_v59 = vld [vmem:[%s16891_s29 + $0xb0] sm:$0xff]  ;;  %v17015_v11 = vld [vmem:[%s16891_s29 + $0x40] sm:$0xff]  ;;  %v17024_v18 = vld [vmem:[%s16891_s29 + $0xb8] sm:$0xff] }
  0x27   : > { %v1477_v30 = vsel %vm1441_vm4, %v1474_v24, %v1476_v25  ;;  %v816_v32 = vrot.slane %v16943_v29, 1  ;;  %v1447_v36 = vrot.slane %v16940_v28, 2  ;;  %v845_v38 = vrot.slane %v16952_v34, 1 }
  0x28   : > { %v1475_v33 = vsel %vm1441_vm4, %v1473_v27, %v1474_v24  ;;  %v815_v37 = vsel %vm808_vm3, %v812_v15, %v814_v31  ;;  %v1449_v41 = vrot.slane %v16943_v29, 2  ;;  %v847_v43 = vrot.slane %v16961_v39, 1 }
  0x29   : > { %1690 = vrot.lane.b32.xlu1 %v1444_v19, %s23609_s22  ;;  %v817_v35 = vsel %vm808_vm3, %v814_v31, %v816_v32  ;;  %v1448_v40 = vsel %vm1441_vm4, %v1445_v20, %v1447_v36  ;;  %v846_v42 = vsel %vm808_vm3, %v843_v22, %v845_v38  ;;  %v1478_v45 = vrot.slane %v16952_v34, 2 }
  0x2a   : > { %1059 = vrot.lane.b32.xlu0 %v813_v21, %s23607_s21  ;;  %v1450_v44 = vsel %vm1441_vm4, %v1447_v36, %v1449_v41  ;;  %v1480_v46 = vrot.slane %v16961_v39, 2  ;;  %v848_v47 = vsel %vm808_vm3, %v845_v38, %v847_v43  ;;  %v818_v51 = vrot.slane %v16976_v48, 1  ;;  %v17051_v36 = vld [vmem:[%s16891_s29 + $0x50] sm:$0xff] }
  0x2b   : > { %v820_v52 = vrot.slane %v16979_v49, 1  ;;  %v1479_v53 = vsel %vm1441_vm4, %v1476_v25, %v1478_v45  ;;  %v1451_v56 = vrot.slane %v16976_v48, 2  ;;  %v849_v58 = vrot.slane %v16988_v54, 1 }
  0x2c   : > { %v1481_v50 = vsel %vm1441_vm4, %v1478_v45, %v1480_v46  ;;  %v819_v57 = vsel %vm808_vm3, %v816_v32, %v818_v51  ;;  %v1453_v61 = vrot.slane %v16979_v49, 2  ;;  %v851_v63 = vrot.slane %v16997_v59, 1 }
  0x2d   : > { %1692 = vrot.lane.b32.xlu1 %v1446_v23, %s23609_s22  ;;  %v821_v55 = vsel %vm808_vm3, %v818_v51, %v820_v52  ;;  %v1452_v60 = vsel %vm1441_vm4, %v1449_v41, %v1451_v56  ;;  %v850_v62 = vsel %vm808_vm3, %v847_v43, %v849_v58  ;;  %v1482_v1 = vrot.slane %v16988_v54, 2  ;;  %v17033_v23 = vld [vmem:[%s16891_s29 + $0xc0] sm:$0xff] }
  0x2e   : > { %1091 = vrot.lane.b32.xlu0 %v844_v26, %s23607_s21  ;;  %v1454_v0 = vsel %vm1441_vm4, %v1451_v56, %v1453_v61  ;;  %v1484_v7 = vrot.slane %v16997_v59, 2  ;;  %v852_v8 = vsel %vm808_vm3, %v849_v58, %v851_v63  ;;  %v822_v14 = vrot.slane %v17012_v10, 1 }
  0x2f   : > { %v824_v15 = vrot.slane %v17015_v11, 1  ;;  %v1483_v16 = vsel %vm1441_vm4, %v1480_v46, %v1482_v1  ;;  %v1455_v20 = vrot.slane %v17012_v10, 2  ;;  %v853_v22 = vrot.slane %v17024_v18, 1 }
  0x30   : > { %v1485_v13 = vsel %vm1441_vm4, %v1482_v1, %v1484_v7  ;;  %v823_v21 = vsel %vm808_vm3, %v820_v52, %v822_v14  ;;  %v1457_v25 = vrot.slane %v17015_v11, 2  ;;  %v855_v27 = vrot.slane %v17033_v23, 1 }
  0x31   : > { %1724 = vrot.lane.b32.xlu1 %v1477_v30, %s23609_s22  ;;  %v825_v19 = vsel %vm808_vm3, %v822_v14, %v824_v15  ;;  %v1456_v24 = vsel %vm1441_vm4, %v1453_v61, %v1455_v20  ;;  %v854_v26 = vsel %vm808_vm3, %v851_v63, %v853_v22  ;;  %v1486_v31 = vrot.slane %v17024_v18, 2  ;;  %v17087_v61 = vld [vmem:[%s16891_s29 + $0x60] sm:$0xff] }
  0x32   : > { %1722 = vrot.lane.b32.xlu0 %v1475_v33, %s23609_s22  ;;  %v1458_v30 = vsel %vm1441_vm4, %v1455_v20, %v1457_v25  ;;  %v1488_v32 = vrot.slane %v17033_v23, 2  ;;  %v856_v33 = vsel %vm808_vm3, %v853_v22, %v855_v27  ;;  %v1461_v51 = vrot.slane %v17051_v36, 2 }
  0x33   : > { %v1487_v41 = vsel %vm1441_vm4, %v1484_v7, %v1486_v31  ;;  %v17096_v7 = vld [vmem:[%s16891_s29 + $0xd8] sm:$0xff]  ;;  %v1465_v20 = vrot.slane %v17087_v61, 2 }
  0x35   : > { %1063 = vrot.lane.b32.xlu1 %v817_v35, %s23607_s21  ;;  %v17048_v35 = vld [vmem:[%s16891_s29 + $0x48] sm:$0xff] }
  0x36   : > { %1061 = vrot.lane.b32.xlu0 %v815_v37, %s23607_s21  ;;  %v1489_v37 = vsel %vm1441_vm4, %v1486_v31, %v1488_v32  ;;  %v826_v38 = vrot.slane %v17048_v35, 1  ;;  %v17123_v31 = vld [vmem:[%s16891_s29 + $0x70] sm:$0xff] }
  0x38   : > { %v827_v45 = vsel %vm808_vm3, %v824_v15, %v826_v38  ;;  %v861_v15 = vrot.slane %v17096_v7, 1 }
  0x39   : > { %1694 = vrot.lane.b32.xlu1 %v1448_v40, %s23609_s22  ;;  %v828_v40 = vrot.slane %v17051_v36, 1 }
  0x3a   : > { %1093 = vrot.lane.b32.xlu0 %v846_v42, %s23607_s21  ;;  %v17060_v42 = vld [vmem:[%s16891_s29 + $0xc8] sm:$0xff] }
  0x3b   : > { %v829_v43 = vsel %vm808_vm3, %v826_v38, %v828_v40  ;;  %v857_v46 = vrot.slane %v17060_v42, 1  ;;  %v1490_v56 = vrot.slane %v17060_v42, 2 }
  0x3d   : > { %1696 = vrot.lane.b32.xlu1 %v1450_v44, %s23609_s22  ;;  %v1459_v44 = vrot.slane %v17048_v35, 2  ;;  %v858_v52 = vsel %vm808_vm3, %v855_v27, %v857_v46  ;;  %v1491_v1 = vsel %vm1441_vm4, %v1488_v32, %v1490_v56 }
  0x3e   : > { %1095 = vrot.lane.b32.xlu0 %v848_v47, %s23607_s21  ;;  %v17069_v47 = vld [vmem:[%s16891_s29 + $0xd0] sm:$0xff] }
  0x41   : > { %1728 = vrot.lane.b32.xlu1 %v1481_v50, %s23609_s22  ;;  %v1460_v50 = vsel %vm1441_vm4, %v1457_v25, %v1459_v44  ;;  %v1494_v25 = vrot.slane %v17096_v7, 2 }
  0x42   : > { %1726 = vrot.lane.b32.xlu0 %v1479_v53, %s23609_s22  ;;  %v859_v53 = vrot.slane %v17069_v47, 1 }
  0x44   : > { %v860_v58 = vsel %vm808_vm3, %v857_v46, %v859_v53  ;;  %v17141_v46 = vld [vmem:[%s16891_s29 + $0xf0] sm:$0xff] }
  0x45   : > { %1067 = vrot.lane.b32.xlu1 %v821_v55, %s23607_s21  ;;  %v1462_v55 = vsel %vm1441_vm4, %v1459_v44, %v1461_v51 }
  0x46   : > { %1065 = vrot.lane.b32.xlu0 %v819_v57, %s23607_s21  ;;  %v1492_v57 = vrot.slane %v17069_v47, 2 }
  0x48   : > { %v1495_v38 = vsel %vm1441_vm4, %v1492_v57, %v1494_v25 }
  0x49   : > { %1698 = vrot.lane.b32.xlu1 %v1452_v60, %s23609_s22  ;;  %v17084_v60 = vld [vmem:[%s16891_s29 + $0x58] sm:$0xff] }
  0x4a   : > { %1097 = vrot.lane.b32.xlu0 %v850_v62, %s23607_s21  ;;  %v1493_v62 = vsel %vm1441_vm4, %v1490_v56, %v1492_v57  ;;  %v830_v63 = vrot.slane %v17084_v60, 1  ;;  %v1500_v57 = vrot.slane %v17141_v46, 2 }
  0x4c   : > { %v831_v14 = vsel %vm808_vm3, %v828_v40, %v830_v63  ;;  %v17132_v40 = vld [vmem:[%s16891_s29 + $0xe8] sm:$0xff] }
  0x4d   : > { %1700 = vrot.lane.b32.xlu1 %v1454_v0, %s23609_s22  ;;  %v832_v0 = vrot.slane %v17087_v61, 1  ;;  %v1498_v56 = vrot.slane %v17132_v40, 2 }
  0x4e   : > { %1099 = vrot.lane.b32.xlu0 %v852_v8, %s23607_s21 }
  0x4f   : > { %v833_v8 = vsel %vm808_vm3, %v830_v63, %v832_v0  ;;  %v1501_v63 = vsel %vm1441_vm4, %v1498_v56, %v1500_v57 }
  0x51   : > { %1732 = vrot.lane.b32.xlu1 %v1485_v13, %s23609_s22  ;;  %v1463_v13 = vrot.slane %v17084_v60, 2 }
  0x52   : > { %1730 = vrot.lane.b32.xlu0 %v1483_v16, %s23609_s22  ;;  %v17105_v16 = vld [vmem:[%s16891_s29 + $0xe0] sm:$0xff] }
  0x53   : > { %v863_v22 = vrot.slane %v17105_v16, 1 }
  0x55   : > { %1071 = vrot.lane.b32.xlu1 %v825_v19, %s23607_s21  ;;  %v1464_v19 = vsel %vm1441_vm4, %v1461_v51, %v1463_v13  ;;  %v864_v27 = vsel %vm808_vm3, %v861_v15, %v863_v22  ;;  %v1469_v51 = vrot.slane %v17123_v31, 2 }
  0x56   : > { %1069 = vrot.lane.b32.xlu0 %v823_v21, %s23607_s21  ;;  %v862_v21 = vsel %vm808_vm3, %v859_v53, %v861_v15  ;;  %v867_v53 = vrot.slane %v17141_v46, 1 }
  0x59   : > { %1702 = vrot.lane.b32.xlu1 %v1456_v24, %s23609_s22  ;;  %v1466_v24 = vsel %vm1441_vm4, %v1463_v13, %v1465_v20 }
  0x5a   : > { %1101 = vrot.lane.b32.xlu0 %v854_v26, %s23607_s21  ;;  %v1496_v26 = vrot.slane %v17105_v16, 2 }
  0x5c   : > { %v1497_v32 = vsel %vm1441_vm4, %v1494_v25, %v1496_v26 }
  0x5d   : > { %1704 = vrot.lane.b32.xlu1 %v1458_v30, %s23609_s22  ;;  %v17120_v30 = vld [vmem:[%s16891_s29 + $0x68] sm:$0xff] }
  0x5e   : > { %1103 = vrot.lane.b32.xlu0 %v856_v33, %s23607_s21  ;;  %v834_v33 = vrot.slane %v17120_v30, 1 }
  0x60   : > { %v835_v44 = vsel %vm808_vm3, %v832_v0, %v834_v33  ;;  %v1499_v0 = vsel %vm1441_vm4, %v1496_v26, %v1498_v56 }
  0x61   : > { %1736 = vrot.lane.b32.xlu1 %v1489_v37, %s23609_s22  ;;  %v836_v37 = vrot.slane %v17123_v31, 1 }
  0x62   : > { %1734 = vrot.lane.b32.xlu0 %v1487_v41, %s23609_s22 }
  0x63   : > { %v837_v41 = vsel %vm808_vm3, %v834_v33, %v836_v37 }
  0x65   : > { %1075 = vrot.lane.b32.xlu1 %v829_v43, %s23607_s21  ;;  %v1467_v43 = vrot.slane %v17120_v30, 2 }
  0x66   : > { %1073 = vrot.lane.b32.xlu0 %v827_v45, %s23607_s21  ;;  %v865_v45 = vrot.slane %v17132_v40, 1 }
  0x69   : > { %1706 = vrot.lane.b32.xlu1 %v1460_v50, %s23609_s22  ;;  %v1468_v50 = vsel %vm1441_vm4, %v1465_v20, %v1467_v43 }
  0x6a   : > { %1105 = vrot.lane.b32.xlu0 %v858_v52, %s23607_s21  ;;  %v866_v52 = vsel %vm808_vm3, %v863_v22, %v865_v45 }
  0x6d   : > { %1708 = vrot.lane.b32.xlu1 %v1462_v55, %s23609_s22  ;;  %v1470_v55 = vsel %vm1441_vm4, %v1467_v43, %v1469_v51 }
  0x6e   : > { %1107 = vrot.lane.b32.xlu0 %v860_v58, %s23607_s21  ;;  %v868_v58 = vsel %vm808_vm3, %v865_v45, %v867_v53 }
  0x71   : > { %1740 = vrot.lane.b32.xlu1 %v1493_v62, %s23609_s22  ;;  %v17156_v62 = vld [vmem:[%s16891_s29 + $0x78] sm:$0xff] }
  0x72   : > { %1738 = vrot.lane.b32.xlu0 %v1491_v1, %s23609_s22  ;;  %v838_v1 = vrot.slane %v17156_v62, 1  ;;  %v1471_v13 = vrot.slane %v17156_v62, 2 }
  0x75   : > { %1079 = vrot.lane.b32.xlu1 %v833_v8, %s23607_s21  ;;  %v17164_v8 = vld [vmem:[%s16891_s29 + $0xf8] sm:$0xff] }
  0x76   : > { %1077 = vrot.lane.b32.xlu0 %v831_v14, %s23607_s21  ;;  %v839_v14 = vsel %vm808_vm3, %v836_v37, %v838_v1  ;;  %v869_v15 = vrot.slane %v17164_v8, 1  ;;  %v1502_v26 = vrot.slane %v17164_v8, 2 }
  0x78   : > { %v1503_v45 = vsel %vm1441_vm4, %v1500_v57, %v1502_v26 }
  0x79   : > { %1710 = vrot.lane.b32.xlu1 %v1464_v19, %s23609_s22  ;;  %v1472_v19 = vsel %vm1441_vm4, %v1469_v51, %v1471_v13 }
  0x7a   : > { %1109 = vrot.lane.b32.xlu0 %v862_v21, %s23607_s21  ;;  %v870_v21 = vsel %vm808_vm3, %v867_v53, %v869_v15  ;;  %v17201_v53 = vld [vmem:[%s16891_s29 + $0x180] sm:$0xff] }
  0x7d   : > { %1712 = vrot.lane.b32.xlu1 %v1466_v24, %s23609_s22 }
  0x7e   : > { %1111 = vrot.lane.b32.xlu0 %v864_v27, %s23607_s21  ;;  %v17181_v27 = vld [vmem:[%s16891_s29 + $0x108] sm:$0xff] }
  0x81   : > { %1744 = vrot.lane.b32.xlu1 %v1497_v32, %s23609_s22  ;;  %v17184_v32 = vld [vmem:[%s16891_s29 + $0x110] sm:$0xff] }
  0x82   : > { %1742 = vrot.lane.b32.xlu0 %v1495_v38, %s23609_s22  ;;  %v17188_v38 = vld [vmem:[%s16891_s29 + $0x100] sm:$0xff]  ;;  %v874_v43 = vrot.slane %v17184_v32, 1 }
  0x83   : > { %v1504_v57 = vrot.slane %v17188_v38, 2 }
  0x85   : > { %1083 = vrot.lane.b32.xlu1 %v837_v41, %s23607_s21  ;;  %v872_v41 = vrot.slane %v17181_v27, 1 }
  0x86   : > { %1081 = vrot.lane.b32.xlu0 %v835_v44, %s23607_s21 }
  0x87   : > { %v875_v56 = vsel %vm808_vm3, %v872_v41, %v874_v43 }
  0x89   : > { %1714 = vrot.lane.b32.xlu1 %v1468_v50, %s23609_s22  ;;  %v871_v50 = vrot.slane %v17188_v38, 1 }
  0x8a   : > { %1113 = vrot.lane.b32.xlu0 %v866_v52, %s23607_s21 }
  0x8d   : > { %1716 = vrot.lane.b32.xlu1 %v1470_v55, %s23609_s22 }
  0x8e   : > { %1115 = vrot.lane.b32.xlu0 %v868_v58, %s23607_s21  ;;  %v1505_v58 = vrot.slane %v17181_v27, 2 }
  0x91   : > { %1748 = vrot.lane.b32.xlu1 %v1501_v63, %s23609_s22  ;;  %v873_v63 = vsel %vm808_vm3, %v871_v50, %v872_v41  ;;  %v1535_v50 = vrot.slane %v17201_v53, 2 }
  0x92   : > { %1746 = vrot.lane.b32.xlu0 %v1499_v0, %s23609_s22  ;;  %v902_v0 = vrot.slane %v17201_v53, 1 }
  0x95   : > { %1087 = vrot.lane.b32.xlu1 %v838_v1, %s23607_s21 }
  0x96   : > { %1085 = vrot.lane.b32.xlu0 %v839_v14, %s23607_s21 }
  0x97   : > { %v1090_v20 = vpop.permute.xlu1 %1089 }
  0x98   : > { %v1058_v22 = vpop.permute.xlu0 %1057 }
  0x99   : > { %v2075_v24 = vsel %vm2074_vm5, %v16906_v6, %v1058_v22  ;;  %1718 = vrot.lane.b32.xlu1 %v1472_v19, %s23609_s22  ;;  %v17229_v19 = vld [vmem:[%s16891_s29 + $0x190] sm:$0xff]  ;;  %v1506_v22 = vsel %vm1441_vm4, %v1504_v57, %v1505_v58 }
  0x9a   : > { %1117 = vrot.lane.b32.xlu0 %v870_v21, %s23607_s21  ;;  %v1538_v41 = vrot.slane %v17229_v19, 2 }
  0x9b   : > { %v1691_v25 = vpop.permute.xlu1 %1690 }
  0x9c   : > { %v1060_v33 = vpop.permute.xlu0 %1059  ;;  %v2204_v37 = vsel %vm2203_vm6, %v2075_v24, %v1691_v25  ;;  %v1507_v24 = vrot.slane %v17184_v32, 2  ;;  %v905_v25 = vrot.slane %v17229_v19, 1 }
  0x9d   : > { %v2076_v6 = vsel %vm2074_vm5, %v16911_v9, %v1060_v33  ;;  %1720 = vrot.lane.b32.xlu1 %v1471_v13, %s23609_s22  ;;  %14070 = vmatprep.mubr.msk.f32.mxu0 %vm2334_vm7, %v2204_v37  ;;  %v17204_v9 = vld [vmem:[%s16891_s29 + $0x188] sm:$0xff]  ;;  %v2091_v13 = vsel %vm2074_vm5, %v16900_v4, %v1090_v20 }
  0x9e   : > { %1119 = vrot.lane.b32.xlu0 %v869_v15, %s23607_s21  ;;  %v903_v1 = vrot.slane %v17204_v9, 1  ;;  %v1508_v37 = vsel %vm1441_vm4, %v1505_v58, %v1507_v24 }
  0x9f   : > { %v1693_v44 = vpop.permute.xlu1 %1692 }
  0xa0   : > { %v2205_v51 = vsel %vm2203_vm6, %v2076_v6, %v1693_v44  ;;  %v1092_v52 = vpop.permute.xlu0 %1091  ;;  %v904_v20 = vsel %vm808_vm3, %v902_v0, %v903_v1  ;;  %v1536_v6 = vrot.slane %v17204_v9, 2 }
  0xa1   : > { %v2092_v55 = vsel %vm2074_vm5, %v16903_v5, %v1092_v52  ;;  %1752 = vrot.lane.b32.xlu1 %v1502_v26, %s23609_s22  ;;  %14071 = vmatmul.mubr.msk.f32.vlgmr.msra.gmra.mrb[0].mxu0 %vm2334_vm7, %v2205_v51  ;;  %v17259_v51 = vld [vmem:[%s16891_s29 + $0x120] sm:$0xff] }
  0xa2   : > { %1750 = vrot.lane.b32.xlu0 %v1503_v45, %s23609_s22  ;;  %15483 = vmatpush3.bf16.msk.msra.mxu0 %vm16872_vm2, %v16870_v2  ;;  %v906_v45 = vsel %vm808_vm3, %v903_v1, %v905_v25  ;;  %v878_v58 = vrot.slane %v17259_v51, 1  ;;  %v1537_v0 = vsel %vm1441_vm4, %v1535_v50, %v1536_v6 }
  0xa3   : > { %v1725_v5 = vpop.permute.xlu1 %1724  ;;  %15492 = vmatprep.subr.msk.bf16.mxu0 %vm16872_vm2, %v16870_v2 }
  0xa4   : > { %v2221_v14 = vsel %vm2203_vm6, %v2092_v55, %v1725_v5  ;;  %v1723_v15 = vpop.permute.xlu0 %1722 }
  0xa5   : > { %1123 = vrot.lane.b32.xlu1 %v875_v56, %s23607_s21  ;;  %v2220_v21 = vsel %vm2203_vm6, %v2091_v13, %v1723_v15  ;;  %v1539_v56 = vsel %vm1441_vm4, %v1536_v6, %v1538_v41 }
  0xa6   : > { %1121 = vrot.lane.b32.xlu0 %v873_v63, %s23607_s21  ;;  %14098 = vmatprep.mubr.msk.f32.mxu1 %vm2334_vm7, %v2220_v21 }
  0xa7   : > { %14099 = vmatmul.mubr.msk.f32.vlgmr.msra.gmra.mrb[0].mxu1 %vm2334_vm7, %v2221_v14  ;;  %v1064_v4 = vpop.permute.xlu1 %1063  ;;  %v17275_v14 = vld [vmem:[%s16891_s29 + $0x198] sm:$0xff] }
  0xa8   : > { %v1062_v26 = vpop.permute.xlu0 %1061  ;;  %15489 = vmatpush3.bf16.msk.msra.mxu1 %vm16872_vm2, %v16870_v2  ;;  %v2078_v5 = vsel %vm2074_vm5, %v16940_v28, %v1064_v4 }
  0xa9   : > { %v2077_v33 = vsel %vm2074_vm5, %v16916_v12, %v1062_v26  ;;  %1754 = vrot.lane.b32.xlu1 %v1506_v22, %s23609_s22  ;;  %15498 = vmatprep.subr.msk.bf16.mxu1 %vm16872_vm2, %v16870_v2  ;;  %v17256_v12 = vld [vmem:[%s16891_s29 + $0x118] sm:$0xff] }
  0xaa   : > { %1153 = vrot.lane.b32.xlu0 %v904_v20, %s23607_s21  ;;  %v876_v57 = vrot.slane %v17256_v12, 1  ;;  %v1509_v21 = vrot.slane %v17256_v12, 2  ;;  %v907_v20 = vrot.slane %v17275_v14, 1 }
  0xab   : > { %v1695_v44 = vpop.permute.xlu1 %1694 }
  0xac   : > { %v2206_v52 = vsel %vm2203_vm6, %v2077_v33, %v1695_v44  ;;  %v1094_v55 = vpop.permute.xlu0 %1093  ;;  %v879_v28 = vsel %vm808_vm3, %v876_v57, %v878_v58  ;;  %v877_v4 = vsel %vm808_vm3, %v874_v43, %v876_v57  ;;  %v1510_v43 = vsel %vm1441_vm4, %v1507_v24, %v1509_v21 }
  0xad   : > { %1756 = vrot.lane.b32.xlu1 %v1508_v37, %s23609_s22  ;;  %14073 = vmatprep.mubr.msk.f32.mxu0 %vm2334_vm7, %v2206_v52  ;;  %v17294_v37 = vld [vmem:[%s16891_s29 + $0x1a0] sm:$0xff]  ;;  %v1511_v44 = vrot.slane %v17259_v51, 2 }
  0xae   : > { %1155 = vrot.lane.b32.xlu0 %v906_v45, %s23607_s21  ;;  %v908_v45 = vsel %vm808_vm3, %v905_v25, %v907_v20  ;;  %v909_v50 = vrot.slane %v17294_v37, 1  ;;  %v1542_v57 = vrot.slane %v17294_v37, 2  ;;  %v17314_v25 = vld [vmem:[%s16891_s29 + $0x128] sm:$0xff] }
  0xaf   : > { %v1697_v63 = vpop.permute.xlu1 %1696  ;;  %v1512_v24 = vsel %vm1441_vm4, %v1509_v21, %v1511_v44 }
  0xb0   : > { %v2207_v1 = vsel %vm2203_vm6, %v2078_v5, %v1697_v63  ;;  %v1096_v13 = vpop.permute.xlu0 %1095  ;;  %v910_v63 = vsel %vm808_vm3, %v907_v20, %v909_v50 }
  0xb1   : > { %v2094_v15 = vsel %vm2074_vm5, %v16952_v34, %v1096_v13  ;;  %1788 = vrot.lane.b32.xlu1 %v1539_v56, %s23609_s22  ;;  %14074 = vmatmul.mubr.msk.f32.gmra.mrb[2].mxu0 %vm2334_vm7, %v2207_v1  ;;  %v2093_v34 = vsel %vm2074_vm5, %v16923_v17, %v1094_v55  ;;  %v1540_v56 = vrot.slane %v17275_v14, 2 }
  0xb2   : > { %1786 = vrot.lane.b32.xlu0 %v1537_v0, %s23609_s22  ;;  %v17317_v0 = vld [vmem:[%s16891_s29 + $0x130] sm:$0xff] }
  0xb3   : > { %v1729_v22 = vpop.permute.xlu1 %1728  ;;  %v1543_v13 = vsel %vm1441_vm4, %v1540_v56, %v1542_v57 }
  0xb4   : > { %v2223_v26 = vsel %vm2203_vm6, %v2094_v15, %v1729_v22  ;;  %v1727_v33 = vpop.permute.xlu0 %1726  ;;  %v880_v15 = vrot.slane %v17314_v25, 1 }
  0xb5   : > { %v2222_v6 = vsel %vm2203_vm6, %v2093_v34, %v1727_v33  ;;  %1127 = vrot.lane.b32.xlu1 %v879_v28, %s23607_s21  ;;  %v882_v28 = vrot.slane %v17317_v0, 1 }
  0xb6   : > { %1125 = vrot.lane.b32.xlu0 %v877_v4, %s23607_s21  ;;  %14101 = vmatprep.mubr.msk.f32.mxu1 %vm2334_vm7, %v2222_v6  ;;  %v1541_v4 = vsel %vm1441_vm4, %v1538_v41, %v1540_v56  ;;  %v1513_v41 = vrot.slane %v17314_v25, 2  ;;  %v1515_v56 = vrot.slane %v17317_v0, 2 }
  0xb7   : > { %14102 = vmatmul.mubr.msk.f32.gmra.mrb[2].mxu1 %vm2334_vm7, %v2223_v26  ;;  %v1068_v17 = vpop.permute.xlu1 %1067  ;;  %v17335_v26 = vld [vmem:[%s16891_s29 + $0x1a8] sm:$0xff] }
  0xb8   : > { %v1066_v52 = vpop.permute.xlu0 %1065  ;;  %v2080_v21 = vsel %vm2074_vm5, %v16976_v48, %v1068_v17  ;;  %v883_v48 = vsel %vm808_vm3, %v880_v15, %v882_v28  ;;  %v911_v17 = vrot.slane %v17335_v26, 1 }
  0xb9   : > { %v2079_v55 = vsel %vm2074_vm5, %v16943_v29, %v1066_v52  ;;  %1758 = vrot.lane.b32.xlu1 %v1510_v43, %s23609_s22  ;;  %v881_v43 = vsel %vm808_vm3, %v878_v58, %v880_v15  ;;  %v1514_v58 = vsel %vm1441_vm4, %v1511_v44, %v1513_v41  ;;  %v1516_v44 = vsel %vm1441_vm4, %v1513_v41, %v1515_v56 }
  0xba   : > { %1157 = vrot.lane.b32.xlu0 %v908_v45, %s23607_s21 }
  0xbb   : > { %v1699_v5 = vpop.permute.xlu1 %1698 }
  0xbc   : > { %v2208_v29 = vsel %vm2203_vm6, %v2079_v55, %v1699_v5  ;;  %v1098_v1 = vpop.permute.xlu0 %1097  ;;  %v17354_v55 = vld [vmem:[%s16891_s29 + $0x1b0] sm:$0xff]  ;;  %v912_v5 = vsel %vm808_vm3, %v909_v50, %v911_v17  ;;  %v17374_v50 = vld [vmem:[%s16891_s29 + $0x138] sm:$0xff] }
  0xbd   : > { %1760 = vrot.lane.b32.xlu1 %v1512_v24, %s23609_s22  ;;  %14076 = vmatprep.mubr.msk.f32.mxu0 %vm2334_vm7, %v2208_v29  ;;  %v1546_v15 = vrot.slane %v17354_v55, 2 }
  0xbe   : > { %1159 = vrot.lane.b32.xlu0 %v910_v63, %s23607_s21  ;;  %v913_v63 = vrot.slane %v17354_v55, 1 }
  0xbf   : > { %v1701_v22 = vpop.permute.xlu1 %1700 }
  0xc0   : > { %v2209_v20 = vsel %vm2203_vm6, %v2080_v21, %v1701_v22  ;;  %v1100_v34 = vpop.permute.xlu0 %1099  ;;  %v914_v22 = vsel %vm808_vm3, %v911_v17, %v913_v63 }
  0xc1   : > { %v2096_v33 = vsel %vm2074_vm5, %v16988_v54, %v1100_v34  ;;  %1792 = vrot.lane.b32.xlu1 %v1543_v13, %s23609_s22  ;;  %14077 = vmatmul.mubr.msk.f32.gmra.mrb[4].mxu0 %vm2334_vm7, %v2209_v20  ;;  %v2095_v54 = vsel %vm2074_vm5, %v16961_v39, %v1098_v1  ;;  %v1544_v13 = vrot.slane %v17335_v26, 2 }
  0xc2   : > { %1790 = vrot.lane.b32.xlu0 %v1541_v4, %s23609_s22  ;;  %v17377_v4 = vld [vmem:[%s16891_s29 + $0x140] sm:$0xff] }
  0xc3   : > { %v1733_v6 = vpop.permute.xlu1 %1732  ;;  %v1547_v34 = vsel %vm1441_vm4, %v1544_v13, %v1546_v15 }
  0xc4   : > { %v2225_v45 = vsel %vm2203_vm6, %v2096_v33, %v1733_v6  ;;  %v1731_v52 = vpop.permute.xlu0 %1730  ;;  %v884_v33 = vrot.slane %v17374_v50, 1 }
  0xc5   : > { %v2224_v24 = vsel %vm2203_vm6, %v2095_v54, %v1731_v52  ;;  %1131 = vrot.lane.b32.xlu1 %v883_v48, %s23607_s21  ;;  %v886_v48 = vrot.slane %v17377_v4, 1 }
  0xc6   : > { %1129 = vrot.lane.b32.xlu0 %v881_v43, %s23607_s21  ;;  %14104 = vmatprep.mubr.msk.f32.mxu1 %vm2334_vm7, %v2224_v24  ;;  %v1545_v43 = vsel %vm1441_vm4, %v1542_v57, %v1544_v13  ;;  %v1517_v57 = vrot.slane %v17374_v50, 2  ;;  %v1519_v13 = vrot.slane %v17377_v4, 2 }
  0xc7   : > { %14105 = vmatmul.mubr.msk.f32.gmra.mrb[4].mxu1 %vm2334_vm7, %v2225_v45  ;;  %v1072_v39 = vpop.permute.xlu1 %1071  ;;  %v17395_v45 = vld [vmem:[%s16891_s29 + $0x1b8] sm:$0xff] }
  0xc8   : > { %v1070_v29 = vpop.permute.xlu0 %1069  ;;  %v2082_v41 = vsel %vm2074_vm5, %v17012_v10, %v1072_v39  ;;  %v887_v10 = vsel %vm808_vm3, %v884_v33, %v886_v48  ;;  %v915_v39 = vrot.slane %v17395_v45, 1 }
  0xc9   : > { %v2081_v1 = vsel %vm2074_vm5, %v16979_v49, %v1070_v29  ;;  %1762 = vrot.lane.b32.xlu1 %v1514_v58, %s23609_s22  ;;  %v885_v58 = vsel %vm808_vm3, %v882_v28, %v884_v33  ;;  %v1518_v28 = vsel %vm1441_vm4, %v1515_v56, %v1517_v57  ;;  %v1520_v56 = vsel %vm1441_vm4, %v1517_v57, %v1519_v13 }
  0xca   : > { %1161 = vrot.lane.b32.xlu0 %v912_v5, %s23607_s21 }
  0xcb   : > { %v1703_v21 = vpop.permute.xlu1 %1702 }
  0xcc   : > { %v2210_v49 = vsel %vm2203_vm6, %v2081_v1, %v1703_v21  ;;  %v1102_v20 = vpop.permute.xlu0 %1101  ;;  %v17414_v1 = vld [vmem:[%s16891_s29 + $0x1c0] sm:$0xff]  ;;  %v916_v21 = vsel %vm808_vm3, %v913_v63, %v915_v39  ;;  %v17434_v63 = vld [vmem:[%s16891_s29 + $0x148] sm:$0xff] }
  0xcd   : > { %1764 = vrot.lane.b32.xlu1 %v1516_v44, %s23609_s22  ;;  %14079 = vmatprep.mubr.msk.f32.mxu0 %vm2334_vm7, %v2210_v49  ;;  %v1550_v33 = vrot.slane %v17414_v1, 2 }
  0xce   : > { %1163 = vrot.lane.b32.xlu0 %v914_v22, %s23607_s21  ;;  %v917_v22 = vrot.slane %v17414_v1, 1 }
  0xcf   : > { %v1705_v6 = vpop.permute.xlu1 %1704 }
  0xd0   : > { %v2211_v17 = vsel %vm2203_vm6, %v2082_v41, %v1705_v6  ;;  %v1104_v54 = vpop.permute.xlu0 %1103  ;;  %v918_v6 = vsel %vm808_vm3, %v915_v39, %v917_v22 }
  0xd1   : > { %v2098_v52 = vsel %vm2074_vm5, %v17024_v18, %v1104_v54  ;;  %1796 = vrot.lane.b32.xlu1 %v1547_v34, %s23609_s22  ;;  %14080 = vmatmul.mubr.msk.f32.gmra.mrb[6].mxu0 %vm2334_vm7, %v2211_v17  ;;  %v2097_v18 = vsel %vm2074_vm5, %v16997_v59, %v1102_v20  ;;  %v1548_v34 = vrot.slane %v17395_v45, 2 }
  0xd2   : > { %1794 = vrot.lane.b32.xlu0 %v1545_v43, %s23609_s22  ;;  %v17437_v43 = vld [vmem:[%s16891_s29 + $0x150] sm:$0xff] }
  0xd3   : > { %v1737_v24 = vpop.permute.xlu1 %1736  ;;  %v1551_v54 = vsel %vm1441_vm4, %v1548_v34, %v1550_v33 }
  0xd4   : > { %v2227_v5 = vsel %vm2203_vm6, %v2098_v52, %v1737_v24  ;;  %v1735_v29 = vpop.permute.xlu0 %1734  ;;  %v888_v52 = vrot.slane %v17434_v63, 1 }
  0xd5   : > { %v2226_v44 = vsel %vm2203_vm6, %v2097_v18, %v1735_v29  ;;  %1135 = vrot.lane.b32.xlu1 %v887_v10, %s23607_s21  ;;  %v890_v10 = vrot.slane %v17437_v43, 1 }
  0xd6   : > { %1133 = vrot.lane.b32.xlu0 %v885_v58, %s23607_s21  ;;  %14107 = vmatprep.mubr.msk.f32.mxu1 %vm2334_vm7, %v2226_v44  ;;  %v1549_v58 = vsel %vm1441_vm4, %v1546_v15, %v1548_v34  ;;  %v1521_v15 = vrot.slane %v17434_v63, 2  ;;  %v1523_v34 = vrot.slane %v17437_v43, 2 }
  0xd7   : > { %14108 = vmatmul.mubr.msk.f32.gmra.mrb[6].mxu1 %vm2334_vm7, %v2227_v5  ;;  %v1076_v59 = vpop.permute.xlu1 %1075  ;;  %v17455_v5 = vld [vmem:[%s16891_s29 + $0x1c8] sm:$0xff] }
  0xd8   : > { %v1074_v49 = vpop.permute.xlu0 %1073  ;;  %v2084_v57 = vsel %vm2074_vm5, %v17048_v35, %v1076_v59  ;;  %v891_v35 = vsel %vm808_vm3, %v888_v52, %v890_v10  ;;  %v919_v59 = vrot.slane %v17455_v5, 1 }
  0xd9   : > { %v2083_v20 = vsel %vm2074_vm5, %v17015_v11, %v1074_v49  ;;  %1766 = vrot.lane.b32.xlu1 %v1518_v28, %s23609_s22  ;;  %v889_v28 = vsel %vm808_vm3, %v886_v48, %v888_v52  ;;  %v1522_v48 = vsel %vm1441_vm4, %v1519_v13, %v1521_v15  ;;  %v1524_v13 = vsel %vm1441_vm4, %v1521_v15, %v1523_v34 }
  0xda   : > { %1165 = vrot.lane.b32.xlu0 %v916_v21, %s23607_s21 }
  0xdb   : > { %v1707_v41 = vpop.permute.xlu1 %1706 }
  0xdc   : > { %v2212_v11 = vsel %vm2203_vm6, %v2083_v20, %v1707_v41  ;;  %v1106_v17 = vpop.permute.xlu0 %1105  ;;  %v17474_v20 = vld [vmem:[%s16891_s29 + $0x1d0] sm:$0xff]  ;;  %v920_v41 = vsel %vm808_vm3, %v917_v22, %v919_v59  ;;  %v17494_v22 = vld [vmem:[%s16891_s29 + $0x158] sm:$0xff] }
  0xdd   : > { %1768 = vrot.lane.b32.xlu1 %v1520_v56, %s23609_s22  ;;  %14082 = vmatprep.mubr.msk.f32.mxu0 %vm2334_vm7, %v2212_v11  ;;  %v1554_v52 = vrot.slane %v17474_v20, 2 }
  0xde   : > { %1167 = vrot.lane.b32.xlu0 %v918_v6, %s23607_s21  ;;  %v921_v6 = vrot.slane %v17474_v20, 1 }
  0xdf   : > { %v1709_v24 = vpop.permute.xlu1 %1708 }
  0xe0   : > { %v2213_v39 = vsel %vm2203_vm6, %v2084_v57, %v1709_v24  ;;  %v1108_v18 = vpop.permute.xlu0 %1107  ;;  %v922_v24 = vsel %vm808_vm3, %v919_v59, %v921_v6 }
  0xe1   : > { %v2100_v29 = vsel %vm2074_vm5, %v17060_v42, %v1108_v18  ;;  %1800 = vrot.lane.b32.xlu1 %v1551_v54, %s23609_s22  ;;  %14083 = vmatmul.mubr.msk.f32.gmra.mrb[8].mxu0 %vm2334_vm7, %v2213_v39  ;;  %v2099_v42 = vsel %vm2074_vm5, %v17033_v23, %v1106_v17  ;;  %v1552_v54 = vrot.slane %v17455_v5, 2 }
  0xe2   : > { %1798 = vrot.lane.b32.xlu0 %v1549_v58, %s23609_s22  ;;  %v17497_v58 = vld [vmem:[%s16891_s29 + $0x160] sm:$0xff] }
  0xe3   : > { %v1741_v44 = vpop.permute.xlu1 %1740  ;;  %v1555_v18 = vsel %vm1441_vm4, %v1552_v54, %v1554_v52 }
  0xe4   : > { %v2229_v21 = vsel %vm2203_vm6, %v2100_v29, %v1741_v44  ;;  %v1739_v49 = vpop.permute.xlu0 %1738  ;;  %v892_v29 = vrot.slane %v17494_v22, 1 }
  0xe5   : > { %v2228_v56 = vsel %vm2203_vm6, %v2099_v42, %v1739_v49  ;;  %1139 = vrot.lane.b32.xlu1 %v891_v35, %s23607_s21  ;;  %v894_v35 = vrot.slane %v17497_v58, 1 }
  0xe6   : > { %1137 = vrot.lane.b32.xlu0 %v889_v28, %s23607_s21  ;;  %14110 = vmatprep.mubr.msk.f32.mxu1 %vm2334_vm7, %v2228_v56  ;;  %v1553_v28 = vsel %vm1441_vm4, %v1550_v33, %v1552_v54  ;;  %v1525_v33 = vrot.slane %v17494_v22, 2  ;;  %v1527_v54 = vrot.slane %v17497_v58, 2 }
  0xe7   : > { %14111 = vmatmul.mubr.msk.f32.gmra.mrb[8].mxu1 %vm2334_vm7, %v2229_v21  ;;  %v1080_v23 = vpop.permute.xlu1 %1079  ;;  %v17515_v21 = vld [vmem:[%s16891_s29 + $0x1d8] sm:$0xff] }
  0xe8   : > { %v1078_v11 = vpop.permute.xlu0 %1077  ;;  %v2086_v15 = vsel %vm2074_vm5, %v17084_v60, %v1080_v23  ;;  %v895_v60 = vsel %vm808_vm3, %v892_v29, %v894_v35  ;;  %v923_v23 = vrot.slane %v17515_v21, 1 }
  0xe9   : > { %v2085_v17 = vsel %vm2074_vm5, %v17051_v36, %v1078_v11  ;;  %1770 = vrot.lane.b32.xlu1 %v1522_v48, %s23609_s22  ;;  %v893_v48 = vsel %vm808_vm3, %v890_v10, %v892_v29  ;;  %v1526_v10 = vsel %vm1441_vm4, %v1523_v34, %v1525_v33  ;;  %v1528_v34 = vsel %vm1441_vm4, %v1525_v33, %v1527_v54 }
  0xea   : > { %1169 = vrot.lane.b32.xlu0 %v920_v41, %s23607_s21 }
  0xeb   : > { %v1711_v57 = vpop.permute.xlu1 %1710 }
  0xec   : > { %v2214_v36 = vsel %vm2203_vm6, %v2085_v17, %v1711_v57  ;;  %v1110_v39 = vpop.permute.xlu0 %1109  ;;  %v17534_v17 = vld [vmem:[%s16891_s29 + $0x1e0] sm:$0xff]  ;;  %v924_v57 = vsel %vm808_vm3, %v921_v6, %v923_v23  ;;  %v17554_v6 = vld [vmem:[%s16891_s29 + $0x168] sm:$0xff] }
  0xed   : > { %1772 = vrot.lane.b32.xlu1 %v1524_v13, %s23609_s22  ;;  %14085 = vmatprep.mubr.msk.f32.mxu0 %vm2334_vm7, %v2214_v36  ;;  %v1558_v29 = vrot.slane %v17534_v17, 2 }
  0xee   : > { %1171 = vrot.lane.b32.xlu0 %v922_v24, %s23607_s21  ;;  %v925_v24 = vrot.slane %v17534_v17, 1 }
  0xef   : > { %v1713_v44 = vpop.permute.xlu1 %1712 }
  0xf0   : > { %v2215_v59 = vsel %vm2203_vm6, %v2086_v15, %v1713_v44  ;;  %v1112_v42 = vpop.permute.xlu0 %1111  ;;  %v926_v44 = vsel %vm808_vm3, %v923_v23, %v925_v24 }
  0xf1   : > { %v2102_v49 = vsel %vm2074_vm5, %v17096_v7, %v1112_v42  ;;  %1804 = vrot.lane.b32.xlu1 %v1555_v18, %s23609_s22  ;;  %14086 = vmatmul.mubr.msk.f32.gmra.mrb[10].mxu0 %vm2334_vm7, %v2215_v59  ;;  %v2101_v7 = vsel %vm2074_vm5, %v17069_v47, %v1110_v39  ;;  %v1556_v18 = vrot.slane %v17515_v21, 2 }
  0xf2   : > { %1802 = vrot.lane.b32.xlu0 %v1553_v28, %s23609_s22  ;;  %v17557_v28 = vld [vmem:[%s16891_s29 + $0x170] sm:$0xff] }
  0xf3   : > { %v1745_v56 = vpop.permute.xlu1 %1744  ;;  %v1559_v42 = vsel %vm1441_vm4, %v1556_v18, %v1558_v29 }
  0xf4   : > { %v2231_v41 = vsel %vm2203_vm6, %v2102_v49, %v1745_v56  ;;  %v1743_v11 = vpop.permute.xlu0 %1742  ;;  %v896_v49 = vrot.slane %v17554_v6, 1 }
  0xf5   : > { %v2230_v13 = vsel %vm2203_vm6, %v2101_v7, %v1743_v11  ;;  %1143 = vrot.lane.b32.xlu1 %v895_v60, %s23607_s21  ;;  %v898_v60 = vrot.slane %v17557_v28, 1 }
  0xf6   : > { %1141 = vrot.lane.b32.xlu0 %v893_v48, %s23607_s21  ;;  %14113 = vmatprep.mubr.msk.f32.mxu1 %vm2334_vm7, %v2230_v13  ;;  %v1557_v48 = vsel %vm1441_vm4, %v1554_v52, %v1556_v18  ;;  %v1529_v13 = vrot.slane %v17554_v6, 2  ;;  %v1531_v18 = vrot.slane %v17557_v28, 2 }
  0xf7   : > { %14114 = vmatmul.mubr.msk.f32.gmra.mrb[10].mxu1 %vm2334_vm7, %v2231_v41  ;;  %v1084_v47 = vpop.permute.xlu1 %1083  ;;  %v17573_v41 = vld [vmem:[%s16891_s29 + $0x1e8] sm:$0xff] }
  0xf8   : > { %v1082_v36 = vpop.permute.xlu0 %1081  ;;  %v2088_v33 = vsel %vm2074_vm5, %v17120_v30, %v1084_v47  ;;  %v899_v30 = vsel %vm808_vm3, %v896_v49, %v898_v60  ;;  %v927_v47 = vrot.slane %v17573_v41, 1 }
  0xf9   : > { %v2087_v39 = vsel %vm2074_vm5, %v17087_v61, %v1082_v36  ;;  %1774 = vrot.lane.b32.xlu1 %v1526_v10, %s23609_s22  ;;  %v897_v10 = vsel %vm808_vm3, %v894_v35, %v896_v49  ;;  %v1530_v35 = vsel %vm1441_vm4, %v1527_v54, %v1529_v13  ;;  %v1532_v54 = vsel %vm1441_vm4, %v1529_v13, %v1531_v18 }
  0xfa   : > { %1173 = vrot.lane.b32.xlu0 %v924_v57, %s23607_s21 }
  0xfb   : > { %v1715_v15 = vpop.permute.xlu1 %1714 }
  0xfc   : > { %v2216_v61 = vsel %vm2203_vm6, %v2087_v39, %v1715_v15  ;;  %v1114_v59 = vpop.permute.xlu0 %1113  ;;  %v17590_v39 = vld [vmem:[%s16891_s29 + $0x1f0] sm:$0xff]  ;;  %v928_v15 = vsel %vm808_vm3, %v925_v24, %v927_v47 }
  0xfd   : > { %1776 = vrot.lane.b32.xlu1 %v1528_v34, %s23609_s22  ;;  %14088 = vmatprep.mubr.msk.f32.mxu0 %vm2334_vm7, %v2216_v61  ;;  %v1562_v49 = vrot.slane %v17590_v39, 2 }
  0xfe   : > { %1175 = vrot.lane.b32.xlu0 %v926_v44, %s23607_s21  ;;  %v929_v44 = vrot.slane %v17590_v39, 1 }
  0xff   : > { %v1717_v56 = vpop.permute.xlu1 %1716 }
 0x100   : > { %v2217_v23 = vsel %vm2203_vm6, %v2088_v33, %v1717_v56  ;;  %v1116_v7 = vpop.permute.xlu0 %1115  ;;  %v930_v24 = vsel %vm808_vm3, %v927_v47, %v929_v44  ;;  %v17623_v47 = vld [vmem:[%s16891_s29 + $0x1f8] sm:$0xff] }
 0x101   : > { %v2104_v11 = vsel %vm2074_vm5, %v17132_v40, %v1116_v7  ;;  %1808 = vrot.lane.b32.xlu1 %v1559_v42, %s23609_s22  ;;  %14089 = vmatmul.mubr.msk.f32.gmra.mrb[12].mxu0 %vm2334_vm7, %v2217_v23  ;;  %v2103_v40 = vsel %vm2074_vm5, %v17105_v16, %v1114_v59  ;;  %v1560_v42 = vrot.slane %v17573_v41, 2  ;;  %v17611_v23 = vld [vmem:[%s16891_s29 + $0x178] sm:$0xff] }
 0x102   : > { %1806 = vrot.lane.b32.xlu0 %v1557_v48, %s23609_s22  ;;  %v900_v13 = vrot.slane %v17611_v23, 1 }
 0x103   : > { %v1749_v52 = vpop.permute.xlu1 %1748 }
 0x104   : > { %v2233_v57 = vsel %vm2203_vm6, %v2104_v11, %v1749_v52  ;;  %v1747_v36 = vpop.permute.xlu0 %1746 }
 0x105   : > { %v2232_v34 = vsel %vm2203_vm6, %v2103_v40, %v1747_v36  ;;  %1147 = vrot.lane.b32.xlu1 %v899_v30, %s23607_s21  ;;  %v1561_v30 = vsel %vm1441_vm4, %v1558_v29, %v1560_v42  ;;  %v901_v29 = vsel %vm808_vm3, %v898_v60, %v900_v13  ;;  %v931_v36 = vrot.slane %v17623_v47, 1 }
 0x106   : > { %1145 = vrot.lane.b32.xlu0 %v897_v10, %s23607_s21  ;;  %14116 = vmatprep.mubr.msk.f32.mxu1 %vm2334_vm7, %v2232_v34 }
 0x107   : > { %14117 = vmatmul.mubr.msk.f32.gmra.mrb[12].mxu1 %vm2334_vm7, %v2233_v57  ;;  %v1088_v16 = vpop.permute.xlu1 %1087 }
 0x108   : > { %v1086_v61 = vpop.permute.xlu0 %1085  ;;  %v2090_v7 = vsel %vm2074_vm5, %v17156_v62, %v1088_v16  ;;  %v1533_v62 = vrot.slane %v17611_v23, 2 }
 0x109   : > { %v2089_v59 = vsel %vm2074_vm5, %v17123_v31, %v1086_v61  ;;  %1778 = vrot.lane.b32.xlu1 %v1530_v35, %s23609_s22  ;;  %v1563_v31 = vsel %vm1441_vm4, %v1560_v42, %v1562_v49  ;;  %v1564_v42 = vrot.slane %v17623_v47, 2 }
 0x10a   : > { %1177 = vrot.lane.b32.xlu0 %v928_v15, %s23607_s21  ;;  %v1534_v60 = vsel %vm1441_vm4, %v1531_v18, %v1533_v62  ;;  %v17652_v18 = vld [vmem:[%s16891_s29 + $0x210] sm:$0xff] }
 0x10b   : > { %v1719_v33 = vpop.permute.xlu1 %1718 }
 0x10c   : > { %v2218_v56 = vsel %vm2203_vm6, %v2089_v59, %v1719_v33  ;;  %v1118_v48 = vpop.permute.xlu0 %1117  ;;  %v17649_v33 = vld [vmem:[%s16891_s29 + $0x208] sm:$0xff] }
 0x10d   : > { %1780 = vrot.lane.b32.xlu1 %v1532_v54, %s23609_s22  ;;  %14091 = vmatprep.mubr.msk.f32.mxu0 %vm2334_vm7, %v2218_v56  ;;  %v2105_v34 = vsel %vm2074_vm5, %v17141_v46, %v1118_v48  ;;  %v932_v46 = vsel %vm808_vm3, %v929_v44, %v931_v36  ;;  %v17656_v56 = vld [vmem:[%s16891_s29 + $0x200] sm:$0xff]  ;;  %v936_v48 = vrot.slane %v17652_v18, 1 }
 0x10e   : > { %1179 = vrot.lane.b32.xlu0 %v930_v24, %s23607_s21 }
 0x10f   : > { %v1721_v11 = vpop.permute.xlu1 %1720 }
 0x110   : > { %v2219_v52 = vsel %vm2203_vm6, %v2090_v7, %v1721_v11  ;;  %v1120_v10 = vpop.permute.xlu0 %1119  ;;  %v1565_v11 = vsel %vm1441_vm4, %v1562_v49, %v1564_v42  ;;  %v1566_v49 = vrot.slane %v17656_v56, 2 }
 0x111   : > { %v2106_v40 = vsel %vm2074_vm5, %v17164_v8, %v1120_v10  ;;  %1812 = vrot.lane.b32.xlu1 %v1563_v31, %s23609_s22  ;;  %14092 = vmatmul.mubr.msk.f32.gmra.mrb[14].mxu0 %vm2334_vm7, %v2219_v52  ;;  %v17669_v10 = vld [vmem:[%s16891_s29 + $0x280] sm:$0xff] }
 0x112   : > { %1810 = vrot.lane.b32.xlu0 %v1561_v30, %s23609_s22  ;;  %v933_v30 = vrot.slane %v17656_v56, 1 }
 0x113   : > { %v1753_v57 = vpop.permute.xlu1 %1752 }
 0x114   : > { %v2235_v35 = vsel %vm2203_vm6, %v2106_v40, %v1753_v57  ;;  %v1751_v8 = vpop.permute.xlu0 %1750  ;;  %v17672_v40 = vld [vmem:[%s16891_s29 + $0x288] sm:$0xff]  ;;  %v1567_v57 = vrot.slane %v17649_v33, 2 }
 0x115   : > { %v2234_v16 = vsel %vm2203_vm6, %v2105_v34, %v1751_v8  ;;  %1151 = vrot.lane.b32.xlu1 %v900_v13, %s23607_s21  ;;  %v965_v34 = vrot.slane %v17672_v40, 1 }
 0x116   : > { %1149 = vrot.lane.b32.xlu0 %v901_v29, %s23607_s21  ;;  %14119 = vmatprep.mubr.msk.f32.mxu1 %vm2334_vm7, %v2234_v16 }
 0x117   : > { %14120 = vmatmul.mubr.msk.f32.gmra.mrb[14].mxu1 %vm2334_vm7, %v2235_v35  ;;  %v1124_v15 = vpop.permute.xlu1 %1123 }
 0x118   : > { %v1122_v61 = vpop.permute.xlu0 %1121  ;;  %v2108_v31 = vsel %vm2074_vm5, %v17181_v27, %v1124_v15 }
 0x119   : > { %v2107_v59 = vsel %vm2074_vm5, %v17188_v38, %v1122_v61  ;;  %1782 = vrot.lane.b32.xlu1 %v1534_v60, %s23609_s22  ;;  %v934_v38 = vrot.slane %v17649_v33, 1  ;;  %v17697_v60 = vld [vmem:[%s16891_s29 + $0x290] sm:$0xff]  ;;  %v1569_v61 = vrot.slane %v17652_v18, 2 }
 0x11a   : > { %1181 = vrot.lane.b32.xlu0 %v932_v46, %s23607_s21  ;;  %v1568_v46 = vsel %vm1441_vm4, %v1566_v49, %v1567_v57 }
 0x11b   : > { %v1755_v54 = vpop.permute.xlu1 %1754  ;;  %v937_v27 = vsel %vm808_vm3, %v934_v38, %v936_v48  ;;  %v935_v29 = vsel %vm808_vm3, %v933_v30, %v934_v38  ;;  %v1598_v38 = vrot.slane %v17672_v40, 2  ;;  %v1597_v30 = vrot.slane %v17669_v10, 2 }
 0x11c   : > { %v2236_v24 = vsel %vm2203_vm6, %v2107_v59, %v1755_v54  ;;  %v1154_v44 = vpop.permute.xlu0 %1153  ;;  %v967_v54 = vrot.slane %v17697_v60, 1 }
 0x11d   : > { %1784 = vrot.lane.b32.xlu1 %v1533_v62, %s23609_s22  ;;  %14126 = vmatprep.mubr.msk.f32.mxu0 %vm2334_vm7, %v2236_v24  ;;  %v2123_v35 = vsel %vm2074_vm5, %v17201_v53, %v1154_v44  ;;  %v1570_v44 = vsel %vm1441_vm4, %v1567_v57, %v1569_v61 }
 0x11e   : > { %1183 = vrot.lane.b32.xlu0 %v931_v36, %s23607_s21  ;;  %v964_v36 = vrot.slane %v17669_v10, 1 }
 0x11f   : > { %v1757_v7 = vpop.permute.xlu1 %1756 }
 0x120   : > { %v2237_v13 = vsel %vm2203_vm6, %v2108_v31, %v1757_v7  ;;  %v1156_v52 = vpop.permute.xlu0 %1155  ;;  %v966_v59 = vsel %vm808_vm3, %v964_v36, %v965_v34  ;;  %v1600_v31 = vrot.slane %v17697_v60, 2  ;;  %v1599_v36 = vsel %vm1441_vm4, %v1597_v30, %v1598_v38 }
 0x121   : > { %v2124_v62 = vsel %vm2074_vm5, %v17204_v9, %v1156_v52  ;;  %1816 = vrot.lane.b32.xlu1 %v1564_v42, %s23609_s22  ;;  %14127 = vmatmul.mubr.msk.f32.vlgmr.msra.gmra.mrb[16].mxu0 %vm2334_vm7, %v2237_v13  ;;  %v17727_v13 = vld [vmem:[%s16891_s29 + $0x220] sm:$0xff] }
 0x122   : > { %1814 = vrot.lane.b32.xlu0 %v1565_v11, %s23609_s22  ;;  %15495 = vmatpush3.bf16.msk.msra.mxu0 %vm16872_vm2, %v16870_v2  ;;  %v968_v11 = vsel %vm808_vm3, %v965_v34, %v967_v54  ;;  %v940_v57 = vrot.slane %v17727_v13, 1 }
 0x123   : > { %v1789_v9 = vpop.permute.xlu1 %1788  ;;  %15504 = vmatprep.subr.msk.bf16.mxu0 %vm16872_vm2, %v16870_v2 }
 0x124   : > { %v2253_v8 = vsel %vm2203_vm6, %v2124_v62, %v1789_v9  ;;  %v1787_v16 = vpop.permute.xlu0 %1786 }
 0x125   : > { %v2252_v15 = vsel %vm2203_vm6, %v2123_v35, %v1787_v16  ;;  %1187 = vrot.lane.b32.xlu1 %v937_v27, %s23607_s21  ;;  %v1601_v27 = vsel %vm1441_vm4, %v1598_v38, %v1600_v31 }
 0x126   : > { %1185 = vrot.lane.b32.xlu0 %v935_v29, %s23607_s21  ;;  %14154 = vmatprep.mubr.msk.f32.mxu1 %vm2334_vm7, %v2252_v15 }
 0x127   : > { %14155 = vmatmul.mubr.msk.f32.vlgmr.msra.gmra.mrb[16].mxu1 %vm2334_vm7, %v2253_v8  ;;  %v1128_v53 = vpop.permute.xlu1 %1127  ;;  %v17743_v8 = vld [vmem:[%s16891_s29 + $0x298] sm:$0xff] }
 0x128   : > { %v1126_v42 = vpop.permute.xlu0 %1125  ;;  %15501 = vmatpush3.bf16.msk.msra.mxu1 %vm16872_vm2, %v16870_v2  ;;  %v2110_v9 = vsel %vm2074_vm5, %v17256_v12, %v1128_v53 }
 0x129   : > { %v2109_v24 = vsel %vm2074_vm5, %v17184_v32, %v1126_v42  ;;  %1818 = vrot.lane.b32.xlu1 %v1568_v46, %s23609_s22  ;;  %15510 = vmatprep.subr.msk.bf16.mxu1 %vm16872_vm2, %v16870_v2  ;;  %v17724_v32 = vld [vmem:[%s16891_s29 + $0x218] sm:$0xff] }
 0x12a   : > { %1217 = vrot.lane.b32.xlu0 %v966_v59, %s23607_s21  ;;  %v938_v49 = vrot.slane %v17724_v32, 1  ;;  %v1571_v15 = vrot.slane %v17724_v32, 2  ;;  %v969_v59 = vrot.slane %v17743_v8, 1 }
 0x12b   : > { %v1759_v7 = vpop.permute.xlu1 %1758 }
 0x12c   : > { %v2238_v52 = vsel %vm2203_vm6, %v2109_v24, %v1759_v7  ;;  %v1158_v62 = vpop.permute.xlu0 %1157  ;;  %v941_v12 = vsel %vm808_vm3, %v938_v49, %v940_v57  ;;  %v939_v53 = vsel %vm808_vm3, %v936_v48, %v938_v49  ;;  %v1572_v18 = vsel %vm1441_vm4, %v1569_v61, %v1571_v15 }
 0x12d   : > { %1820 = vrot.lane.b32.xlu1 %v1570_v44, %s23609_s22  ;;  %14129 = vmatprep.mubr.msk.f32.mxu0 %vm2334_vm7, %v2238_v52  ;;  %v17762_v44 = vld [vmem:[%s16891_s29 + $0x2a0] sm:$0xff]  ;;  %v1573_v48 = vrot.slane %v17727_v13, 2  ;;  %v970_v7 = vsel %vm808_vm3, %v967_v54, %v969_v59  ;;  %v621_v54 = vld [vmem:[%s16891_s29 + $0x228] sm:$0xff] }
 0x12e   : > { %1219 = vrot.lane.b32.xlu0 %v968_v11, %s23607_s21  ;;  %v971_v11 = vrot.slane %v17762_v44, 1  ;;  %v1575_v60 = vrot.slane %v621_v54, 2 }
 0x12f   : > { %v1761_v29 = vpop.permute.xlu1 %1760  ;;  %v1574_v61 = vsel %vm1441_vm4, %v1571_v15, %v1573_v48 }
 0x130   : > { %v2239_v34 = vsel %vm2203_vm6, %v2110_v9, %v1761_v29  ;;  %v1160_v35 = vpop.permute.xlu0 %1159  ;;  %v972_v9 = vsel %vm808_vm3, %v969_v59, %v971_v11  ;;  %v17783_v29 = vld [vmem:[%s16891_s29 + $0x230] sm:$0xff]  ;;  %v1576_v13 = vsel %vm1441_vm4, %v1573_v48, %v1575_v60 }
 0x131   : > { %v2126_v16 = vsel %vm2074_vm5, %v17275_v14, %v1160_v35  ;;  %1852 = vrot.lane.b32.xlu1 %v1601_v27, %s23609_s22  ;;  %14130 = vmatmul.mubr.msk.f32.gmra.mrb[18].mxu0 %vm2334_vm7, %v2239_v34  ;;  %v2125_v14 = vsel %vm2074_vm5, %v17229_v19, %v1158_v62  ;;  %v1602_v62 = vrot.slane %v17743_v8, 2  ;;  %v1604_v27 = vrot.slane %v17762_v44, 2 }
 0x132   : > { %1850 = vrot.lane.b32.xlu0 %v1599_v36, %s23609_s22  ;;  %v942_v35 = vrot.slane %v621_v54, 1 }
 0x133   : > { %v1793_v46 = vpop.permute.xlu1 %1792  ;;  %v1605_v34 = vsel %vm1441_vm4, %v1602_v62, %v1604_v27 }
 0x134   : > { %v2255_v42 = vsel %vm2203_vm6, %v2126_v16, %v1793_v46  ;;  %v1791_v24 = vpop.permute.xlu0 %1790  ;;  %v944_v16 = vrot.slane %v17783_v29, 1  ;;  %v1603_v46 = vsel %vm1441_vm4, %v1600_v31, %v1602_v62 }
 0x135   : > { %v2254_v38 = vsel %vm2203_vm6, %v2125_v14, %v1791_v24  ;;  %1191 = vrot.lane.b32.xlu1 %v941_v12, %s23607_s21  ;;  %v637_v14 = vld [vmem:[%s16891_s29 + $0x2a8] sm:$0xff]  ;;  %v943_v24 = vsel %vm808_vm3, %v940_v57, %v942_v35  ;;  %v1577_v57 = vrot.slane %v17783_v29, 2 }
 0x136   : > { %1189 = vrot.lane.b32.xlu0 %v939_v53, %s23607_s21  ;;  %14157 = vmatprep.mubr.msk.f32.mxu1 %vm2334_vm7, %v2254_v38  ;;  %v973_v38 = vrot.slane %v637_v14, 1 }
 0x137   : > { %14158 = vmatmul.mubr.msk.f32.gmra.mrb[18].mxu1 %vm2334_vm7, %v2255_v42  ;;  %v1132_v19 = vpop.permute.xlu1 %1131  ;;  %v1578_v48 = vsel %vm1441_vm4, %v1575_v60, %v1577_v57  ;;  %v639_v60 = vld [vmem:[%s16891_s29 + $0x2b8] sm:$0xff] }
 0x138   : > { %v1130_v30 = vpop.permute.xlu0 %1129  ;;  %v2112_v12 = vsel %vm2074_vm5, %v17314_v25, %v1132_v19  ;;  %v945_v25 = vsel %vm808_vm3, %v942_v35, %v944_v16 }
 0x139   : > { %v2111_v52 = vsel %vm2074_vm5, %v17259_v51, %v1130_v30  ;;  %1822 = vrot.lane.b32.xlu1 %v1572_v18, %s23609_s22 }
 0x13a   : > { %1221 = vrot.lane.b32.xlu0 %v970_v7, %s23607_s21  ;;  %v17815_v7 = vld [vmem:[%s16891_s29 + $0x2b0] sm:$0xff] }
 0x13b   : > { %v1763_v49 = vpop.permute.xlu1 %1762  ;;  %v1608_v54 = vrot.slane %v17815_v7, 2 }
 0x13c   : > { %v2240_v36 = vsel %vm2203_vm6, %v2111_v52, %v1763_v49  ;;  %v1162_v51 = vpop.permute.xlu0 %1161  ;;  %v974_v52 = vsel %vm808_vm3, %v971_v11, %v973_v38  ;;  %v623_v11 = vld [vmem:[%s16891_s29 + $0x238] sm:$0xff] }
 0x13d   : > { %1824 = vrot.lane.b32.xlu1 %v1574_v61, %s23609_s22  ;;  %14132 = vmatprep.mubr.msk.f32.mxu0 %vm2334_vm7, %v2240_v36  ;;  %v975_v61 = vrot.slane %v17815_v7, 1  ;;  %v1579_v44 = vrot.slane %v623_v11, 2 }
 0x13e   : > { %1223 = vrot.lane.b32.xlu0 %v972_v9, %s23607_s21  ;;  %v1606_v9 = vrot.slane %v637_v14, 2 }
 0x13f   : > { %v1765_v15 = vpop.permute.xlu1 %1764  ;;  %v1580_v29 = vsel %vm1441_vm4, %v1577_v57, %v1579_v44 }
 0x140   : > { %v2241_v53 = vsel %vm2203_vm6, %v2112_v12, %v1765_v15  ;;  %v1164_v59 = vpop.permute.xlu0 %1163  ;;  %v946_v15 = vrot.slane %v623_v11, 1  ;;  %v1607_v14 = vsel %vm1441_vm4, %v1604_v27, %v1606_v9 }
 0x141   : > { %v2128_v42 = vsel %vm2074_vm5, %v17335_v26, %v1164_v59  ;;  %1856 = vrot.lane.b32.xlu1 %v1605_v34, %s23609_s22  ;;  %14133 = vmatmul.mubr.msk.f32.gmra.mrb[20].mxu0 %vm2334_vm7, %v2241_v53  ;;  %v2127_v26 = vsel %vm2074_vm5, %v17294_v37, %v1162_v51  ;;  %v976_v51 = vsel %vm808_vm3, %v973_v38, %v975_v61  ;;  %v17835_v34 = vld [vmem:[%s16891_s29 + $0x240] sm:$0xff]  ;;  %v977_v38 = vrot.slane %v639_v60, 1 }
 0x142   : > { %1854 = vrot.lane.b32.xlu0 %v1603_v46, %s23609_s22  ;;  %v948_v46 = vrot.slane %v17835_v34, 1 }
 0x143   : > { %v1797_v31 = vpop.permute.xlu1 %1796 }
 0x144   : > { %v2257_v18 = vsel %vm2203_vm6, %v2128_v42, %v1797_v31  ;;  %v1795_v19 = vpop.permute.xlu0 %1794 }
 0x145   : > { %v2256_v30 = vsel %vm2203_vm6, %v2127_v26, %v1795_v19  ;;  %1195 = vrot.lane.b32.xlu1 %v945_v25, %s23607_s21  ;;  %v17867_v19 = vld [vmem:[%s16891_s29 + $0x2c0] sm:$0xff] }
 0x146   : > { %1193 = vrot.lane.b32.xlu0 %v943_v24, %s23607_s21  ;;  %14160 = vmatprep.mubr.msk.f32.mxu1 %vm2334_vm7, %v2256_v30  ;;  %v947_v24 = vsel %vm808_vm3, %v944_v16, %v946_v15  ;;  %v1581_v16 = vrot.slane %v17835_v34, 2 }
 0x147   : > { %14161 = vmatmul.mubr.msk.f32.gmra.mrb[20].mxu1 %vm2334_vm7, %v2257_v18  ;;  %v1136_v37 = vpop.permute.xlu1 %1135 }
 0x148   : > { %v1134_v62 = vpop.permute.xlu0 %1133  ;;  %v2114_v53 = vsel %vm2074_vm5, %v17374_v50, %v1136_v37  ;;  %v949_v50 = vsel %vm808_vm3, %v946_v15, %v948_v46  ;;  %v979_v37 = vrot.slane %v17867_v19, 1  ;;  %v1582_v57 = vsel %vm1441_vm4, %v1579_v44, %v1581_v16 }
 0x149   : > { %v2113_v49 = vsel %vm2074_vm5, %v17317_v0, %v1134_v62  ;;  %1826 = vrot.lane.b32.xlu1 %v1576_v13, %s23609_s22  ;;  %v1609_v0 = vsel %vm1441_vm4, %v1606_v9, %v1608_v54  ;;  %v978_v13 = vsel %vm808_vm3, %v975_v61, %v977_v38  ;;  %v625_v61 = vld [vmem:[%s16891_s29 + $0x248] sm:$0xff] }
 0x14a   : > { %1225 = vrot.lane.b32.xlu0 %v974_v52, %s23607_s21  ;;  %v1583_v7 = vrot.slane %v625_v61, 2 }
 0x14b   : > { %v1767_v36 = vpop.permute.xlu1 %1766 }
 0x14c   : > { %v2242_v35 = vsel %vm2203_vm6, %v2113_v49, %v1767_v36  ;;  %v1166_v12 = vpop.permute.xlu0 %1165  ;;  %v1610_v49 = vrot.slane %v639_v60, 2  ;;  %v980_v36 = vsel %vm808_vm3, %v977_v38, %v979_v37  ;;  %v1584_v34 = vsel %vm1441_vm4, %v1581_v16, %v1583_v7 }
 0x14d   : > { %1828 = vrot.lane.b32.xlu1 %v1578_v48, %s23609_s22  ;;  %14135 = vmatprep.mubr.msk.f32.mxu0 %vm2334_vm7, %v2242_v35  ;;  %v1612_v48 = vrot.slane %v17867_v19, 2 }
 0x14e   : > { %1227 = vrot.lane.b32.xlu0 %v976_v51, %s23607_s21  ;;  %v17887_v51 = vld [vmem:[%s16891_s29 + $0x250] sm:$0xff] }
 0x14f   : > { %v1769_v59 = vpop.permute.xlu1 %1768 }
 0x150   : > { %v2243_v42 = vsel %vm2203_vm6, %v2114_v53, %v1769_v59  ;;  %v1168_v25 = vpop.permute.xlu0 %1167  ;;  %v1611_v59 = vsel %vm1441_vm4, %v1608_v54, %v1610_v49 }
 0x151   : > { %v2130_v31 = vsel %vm2074_vm5, %v17395_v45, %v1168_v25  ;;  %1860 = vrot.lane.b32.xlu1 %v1609_v0, %s23609_s22  ;;  %14136 = vmatmul.mubr.msk.f32.gmra.mrb[22].mxu0 %vm2334_vm7, %v2243_v42  ;;  %v2129_v45 = vsel %vm2074_vm5, %v17354_v55, %v1166_v12  ;;  %v950_v12 = vrot.slane %v625_v61, 1  ;;  %v952_v0 = vrot.slane %v17887_v51, 1  ;;  %v641_v25 = vld [vmem:[%s16891_s29 + $0x2c8] sm:$0xff] }
 0x152   : > { %1858 = vrot.lane.b32.xlu0 %v1607_v14, %s23609_s22  ;;  %v1614_v16 = vrot.slane %v641_v25, 2 }
 0x153   : > { %v1801_v27 = vpop.permute.xlu1 %1800 }
 0x154   : > { %v2259_v26 = vsel %vm2203_vm6, %v2130_v31, %v1801_v27  ;;  %v1799_v18 = vpop.permute.xlu0 %1798  ;;  %v951_v31 = vsel %vm808_vm3, %v948_v46, %v950_v12  ;;  %v1585_v46 = vrot.slane %v17887_v51, 2 }
 0x155   : > { %v2258_v30 = vsel %vm2203_vm6, %v2129_v45, %v1799_v18  ;;  %1199 = vrot.lane.b32.xlu1 %v949_v50, %s23607_s21  ;;  %v981_v50 = vrot.slane %v641_v25, 1 }
 0x156   : > { %1197 = vrot.lane.b32.xlu0 %v947_v24, %s23607_s21  ;;  %14163 = vmatprep.mubr.msk.f32.mxu1 %vm2334_vm7, %v2258_v30  ;;  %v17919_v24 = vld [vmem:[%s16891_s29 + $0x2d0] sm:$0xff] }
 0x157   : > { %14164 = vmatmul.mubr.msk.f32.gmra.mrb[22].mxu1 %vm2334_vm7, %v2259_v26  ;;  %v1140_v55 = vpop.permute.xlu1 %1139  ;;  %v982_v45 = vsel %vm808_vm3, %v979_v37, %v981_v50  ;;  %v983_v26 = vrot.slane %v17919_v24, 1  ;;  %v627_v37 = vld [vmem:[%s16891_s29 + $0x258] sm:$0xff] }
 0x158   : > { %v1138_v52 = vpop.permute.xlu0 %1137  ;;  %v2116_v15 = vsel %vm2074_vm5, %v17434_v63, %v1140_v55  ;;  %v953_v63 = vsel %vm808_vm3, %v950_v12, %v952_v0  ;;  %v1616_v55 = vrot.slane %v17919_v24, 2  ;;  %v1587_v19 = vrot.slane %v627_v37, 2 }
 0x159   : > { %v2115_v62 = vsel %vm2074_vm5, %v17377_v4, %v1138_v52  ;;  %1830 = vrot.lane.b32.xlu1 %v1580_v29, %s23609_s22  ;;  %v1613_v4 = vsel %vm1441_vm4, %v1610_v49, %v1612_v48  ;;  %v1586_v29 = vsel %vm1441_vm4, %v1583_v7, %v1585_v46  ;;  %v984_v52 = vsel %vm808_vm3, %v981_v50, %v983_v26 }
 0x15a   : > { %1229 = vrot.lane.b32.xlu0 %v978_v13, %s23607_s21 }
 0x15b   : > { %v1771_v9 = vpop.permute.xlu1 %1770 }
 0x15c   : > { %v2244_v11 = vsel %vm2203_vm6, %v2115_v62, %v1771_v9  ;;  %v1170_v35 = vpop.permute.xlu0 %1169  ;;  %v17939_v62 = vld [vmem:[%s16891_s29 + $0x260] sm:$0xff]  ;;  %v954_v9 = vrot.slane %v627_v37, 1 }
 0x15d   : > { %1832 = vrot.lane.b32.xlu1 %v1582_v57, %s23609_s22  ;;  %14138 = vmatprep.mubr.msk.f32.mxu0 %vm2334_vm7, %v2244_v11 }
 0x15e   : > { %1231 = vrot.lane.b32.xlu0 %v980_v36, %s23607_s21  ;;  %v956_v36 = vrot.slane %v17939_v62, 1 }
 0x15f   : > { %v1773_v53 = vpop.permute.xlu1 %1772 }
 0x160   : > { %v2245_v14 = vsel %vm2203_vm6, %v2116_v15, %v1773_v53  ;;  %v1172_v42 = vpop.permute.xlu0 %1171  ;;  %v17956_v15 = vld [vmem:[%s16891_s29 + $0x2d8] sm:$0xff] }
 0x161   : > { %v2132_v60 = vsel %vm2074_vm5, %v17455_v5, %v1172_v42  ;;  %1864 = vrot.lane.b32.xlu1 %v1613_v4, %s23609_s22  ;;  %14139 = vmatmul.mubr.msk.f32.gmra.mrb[24].mxu0 %vm2334_vm7, %v2245_v14  ;;  %v2131_v5 = vsel %vm2074_vm5, %v17414_v1, %v1170_v35  ;;  %v1615_v35 = vsel %vm1441_vm4, %v1612_v48, %v1614_v16  ;;  %v985_v14 = vrot.slane %v17956_v15, 1 }
 0x162   : > { %1862 = vrot.lane.b32.xlu0 %v1611_v59, %s23609_s22  ;;  %v955_v59 = vsel %vm808_vm3, %v952_v0, %v954_v9 }
 0x163   : > { %v1805_v54 = vpop.permute.xlu1 %1804 }
 0x164   : > { %v2261_v44 = vsel %vm2203_vm6, %v2132_v60, %v1805_v54  ;;  %v1803_v27 = vpop.permute.xlu0 %1802 }
 0x165   : > { %v2260_v38 = vsel %vm2203_vm6, %v2131_v5, %v1803_v27  ;;  %1203 = vrot.lane.b32.xlu1 %v953_v63, %s23607_s21  ;;  %v17976_v63 = vld [vmem:[%s16891_s29 + $0x2e0] sm:$0xff]  ;;  %v1589_v5 = vrot.slane %v17939_v62, 2  ;;  %v986_v27 = vsel %vm808_vm3, %v983_v26, %v985_v14  ;;  %v1618_v26 = vrot.slane %v17956_v15, 2 }
 0x166   : > { %1201 = vrot.lane.b32.xlu0 %v951_v31, %s23607_s21  ;;  %14166 = vmatprep.mubr.msk.f32.mxu1 %vm2334_vm7, %v2260_v38  ;;  %v987_v38 = vrot.slane %v17976_v63, 1 }
 0x167   : > { %14167 = vmatmul.mubr.msk.f32.gmra.mrb[24].mxu1 %vm2334_vm7, %v2261_v44  ;;  %v1144_v1 = vpop.permute.xlu1 %1143 }
 0x168   : > { %v1142_v18 = vpop.permute.xlu0 %1141  ;;  %v2118_v61 = vsel %vm2074_vm5, %v17494_v22, %v1144_v1  ;;  %v957_v22 = vsel %vm808_vm3, %v954_v9, %v956_v36  ;;  %v18015_v9 = vld [vmem:[%s16891_s29 + $0x270] sm:$0xff] }
 0x169   : > { %v2117_v30 = vsel %vm2074_vm5, %v17437_v43, %v1142_v18  ;;  %1834 = vrot.lane.b32.xlu1 %v1584_v34, %s23609_s22  ;;  %v1617_v43 = vsel %vm1441_vm4, %v1614_v16, %v1616_v55  ;;  %v1590_v16 = vsel %vm1441_vm4, %v1587_v19, %v1589_v5 }
 0x16a   : > { %1233 = vrot.lane.b32.xlu0 %v982_v45, %s23607_s21 }
 0x16b   : > { %v1775_v13 = vpop.permute.xlu1 %1774 }
 0x16c   : > { %v2246_v57 = vsel %vm2203_vm6, %v2117_v30, %v1775_v13  ;;  %v1174_v49 = vpop.permute.xlu0 %1173  ;;  %v1620_v30 = vrot.slane %v17976_v63, 2 }
 0x16d   : > { %1836 = vrot.lane.b32.xlu1 %v1586_v29, %s23609_s22  ;;  %14141 = vmatprep.mubr.msk.f32.mxu0 %vm2334_vm7, %v2246_v57 }
 0x16e   : > { %1235 = vrot.lane.b32.xlu0 %v984_v52, %s23607_s21 }
 0x16f   : > { %v1777_v11 = vpop.permute.xlu1 %1776 }
 0x170   : > { %v2247_v4 = vsel %vm2203_vm6, %v2118_v61, %v1777_v11  ;;  %v1176_v12 = vpop.permute.xlu0 %1175 }
 0x171   : > { %v2134_v53 = vsel %vm2074_vm5, %v17515_v21, %v1176_v12  ;;  %1868 = vrot.lane.b32.xlu1 %v1617_v43, %s23609_s22  ;;  %14142 = vmatmul.mubr.msk.f32.gmra.mrb[26].mxu0 %vm2334_vm7, %v2247_v4  ;;  %v2133_v21 = vsel %vm2074_vm5, %v17474_v20, %v1174_v49  ;;  %v1588_v20 = vsel %vm1441_vm4, %v1585_v46, %v1587_v19  ;;  %v18012_v43 = vld [vmem:[%s16891_s29 + $0x268] sm:$0xff]  ;;  %v960_v19 = vrot.slane %v18015_v9, 1 }
 0x172   : > { %1866 = vrot.lane.b32.xlu0 %v1615_v35, %s23609_s22  ;;  %v988_v49 = vsel %vm808_vm3, %v985_v14, %v987_v38  ;;  %v1621_v12 = vsel %vm1441_vm4, %v1618_v26, %v1620_v30 }
 0x173   : > { %v1809_v48 = vpop.permute.xlu1 %1808 }
 0x174   : > { %v2263_v42 = vsel %vm2203_vm6, %v2134_v53, %v1809_v48  ;;  %v1807_v25 = vpop.permute.xlu0 %1806  ;;  %v17973_v60 = vpop.f32.mrb[0].mxu0 }
 0x175   : > { %v2262_v7 = vsel %vm2203_vm6, %v2133_v21, %v1807_v25  ;;  %v4012_v54 = vrot.slane %v17973_v60, 1  ;;  %v4516_v51 = vrot.slane %v17973_v60, 2  ;;  %1207 = vrot.lane.b32.xlu1 %v957_v22, %s23607_s21  ;;  %v2453_v0 = vpop.f32.mrb[1].mxu0  ;;  %v958_v22 = vrot.slane %v18012_v43, 1 }
 0x176   : > { %v4011_v31 = vrot.slane %v2453_v0, 1  ;;  %v4515_v50 = vrot.slane %v2453_v0, 2  ;;  %1205 = vrot.lane.b32.xlu0 %v955_v59, %s23607_s21  ;;  %14169 = vmatprep.mubr.msk.f32.mxu1 %vm2334_vm7, %v2262_v7  ;;  %v1619_v21 = vsel %vm1441_vm4, %v1616_v55, %v1618_v26  ;;  %v18040_v7 = vld [vmem:[%s16891_s29 + $0x2e8] sm:$0xff] }
 0x177   : > { %14170 = vmatmul.mubr.msk.f32.gmra.mrb[26].mxu1 %vm2334_vm7, %v2263_v42  ;;  %v1148_v44 = vpop.permute.xlu1 %1147  ;;  %v961_v24 = vsel %vm808_vm3, %v958_v22, %v960_v19  ;;  %v1622_v62 = vrot.slane %v18040_v7, 2 }
 0x178   : > { %v4013_v34 = vsel %vm808_vm3, %v4011_v31, %v4012_v54  ;;  %v4517_v1 = vsel %vm1441_vm4, %v4515_v50, %v4516_v51  ;;  %v1146_v45 = vpop.permute.xlu0 %1145  ;;  %v2120_v48 = vsel %vm2074_vm5, %v17554_v6, %v1148_v44  ;;  %v1591_v6 = vrot.slane %v18012_v43, 2 }
 0x179   : > { %v4387_v46 = vmax.f32 %v2453_v0, %v4013_v34  ;;  %v2119_v18 = vsel %vm2074_vm5, %v17497_v58, %v1146_v45  ;;  %1838 = vrot.lane.b32.xlu1 %v1588_v20, %s23609_s22  ;;  %v959_v50 = vsel %vm808_vm3, %v956_v36, %v958_v22  ;;  %v18057_v20 = vld [vmem:[%s16891_s29 + $0x2f0] sm:$0xff] }
 0x17a   : > { %v18000_v29 = vpop.f32.mrb[0].mxu1  ;;  %1237 = vrot.lane.b32.xlu0 %v986_v27, %s23607_s21  ;;  %v1592_v26 = vsel %vm1441_vm4, %v1589_v5, %v1591_v6 }
 0x17b   : > { %v4891_v13 = vmax.f32 %v4387_v46, %v4517_v1  ;;  %v4043_v52 = vrot.slane %v18000_v29, 1  ;;  %v4547_v58 = vrot.slane %v18000_v29, 2  ;;  %v2646_v37 = vpop.f32.mrb[1].mxu1  ;;  %v1779_v57 = vpop.permute.xlu1 %1778 }
 0x17c   : > { %v4042_v61 = vrot.slane %v2646_v37, 1  ;;  %v4546_v11 = vrot.slane %v2646_v37, 2  ;;  %v2248_v35 = vsel %vm2203_vm6, %v2119_v18, %v1779_v57  ;;  %v1178_v4 = vpop.permute.xlu0 %1177 }
 0x17d   : > { %5020 = vst.msk [vmem:[#allocation2] sm:$0xff] %vm5019_vm8, %v4891_v13  ;;  %1840 = vrot.lane.b32.xlu1 %v1590_v16, %s23609_s22  ;;  %14144 = vmatprep.mubr.msk.f32.mxu0 %vm2334_vm7, %v2248_v35  ;;  %v2135_v44 = vsel %vm2074_vm5, %v17534_v17, %v1178_v4  ;;  %v1593_v13 = vrot.slane %v18015_v9, 2 }
 0x17e   : > { %v4044_v15 = vsel %vm808_vm3, %v4042_v61, %v4043_v52  ;;  %v4548_v53 = vsel %vm1441_vm4, %v4546_v11, %v4547_v58  ;;  %1239 = vrot.lane.b32.xlu0 %v988_v49, %s23607_s21 }
 0x17f   : > { %v4403_v59 = vmax.f32 %v2646_v37, %v4044_v15  ;;  %v1781_v14 = vpop.permute.xlu1 %1780  ;;  %v991_v37 = vrot.slane %v18057_v20, 1 }
 0x180   : > { %v2249_v42 = vsel %vm2203_vm6, %v2120_v48, %v1781_v14  ;;  %v1180_v25 = vpop.permute.xlu0 %1179 }
 0x181   : > { %v4907_v0 = vmax.f32 %v4403_v59, %v4548_v53  ;;  %v2136_v31 = vsel %vm2074_vm5, %v17573_v41, %v1180_v25  ;;  %1872 = vrot.lane.b32.xlu1 %v1621_v12, %s23609_s22  ;;  %14145 = vmatmul.mubr.msk.f32.gmra.mrb[28].mxu0 %vm2334_vm7, %v2249_v42  ;;  %v989_v41 = vrot.slane %v18040_v7, 1 }
 0x182   : > { %1870 = vrot.lane.b32.xlu0 %v1619_v21, %s23609_s22 }
 0x183   : > { %5037 = vst.msk [vmem:[#allocation2 + $0x80] sm:$0xff] %vm5019_vm8, %v4907_v0  ;;  %v1813_v55 = vpop.permute.xlu1 %1812  ;;  %v990_v49 = vsel %vm808_vm3, %v987_v38, %v989_v41  ;;  %v18110_v0 = vld [vmem:[%s16891_s29 + $0x278] sm:$0xff] }
 0x184   : > { %v2265_v27 = vsel %vm2203_vm6, %v2136_v31, %v1813_v55  ;;  %v1811_v34 = vpop.permute.xlu0 %1810  ;;  %v18062_v1 = vpop.f32.mrb[2].mxu0 }
 0x185   : > { %v2264_v45 = vsel %vm2203_vm6, %v2135_v44, %v1811_v34  ;;  %v4016_v46 = vrot.slane %v18062_v1, 1  ;;  %v4520_v18 = vrot.slane %v18062_v1, 2  ;;  %1211 = vrot.lane.b32.xlu1 %v961_v24, %s23607_s21  ;;  %v2463_v36 = vpop.f32.mrb[3].mxu0 }
 0x186   : > { %v4014_v16 = vrot.slane %v2463_v36, 1  ;;  %v4518_v17 = vrot.slane %v2463_v36, 2  ;;  %1209 = vrot.lane.b32.xlu0 %v959_v50, %s23607_s21  ;;  %14172 = vmatprep.mubr.msk.f32.mxu1 %vm2334_vm7, %v2264_v45 }
 0x187   : > { %14173 = vmatmul.mubr.msk.f32.gmra.mrb[28].mxu1 %vm2334_vm7, %v2265_v27  ;;  %v1152_v57 = vpop.permute.xlu1 %1151  ;;  %v962_v27 = vrot.slane %v18110_v0, 1 }
 0x188   : > { %v4015_v5 = vsel %vm808_vm3, %v4012_v54, %v4014_v16  ;;  %v4017_v43 = vsel %vm808_vm3, %v4014_v16, %v4016_v46  ;;  %v4519_v61 = vsel %vm1441_vm4, %v4516_v51, %v4518_v17  ;;  %v4521_v11 = vsel %vm1441_vm4, %v4518_v17, %v4520_v18  ;;  %v1150_v35 = vpop.permute.xlu0 %1149 }
 0x189   : > { %v4388_v38 = vmax.f32 %v17973_v60, %v4015_v5  ;;  %v4389_v4 = vmax.f32 %v2463_v36, %v4017_v43  ;;  %v2121_v12 = vsel %vm2074_vm5, %v17557_v28, %v1150_v35  ;;  %1842 = vrot.lane.b32.xlu1 %v1592_v26, %s23609_s22  ;;  %v1624_v54 = vrot.slane %v18057_v20, 2  ;;  %v18141_v36 = vld [vmem:[%s16891_s29 + $0x2f8] sm:$0xff] }
 0x18a   : > { %v18097_v15 = vpop.f32.mrb[2].mxu1  ;;  %1241 = vrot.lane.b32.xlu0 %v990_v49, %s23607_s21  ;;  %v1594_v51 = vsel %vm1441_vm4, %v1591_v6, %v1593_v13  ;;  %v992_v60 = vsel %vm808_vm3, %v989_v41, %v991_v37  ;;  %v1623_v6 = vsel %vm1441_vm4, %v1620_v30, %v1622_v62  ;;  %v2122_v63 = vsel %vm2074_vm5, %v17611_v23, %v1152_v57 }
 0x18b   : > { %v4892_v53 = vmax.f32 %v4388_v38, %v4519_v61  ;;  %v4893_v22 = vmax.f32 %v4389_v4, %v4521_v11  ;;  %v4047_v28 = vrot.slane %v18097_v15, 1  ;;  %v4551_v48 = vrot.slane %v18097_v15, 2  ;;  %v2656_v59 = vpop.f32.mrb[3].mxu1  ;;  %v1783_v14 = vpop.permute.xlu1 %1782 }
 0x18c   : > { %v4045_v21 = vrot.slane %v2656_v59, 1  ;;  %v4549_v42 = vrot.slane %v2656_v59, 2  ;;  %v2250_v25 = vsel %vm2203_vm6, %v2121_v12, %v1783_v14  ;;  %v1182_v7 = vpop.permute.xlu0 %1181  ;;  %v1625_v31 = vsel %vm1441_vm4, %v1622_v62, %v1624_v54 }
 0x18d   : > { %5021 = vst.msk [vmem:[#allocation2 + $0x8] sm:$0xff] %vm5019_vm8, %v4892_v53  ;;  %5022 = vst.msk [vmem:[#allocation2 + $0x10] sm:$0xff] %vm5019_vm8, %v4893_v22  ;;  %1844 = vrot.lane.b32.xlu1 %v1594_v51, %s23609_s22  ;;  %14147 = vmatprep.mubr.msk.f32.mxu0 %vm2334_vm7, %v2250_v25  ;;  %v1595_v23 = vrot.slane %v18110_v0, 2  ;;  %v963_v17 = vsel %vm808_vm3, %v960_v19, %v962_v27  ;;  %v993_v57 = vrot.slane %v18141_v36, 1 }
 0x18e   : > { %v4046_v24 = vsel %vm808_vm3, %v4043_v52, %v4045_v21  ;;  %v4048_v55 = vsel %vm808_vm3, %v4045_v21, %v4047_v28  ;;  %v4550_v50 = vsel %vm1441_vm4, %v4547_v58, %v4549_v42  ;;  %v4552_v41 = vsel %vm1441_vm4, %v4549_v42, %v4551_v48  ;;  %1243 = vrot.lane.b32.xlu0 %v992_v60, %s23607_s21  ;;  %v18197_v21 = vld [vmem:[%s16891_s29 + $0x310] sm:$0xff] }
 0x18f   : > { %v4404_v30 = vmax.f32 %v18000_v29, %v4046_v24  ;;  %v4405_v52 = vmax.f32 %v2656_v59, %v4048_v55  ;;  %v1785_v44 = vpop.permute.xlu1 %1784  ;;  %v994_v12 = vsel %vm808_vm3, %v991_v37, %v993_v57 }
 0x190   : > { %v2251_v34 = vsel %vm2203_vm6, %v2122_v63, %v1785_v44  ;;  %v1184_v45 = vpop.permute.xlu0 %1183 }
 0x191   : > { %v4908_v58 = vmax.f32 %v4404_v30, %v4550_v50  ;;  %v4909_v26 = vmax.f32 %v4405_v52, %v4552_v41  ;;  %v2138_v16 = vsel %vm2074_vm5, %v17623_v47, %v1184_v45  ;;  %1876 = vrot.lane.b32.xlu1 %v1625_v31, %s23609_s22  ;;  %14148 = vmatmul.mubr.msk.f32.gmra.mrb[30].mxu0 %vm2334_vm7, %v2251_v34  ;;  %v648_v50 = vld [vmem:[%s16891_s29 + $0x300] sm:$0xff]  ;;  %v998_v30 = vrot.slane %v18197_v21, 1 }
 0x192   : > { %1874 = vrot.lane.b32.xlu0 %v1623_v6, %s23609_s22  ;;  %v2137_v47 = vsel %vm2074_vm5, %v17590_v39, %v1182_v7  ;;  %v1596_v39 = vsel %vm1441_vm4, %v1593_v13, %v1595_v23 }
 0x193   : > { %5038 = vst.msk [vmem:[#allocation2 + $0x88] sm:$0xff] %vm5019_vm8, %v4908_v58  ;;  %5039 = vst.msk [vmem:[#allocation2 + $0x90] sm:$0xff] %vm5019_vm8, %v4909_v26  ;;  %v1817_v29 = vpop.permute.xlu1 %1816 }
 0x194   : > { %v2267_v49 = vsel %vm2203_vm6, %v2138_v16, %v1817_v29  ;;  %v1815_v62 = vpop.permute.xlu0 %1814  ;;  %v18158_v5 = vpop.f32.mrb[4].mxu0  ;;  %v1628_v16 = vrot.slane %v648_v50, 2 }
 0x195   : > { %v2266_v43 = vsel %vm2203_vm6, %v2137_v47, %v1815_v62  ;;  %v4020_v61 = vrot.slane %v18158_v5, 1  ;;  %v4524_v11 = vrot.slane %v18158_v5, 2  ;;  %1215 = vrot.lane.b32.xlu1 %v962_v27, %s23607_s21  ;;  %v2473_v35 = vpop.f32.mrb[5].mxu0 }
 0x196   : > { %v4018_v19 = vrot.slane %v2473_v35, 1  ;;  %v4522_v38 = vrot.slane %v2473_v35, 2  ;;  %1213 = vrot.lane.b32.xlu0 %v963_v17, %s23607_s21  ;;  %14175 = vmatprep.mubr.msk.f32.mxu1 %vm2334_vm7, %v2266_v43  ;;  %v18253_v43 = vld [vmem:[%s16891_s29 + $0x390] sm:$0xff] }
 0x197   : > { %14176 = vmatmul.mubr.msk.f32.gmra.mrb[30].mxu1 %vm2334_vm7, %v2267_v49  ;;  %v1188_v4 = vpop.permute.xlu1 %1187 }
 0x198   : > { %v4019_v51 = vsel %vm808_vm3, %v4016_v46, %v4018_v19  ;;  %v4021_v60 = vsel %vm808_vm3, %v4018_v19, %v4020_v61  ;;  %v4523_v9 = vsel %vm1441_vm4, %v4520_v18, %v4522_v38  ;;  %v4525_v13 = vsel %vm1441_vm4, %v4522_v38, %v4524_v11  ;;  %v1186_v53 = vpop.permute.xlu0 %1185  ;;  %v18194_v18 = vld [vmem:[%s16891_s29 + $0x308] sm:$0xff] }
 0x199   : > { %v4390_v22 = vmax.f32 %v18062_v1, %v4019_v51  ;;  %v4391_v37 = vmax.f32 %v2473_v35, %v4021_v60  ;;  %v2139_v59 = vsel %vm2074_vm5, %v17656_v56, %v1186_v53  ;;  %1846 = vrot.lane.b32.xlu1 %v1596_v39, %s23609_s22  ;;  %v1626_v46 = vrot.slane %v18141_v36, 2 }
 0x19a   : > { %v18190_v14 = vpop.f32.mrb[4].mxu1  ;;  %1245 = vrot.lane.b32.xlu0 %v994_v12, %s23607_s21  ;;  %v996_v63 = vrot.slane %v18194_v18, 1  ;;  %v2140_v27 = vsel %vm2074_vm5, %v17649_v33, %v1188_v4  ;;  %v995_v36 = vrot.slane %v648_v50, 1  ;;  %v1629_v33 = vrot.slane %v18194_v18, 2 }
 0x19b   : > { %v4894_v42 = vmax.f32 %v4390_v22, %v4523_v9  ;;  %v4895_v25 = vmax.f32 %v4391_v37, %v4525_v13  ;;  %v4051_v1 = vrot.slane %v18190_v14, 1  ;;  %v4555_v7 = vrot.slane %v18190_v14, 2  ;;  %v2666_v56 = vpop.f32.mrb[5].mxu1  ;;  %v1819_v0 = vpop.permute.xlu1 %1818 }
 0x19c   : > { %v4049_v31 = vrot.slane %v2666_v56, 1  ;;  %v4553_v6 = vrot.slane %v2666_v56, 2  ;;  %v2268_v24 = vsel %vm2203_vm6, %v2139_v59, %v1819_v0  ;;  %v1218_v55 = vpop.permute.xlu0 %1217  ;;  %v1627_v41 = vsel %vm1441_vm4, %v1624_v54, %v1626_v46 }
 0x19d   : > { %5023 = vst.msk [vmem:[#allocation2 + $0x18] sm:$0xff] %vm5019_vm8, %v4894_v42  ;;  %5024 = vst.msk [vmem:[#allocation2 + $0x20] sm:$0xff] %vm5019_vm8, %v4895_v25  ;;  %1848 = vrot.lane.b32.xlu1 %v1595_v23, %s23609_s22  ;;  %14182 = vmatprep.mubr.msk.f32.mxu0 %vm2334_vm7, %v2268_v24  ;;  %v18230_v23 = vld [vmem:[%s16891_s29 + $0x380] sm:$0xff]  ;;  %v997_v47 = vsel %vm808_vm3, %v995_v36, %v996_v63  ;;  %v2155_v35 = vsel %vm2074_vm5, %v17669_v10, %v1218_v55  ;;  %v1631_v10 = vrot.slane %v18197_v21, 2 }
 0x19e   : > { %v4050_v52 = vsel %vm808_vm3, %v4047_v28, %v4049_v31  ;;  %v4052_v44 = vsel %vm808_vm3, %v4049_v31, %v4051_v1  ;;  %v4554_v20 = vsel %vm1441_vm4, %v4551_v48, %v4553_v6  ;;  %v4556_v54 = vsel %vm1441_vm4, %v4553_v6, %v4555_v7  ;;  %1247 = vrot.lane.b32.xlu0 %v993_v57, %s23607_s21  ;;  %v18233_v48 = vld [vmem:[%s16891_s29 + $0x388] sm:$0xff]  ;;  %v16588_v6 = vld [vmem:[%s16891_s29 + $0x210] sm:$0xff] }
 0x19f   : > { %v4406_v34 = vmax.f32 %v18097_v15, %v4050_v52  ;;  %v4407_v28 = vmax.f32 %v2666_v56, %v4052_v44  ;;  %v1821_v45 = vpop.permute.xlu1 %1820  ;;  %v999_v15 = vsel %vm808_vm3, %v996_v63, %v998_v30  ;;  %v1026_v49 = vrot.slane %v18230_v23, 1 }
 0x1a0   : > { %v2269_v58 = vsel %vm2203_vm6, %v2140_v27, %v1821_v45  ;;  %v1220_v26 = vpop.permute.xlu0 %1219  ;;  %v1027_v62 = vrot.slane %v18233_v48, 1  ;;  %v1630_v9 = vsel %vm1441_vm4, %v1628_v16, %v1629_v33  ;;  %v1029_v22 = vrot.slane %v18253_v43, 1 }
 0x1a1   : > { %v4910_v29 = vmax.f32 %v4406_v34, %v4554_v20  ;;  %v4911_v17 = vmax.f32 %v4407_v28, %v4556_v54  ;;  %v2156_v57 = vsel %vm2074_vm5, %v17672_v40, %v1220_v26  ;;  %1880 = vrot.lane.b32.xlu1 %v1626_v46, %s23609_s22  ;;  %14183 = vmatmul.mubr.msk.f32.vlgmr.msra.gmra.mrb[32].mxu0 %vm2334_vm7, %v2269_v58  ;;  %v1660_v46 = vrot.slane %v18233_v48, 2 }
 0x1a2   : > { %1878 = vrot.lane.b32.xlu0 %v1627_v41, %s23609_s22  ;;  %15507 = vmatpush3.bf16.msk.msra.mxu0 %vm16872_vm2, %v16870_v2  ;;  %v1028_v59 = vsel %vm808_vm3, %v1026_v49, %v1027_v62  ;;  %v1632_v50 = vsel %vm1441_vm4, %v1629_v33, %v1631_v10  ;;  %v1659_v3 = vrot.slane %v18230_v23, 2  ;;  %v18306_v41 = vld [vmem:[%s16891_s29 + $0x320] sm:$0xff] }
 0x1a3   : > { %5040 = vst.msk [vmem:[#allocation2 + $0x98] sm:$0xff] %vm5019_vm8, %v4910_v29  ;;  %5041 = vst.msk [vmem:[#allocation2 + $0xa0] sm:$0xff] %vm5019_vm8, %v4911_v17  ;;  %v1853_v40 = vpop.permute.xlu1 %1852  ;;  %v1002_v16 = vrot.slane %v18306_v41, 1 }
 0x1a4   : > { %v2285_v19 = vsel %vm2203_vm6, %v2156_v57, %v1853_v40  ;;  %v1851_v38 = vpop.permute.xlu0 %1850  ;;  %v18258_v39 = vpop.f32.mrb[6].mxu0  ;;  %v1661_v40 = vsel %vm1441_vm4, %v1659_v3, %v1660_v46 }
 0x1a5   : > { %v2284_v4 = vsel %vm2203_vm6, %v2155_v35, %v1851_v38  ;;  %v4024_v12 = vrot.slane %v18258_v39, 1  ;;  %v4528_v51 = vrot.slane %v18258_v39, 2  ;;  %1251 = vrot.lane.b32.xlu1 %v999_v15, %s23607_s21  ;;  %v2483_v60 = vpop.f32.mrb[7].mxu0 }
 0x1a6   : > { %v4022_v13 = vrot.slane %v2483_v60, 1  ;;  %v4526_v53 = vrot.slane %v2483_v60, 2  ;;  %1249 = vrot.lane.b32.xlu0 %v997_v47, %s23607_s21  ;;  %14210 = vmatprep.mubr.msk.f32.mxu1 %vm2334_vm7, %v2284_v4 }
 0x1a7   : > { %14211 = vmatmul.mubr.msk.f32.vlgmr.msra.gmra.mrb[32].mxu1 %vm2334_vm7, %v2285_v19  ;;  %v1192_v37 = vpop.permute.xlu1 %1191 }
 0x1a8   : > { %v4023_v18 = vsel %vm808_vm3, %v4020_v61, %v4022_v13  ;;  %v4025_v42 = vsel %vm808_vm3, %v4022_v13, %v4024_v12  ;;  %v4527_v25 = vsel %vm1441_vm4, %v4524_v11, %v4526_v53  ;;  %v4529_v56 = vsel %vm1441_vm4, %v4526_v53, %v4528_v51  ;;  %v1190_v0 = vpop.permute.xlu0 %1189  ;;  %15513 = vmatpush3.bf16.msk.msra.mxu1 %vm16872_vm2, %v16870_v2 }
 0x1a9   : > { %v4392_v61 = vmax.f32 %v18158_v5, %v4023_v18  ;;  %v4393_v31 = vmax.f32 %v2483_v60, %v4025_v42  ;;  %v2141_v24 = vsel %vm2074_vm5, %v16588_v6, %v1190_v0  ;;  %1882 = vrot.lane.b32.xlu1 %v1630_v9, %s23609_s22  ;;  %v1662_v11 = vrot.slane %v18253_v43, 2  ;;  %v18303_v5 = vld [vmem:[%s16891_s29 + $0x318] sm:$0xff]  ;;  %v18357_v60 = vld [vmem:[%s16891_s29 + $0x3a0] sm:$0xff]  ;;  %v16589_v9 = vld [vmem:[%s16891_s29 + $0x290] sm:$0xff] }
 0x1aa   : > { %v18292_v55 = vpop.f32.mrb[6].mxu1  ;;  %1281 = vrot.lane.b32.xlu0 %v1028_v59, %s23607_s21  ;;  %v1030_v2 = vsel %vm808_vm3, %v1027_v62, %v1029_v22  ;;  %v1000_v26 = vrot.slane %v18303_v5, 1  ;;  %v2142_v57 = vsel %vm2074_vm5, %v17724_v32, %v1192_v37  ;;  %v1633_v32 = vrot.slane %v18303_v5, 2 }
 0x1ab   : > { %v4896_v63 = vmax.f32 %v4392_v61, %v4527_v25  ;;  %v4897_v52 = vmax.f32 %v4393_v31, %v4529_v56  ;;  %v4055_v44 = vrot.slane %v18292_v55, 1  ;;  %v4559_v20 = vrot.slane %v18292_v55, 2  ;;  %v2676_v54 = vpop.f32.mrb[7].mxu1  ;;  %v1823_v27 = vpop.permute.xlu1 %1822 }
 0x1ac   : > { %v4053_v34 = vrot.slane %v2676_v54, 1  ;;  %v4557_v28 = vrot.slane %v2676_v54, 2  ;;  %v2270_v45 = vsel %vm2203_vm6, %v2141_v24, %v1823_v27  ;;  %v1222_v36 = vpop.permute.xlu0 %1221  ;;  %v1663_v58 = vsel %vm1441_vm4, %v1660_v46, %v1662_v11 }
 0x1ad   : > { %5025 = vst.msk [vmem:[#allocation2 + $0x28] sm:$0xff] %vm5019_vm8, %v4896_v63  ;;  %5026 = vst.msk [vmem:[#allocation2 + $0x30] sm:$0xff] %vm5019_vm8, %v4897_v52  ;;  %1884 = vrot.lane.b32.xlu1 %v1632_v50, %s23609_s22  ;;  %14185 = vmatprep.mubr.msk.f32.mxu0 %vm2334_vm7, %v2270_v45  ;;  %v2157_v13 = vsel %vm2074_vm5, %v16589_v9, %v1222_v36  ;;  %v1634_v25 = vsel %vm1441_vm4, %v1631_v10, %v1633_v32  ;;  %v1635_v61 = vrot.slane %v18306_v41, 2  ;;  %v16590_v52 = vld [vmem:[%s16891_s29 + $0x220] sm:$0xff]  ;;  %vm12076_vm2 = vcmask 1044484  }
 0x1ae   : > { %v4054_v23 = vsel %vm808_vm3, %v4051_v1, %v4053_v34  ;;  %v4056_v48 = vsel %vm808_vm3, %v4053_v34, %v4055_v44  ;;  %v4558_v29 = vsel %vm1441_vm4, %v4555_v7, %v4557_v28  ;;  %v4560_v17 = vsel %vm1441_vm4, %v4557_v28, %v4559_v20  ;;  %1283 = vrot.lane.b32.xlu0 %v1030_v2, %s23607_s21  ;;  %v18339_v7 = vld [vmem:[%s16891_s29 + $0x398] sm:$0xff]  ;;  %v18407_v34 = vld [vmem:[%s16891_s29 + $0x328] sm:$0xff]  ;;  %v18410_v28 = vld [vmem:[%s16891_s29 + $0x330] sm:$0xff] }
 0x1af   : > { %v4408_v33 = vmax.f32 %v18190_v14, %v4054_v23  ;;  %v4409_v1 = vmax.f32 %v2676_v54, %v4056_v48  ;;  %v1825_v15 = vpop.permute.xlu1 %1824  ;;  %v1003_v14 = vsel %vm808_vm3, %v1000_v26, %v1002_v16  ;;  %v1031_v4 = vrot.slane %v18339_v7, 1 }
 0x1b0   : > { %v2271_v47 = vsel %vm2203_vm6, %v2142_v57, %v1825_v15  ;;  %v1224_v49 = vpop.permute.xlu0 %1223  ;;  %v1033_v31 = vrot.slane %v18357_v60, 1  ;;  %v1664_v10 = vrot.slane %v18339_v7, 2  ;;  %v1666_v54 = vrot.slane %v18357_v60, 2 }
 0x1b1   : > { %v4912_v62 = vmax.f32 %v4408_v33, %v4558_v29  ;;  %v4913_v35 = vmax.f32 %v4409_v1, %v4560_v17  ;;  %v2158_v19 = vsel %vm2074_vm5, %v17743_v8, %v1224_v49  ;;  %1916 = vrot.lane.b32.xlu1 %v1663_v58, %s23609_s22  ;;  %14186 = vmatmul.mubr.msk.f32.gmra.mrb[34].mxu0 %vm2334_vm7, %v2271_v47  ;;  %v1004_v15 = vrot.slane %v18407_v34, 1 }
 0x1b2   : > { %1914 = vrot.lane.b32.xlu0 %v1661_v40, %s23609_s22  ;;  %v1001_v8 = vsel %vm808_vm3, %v998_v30, %v1000_v26  ;;  %v1032_v21 = vsel %vm808_vm3, %v1029_v22, %v1031_v4  ;;  %v1667_v1 = vsel %vm1441_vm4, %v1664_v10, %v1666_v54  ;;  %v1006_v40 = vrot.slane %v18410_v28, 1 }
 0x1b3   : > { %5042 = vst.msk [vmem:[#allocation2 + $0xa8] sm:$0xff] %vm5019_vm8, %v4912_v62  ;;  %5043 = vst.msk [vmem:[#allocation2 + $0xb0] sm:$0xff] %vm5019_vm8, %v4913_v35  ;;  %v1857_v38 = vpop.permute.xlu1 %1856  ;;  %v16591_v35 = vld [vmem:[%s16891_s29 + $0x228] sm:$0xff]  ;;  %v1637_v43 = vrot.slane %v18407_v34, 2 }
 0x1b4   : > { %v2287_v53 = vsel %vm2203_vm6, %v2158_v19, %v1857_v38  ;;  %v1855_v37 = vpop.permute.xlu0 %1854  ;;  %v18362_v59 = vpop.f32.mrb[8].mxu0  ;;  %v1665_v38 = vsel %vm1441_vm4, %v1662_v11, %v1664_v10  ;;  %v1007_v11 = vsel %vm808_vm3, %v1004_v15, %v1006_v40 }
 0x1b5   : > { %v2286_v46 = vsel %vm2203_vm6, %v2157_v13, %v1855_v37  ;;  %v4028_v18 = vrot.slane %v18362_v59, 1  ;;  %v4532_v42 = vrot.slane %v18362_v59, 2  ;;  %1255 = vrot.lane.b32.xlu1 %v1003_v14, %s23607_s21  ;;  %v2493_v30 = vpop.f32.mrb[9].mxu0 }
 0x1b6   : > { %v4026_v56 = vrot.slane %v2493_v30, 1  ;;  %v4530_v0 = vrot.slane %v2493_v30, 2  ;;  %1253 = vrot.lane.b32.xlu0 %v1001_v8, %s23607_s21  ;;  %14213 = vmatprep.mubr.msk.f32.mxu1 %vm2334_vm7, %v2286_v46  ;;  %v1005_v46 = vsel %vm808_vm3, %v1002_v16, %v1004_v15 }
 0x1b7   : > { %14214 = vmatmul.mubr.msk.f32.gmra.mrb[34].mxu1 %vm2334_vm7, %v2287_v53  ;;  %v1196_v6 = vpop.permute.xlu1 %1195  ;;  %v16592_v53 = vld [vmem:[%s16891_s29 + $0x2a8] sm:$0xff] }
 0x1b8   : > { %v4027_v24 = vsel %vm808_vm3, %v4024_v12, %v4026_v56  ;;  %v4029_v50 = vsel %vm808_vm3, %v4026_v56, %v4028_v18  ;;  %v4531_v2 = vsel %vm1441_vm4, %v4528_v51, %v4530_v0  ;;  %v4533_v22 = vsel %vm1441_vm4, %v4530_v0, %v4532_v42  ;;  %v1194_v3 = vpop.permute.xlu0 %1193  ;;  %v16593_v56 = vld [vmem:[%s16891_s29 + $0x2a0] sm:$0xff] }
 0x1b9   : > { %v4394_v5 = vmax.f32 %v18258_v39, %v4027_v24  ;;  %v4395_v63 = vmax.f32 %v2493_v30, %v4029_v50  ;;  %v2143_v12 = vsel %vm2074_vm5, %v16590_v52, %v1194_v3  ;;  %1886 = vrot.lane.b32.xlu1 %v1634_v25, %s23609_s22  ;;  %v1636_v51 = vsel %vm1441_vm4, %v1633_v32, %v1635_v61  ;;  %v18463_v25 = vld [vmem:[%s16891_s29 + $0x3b0] sm:$0xff] }
 0x1ba   : > { %v18397_v27 = vpop.f32.mrb[8].mxu1  ;;  %1285 = vrot.lane.b32.xlu0 %v1032_v21, %s23607_s21  ;;  %v1034_v39 = vsel %vm808_vm3, %v1031_v4, %v1033_v31  ;;  %v2144_v19 = vsel %vm2074_vm5, %v16591_v35, %v1196_v6  ;;  %v18445_v4 = vld [vmem:[%s16891_s29 + $0x3a8] sm:$0xff]  ;;  %v1037_v52 = vrot.slane %v18463_v25, 1 }
 0x1bb   : > { %v4898_v45 = vmax.f32 %v4394_v5, %v4531_v2  ;;  %v4899_v36 = vmax.f32 %v4395_v63, %v4533_v22  ;;  %v4059_v58 = vrot.slane %v18397_v27, 1  ;;  %v4563_v26 = vrot.slane %v18397_v27, 2  ;;  %v2686_v23 = vpop.f32.mrb[9].mxu1  ;;  %v1827_v48 = vpop.permute.xlu1 %1826 }
 0x1bc   : > { %v4057_v29 = vrot.slane %v2686_v23, 1  ;;  %v4561_v17 = vrot.slane %v2686_v23, 2  ;;  %v2272_v57 = vsel %vm2203_vm6, %v2143_v12, %v1827_v48  ;;  %v1226_v33 = vpop.permute.xlu0 %1225  ;;  %v1035_v30 = vrot.slane %v18445_v4, 1  ;;  %v16594_v48 = vld [vmem:[%s16891_s29 + $0x230] sm:$0xff] }
 0x1bd   : > { %5027 = vst.msk [vmem:[#allocation2 + $0x38] sm:$0xff] %vm5019_vm8, %v4898_v45  ;;  %5028 = vst.msk [vmem:[#allocation2 + $0x40] sm:$0xff] %vm5019_vm8, %v4899_v36  ;;  %1888 = vrot.lane.b32.xlu1 %v1636_v51, %s23609_s22  ;;  %14188 = vmatprep.mubr.msk.f32.mxu0 %vm2334_vm7, %v2272_v57  ;;  %v2159_v0 = vsel %vm2074_vm5, %v16593_v56, %v1226_v33  ;;  %v1638_v22 = vsel %vm1441_vm4, %v1635_v61, %v1637_v43  ;;  %v1639_v63 = vrot.slane %v18410_v28, 2  ;;  %v18513_v57 = vld [vmem:[%s16891_s29 + $0x338] sm:$0xff]  ;;  %v18516_v33 = vld [vmem:[%s16891_s29 + $0x340] sm:$0xff] }
 0x1be   : > { %v4058_v47 = vsel %vm808_vm3, %v4055_v44, %v4057_v29  ;;  %v4060_v49 = vsel %vm808_vm3, %v4057_v29, %v4059_v58  ;;  %v4562_v7 = vsel %vm1441_vm4, %v4559_v20, %v4561_v17  ;;  %v4564_v62 = vsel %vm1441_vm4, %v4561_v17, %v4563_v26  ;;  %1287 = vrot.lane.b32.xlu0 %v1034_v39, %s23607_s21 }
 0x1bf   : > { %v4410_v44 = vmax.f32 %v18292_v55, %v4058_v47  ;;  %v4411_v32 = vmax.f32 %v2686_v23, %v4060_v49  ;;  %v1829_v14 = vpop.permute.xlu1 %1828  ;;  %v1036_v41 = vsel %vm808_vm3, %v1033_v31, %v1035_v30  ;;  %v1668_v61 = vrot.slane %v18445_v4, 2 }
 0x1c0   : > { %v2273_v8 = vsel %vm2203_vm6, %v2144_v19, %v1829_v14  ;;  %v1228_v20 = vpop.permute.xlu0 %1227  ;;  %v1670_v29 = vrot.slane %v18463_v25, 2  ;;  %v1641_v60 = vrot.slane %v18513_v57, 2 }
 0x1c1   : > { %v4914_v9 = vmax.f32 %v4410_v44, %v4562_v7  ;;  %v4915_v13 = vmax.f32 %v4411_v32, %v4564_v62  ;;  %v2160_v37 = vsel %vm2074_vm5, %v16592_v53, %v1228_v20  ;;  %1920 = vrot.lane.b32.xlu1 %v1667_v1, %s23609_s22  ;;  %14189 = vmatmul.mubr.msk.f32.gmra.mrb[36].mxu0 %vm2334_vm7, %v2273_v8  ;;  %v1010_v8 = vrot.slane %v18516_v33, 1  ;;  %v16595_v53 = vld [vmem:[%s16891_s29 + $0x238] sm:$0xff] }
 0x1c2   : > { %1918 = vrot.lane.b32.xlu0 %v1665_v38, %s23609_s22  ;;  %v1671_v14 = vsel %vm1441_vm4, %v1668_v61, %v1670_v29  ;;  %v1008_v38 = vrot.slane %v18513_v57, 1 }
 0x1c3   : > { %5044 = vst.msk [vmem:[#allocation2 + $0xb8] sm:$0xff] %vm5019_vm8, %v4914_v9  ;;  %5045 = vst.msk [vmem:[#allocation2 + $0xc0] sm:$0xff] %vm5019_vm8, %v4915_v13  ;;  %v1861_v55 = vpop.permute.xlu1 %1860 }
 0x1c4   : > { %v2289_v6 = vsel %vm2203_vm6, %v2160_v37, %v1861_v55  ;;  %v1859_v21 = vpop.permute.xlu0 %1858  ;;  %v18468_v10 = vpop.f32.mrb[10].mxu0  ;;  %v1669_v55 = vsel %vm1441_vm4, %v1666_v54, %v1668_v61  ;;  %v1011_v54 = vsel %vm808_vm3, %v1008_v38, %v1010_v8 }
 0x1c5   : > { %v2288_v24 = vsel %vm2203_vm6, %v2159_v0, %v1859_v21  ;;  %v4032_v50 = vrot.slane %v18468_v10, 1  ;;  %v4536_v2 = vrot.slane %v18468_v10, 2  ;;  %1259 = vrot.lane.b32.xlu1 %v1007_v11, %s23607_s21  ;;  %v2503_v16 = vpop.f32.mrb[11].mxu0 }
 0x1c6   : > { %v4030_v3 = vrot.slane %v2503_v16, 1  ;;  %v4534_v5 = vrot.slane %v2503_v16, 2  ;;  %1257 = vrot.lane.b32.xlu0 %v1005_v46, %s23607_s21  ;;  %14216 = vmatprep.mubr.msk.f32.mxu1 %vm2334_vm7, %v2288_v24  ;;  %v1009_v24 = vsel %vm808_vm3, %v1006_v40, %v1008_v38 }
 0x1c7   : > { %14217 = vmatmul.mubr.msk.f32.gmra.mrb[36].mxu1 %vm2334_vm7, %v2289_v6  ;;  %v1200_v12 = vpop.permute.xlu1 %1199  ;;  %v16596_v6 = vld [vmem:[%s16891_s29 + $0x2b8] sm:$0xff] }
 0x1c8   : > { %v4031_v51 = vsel %vm808_vm3, %v4028_v18, %v4030_v3  ;;  %v4033_v39 = vsel %vm808_vm3, %v4030_v3, %v4032_v50  ;;  %v4535_v34 = vsel %vm1441_vm4, %v4532_v42, %v4534_v5  ;;  %v4537_v31 = vsel %vm1441_vm4, %v4534_v5, %v4536_v2  ;;  %v1198_v45 = vpop.permute.xlu0 %1197  ;;  %v16597_v3 = vld [vmem:[%s16891_s29 + $0x2b0] sm:$0xff] }
 0x1c9   : > { %v4396_v36 = vmax.f32 %v18362_v59, %v4031_v51  ;;  %v4397_v23 = vmax.f32 %v2503_v16, %v4033_v39  ;;  %v2145_v18 = vsel %vm2074_vm5, %v16594_v48, %v1198_v45  ;;  %1890 = vrot.lane.b32.xlu1 %v1638_v22, %s23609_s22  ;;  %v1640_v42 = vsel %vm1441_vm4, %v1637_v43, %v1639_v63  ;;  %v18569_v22 = vld [vmem:[%s16891_s29 + $0x3c0] sm:$0xff] }
 0x1ca   : > { %v18503_v17 = vpop.f32.mrb[10].mxu1  ;;  %1289 = vrot.lane.b32.xlu0 %v1036_v41, %s23607_s21  ;;  %v1038_v59 = vsel %vm808_vm3, %v1035_v30, %v1037_v52  ;;  %v2146_v37 = vsel %vm2074_vm5, %v16595_v53, %v1200_v12  ;;  %v18551_v30 = vld [vmem:[%s16891_s29 + $0x3b8] sm:$0xff]  ;;  %v1041_v48 = vrot.slane %v18569_v22, 1 }
 0x1cb   : > { %v4900_v1 = vmax.f32 %v4396_v36, %v4535_v34  ;;  %v4901_v15 = vmax.f32 %v4397_v23, %v4537_v31  ;;  %v4063_v47 = vrot.slane %v18503_v17, 1  ;;  %v4567_v49 = vrot.slane %v18503_v17, 2  ;;  %v2696_v7 = vpop.f32.mrb[11].mxu1  ;;  %v1831_v62 = vpop.permute.xlu1 %1830 }
 0x1cc   : > { %v4061_v35 = vrot.slane %v2696_v7, 1  ;;  %v4565_v19 = vrot.slane %v2696_v7, 2  ;;  %v2274_v44 = vsel %vm2203_vm6, %v2145_v18, %v1831_v62  ;;  %v1230_v32 = vpop.permute.xlu0 %1229  ;;  %v1039_v16 = vrot.slane %v18551_v30, 1  ;;  %v16598_v62 = vld [vmem:[%s16891_s29 + $0x240] sm:$0xff] }
 0x1cd   : > { %5029 = vst.msk [vmem:[#allocation2 + $0x48] sm:$0xff] %vm5019_vm8, %v4900_v1  ;;  %5030 = vst.msk [vmem:[#allocation2 + $0x50] sm:$0xff] %vm5019_vm8, %v4901_v15  ;;  %1892 = vrot.lane.b32.xlu1 %v1640_v42, %s23609_s22  ;;  %14191 = vmatprep.mubr.msk.f32.mxu0 %vm2334_vm7, %v2274_v44  ;;  %v2161_v5 = vsel %vm2074_vm5, %v16597_v3, %v1230_v32  ;;  %v1642_v31 = vsel %vm1441_vm4, %v1639_v63, %v1641_v60  ;;  %v1643_v23 = vrot.slane %v18516_v33, 2  ;;  %v18619_v44 = vld [vmem:[%s16891_s29 + $0x348] sm:$0xff]  ;;  %v18622_v32 = vld [vmem:[%s16891_s29 + $0x350] sm:$0xff] }
 0x1ce   : > { %v4062_v20 = vsel %vm808_vm3, %v4059_v58, %v4061_v35  ;;  %v4064_v4 = vsel %vm808_vm3, %v4061_v35, %v4063_v47  ;;  %v4566_v9 = vsel %vm1441_vm4, %v4563_v26, %v4565_v19  ;;  %v4568_v13 = vsel %vm1441_vm4, %v4565_v19, %v4567_v49  ;;  %1291 = vrot.lane.b32.xlu0 %v1038_v59, %s23607_s21 }
 0x1cf   : > { %v4412_v58 = vmax.f32 %v18397_v27, %v4062_v20  ;;  %v4413_v43 = vmax.f32 %v2696_v7, %v4064_v4  ;;  %v1833_v11 = vpop.permute.xlu1 %1832  ;;  %v1040_v28 = vsel %vm808_vm3, %v1037_v52, %v1039_v16  ;;  %v1672_v63 = vrot.slane %v18551_v30, 2 }
 0x1d0   : > { %v2275_v46 = vsel %vm2203_vm6, %v2146_v37, %v1833_v11  ;;  %v1232_v26 = vpop.permute.xlu0 %1231  ;;  %v1674_v35 = vrot.slane %v18569_v22, 2  ;;  %v1645_v25 = vrot.slane %v18619_v44, 2 }
 0x1d1   : > { %v4916_v56 = vmax.f32 %v4412_v58, %v4566_v9  ;;  %v4917_v0 = vmax.f32 %v4413_v43, %v4568_v13  ;;  %v2162_v21 = vsel %vm2074_vm5, %v16596_v6, %v1232_v26  ;;  %1924 = vrot.lane.b32.xlu1 %v1671_v14, %s23609_s22  ;;  %14192 = vmatmul.mubr.msk.f32.gmra.mrb[38].mxu0 %vm2334_vm7, %v2275_v46  ;;  %v1014_v46 = vrot.slane %v18622_v32, 1  ;;  %v16599_v6 = vld [vmem:[%s16891_s29 + $0x248] sm:$0xff] }
 0x1d2   : > { %1922 = vrot.lane.b32.xlu0 %v1669_v55, %s23609_s22  ;;  %v1675_v11 = vsel %vm1441_vm4, %v1672_v63, %v1674_v35  ;;  %v1012_v55 = vrot.slane %v18619_v44, 1 }
 0x1d3   : > { %5046 = vst.msk [vmem:[#allocation2 + $0xc8] sm:$0xff] %vm5019_vm8, %v4916_v56  ;;  %5047 = vst.msk [vmem:[#allocation2 + $0xd0] sm:$0xff] %vm5019_vm8, %v4917_v0  ;;  %v1865_v27 = vpop.permute.xlu1 %1864 }
 0x1d4   : > { %v2291_v12 = vsel %vm2203_vm6, %v2162_v21, %v1865_v27  ;;  %v1863_v41 = vpop.permute.xlu0 %1862  ;;  %v18574_v61 = vpop.f32.mrb[12].mxu0  ;;  %v1673_v27 = vsel %vm1441_vm4, %v1670_v29, %v1672_v63  ;;  %v1015_v29 = vsel %vm808_vm3, %v1012_v55, %v1014_v46 }
 0x1d5   : > { %v2290_v51 = vsel %vm2203_vm6, %v2161_v5, %v1863_v41  ;;  %v4036_v39 = vrot.slane %v18574_v61, 1  ;;  %v4540_v34 = vrot.slane %v18574_v61, 2  ;;  %1263 = vrot.lane.b32.xlu1 %v1011_v54, %s23607_s21  ;;  %v2513_v40 = vpop.f32.mrb[13].mxu0 }
 0x1d6   : > { %v4034_v45 = vrot.slane %v2513_v40, 1  ;;  %v4538_v36 = vrot.slane %v2513_v40, 2  ;;  %1261 = vrot.lane.b32.xlu0 %v1009_v24, %s23607_s21  ;;  %14219 = vmatprep.mubr.msk.f32.mxu1 %vm2334_vm7, %v2290_v51  ;;  %v1013_v51 = vsel %vm808_vm3, %v1010_v8, %v1012_v55  ;;  %v1646_v8 = vsel %vm1441_vm4, %v1643_v23, %v1645_v25  ;;  %v18715_v55 = vld [vmem:[%s16891_s29 + $0x358] sm:$0xff] }
 0x1d7   : > { %14220 = vmatmul.mubr.msk.f32.gmra.mrb[38].mxu1 %vm2334_vm7, %v2291_v12  ;;  %v1204_v18 = vpop.permute.xlu1 %1203  ;;  %v16600_v12 = vld [vmem:[%s16891_s29 + $0x2c8] sm:$0xff] }
 0x1d8   : > { %v4035_v42 = vsel %vm808_vm3, %v4032_v50, %v4034_v45  ;;  %v4037_v59 = vsel %vm808_vm3, %v4034_v45, %v4036_v39  ;;  %v4539_v57 = vsel %vm1441_vm4, %v4536_v2, %v4538_v36  ;;  %v4541_v52 = vsel %vm1441_vm4, %v4538_v36, %v4540_v34  ;;  %v1202_v1 = vpop.permute.xlu0 %1201  ;;  %v16601_v45 = vld [vmem:[%s16891_s29 + $0x2c0] sm:$0xff] }
 0x1d9   : > { %v4398_v15 = vmax.f32 %v18468_v10, %v4035_v42  ;;  %v4399_v7 = vmax.f32 %v2513_v40, %v4037_v59  ;;  %v2147_v50 = vsel %vm2074_vm5, %v16598_v62, %v1202_v1  ;;  %1894 = vrot.lane.b32.xlu1 %v1642_v31, %s23609_s22  ;;  %v1644_v2 = vsel %vm1441_vm4, %v1641_v60, %v1643_v23  ;;  %v18675_v31 = vld [vmem:[%s16891_s29 + $0x3d0] sm:$0xff] }
 0x1da   : > { %v18609_v19 = vpop.f32.mrb[12].mxu1  ;;  %1293 = vrot.lane.b32.xlu0 %v1040_v28, %s23607_s21  ;;  %v1042_v10 = vsel %vm808_vm3, %v1039_v16, %v1041_v48  ;;  %v2148_v21 = vsel %vm2074_vm5, %v16599_v6, %v1204_v18  ;;  %v18657_v16 = vld [vmem:[%s16891_s29 + $0x3c8] sm:$0xff]  ;;  %v1045_v62 = vrot.slane %v18675_v31, 1 }
 0x1db   : > { %v4902_v14 = vmax.f32 %v4398_v15, %v4539_v57  ;;  %v4903_v38 = vmax.f32 %v4399_v7, %v4541_v52  ;;  %v4067_v20 = vrot.slane %v18609_v19, 1  ;;  %v4571_v4 = vrot.slane %v18609_v19, 2  ;;  %v2706_v9 = vpop.f32.mrb[13].mxu1  ;;  %v1835_v13 = vpop.permute.xlu1 %1834 }
 0x1dc   : > { %v4065_v53 = vrot.slane %v2706_v9, 1  ;;  %v4569_v37 = vrot.slane %v2706_v9, 2  ;;  %v2276_v58 = vsel %vm2203_vm6, %v2147_v50, %v1835_v13  ;;  %v1234_v43 = vpop.permute.xlu0 %1233  ;;  %v1043_v40 = vrot.slane %v18657_v16, 1 }
 0x1dd   : > { %5031 = vst.msk [vmem:[#allocation2 + $0x58] sm:$0xff] %vm5019_vm8, %v4902_v14  ;;  %5032 = vst.msk [vmem:[#allocation2 + $0x60] sm:$0xff] %vm5019_vm8, %v4903_v38  ;;  %1896 = vrot.lane.b32.xlu1 %v1644_v2, %s23609_s22  ;;  %14194 = vmatprep.mubr.msk.f32.mxu0 %vm2334_vm7, %v2276_v58  ;;  %v2163_v36 = vsel %vm2074_vm5, %v16601_v45, %v1234_v43  ;;  %v1647_v7 = vrot.slane %v18622_v32, 2  ;;  %v1676_v23 = vrot.slane %v18657_v16, 2  ;;  %v16602_v58 = vld [vmem:[%s16891_s29 + $0x250] sm:$0xff] }
 0x1de   : > { %v4066_v26 = vsel %vm808_vm3, %v4063_v47, %v4065_v53  ;;  %v4068_v30 = vsel %vm808_vm3, %v4065_v53, %v4067_v20  ;;  %v4570_v56 = vsel %vm1441_vm4, %v4567_v49, %v4569_v37  ;;  %v4572_v0 = vsel %vm1441_vm4, %v4569_v37, %v4571_v4  ;;  %1295 = vrot.lane.b32.xlu0 %v1042_v10, %s23607_s21 }
 0x1df   : > { %v4414_v47 = vmax.f32 %v18503_v17, %v4066_v26  ;;  %v4415_v60 = vmax.f32 %v2706_v9, %v4068_v30  ;;  %v1837_v54 = vpop.permute.xlu1 %1836  ;;  %v1044_v33 = vsel %vm808_vm3, %v1041_v48, %v1043_v40  ;;  %v1678_v10 = vrot.slane %v18675_v31, 2 }
 0x1e0   : > { %v2277_v24 = vsel %vm2203_vm6, %v2148_v21, %v1837_v54  ;;  %v1236_v49 = vpop.permute.xlu0 %1235  ;;  %v1677_v16 = vsel %vm1441_vm4, %v1674_v35, %v1676_v23  ;;  %v16603_v35 = vld [vmem:[%s16891_s29 + $0x258] sm:$0xff] }
 0x1e1   : > { %v4918_v3 = vmax.f32 %v4414_v47, %v4570_v56  ;;  %v4919_v5 = vmax.f32 %v4415_v60, %v4572_v0  ;;  %v2164_v41 = vsel %vm2074_vm5, %v16600_v12, %v1236_v49  ;;  %1928 = vrot.lane.b32.xlu1 %v1675_v11, %s23609_s22  ;;  %14195 = vmatmul.mubr.msk.f32.gmra.mrb[40].mxu0 %vm2334_vm7, %v2277_v24 }
 0x1e2   : > { %1926 = vrot.lane.b32.xlu0 %v1673_v27, %s23609_s22  ;;  %v1648_v11 = vsel %vm1441_vm4, %v1645_v25, %v1647_v7  ;;  %v1679_v24 = vsel %vm1441_vm4, %v1676_v23, %v1678_v10  ;;  %v18772_v23 = vld [vmem:[%s16891_s29 + $0x3e0] sm:$0xff] }
 0x1e3   : > { %5048 = vst.msk [vmem:[#allocation2 + $0xd8] sm:$0xff] %vm5019_vm8, %v4918_v3  ;;  %5049 = vst.msk [vmem:[#allocation2 + $0xe0] sm:$0xff] %vm5019_vm8, %v4919_v5  ;;  %v1869_v17 = vpop.permute.xlu1 %1868  ;;  %v1016_v3 = vrot.slane %v18715_v55, 1 }
 0x1e4   : > { %v2293_v18 = vsel %vm2203_vm6, %v2164_v41, %v1869_v17  ;;  %v1867_v28 = vpop.permute.xlu0 %1866  ;;  %v14093_v63 = vpop.f32.mrb[14].mxu0 }
 0x1e5   : > { %v2292_v42 = vsel %vm2203_vm6, %v2163_v36, %v1867_v28  ;;  %v4040_v59 = vrot.slane %v14093_v63, 1  ;;  %v4544_v57 = vrot.slane %v14093_v63, 2  ;;  %1267 = vrot.lane.b32.xlu1 %v1015_v29, %s23607_s21  ;;  %v2523_v52 = vpop.f32.mrb[15].mxu0 }
 0x1e6   : > { %v4038_v1 = vrot.slane %v2523_v52, 1  ;;  %v4542_v15 = vrot.slane %v2523_v52, 2  ;;  %1265 = vrot.lane.b32.xlu0 %v1013_v51, %s23607_s21  ;;  %14222 = vmatprep.mubr.msk.f32.mxu1 %vm2334_vm7, %v2292_v42 }
 0x1e7   : > { %v4402_v50 = vmax.f32 %v14093_v63, %v4040_v59  ;;  %14223 = vmatmul.mubr.msk.f32.gmra.mrb[40].mxu1 %vm2334_vm7, %v2293_v18  ;;  %v1208_v2 = vpop.permute.xlu1 %1207  ;;  %v18748_v18 = vld [vmem:[%s16891_s29 + $0x3d8] sm:$0xff] }
 0x1e8   : > { %v4039_v44 = vsel %vm808_vm3, %v4036_v39, %v4038_v1  ;;  %v4041_v14 = vsel %vm808_vm3, %v4038_v1, %v4040_v59  ;;  %v4543_v38 = vsel %vm1441_vm4, %v4540_v34, %v4542_v15  ;;  %v4545_v9 = vsel %vm1441_vm4, %v4542_v15, %v4544_v57  ;;  %v1206_v13 = vpop.permute.xlu0 %1205  ;;  %v16604_v63 = vld [vmem:[%s16891_s29 + $0x2d8] sm:$0xff]  ;;  %v16605_v1 = vld [vmem:[%s16891_s29 + $0x2d0] sm:$0xff] }
 0x1e9   : > { %v4906_v48 = vmax.f32 %v4402_v50, %v4544_v57  ;;  %v4400_v53 = vmax.f32 %v18574_v61, %v4039_v44  ;;  %v4401_v37 = vmax.f32 %v2523_v52, %v4041_v14  ;;  %1898 = vrot.lane.b32.xlu1 %v1646_v8, %s23609_s22  ;;  %v2149_v43 = vsel %vm2074_vm5, %v16602_v58, %v1206_v13  ;;  %v18718_v61 = vld [vmem:[%s16891_s29 + $0x360] sm:$0xff] }
 0x1ea   : > { %v14121_v39 = vpop.f32.mrb[14].mxu1  ;;  %1297 = vrot.lane.b32.xlu0 %v1044_v33, %s23607_s21  ;;  %v1046_v34 = vsel %vm808_vm3, %v1043_v40, %v1045_v62  ;;  %v1018_v5 = vrot.slane %v18718_v61, 1  ;;  %v2150_v29 = vsel %vm2074_vm5, %v16603_v35, %v1208_v2  ;;  %v1649_v59 = vrot.slane %v18715_v55, 2 }
 0x1eb   : > { %5036 = vst.msk [vmem:[#allocation2 + $0x78] sm:$0xf] %vm5035_vm9, %v4906_v48  ;;  %v4904_v26 = vmax.f32 %v4400_v53, %v4543_v38  ;;  %v4905_v30 = vmax.f32 %v4401_v37, %v4545_v9  ;;  %v4071_v56 = vrot.slane %v14121_v39, 1  ;;  %v4575_v0 = vrot.slane %v14121_v39, 2  ;;  %v2716_v6 = vpop.f32.mrb[15].mxu1  ;;  %v1839_v21 = vpop.permute.xlu1 %1838 }
 0x1ec   : > { %v4069_v47 = vrot.slane %v2716_v6, 1  ;;  %v4573_v60 = vrot.slane %v2716_v6, 2  ;;  %v2278_v54 = vsel %vm2203_vm6, %v2149_v43, %v1839_v21  ;;  %v1238_v27 = vpop.permute.xlu0 %1237  ;;  %v1017_v52 = vsel %vm808_vm3, %v1014_v46, %v1016_v3 }
 0x1ed   : > { %5033 = vst.msk [vmem:[#allocation2 + $0x68] sm:$0xff] %vm5019_vm8, %v4904_v26  ;;  %5034 = vst.msk [vmem:[#allocation2 + $0x70] sm:$0xff] %vm5019_vm8, %v4905_v30  ;;  %v4418_v49 = vmax.f32 %v14121_v39, %v4071_v56  ;;  %1900 = vrot.lane.b32.xlu1 %v1648_v11, %s23609_s22  ;;  %14197 = vmatprep.mubr.msk.f32.mxu0 %vm2334_vm7, %v2278_v54  ;;  %v1047_v8 = vrot.slane %v18748_v18, 1  ;;  %v2165_v15 = vsel %vm2074_vm5, %v16605_v1, %v1238_v27  ;;  %v18812_v27 = vld [vmem:[%s16891_s29 + $0x368] sm:$0xff] }
 0x1ee   : > { %v4070_v12 = vsel %vm808_vm3, %v4067_v20, %v4069_v47  ;;  %v4072_v41 = vsel %vm808_vm3, %v4069_v47, %v4071_v56  ;;  %v4574_v25 = vsel %vm1441_vm4, %v4571_v4, %v4573_v60  ;;  %v4576_v22 = vsel %vm1441_vm4, %v4573_v60, %v4575_v0  ;;  %1299 = vrot.lane.b32.xlu0 %v1046_v34, %s23607_s21  ;;  %v16606_v34 = vld [vmem:[%s16891_s29 + $0x260] sm:$0xff] }
 0x1ef   : > { %v4922_v17 = vmax.f32 %v4418_v49, %v4575_v0  ;;  %v4416_v51 = vmax.f32 %v18609_v19, %v4070_v12  ;;  %v4417_v40 = vmax.f32 %v2716_v6, %v4072_v41  ;;  %v1841_v45 = vpop.permute.xlu1 %1840  ;;  %v1019_v19 = vsel %vm808_vm3, %v1016_v3, %v1018_v5 }
 0x1f0   : > { %v2279_v20 = vsel %vm2203_vm6, %v2150_v29, %v1841_v45  ;;  %v1240_v36 = vpop.permute.xlu0 %1239  ;;  %v1650_v48 = vsel %vm1441_vm4, %v1647_v7, %v1649_v59  ;;  %v1651_v53 = vrot.slane %v18718_v61, 2  ;;  %v1048_v58 = vsel %vm808_vm3, %v1045_v62, %v1047_v8 }
 0x1f1   : > { %5052 = vst.msk [vmem:[#allocation2 + $0xf8] sm:$0xf] %vm5035_vm9, %v4922_v17  ;;  %v4920_v4 = vmax.f32 %v4416_v51, %v4574_v25  ;;  %v4921_v28 = vmax.f32 %v4417_v40, %v4576_v22  ;;  %v2166_v42 = vsel %vm2074_vm5, %v16604_v63, %v1240_v36  ;;  %1932 = vrot.lane.b32.xlu1 %v1679_v24, %s23609_s22  ;;  %v1049_v43 = vrot.slane %v18772_v23, 1  ;;  %v18815_v24 = vld [vmem:[%s16891_s29 + $0x370] sm:$0xff]  ;;  %v16607_v17 = vld [vmem:[%s16891_s29 + $0x268] sm:$0xff] }
 0x1f2   : > { %14198 = vmatmul.mubr.msk.f32.gmra.mrb[42].mxu0 %vm2334_vm7, %v2279_v20  ;;  %1930 = vrot.lane.b32.xlu0 %v1677_v16, %s23609_s22  ;;  %v1680_v62 = vrot.slane %v18748_v18, 2  ;;  %v1682_v26 = vrot.slane %v18772_v23, 2  ;;  %v1652_v56 = vsel %vm1441_vm4, %v1649_v59, %v1651_v53  ;;  %v1020_v35 = vrot.slane %v18812_v27, 1  ;;  %v16608_v63 = vld [vmem:[%s16891_s29 + $0x2e8] sm:$0xff] }
 0x1f3   : > { %5050 = vst.msk [vmem:[#allocation2 + $0xe8] sm:$0xff] %vm5019_vm8, %v4920_v4  ;;  %5051 = vst.msk [vmem:[#allocation2 + $0xf0] sm:$0xff] %vm5019_vm8, %v4921_v28  ;;  %v1873_v57 = vpop.permute.xlu1 %1872  ;;  %v1050_v54 = vsel %vm808_vm3, %v1047_v8, %v1049_v43  ;;  %v1022_v29 = vrot.slane %v18815_v24, 1  ;;  %v18840_v4 = vld [vmem:[%s16891_s29 + $0x3e8] sm:$0xff]  ;;  %v16609_v8 = vld [vmem:[%s16891_s29 + $0x2e0] sm:$0xff] }
 0x1f4   : > { %v2295_v50 = vsel %vm2203_vm6, %v2166_v42, %v1873_v57  ;;  %v1871_v2 = vpop.permute.xlu0 %1870  ;;  %v18769_v33 = vpop.f32.mrb[16].mxu0  ;;  %v1683_v41 = vsel %vm1441_vm4, %v1680_v62, %v1682_v26  ;;  %v1681_v20 = vsel %vm1441_vm4, %v1678_v10, %v1680_v62  ;;  %v1021_v59 = vsel %vm808_vm3, %v1018_v5, %v1020_v35 }
 0x1f5   : > { %v2294_v44 = vsel %vm2203_vm6, %v2165_v15, %v1871_v2  ;;  %v4074_v14 = vrot.slane %v18769_v33, 1  ;;  %v4578_v38 = vrot.slane %v18769_v33, 2  ;;  %1271 = vrot.lane.b32.xlu1 %v1019_v19, %s23607_s21  ;;  %v2839_v46 = vpop.f32.mrb[17].mxu0  ;;  %v1653_v19 = vrot.slane %v18812_v27, 2 }
 0x1f6   : > { %v4073_v9 = vrot.slane %v2839_v46, 1  ;;  %v4577_v13 = vrot.slane %v2839_v46, 2  ;;  %1269 = vrot.lane.b32.xlu0 %v1017_v52, %s23607_s21  ;;  %14225 = vmatprep.mubr.msk.f32.mxu1 %vm2334_vm7, %v2294_v44  ;;  %v1023_v31 = vsel %vm808_vm3, %v1020_v35, %v1022_v29  ;;  %v1051_v57 = vrot.slane %v18840_v4, 1  ;;  %v18857_v52 = vld [vmem:[%s16891_s29 + $0x3f0] sm:$0xff] }
 0x1f7   : > { %14226 = vmatmul.mubr.msk.f32.gmra.mrb[42].mxu1 %vm2334_vm7, %v2295_v50  ;;  %v1212_v37 = vpop.permute.xlu1 %1211 }
 0x1f8   : > { %v4075_v39 = vsel %vm808_vm3, %v4073_v9, %v4074_v14  ;;  %v4579_v32 = vsel %vm1441_vm4, %v4577_v13, %v4578_v38  ;;  %v1210_v7 = vpop.permute.xlu0 %1209  ;;  %v2152_v51 = vsel %vm2074_vm5, %v16607_v17, %v1212_v37  ;;  %v1654_v13 = vsel %vm1441_vm4, %v1651_v53, %v1653_v19  ;;  %v18910_v17 = vld [vmem:[%s16891_s29 + $0x378] sm:$0xff] }
 0x1f9   : > { %v4419_v11 = vmax.f32 %v2839_v46, %v4075_v39  ;;  %v2151_v55 = vsel %vm2074_vm5, %v16606_v34, %v1210_v7  ;;  %1902 = vrot.lane.b32.xlu1 %v1650_v48, %s23609_s22  ;;  %v1053_v39 = vrot.slane %v18857_v52, 1  ;;  %v1052_v61 = vsel %vm808_vm3, %v1049_v43, %v1051_v57 }
 0x1fa   : > { %v18800_v30 = vpop.f32.mrb[16].mxu1  ;;  %1301 = vrot.lane.b32.xlu0 %v1048_v58, %s23607_s21  ;;  %v1655_v58 = vrot.slane %v18815_v24, 2  ;;  %v1684_v53 = vrot.slane %v18840_v4, 2 }
 0x1fb   : > { %v4923_v0 = vmax.f32 %v4419_v11, %v4579_v32  ;;  %v4105_v6 = vrot.slane %v18800_v30, 1  ;;  %v4609_v21 = vrot.slane %v18800_v30, 2  ;;  %v3032_v47 = vpop.f32.mrb[17].mxu1  ;;  %v1843_v60 = vpop.permute.xlu1 %1842 }
 0x1fc   : > { %v4104_v49 = vrot.slane %v3032_v47, 1  ;;  %v4608_v16 = vrot.slane %v3032_v47, 2  ;;  %v2280_v3 = vsel %vm2203_vm6, %v2151_v55, %v1843_v60  ;;  %v1242_v12 = vpop.permute.xlu0 %1241 }
 0x1fd   : > { %5053 = vst.msk [vmem:[#allocation2 + $0x100] sm:$0xff] %vm5019_vm8, %v4923_v0  ;;  %1904 = vrot.lane.b32.xlu1 %v1652_v56, %s23609_s22  ;;  %14200 = vmatprep.mubr.msk.f32.mxu0 %vm2334_vm7, %v2280_v3  ;;  %v2167_v1 = vsel %vm2074_vm5, %v16609_v8, %v1242_v12  ;;  %v16610_v0 = vld [vmem:[%s16891_s29 + $0x270] sm:$0xff] }
 0x1fe   : > { %v4106_v25 = vsel %vm808_vm3, %v4104_v49, %v4105_v6  ;;  %v4610_v22 = vsel %vm1441_vm4, %v4608_v16, %v4609_v21  ;;  %1303 = vrot.lane.b32.xlu0 %v1050_v54, %s23607_s21 }
 0x1ff   : > { %v4435_v40 = vmax.f32 %v3032_v47, %v4106_v25  ;;  %v1845_v45 = vpop.permute.xlu1 %1844 }
 0x200   : > { %v2281_v36 = vsel %vm2203_vm6, %v2152_v51, %v1845_v45  ;;  %v1244_v18 = vpop.permute.xlu0 %1243  ;;  %v6228_v51 = vld [vmem:[%s23643_s3] sm:$0xff] }
 0x201   : > { %v4939_v28 = vmax.f32 %v4435_v40, %v4610_v22  ;;  %v2168_v42 = vsel %vm2074_vm5, %v16608_v63, %v1244_v18  ;;  %1936 = vrot.lane.b32.xlu1 %v1683_v41, %s23609_s22  ;;  %14201 = vmatmul.mubr.msk.f32.gmra.mrb[44].mxu0 %vm2334_vm7, %v2281_v36  ;;  %v6229_v40 = vld [vmem:[%s23643_s3 + $0x8] sm:$0xff] }
 0x202   : > { %1934 = vrot.lane.b32.xlu0 %v1681_v20, %s23609_s22  ;;  %v1685_v20 = vsel %vm1441_vm4, %v1682_v26, %v1684_v53  ;;  %v18928_v36 = vpack.c.bf16 %v6229_v40, %v6228_v51  ;;  %v16611_v26 = vld [vmem:[%s16891_s29 + $0x278] sm:$0xff] }
 0x203   : > { %5069 = vst.msk [vmem:[#allocation2 + $0x180] sm:$0xff] %vm5019_vm8, %v4939_v28  ;;  %v1877_v10 = vpop.permute.xlu1 %1876 }
 0x204   : > { %v2297_v15 = vsel %vm2203_vm6, %v2168_v42, %v1877_v10  ;;  %v1875_v50 = vpop.permute.xlu0 %1874  ;;  %v18862_v2 = vpop.f32.mrb[18].mxu0  ;;  %15515 = vmatprep.subr.bf16.mxu0 %v18928_v36  ;;  %15539 = vmatprep.subr.bf16.mxu1 %v18928_v36 }
 0x205   : > { %v2296_v44 = vsel %vm2203_vm6, %v2167_v1, %v1875_v50  ;;  %v4078_v46 = vrot.slane %v18862_v2, 1  ;;  %v4582_v9 = vrot.slane %v18862_v2, 2  ;;  %1275 = vrot.lane.b32.xlu1 %v1023_v31, %s23607_s21  ;;  %v2849_v5 = vpop.f32.mrb[19].mxu0  ;;  %v1024_v31 = vrot.slane %v18910_v17, 1 }
 0x206   : > { %v4076_v48 = vrot.slane %v2849_v5, 1  ;;  %v4580_v37 = vrot.slane %v2849_v5, 2  ;;  %1273 = vrot.lane.b32.xlu0 %v1021_v59, %s23607_s21  ;;  %14228 = vmatprep.mubr.msk.f32.mxu1 %vm2334_vm7, %v2296_v44  ;;  %v18951_v59 = vld [vmem:[%s16891_s29 + $0x3f8] sm:$0xff]  ;;  %v1657_v50 = vrot.slane %v18910_v17, 2  ;;  %v18961_v44 = vld [vmem:[%s23645_s2] ss:$0 sm:$0xff] }
 0x207   : > { %14229 = vmatmul.mubr.msk.f32.gmra.mrb[44].mxu1 %vm2334_vm7, %v2297_v15  ;;  %v1216_v32 = vpop.permute.xlu1 %1215  ;;  %v16612_v15 = vld [vmem:[%s16891_s29 + $0x2f8] sm:$0xff] }
 0x208   : > { %v4077_v7 = vsel %vm808_vm3, %v4074_v14, %v4076_v48  ;;  %v4079_v11 = vsel %vm808_vm3, %v4076_v48, %v4078_v46  ;;  %v4581_v34 = vsel %vm1441_vm4, %v4578_v38, %v4580_v37  ;;  %v4583_v55 = vsel %vm1441_vm4, %v4580_v37, %v4582_v9  ;;  %v1214_v62 = vpop.permute.xlu0 %1213 }
 0x209   : > { %v4420_v43 = vmax.f32 %v18769_v33, %v4077_v7  ;;  %v4421_v56 = vmax.f32 %v2849_v5, %v4079_v11  ;;  %v2153_v47 = vsel %vm2074_vm5, %v16610_v0, %v1214_v62  ;;  %1906 = vrot.lane.b32.xlu1 %v1654_v13, %s23609_s22  ;;  %v1686_v14 = vrot.slane %v18857_v52, 2  ;;  %v5149_v5 = vld [vmem:[#allocation2] ss:$2 sm:$0xff] }
 0x20a   : > { %v18897_v60 = vpop.f32.mrb[18].mxu1  ;;  %1305 = vrot.lane.b32.xlu0 %v1052_v61, %s23607_s21  ;;  %v1656_v38 = vsel %vm1441_vm4, %v1653_v19, %v1655_v58  ;;  %v1054_v33 = vsel %vm808_vm3, %v1051_v57, %v1053_v39  ;;  %s23644_s21 = smov 4   ;;  %v2154_v63 = vsel %vm2074_vm5, %v16611_v26, %v1216_v32  ;;  %v5151_v57 = vld [vmem:[#allocation2 + $0x10] ss:$2 sm:$0xff]  ;;  %v1025_v48 = vsel %vm808_vm3, %v1022_v29, %v1024_v31  ;;  %v5165_v61 = vld [vmem:[#allocation2 + $0x80] ss:$2 sm:$0xff] }
 0x20b   : > { %v4924_v54 = vmax.f32 %v4420_v43, %v4581_v34  ;;  %v4925_v27 = vmax.f32 %v4421_v56, %v4583_v55  ;;  %v4109_v49 = vrot.slane %v18897_v60, 1  ;;  %v4613_v16 = vrot.slane %v18897_v60, 2  ;;  %v3042_v3 = vpop.f32.mrb[19].mxu1  ;;  %v1847_v12 = vpop.permute.xlu1 %1846  ;;  %v5153_v62 = vld [vmem:[#allocation2 + $0x20] ss:$2 sm:$0xff] }
 0x20c   : > { %v4107_v41 = vrot.slane %v3042_v3, 1  ;;  %v4611_v25 = vrot.slane %v3042_v3, 2  ;;  %v2282_v22 = vsel %vm2203_vm6, %v2153_v47, %v1847_v12  ;;  %v1246_v35 = vpop.permute.xlu0 %1245  ;;  %v1687_v45 = vsel %vm1441_vm4, %v1684_v53, %v1686_v14  ;;  %v16613_v53 = vld [vmem:[%s16891_s29 + $0x2f0] sm:$0xff]  ;;  %v5169_v26 = vld [vmem:[#allocation2 + $0xa0] ss:$2 sm:$0xff] }
 0x20d   : > { %5054 = vst.msk [vmem:[#allocation2 + $0x108] sm:$0xff] %vm5019_vm8, %v4924_v54  ;;  %5055 = vst.msk [vmem:[#allocation2 + $0x110] sm:$0xff] %vm5019_vm8, %v4925_v27  ;;  %1908 = vrot.lane.b32.xlu1 %v1656_v38, %s23609_s22  ;;  %14203 = vmatprep.mubr.msk.f32.mxu0 %vm2334_vm7, %v2282_v22  ;;  %v1055_v37 = vrot.slane %v18951_v59, 1  ;;  %v5284_v32 = vadd.f32 %v18961_v44, %v5151_v57  ;;  %v2169_v7 = vsel %vm2074_vm5, %v16613_v53, %v1246_v35  ;;  %v16615_v53 = vld [vmem:[%s16891_s29 + $0x308] sm:$0xff] }
 0x20e   : > { %v4108_v18 = vsel %vm808_vm3, %v4105_v6, %v4107_v41  ;;  %v4110_v4 = vsel %vm808_vm3, %v4107_v41, %v4109_v49  ;;  %v4612_v28 = vsel %vm1441_vm4, %v4609_v21, %v4611_v25  ;;  %v4614_v23 = vsel %vm1441_vm4, %v4611_v25, %v4613_v16  ;;  %1307 = vrot.lane.b32.xlu0 %v1054_v33, %s23644_s21 }
 0x20f   : > { %v4436_v6 = vmax.f32 %v18800_v30, %v4108_v18  ;;  %v4437_v42 = vmax.f32 %v3042_v3, %v4110_v4  ;;  %v1849_v19 = vpop.permute.xlu1 %1848  ;;  %v5283_v43 = vadd.f32 %v18961_v44, %v5149_v5  ;;  %v1658_v38 = vsel %vm1441_vm4, %v1655_v58, %v1657_v50  ;;  %v5167_v3 = vld [vmem:[#allocation2 + $0x90] ss:$2 sm:$0xff]  ;;  %v16614_v18 = vld [vmem:[%s16891_s29 + $0x300] sm:$0xff] }
 0x210   : > { %v2283_v21 = vsel %vm2203_vm6, %v2154_v63, %v1849_v19  ;;  %v1248_v10 = vpop.permute.xlu0 %1247  ;;  %v1688_v27 = vrot.slane %v18951_v59, 2  ;;  %v5291_v12 = vadd.f32 %v18961_v44, %v5165_v61  ;;  %v1056_v24 = vsel %vm808_vm3, %v1053_v39, %v1055_v37 }
 0x211   : > { %v4940_v8 = vmax.f32 %v4436_v6, %v4612_v28  ;;  %v4941_v1 = vmax.f32 %v4437_v42, %v4614_v23  ;;  %v2170_v30 = vsel %vm2074_vm5, %v16612_v15, %v1248_v10  ;;  %1940 = vrot.lane.b32.xlu1 %v1687_v45, %s23609_s22  ;;  %14204 = vmatmul.mubr.msk.f32.gmra.mrb[46].mxu0 %vm2334_vm7, %v2283_v21  ;;  %v18997_v25 = vmax.f32 %v5284_v32, 0.0  ;;  %v6231_v15 = vld [vmem:[%s23643_s3 + $0x18] sm:$0xff] }
 0x212   : > { %1938 = vrot.lane.b32.xlu0 %v1685_v20, %s23609_s22  ;;  %v5285_v58 = vadd.f32 %v18961_v44, %v5153_v62  ;;  %v19024_v23 = vmax.f32 %v5283_v43, 0.0 }
 0x213   : > { %5070 = vst.msk [vmem:[#allocation2 + $0x188] sm:$0xff] %vm5019_vm8, %v4940_v8  ;;  %5071 = vst.msk [vmem:[#allocation2 + $0x190] sm:$0xff] %vm5019_vm8, %v4941_v1  ;;  %v1881_v13 = vpop.permute.xlu1 %1880  ;;  %v5788_v5 = vrot.slane %v18997_v25, 2 }
 0x214   : > { %v2299_v11 = vsel %vm2203_vm6, %v2170_v30, %v1881_v13  ;;  %v1879_v34 = vpop.permute.xlu0 %1878  ;;  %v18974_v55 = vpop.f32.mrb[20].mxu0  ;;  %v19031_v1 = vmax.f32 %v5285_v58, 0.0  ;;  %v5476_v30 = vrot.slane %v18997_v25, 1 }
 0x215   : > { %v2298_v56 = vsel %vm2203_vm6, %v2169_v7, %v1879_v34  ;;  %v4082_v29 = vrot.slane %v18974_v55, 1  ;;  %v4586_v0 = vrot.slane %v18974_v55, 2  ;;  %1279 = vrot.lane.b32.xlu1 %v1024_v31, %s23644_s21  ;;  %v2859_v47 = vpop.f32.mrb[21].mxu0 }
 0x216   : > { %v4080_v33 = vrot.slane %v2859_v47, 1  ;;  %v4584_v54 = vrot.slane %v2859_v47, 2  ;;  %1277 = vrot.lane.b32.xlu0 %v1025_v48, %s23644_s21  ;;  %14231 = vmatprep.mubr.msk.f32.mxu1 %vm2334_vm7, %v2298_v56  ;;  %v5293_v48 = vadd.f32 %v18961_v44, %v5169_v26  ;;  %v5478_v56 = vrot.slane %v19031_v1, 1  ;;  %v6234_v26 = vld [vmem:[%s23643_s3 + $0x30] sm:$0xff] }
 0x217   : > { %14232 = vmatmul.mubr.msk.f32.gmra.mrb[46].mxu1 %vm2334_vm7, %v2299_v11  ;;  %v1252_v41 = vpop.permute.xlu1 %1251 }
 0x218   : > { %v4081_v22 = vsel %vm808_vm3, %v4078_v46, %v4080_v33  ;;  %v4083_v35 = vsel %vm808_vm3, %v4080_v33, %v4082_v29  ;;  %v4585_v51 = vsel %vm1441_vm4, %v4582_v9, %v4584_v54  ;;  %v4587_v39 = vsel %vm1441_vm4, %v4584_v54, %v4586_v0  ;;  %v1250_v40 = vpop.permute.xlu0 %1249  ;;  %v16616_v54 = vld [vmem:[%s16891_s29 + $0x388] sm:$0xff] }
 0x219   : > { %v4422_v45 = vmax.f32 %v18862_v2, %v4081_v22  ;;  %v4423_v20 = vmax.f32 %v2859_v47, %v4083_v35  ;;  %v2171_v4 = vsel %vm2074_vm5, %v16614_v18, %v1250_v40  ;;  %1910 = vrot.lane.b32.xlu1 %v1658_v38, %s23609_s22  ;;  %v5292_v46 = vadd.f32 %v18961_v44, %v5167_v3  ;;  %v5157_v35 = vld [vmem:[#allocation2 + $0x40] ss:$2 sm:$0xff]  ;;  %s23545_s22 = scalar_lea.hbm %s23604_s17, %s13170_s30 }
 0x21a   : > { %v19016_v28 = vpop.f32.mrb[20].mxu1  ;;  %1309 = vrot.lane.b32.xlu0 %v1056_v24, %s23644_s21  ;;  %v1689_v9 = vsel %vm1441_vm4, %v1686_v14, %v1688_v27  ;;  %v19026_v2 = vmax.f32 %v5291_v12, 0.0  ;;  %v6230_v14 = vld [vmem:[%s23643_s3 + $0x10] sm:$0xff]  ;;  %v5475_v47 = vrot.slane %v19024_v23, 1  ;;  %v19091_v22 = vmax.f32 %v5293_v48, 0.0  ;;  %v16617_v40 = vld [vmem:[%s16891_s29 + $0x380] sm:$0xff] }
 0x21b   : > { %v4926_v63 = vmax.f32 %v4422_v45, %v4585_v51  ;;  %v4927_v6 = vmax.f32 %v4423_v20, %v4587_v39  ;;  %v4113_v42 = vrot.slane %v19016_v28, 1  ;;  %v4617_v19 = vrot.slane %v19016_v28, 2  ;;  %v3052_v31 = vpop.f32.mrb[21].mxu1  ;;  %v1883_v21 = vpop.permute.xlu1 %1882  ;;  %v6232_v51 = vld [vmem:[%s23643_s3 + $0x20] sm:$0xff]  ;;  %v6233_v39 = vld [vmem:[%s23643_s3 + $0x28] sm:$0xff] }
 0x21c   : > { %v4111_v10 = vrot.slane %v3052_v31, 1  ;;  %v4615_v57 = vrot.slane %v3052_v31, 2  ;;  %v2300_v8 = vsel %vm2203_vm6, %v2171_v4, %v1883_v21  ;;  %v1282_v52 = vpop.permute.xlu0 %1281  ;;  %v19047_v13 = vmax.f32 %v5292_v46, 0.0 }
 0x21d   : > { %5056 = vst.msk [vmem:[#allocation2 + $0x118] sm:$0xff] %vm5019_vm8, %v4926_v63  ;;  %5057 = vst.msk [vmem:[#allocation2 + $0x120] sm:$0xff] %vm5019_vm8, %v4927_v6  ;;  %1912 = vrot.lane.b32.xlu1 %v1657_v50, %s23646_s19  ;;  %14238 = vmatprep.mubr.msk.f32.mxu0 %vm2334_vm7, %v2300_v8  ;;  %v19068_v62 = vpack.c.bf16 %v6231_v15, %v6230_v14  ;;  %v5490_v3 = vrot.slane %v19026_v2, 1  ;;  %v5802_v12 = vrot.slane %v19026_v2, 2  ;;  %v6235_v63 = vld [vmem:[%s23643_s3 + $0x38] sm:$0xff] }
 0x21e   : > { %v4112_v32 = vsel %vm808_vm3, %v4109_v49, %v4111_v10  ;;  %v4114_v61 = vsel %vm808_vm3, %v4111_v10, %v4113_v42  ;;  %v4616_v17 = vsel %vm1441_vm4, %v4613_v16, %v4615_v57  ;;  %v4618_v50 = vsel %vm1441_vm4, %v4615_v57, %v4617_v19  ;;  %1311 = vrot.lane.b32.xlu0 %v1055_v37, %s23644_s21  ;;  %s23627_s21 = smov 32  }
 0x21f   : > { %v2172_v49 = vsel %vm2074_vm5, %v16615_v53, %v1252_v41  ;;  %v4438_v7 = vmax.f32 %v18897_v60, %v4112_v32  ;;  %v4439_v11 = vmax.f32 %v3052_v31, %v4114_v61  ;;  %v1885_v34 = vpop.permute.xlu1 %1884  ;;  %v5787_v60 = vrot.slane %v19024_v23, 2  ;;  %v5155_v41 = vld [vmem:[#allocation2 + $0x30] ss:$2 sm:$0xff] }
 0x220   : > { %v2301_v43 = vsel %vm2203_vm6, %v2172_v49, %v1885_v34  ;;  %v1284_v16 = vpop.permute.xlu0 %1283  ;;  %v5491_v58 = vrot.slane %v19047_v13, 1  ;;  %v2187_v45 = vsel %vm2074_vm5, %v16617_v40, %v1282_v52  ;;  %v5479_v46 = vsel %vm808_vm3, %v5476_v30, %v5478_v56 }
 0x221   : > { %v4942_v38 = vmax.f32 %v4438_v7, %v4616_v17  ;;  %v4943_v33 = vmax.f32 %v4439_v11, %v4618_v50  ;;  %v2188_v37 = vsel %vm2074_vm5, %v16616_v54, %v1284_v16  ;;  %1944 = vrot.lane.b32.xlu1 %v1688_v27, %s23646_s19  ;;  %14239 = vmatmul.mubr.msk.f32.vlgmr.msra.gmra.mrb[48].mxu0 %vm2334_vm7, %v2301_v43  ;;  %v5493_v32 = vrot.slane %v19091_v22, 1  ;;  %v5171_v17 = vld [vmem:[#allocation2 + $0xb0] ss:$2 sm:$0xff] }
 0x222   : > { %1942 = vrot.lane.b32.xlu0 %v1689_v9, %s23646_s19  ;;  %15517 = vmatpush3.bf16.msra.mxu0 %v18928_v36  ;;  %v5477_v27 = vsel %vm808_vm3, %v5475_v47, %v5476_v30  ;;  %v5789_v24 = vsel %vm1441_vm4, %v5787_v60, %v5788_v5  ;;  %v5790_v9 = vrot.slane %v19031_v1, 2  ;;  %v5286_v57 = vadd.f32 %v18961_v44, %v5155_v41  ;;  %v16618_v47 = vld [vmem:[%s16891_s29 + $0x310] sm:$0xff]  ;;  %v5173_v41 = vld [vmem:[#allocation2 + $0xc0] ss:$2 sm:$0xff]  ;;  %s23666_s19 = smov 64  }
 0x223   : > { %5072 = vst.msk [vmem:[#allocation2 + $0x198] sm:$0xff] %vm5019_vm8, %v4942_v38  ;;  %5073 = vst.msk [vmem:[#allocation2 + $0x1a0] sm:$0xff] %vm5019_vm8, %v4943_v33  ;;  %v1917_v59 = vpop.permute.xlu1 %1916  ;;  %15519 = vmatprep.subr.bf16.mxu0 %v19068_v62  ;;  %v5287_v14 = vadd.f32 %v18961_v44, %v5157_v35  ;;  %v19123_v15 = vpack.c.bf16 %v6233_v39, %v6232_v51  ;;  %v5492_v48 = vsel %vm808_vm3, %v5490_v3, %v5491_v58  ;;  %v6237_v33 = vld [vmem:[%s23643_s3 + $0x48] sm:$0xff] }
 0x224   : > { %v2317_v20 = vsel %vm2203_vm6, %v2188_v37, %v1917_v59  ;;  %v1915_v18 = vpop.permute.xlu0 %1914  ;;  %v19103_v4 = vpop.f32.mrb[22].mxu0  ;;  %v5803_v61 = vrot.slane %v19047_v13, 2  ;;  %v19132_v50 = vpack.c.bf16 %v6235_v63, %v6234_v26  ;;  %v19151_v38 = vmax.f32 %v5286_v57, 0.0 }
 0x225   : > { %v2316_v6 = vsel %vm2203_vm6, %v2187_v45, %v1915_v18  ;;  %v4086_v31 = vrot.slane %v19103_v4, 1  ;;  %v4590_v21 = vrot.slane %v19103_v4, 2  ;;  %5597 = vrot.lane.b32.xlu1 %v5479_v46, %s23627_s21  ;;  %v2869_v10 = vpop.f32.mrb[23].mxu0  ;;  %v5805_v37 = vrot.slane %v19091_v22, 2 }
 0x226   : > { %v4084_v8 = vrot.slane %v2869_v10, 1  ;;  %v4588_v52 = vrot.slane %v2869_v10, 2  ;;  %5595 = vrot.lane.b32.xlu0 %v5477_v27, %s23627_s21  ;;  %14266 = vmatprep.mubr.msk.f32.mxu1 %vm2334_vm7, %v2316_v6  ;;  %v19168_v60 = vmax.f32 %v5287_v14, 0.0  ;;  %v5294_v3 = vadd.f32 %v18961_v44, %v5171_v17  ;;  %v16619_v14 = vld [vmem:[%s16891_s29 + $0x318] sm:$0xff] }
 0x227   : > { %14267 = vmatmul.mubr.msk.f32.vlgmr.msra.gmra.mrb[48].mxu1 %vm2334_vm7, %v2317_v20  ;;  %v1256_v30 = vpop.permute.xlu1 %1255  ;;  %15521 = vmatpush3.bf16.msra.mxu0 %v19068_v62  ;;  %v5494_v46 = vsel %vm808_vm3, %v5491_v58, %v5493_v32  ;;  %v5804_v26 = vsel %vm1441_vm4, %v5802_v12, %v5803_v61  ;;  %v5480_v63 = vrot.slane %v19151_v38, 1  ;;  %v5295_v6 = vadd.f32 %v18961_v44, %v5173_v41  ;;  %v6239_v58 = vld [vmem:[%s23643_s3 + $0x58] sm:$0xff]  ;;  %v16621_v41 = vld [vmem:[%s16891_s29 + $0x390] sm:$0xff] }
 0x228   : > { %v4085_v53 = vsel %vm808_vm3, %v4082_v29, %v4084_v8  ;;  %v4087_v49 = vsel %vm808_vm3, %v4084_v8, %v4086_v31  ;;  %v4589_v7 = vsel %vm1441_vm4, %v4586_v0, %v4588_v52  ;;  %v4591_v11 = vsel %vm1441_vm4, %v4588_v52, %v4590_v21  ;;  %v1254_v34 = vpop.permute.xlu0 %1253  ;;  %15541 = vmatpush3.bf16.msra.mxu1 %v18928_v36  ;;  %v6236_v0 = vld [vmem:[%s23643_s3 + $0x40] sm:$0xff] }
 0x229   : > { %v4424_v43 = vmax.f32 %v18974_v55, %v4085_v53  ;;  %v4425_v16 = vmax.f32 %v2869_v10, %v4087_v49  ;;  %v2173_v29 = vsel %vm2074_vm5, %v16618_v47, %v1254_v34  ;;  %5907 = vrot.lane.b32.xlu1 %v5789_v24, %s23625_s18  ;;  %v5791_v55 = vsel %vm1441_vm4, %v5788_v5, %v5790_v9  ;;  %v6238_v10 = vld [vmem:[%s23643_s3 + $0x50] sm:$0xff] }
 0x22a   : > { %v19159_v54 = vpop.f32.mrb[22].mxu1  ;;  %5611 = vrot.lane.b32.xlu0 %v5492_v48, %s23627_s21  ;;  %15523 = vmatprep.subr.bf16.mxu0 %v19123_v15  ;;  %v19179_v18 = vpack.c.bf16 %v6237_v33, %v6236_v0  ;;  %v2174_v48 = vsel %vm2074_vm5, %v16619_v14, %v1256_v30  ;;  %v19219_v49 = vmax.f32 %v5294_v3, 0.0  ;;  %v5806_v30 = vsel %vm1441_vm4, %v5803_v61, %v5805_v37  ;;  %v5159_v3 = vld [vmem:[#allocation2 + $0x50] ss:$2 sm:$0xff] }
 0x22b   : > { %v4928_v59 = vmax.f32 %v4424_v43, %v4589_v7  ;;  %v4929_v27 = vmax.f32 %v4425_v16, %v4591_v11  ;;  %v4117_v24 = vrot.slane %v19159_v54, 1  ;;  %v4621_v35 = vrot.slane %v19159_v54, 2  ;;  %v3062_v51 = vpop.f32.mrb[23].mxu1  ;;  %v1887_v39 = vpop.permute.xlu1 %1886  ;;  %15525 = vmatpush3.bf16.msra.mxu0 %v19123_v15  ;;  %15543 = vmatprep.subr.bf16.mxu1 %v19068_v62  ;;  %v16620_v16 = vld [vmem:[%s16891_s29 + $0x398] sm:$0xff] }
 0x22c   : > { %v4115_v5 = vrot.slane %v3062_v51, 1  ;;  %v4619_v40 = vrot.slane %v3062_v51, 2  ;;  %v2302_v45 = vsel %vm2203_vm6, %v2173_v29, %v1887_v39  ;;  %v1286_v20 = vpop.permute.xlu0 %1285  ;;  %15545 = vmatpush3.bf16.msra.mxu1 %v19068_v62  ;;  %15527 = vmatprep.subr.bf16.mxu0 %v19132_v50  ;;  %v5482_v11 = vrot.slane %v19168_v60, 1  ;;  %v5175_v14 = vld [vmem:[#allocation2 + $0xd0] ss:$2 sm:$0xff] }
 0x22d   : > { %5058 = vst.msk [vmem:[#allocation2 + $0x128] sm:$0xff] %vm5019_vm8, %v4928_v59  ;;  %5059 = vst.msk [vmem:[#allocation2 + $0x130] sm:$0xff] %vm5019_vm8, %v4929_v27  ;;  %5909 = vrot.lane.b32.xlu1 %v5791_v55, %s23625_s18  ;;  %14241 = vmatprep.mubr.msk.f32.mxu0 %vm2334_vm7, %v2302_v45  ;;  %v5792_v61 = vrot.slane %v19151_v38, 2  ;;  %v5481_v0 = vsel %vm808_vm3, %v5478_v56, %v5480_v63  ;;  %v5495_v33 = vrot.slane %v19219_v49, 1  ;;  %v19247_v55 = vmax.f32 %v5295_v6, 0.0 }
 0x22e   : > { %v4116_v57 = vsel %vm808_vm3, %v4113_v42, %v4115_v5  ;;  %v4118_v12 = vsel %vm808_vm3, %v4115_v5, %v4117_v24  ;;  %v4620_v8 = vsel %vm1441_vm4, %v4617_v19, %v4619_v40  ;;  %v4622_v52 = vsel %vm1441_vm4, %v4619_v40, %v4621_v35  ;;  %5613 = vrot.lane.b32.xlu0 %v5494_v46, %s23627_s21  ;;  %v5161_v56 = vld [vmem:[#allocation2 + $0x60] ss:$2 sm:$0xff] }
 0x22f   : > { %v4440_v42 = vmax.f32 %v19016_v28, %v4116_v57  ;;  %v4441_v17 = vmax.f32 %v3062_v51, %v4118_v12  ;;  %v1889_v53 = vpop.permute.xlu1 %1888  ;;  %15529 = vmatpush3.bf16.msra.mxu0 %v19132_v50  ;;  %15547 = vmatprep.subr.bf16.mxu1 %v19123_v15  ;;  %v19232_v28 = vpack.c.bf16 %v6239_v58, %v6238_v10  ;;  %v5794_v10 = vrot.slane %v19168_v60, 2 }
 0x230   : > { %v2303_v19 = vsel %vm2203_vm6, %v2174_v48, %v1889_v53  ;;  %v1288_v7 = vpop.permute.xlu0 %1287  ;;  %15549 = vmatpush3.bf16.msra.mxu1 %v19123_v15  ;;  %15531 = vmatprep.subr.bf16.mxu0 %v19179_v18  ;;  %v2189_v59 = vsel %vm2074_vm5, %v16621_v41, %v1286_v20  ;;  %v5483_v5 = vsel %vm808_vm3, %v5480_v63, %v5482_v11  ;;  %v5497_v12 = vrot.slane %v19247_v55, 1 }
 0x231   : > { %v4944_v34 = vmax.f32 %v4440_v42, %v4620_v8  ;;  %v4945_v43 = vmax.f32 %v4441_v17, %v4622_v52  ;;  %v2190_v47 = vsel %vm2074_vm5, %v16620_v16, %v1288_v7  ;;  %5925 = vrot.lane.b32.xlu1 %v5806_v30, %s23625_s18  ;;  %14242 = vmatmul.mubr.msk.f32.gmra.mrb[50].mxu0 %vm2334_vm7, %v2303_v19  ;;  %v5807_v8 = vrot.slane %v19219_v49, 2  ;;  %v16622_v30 = vld [vmem:[%s16891_s29 + $0x320] sm:$0xff] }
 0x232   : > { %5923 = vrot.lane.b32.xlu0 %v5804_v26, %s23625_s18  ;;  %15551 = vmatprep.subr.bf16.mxu1 %v19132_v50  ;;  %v5793_v26 = vsel %vm1441_vm4, %v5790_v9, %v5792_v61  ;;  %v5288_v58 = vadd.f32 %v18961_v44, %v5159_v3  ;;  %v5496_v9 = vsel %vm808_vm3, %v5493_v32, %v5495_v33 }
 0x233   : > { %5074 = vst.msk [vmem:[#allocation2 + $0x1a8] sm:$0xff] %vm5019_vm8, %v4944_v34  ;;  %5075 = vst.msk [vmem:[#allocation2 + $0x1b0] sm:$0xff] %vm5019_vm8, %v4945_v43  ;;  %v1921_v29 = vpop.permute.xlu1 %1920  ;;  %15533 = vmatpush3.bf16.msra.mxu0 %v19179_v18  ;;  %v5289_v52 = vadd.f32 %v18961_v44, %v5161_v56  ;;  %v5809_v34 = vrot.slane %v19247_v55, 2 }
 0x234   : > { %v2319_v27 = vsel %vm2203_vm6, %v2190_v47, %v1921_v29  ;;  %v1919_v51 = vpop.permute.xlu0 %1918  ;;  %v19253_v39 = vpop.f32.mrb[24].mxu0  ;;  %15553 = vmatpush3.bf16.msra.mxu1 %v19132_v50  ;;  %15535 = vmatprep.subr.bf16.mxu0 %v19232_v28  ;;  %v19306_v16 = vmax.f32 %v5288_v58, 0.0 }
 0x235   : > { %v2318_v40 = vsel %vm2203_vm6, %v2189_v59, %v1919_v51  ;;  %v4090_v45 = vrot.slane %v19253_v39, 1  ;;  %v4594_v20 = vrot.slane %v19253_v39, 2  ;;  %5601 = vrot.lane.b32.xlu1 %v5483_v5, %s23627_s21  ;;  %v2879_v46 = vpop.f32.mrb[25].mxu0  ;;  %15555 = vmatprep.subr.bf16.mxu1 %v19179_v18  ;;  %v19314_v56 = vmax.f32 %v5289_v52, 0.0 }
 0x236   : > { %v4088_v63 = vrot.slane %v2879_v46, 1  ;;  %v4592_v6 = vrot.slane %v2879_v46, 2  ;;  %5599 = vrot.lane.b32.xlu0 %v5481_v0, %s23627_s21  ;;  %14269 = vmatprep.mubr.msk.f32.mxu1 %vm2334_vm7, %v2318_v40  ;;  %v5498_v40 = vsel %vm808_vm3, %v5495_v33, %v5497_v12 }
 0x237   : > { %14270 = vmatmul.mubr.msk.f32.gmra.mrb[50].mxu1 %vm2334_vm7, %v2319_v27  ;;  %v1260_v57 = vpop.permute.xlu1 %1259  ;;  %15537 = vmatpush3.bf16.msra.mxu0 %v19232_v28 }
 0x238   : > { %v4089_v48 = vsel %vm808_vm3, %v4086_v31, %v4088_v63  ;;  %v4091_v42 = vsel %vm808_vm3, %v4088_v63, %v4090_v45  ;;  %v4593_v32 = vsel %vm1441_vm4, %v4590_v21, %v4592_v6  ;;  %v4595_v17 = vsel %vm1441_vm4, %v4592_v6, %v4594_v20  ;;  %v1258_v53 = vpop.permute.xlu0 %1257  ;;  %15557 = vmatpush3.bf16.msra.mxu1 %v19179_v18  ;;  %v5177_v63 = vld [vmem:[#allocation2 + $0xe0] ss:$2 sm:$0xff] }
 0x239   : > { %v4426_v19 = vmax.f32 %v19103_v4, %v4089_v48  ;;  %v4427_v7 = vmax.f32 %v2879_v46, %v4091_v42  ;;  %v2175_v31 = vsel %vm2074_vm5, %v16622_v30, %v1258_v53  ;;  %5911 = vrot.lane.b32.xlu1 %v5793_v26, %s23625_s18  ;;  %v5795_v21 = vsel %vm1441_vm4, %v5792_v61, %v5794_v10 }
 0x23a   : > { %v19300_v43 = vpop.f32.mrb[24].mxu1  ;;  %5615 = vrot.lane.b32.xlu0 %v5496_v9, %s23627_s21  ;;  %v5296_v4 = vadd.f32 %v18961_v44, %v5175_v14  ;;  %15559 = vmatprep.subr.bf16.mxu1 %v19232_v28  ;;  %v5810_v46 = vsel %vm1441_vm4, %v5807_v8, %v5809_v34  ;;  %v5808_v26 = vsel %vm1441_vm4, %v5805_v37, %v5807_v8  ;;  %v16623_v37 = vld [vmem:[%s16891_s29 + $0x328] sm:$0xff] }
 0x23b   : > { %v4930_v47 = vmax.f32 %v4426_v19, %v4593_v32  ;;  %v4931_v29 = vmax.f32 %v4427_v7, %v4595_v17  ;;  %v4121_v0 = vrot.slane %v19300_v43, 1  ;;  %v4625_v3 = vrot.slane %v19300_v43, 2  ;;  %v3072_v41 = vpop.f32.mrb[25].mxu1  ;;  %v1891_v59 = vpop.permute.xlu1 %1890  ;;  %15563 = vmatprep.subr.bf16.mxu0 %v18928_v36  ;;  %v16624_v7 = vld [vmem:[%s16891_s29 + $0x3a8] sm:$0xff] }
 0x23c   : > { %v4119_v27 = vrot.slane %v3072_v41, 1  ;;  %v4623_v51 = vrot.slane %v3072_v41, 2  ;;  %v2304_v61 = vsel %vm2203_vm6, %v2175_v31, %v1891_v59  ;;  %v1290_v5 = vpop.permute.xlu0 %1289  ;;  %15561 = vmatpush3.bf16.msra.mxu1 %v19232_v28  ;;  %v2176_v8 = vsel %vm2074_vm5, %v16623_v37, %v1260_v57 }
 0x23d   : > { %5060 = vst.msk [vmem:[#allocation2 + $0x138] sm:$0xff] %vm5019_vm8, %v4930_v47  ;;  %5061 = vst.msk [vmem:[#allocation2 + $0x140] sm:$0xff] %vm5019_vm8, %v4931_v29  ;;  %5913 = vrot.lane.b32.xlu1 %v5795_v21, %s23625_s18  ;;  %14244 = vmatprep.mubr.msk.f32.mxu0 %vm2334_vm7, %v2304_v61  ;;  %v19348_v48 = vmax.f32 %v5296_v4, 0.0  ;;  %v5484_v32 = vrot.slane %v19306_v16, 1  ;;  %v5486_v17 = vrot.slane %v19314_v56, 1  ;;  %v5297_v53 = vadd.f32 %v18961_v44, %v5177_v63  ;;  %v16625_v4 = vld [vmem:[%s16891_s29 + $0x3a0] sm:$0xff] }
 0x23e   : > { %v4120_v6 = vsel %vm808_vm3, %v4117_v24, %v4119_v27  ;;  %v4122_v58 = vsel %vm808_vm3, %v4119_v27, %v4121_v0  ;;  %v4624_v33 = vsel %vm1441_vm4, %v4621_v35, %v4623_v51  ;;  %v4626_v9 = vsel %vm1441_vm4, %v4623_v51, %v4625_v3  ;;  %5617 = vrot.lane.b32.xlu0 %v5498_v40, %s23627_s21  ;;  %v5163_v61 = vld [vmem:[#allocation2 + $0x70] ss:$2 sm:$0x3f] }
 0x23f   : > { %v4442_v24 = vmax.f32 %v19159_v54, %v4120_v6  ;;  %v4443_v52 = vmax.f32 %v3072_v41, %v4122_v58  ;;  %v1893_v14 = vpop.permute.xlu1 %1892  ;;  %15587 = vmatprep.subr.bf16.mxu1 %v18928_v36  ;;  %v5796_v31 = vrot.slane %v19306_v16, 2  ;;  %v5499_v21 = vrot.slane %v19348_v48, 1 }
 0x240   : > { %v2305_v35 = vsel %vm2203_vm6, %v2176_v8, %v1893_v14  ;;  %v1292_v42 = vpop.permute.xlu0 %1291  ;;  %v2191_v47 = vsel %vm2074_vm5, %v16625_v4, %v1290_v5  ;;  %v5487_v27 = vsel %vm808_vm3, %v5484_v32, %v5486_v17  ;;  %v5485_v51 = vsel %vm808_vm3, %v5482_v11, %v5484_v32 }
 0x241   : > { %v4946_v19 = vmax.f32 %v4442_v24, %v4624_v33  ;;  %v4947_v57 = vmax.f32 %v4443_v52, %v4626_v9  ;;  %v2192_v54 = vsel %vm2074_vm5, %v16624_v7, %v1292_v42  ;;  %5929 = vrot.lane.b32.xlu1 %v5810_v46, %s23625_s18  ;;  %14245 = vmatmul.mubr.msk.f32.gmra.mrb[52].mxu0 %vm2334_vm7, %v2305_v35  ;;  %v19379_v63 = vmax.f32 %v5297_v53, 0.0  ;;  %v5179_v24 = vld [vmem:[#allocation2 + $0xf0] ss:$2 sm:$0x3f] }
 0x242   : > { %5927 = vrot.lane.b32.xlu0 %v5808_v26, %s23625_s18  ;;  %v5798_v11 = vrot.slane %v19314_v56, 2  ;;  %v5797_v9 = vsel %vm1441_vm4, %v5794_v10, %v5796_v31  ;;  %v5500_v37 = vsel %vm808_vm3, %v5497_v12, %v5499_v21  ;;  %v5290_v8 = vadd.f32 %v18961_v44, %v5163_v61  ;;  %v16626_v53 = vld [vmem:[%s16891_s29 + $0x330] sm:$0xff] }
 0x243   : > { %5076 = vst.msk [vmem:[#allocation2 + $0x1b8] sm:$0xff] %vm5019_vm8, %v4946_v19  ;;  %5077 = vst.msk [vmem:[#allocation2 + $0x1c0] sm:$0xff] %vm5019_vm8, %v4947_v57  ;;  %v1925_v30 = vpop.permute.xlu1 %1924  ;;  %v5811_v7 = vrot.slane %v19348_v48, 2 }
 0x244   : > { %v2321_v29 = vsel %vm2203_vm6, %v2192_v54, %v1925_v30  ;;  %v1923_v41 = vpop.permute.xlu0 %1922  ;;  %v19367_v59 = vpop.f32.mrb[26].mxu0 }
 0x245   : > { %v2320_v40 = vsel %vm2203_vm6, %v2191_v47, %v1923_v41  ;;  %v4094_v46 = vrot.slane %v19367_v59, 1  ;;  %v4598_v5 = vrot.slane %v19367_v59, 2  ;;  %5605 = vrot.lane.b32.xlu1 %v5487_v27, %s23627_s21  ;;  %v2889_v26 = vpop.f32.mrb[27].mxu0 }
 0x246   : > { %v4092_v6 = vrot.slane %v2889_v26, 1  ;;  %v4596_v58 = vrot.slane %v2889_v26, 2  ;;  %5603 = vrot.lane.b32.xlu0 %v5485_v51, %s23627_s21  ;;  %14272 = vmatprep.mubr.msk.f32.mxu1 %vm2334_vm7, %v2320_v40 }
 0x247   : > { %14273 = vmatmul.mubr.msk.f32.gmra.mrb[52].mxu1 %vm2334_vm7, %v2321_v29  ;;  %v1264_v33 = vpop.permute.xlu1 %1263 }
 0x248   : > { %v4093_v52 = vsel %vm808_vm3, %v4090_v45, %v4092_v6  ;;  %v4095_v14 = vsel %vm808_vm3, %v4092_v6, %v4094_v46  ;;  %v4597_v35 = vsel %vm1441_vm4, %v4594_v20, %v4596_v58  ;;  %v4599_v10 = vsel %vm1441_vm4, %v4596_v58, %v4598_v5  ;;  %v1262_v12 = vpop.permute.xlu0 %1261 }
 0x249   : > { %v4428_v42 = vmax.f32 %v19253_v39, %v4093_v52  ;;  %v4429_v32 = vmax.f32 %v2889_v26, %v4095_v14  ;;  %v2177_v19 = vsel %vm2074_vm5, %v16626_v53, %v1262_v12  ;;  %5915 = vrot.lane.b32.xlu1 %v5797_v9, %s23625_s18  ;;  %v5501_v45 = vrot.slane %v19379_v63, 1 }
 0x24a   : > { %v19409_v57 = vpop.f32.mrb[26].mxu1  ;;  %5619 = vrot.lane.b32.xlu0 %v5500_v37, %s23627_s21  ;;  %v5799_v20 = vsel %vm1441_vm4, %v5796_v31, %v5798_v11  ;;  %v5298_v39 = vadd.f32 %v18961_v44, %v5179_v24  ;;  %v5813_v31 = vrot.slane %v19379_v63, 2  ;;  %v19428_v6 = vmax.f32 %v5290_v8, 0.0  ;;  %v16627_v8 = vld [vmem:[%s16891_s29 + $0x338] sm:$0xff] }
 0x24b   : > { %v4932_v54 = vmax.f32 %v4428_v42, %v4597_v35  ;;  %v4933_v30 = vmax.f32 %v4429_v32, %v4599_v10  ;;  %v4125_v4 = vrot.slane %v19409_v57, 1  ;;  %v4629_v47 = vrot.slane %v19409_v57, 2  ;;  %v3082_v29 = vpop.f32.mrb[27].mxu1  ;;  %v1895_v41 = vpop.permute.xlu1 %1894  ;;  %v5183_v32 = vld [vmem:[#allocation2 + $0x110] ss:$2 sm:$0xff] }
 0x24c   : > { %v4123_v27 = vrot.slane %v3082_v29, 1  ;;  %v4627_v51 = vrot.slane %v3082_v29, 2  ;;  %v2306_v61 = vsel %vm2203_vm6, %v2177_v19, %v1895_v41  ;;  %v1294_v40 = vpop.permute.xlu0 %1293  ;;  %v5502_v26 = vsel %vm808_vm3, %v5499_v21, %v5501_v45 }
 0x24d   : > { %5062 = vst.msk [vmem:[#allocation2 + $0x148] sm:$0xff] %vm5019_vm8, %v4932_v54  ;;  %5063 = vst.msk [vmem:[#allocation2 + $0x150] sm:$0xff] %vm5019_vm8, %v4933_v30  ;;  %5917 = vrot.lane.b32.xlu1 %v5799_v20, %s23625_s18  ;;  %14247 = vmatprep.mubr.msk.f32.mxu0 %vm2334_vm7, %v2306_v61  ;;  %v2178_v24 = vsel %vm2074_vm5, %v16627_v8, %v1264_v33  ;;  %v19446_v35 = vmax.f32 %v5298_v39, 0.0  ;;  %v5812_v42 = vsel %vm1441_vm4, %v5809_v34, %v5811_v7  ;;  %v5181_v30 = vld [vmem:[#allocation2 + $0x100] ss:$2 sm:$0xff] }
 0x24e   : > { %v4124_v58 = vsel %vm808_vm3, %v4121_v0, %v4123_v27  ;;  %v4126_v9 = vsel %vm808_vm3, %v4123_v27, %v4125_v4  ;;  %v4628_v37 = vsel %vm1441_vm4, %v4625_v3, %v4627_v51  ;;  %v4630_v21 = vsel %vm1441_vm4, %v4627_v51, %v4629_v47  ;;  %5621 = vrot.lane.b32.xlu0 %v5502_v26, %s23627_s21  ;;  %v5185_v26 = vld [vmem:[#allocation2 + $0x120] ss:$2 sm:$0xff] }
 0x24f   : > { %v4444_v0 = vmax.f32 %v19300_v43, %v4124_v58  ;;  %v4445_v52 = vmax.f32 %v3082_v29, %v4126_v9  ;;  %v1897_v14 = vpop.permute.xlu1 %1896  ;;  %v5814_v3 = vsel %vm1441_vm4, %v5811_v7, %v5813_v31  ;;  %v16628_v43 = vld [vmem:[%s16891_s29 + $0x3b8] sm:$0xff]  ;;  %v5488_v20 = vrot.slane %v19428_v6, 1  ;;  %v16629_v29 = vld [vmem:[%s16891_s29 + $0x3b0] sm:$0xff]  ;;  %v5197_v58 = vld [vmem:[#allocation2 + $0x180] ss:$2 sm:$0xff] }
 0x250   : > { %v2307_v10 = vsel %vm2203_vm6, %v2178_v24, %v1897_v14  ;;  %v1296_v12 = vpop.permute.xlu0 %1295  ;;  %v5800_v39 = vrot.slane %v19428_v6, 2  ;;  %v5503_v7 = vrot.slane %v19446_v35, 1  ;;  %v5300_v54 = vadd.f32 %v18961_v44, %v5183_v32 }
 0x251   : > { %v4948_v33 = vmax.f32 %v4444_v0, %v4628_v37  ;;  %v4949_v53 = vmax.f32 %v4445_v52, %v4630_v21  ;;  %v2194_v19 = vsel %vm2074_vm5, %v16628_v43, %v1296_v12  ;;  %5933 = vrot.lane.b32.xlu1 %v5814_v3, %s23625_s18  ;;  %14248 = vmatmul.mubr.msk.f32.gmra.mrb[54].mxu0 %vm2334_vm7, %v2307_v10  ;;  %v5199_v10 = vld [vmem:[#allocation2 + $0x190] ss:$2 sm:$0xff] }
 0x252   : > { %5931 = vrot.lane.b32.xlu0 %v5812_v42, %s23625_s18  ;;  %v2193_v41 = vsel %vm2074_vm5, %v16629_v29, %v1294_v40  ;;  %v5489_v40 = vsel %vm808_vm3, %v5486_v17, %v5488_v20  ;;  %v5801_v52 = vsel %vm1441_vm4, %v5798_v11, %v5800_v39  ;;  %v5299_v14 = vadd.f32 %v18961_v44, %v5181_v30 }
 0x253   : > { %5078 = vst.msk [vmem:[#allocation2 + $0x1c8] sm:$0xff] %vm5019_vm8, %v4948_v33  ;;  %5079 = vst.msk [vmem:[#allocation2 + $0x1d0] sm:$0xff] %vm5019_vm8, %v4949_v53  ;;  %v1929_v34 = vpop.permute.xlu1 %1928  ;;  %v5504_v17 = vsel %vm808_vm3, %v5501_v45, %v5503_v7  ;;  %v5301_v3 = vadd.f32 %v18961_v44, %v5185_v26  ;;  %v19491_v42 = vmax.f32 %v5300_v54, 0.0  ;;  %v5307_v32 = vadd.f32 %v18961_v44, %v5197_v58 }
 0x254   : > { %v2323_v27 = vsel %vm2203_vm6, %v2194_v19, %v1929_v34  ;;  %v1927_v51 = vpop.permute.xlu0 %1926  ;;  %v19469_v61 = vpop.f32.mrb[28].mxu0  ;;  %v16630_v34 = vld [vmem:[%s16891_s29 + $0x340] sm:$0xff]  ;;  %v19515_v29 = vmax.f32 %v5299_v14, 0.0 }
 0x255   : > { %v2322_v9 = vsel %vm2203_vm6, %v2193_v41, %v1927_v51  ;;  %v4098_v37 = vrot.slane %v19469_v61, 1  ;;  %v4602_v21 = vrot.slane %v19469_v61, 2  ;;  %5609 = vrot.lane.b32.xlu1 %v5488_v20, %s23627_s21  ;;  %v2899_v8 = vpop.f32.mrb[29].mxu0  ;;  %v5506_v14 = vrot.slane %v19491_v42, 1 }
 0x256   : > { %v4096_v24 = vrot.slane %v2899_v8, 1  ;;  %v4600_v0 = vrot.slane %v2899_v8, 2  ;;  %5607 = vrot.lane.b32.xlu0 %v5489_v40, %s23627_s21  ;;  %14275 = vmatprep.mubr.msk.f32.mxu1 %vm2334_vm7, %v2322_v9 }
 0x257   : > { %14276 = vmatmul.mubr.msk.f32.gmra.mrb[54].mxu1 %vm2334_vm7, %v2323_v27  ;;  %v1268_v12 = vpop.permute.xlu1 %1267 }
 0x258   : > { %v4097_v11 = vsel %vm808_vm3, %v4094_v46, %v4096_v24  ;;  %v4099_v33 = vsel %vm808_vm3, %v4096_v24, %v4098_v37  ;;  %v4601_v53 = vsel %vm1441_vm4, %v4598_v5, %v4600_v0  ;;  %v4603_v45 = vsel %vm1441_vm4, %v4600_v0, %v4602_v21  ;;  %v1266_v43 = vpop.permute.xlu0 %1265 }
 0x259   : > { %v4430_v19 = vmax.f32 %v19367_v59, %v4097_v11  ;;  %v4431_v20 = vmax.f32 %v2899_v8, %v4099_v33  ;;  %v2179_v54 = vsel %vm2074_vm5, %v16630_v34, %v1266_v43  ;;  %5919 = vrot.lane.b32.xlu1 %v5801_v52, %s23625_s18  ;;  %v5308_v46 = vadd.f32 %v18961_v44, %v5199_v10  ;;  %v5201_v52 = vld [vmem:[#allocation2 + $0x1a0] ss:$2 sm:$0xff] }
 0x25a   : > { %v19511_v30 = vpop.f32.mrb[28].mxu1  ;;  %5623 = vrot.lane.b32.xlu0 %v5504_v17, %s23627_s21  ;;  %v5815_v5 = vrot.slane %v19446_v35, 2  ;;  %v19520_v0 = vmax.f32 %v5301_v3, 0.0  ;;  %v5818_v10 = vrot.slane %v19491_v42, 2  ;;  %v19528_v17 = vmax.f32 %v5307_v32, 0.0 }
 0x25b   : > { %v4934_v41 = vmax.f32 %v4430_v19, %v4601_v53  ;;  %v4935_v27 = vmax.f32 %v4431_v20, %v4603_v45  ;;  %v4129_v59 = vrot.slane %v19511_v30, 1  ;;  %v23612_v51 = vrot.slane %v19511_v30, 2  ;;  %v3092_v26 = vpop.f32.mrb[29].mxu1  ;;  %v1899_v58 = vpop.permute.xlu1 %1898  ;;  %v16631_v53 = vld [vmem:[%s16891_s29 + $0x348] sm:$0xff] }
 0x25c   : > { %v4127_v9 = vrot.slane %v3092_v26, 1  ;;  %v4631_v8 = vrot.slane %v3092_v26, 2  ;;  %v2308_v40 = vsel %vm2203_vm6, %v2179_v54, %v1899_v58  ;;  %v1298_v24 = vpop.permute.xlu0 %1297  ;;  %v19530_v11 = vmax.f32 %v5308_v46, 0.0 }
 0x25d   : > { %5064 = vst.msk [vmem:[#allocation2 + $0x158] sm:$0xff] %vm5019_vm8, %v4934_v41  ;;  %5065 = vst.msk [vmem:[#allocation2 + $0x160] sm:$0xff] %vm5019_vm8, %v4935_v27  ;;  %5921 = vrot.lane.b32.xlu1 %v5800_v39, %s23625_s18  ;;  %14250 = vmatprep.mubr.msk.f32.mxu0 %vm2334_vm7, %v2308_v40  ;;  %v5309_v20 = vadd.f32 %v18961_v44, %v5201_v52  ;;  %v5816_v54 = vsel %vm1441_vm4, %v5813_v31, %v5815_v5  ;;  %v23611_v46 = vrot.slane %v19520_v0, 1 }
 0x25e   : > { %v4128_v3 = vsel %vm808_vm3, %v4125_v4, %v4127_v9  ;;  %v4130_v33 = vsel %vm808_vm3, %v4127_v9, %v4129_v59  ;;  %v4632_v39 = vsel %vm1441_vm4, %v4629_v47, %v4631_v8  ;;  %v4634_v32 = vsel %vm1441_vm4, %v4631_v8, %v23612_v51  ;;  %5625 = vrot.lane.b32.xlu0 %v5503_v7, %s23627_s21  ;;  %v5187_v9 = vld [vmem:[#allocation2 + $0x130] ss:$2 sm:$0xff] }
 0x25f   : > { %v2180_v4 = vsel %vm2074_vm5, %v16631_v53, %v1268_v12  ;;  %v4446_v45 = vmax.f32 %v19409_v57, %v4128_v3  ;;  %v4447_v43 = vmax.f32 %v3092_v26, %v4130_v33  ;;  %v1901_v19 = vpop.permute.xlu1 %1900  ;;  %v5505_v7 = vrot.slane %v19515_v29, 1  ;;  %v16632_v12 = vld [vmem:[%s16891_s29 + $0x3c8] sm:$0xff]  ;;  %v16633_v33 = vld [vmem:[%s16891_s29 + $0x3c0] sm:$0xff] }
 0x260   : > { %v2309_v47 = vsel %vm2203_vm6, %v2180_v4, %v1901_v19  ;;  %v1300_v34 = vpop.permute.xlu0 %1299  ;;  %v5817_v26 = vrot.slane %v19515_v29, 2  ;;  %v5520_v31 = vrot.slane %v19528_v17, 1  ;;  %v5521_v58 = vrot.slane %v19530_v11, 1  ;;  %v5189_v19 = vld [vmem:[#allocation2 + $0x140] ss:$2 sm:$0xff] }
 0x261   : > { %v4950_v41 = vmax.f32 %v4446_v45, %v4632_v39  ;;  %v4951_v27 = vmax.f32 %v4447_v43, %v4634_v32  ;;  %v2196_v57 = vsel %vm2074_vm5, %v16632_v12, %v1300_v34  ;;  %5937 = vrot.lane.b32.xlu1 %v5815_v5, %s23625_s18  ;;  %14251 = vmatmul.mubr.msk.f32.gmra.mrb[56].mxu0 %vm2334_vm7, %v2309_v47  ;;  %v19571_v52 = vmax.f32 %v5309_v20, 0.0 }
 0x262   : > { %5935 = vrot.lane.b32.xlu0 %v5816_v54, %s23625_s18  ;;  %v5507_v40 = vsel %vm808_vm3, %v5505_v7, %v5506_v14  ;;  %v5819_v5 = vsel %vm1441_vm4, %v5817_v26, %v5818_v10  ;;  %v5832_v3 = vrot.slane %v19528_v17, 2  ;;  %v2195_v39 = vsel %vm2074_vm5, %v16633_v33, %v1298_v24 }
 0x263   : > { %5080 = vst.msk [vmem:[#allocation2 + $0x1d8] sm:$0xff] %vm5019_vm8, %v4950_v41  ;;  %5081 = vst.msk [vmem:[#allocation2 + $0x1e0] sm:$0xff] %vm5019_vm8, %v4951_v27  ;;  %v1933_v8 = vpop.permute.xlu1 %1932  ;;  %v5509_v45 = vsel %vm808_vm3, %v5506_v14, %v23611_v46  ;;  %v5833_v43 = vrot.slane %v19530_v11, 2  ;;  %v5302_v24 = vadd.f32 %v18961_v44, %v5187_v9  ;;  %v5522_v14 = vsel %vm808_vm3, %v5520_v31, %v5521_v58  ;;  %v19596_v9 = vld [vmem:[%s23645_s2] ss:$0 sm:$0xff]  ;;  %v16635_v46 = vld [vmem:[%s16891_s29 + $0x350] sm:$0xff] }
 0x264   : > { %v2325_v32 = vsel %vm2203_vm6, %v2196_v57, %v1933_v8  ;;  %v1931_v53 = vpop.permute.xlu0 %1930  ;;  %v14149_v4 = vpop.f32.mrb[30].mxu0  ;;  %v5820_v27 = vrot.slane %v19520_v0, 2  ;;  %v5523_v26 = vrot.slane %v19571_v52, 1  ;;  %v5835_v44 = vrot.slane %v19571_v52, 2 }
 0x265   : > { %v2324_v47 = vsel %vm2203_vm6, %v2195_v39, %v1931_v53  ;;  %v4102_v20 = vrot.slane %v14149_v4, 1  ;;  %v4606_v34 = vrot.slane %v14149_v4, 2  ;;  %5629 = vrot.lane.b32.xlu1 %v5509_v45, %s23627_s21  ;;  %v2909_v54 = vpop.f32.mrb[31].mxu0  ;;  %v5303_v8 = vadd.f32 %v19596_v9, %v5189_v19 }
 0x266   : > { %v4100_v7 = vrot.slane %v2909_v54, 1  ;;  %v4604_v41 = vrot.slane %v2909_v54, 2  ;;  %5627 = vrot.lane.b32.xlu0 %v5507_v40, %s23627_s21  ;;  %14278 = vmatprep.mubr.msk.f32.mxu1 %vm2334_vm7, %v2324_v47  ;;  %v5203_v40 = vld [vmem:[#allocation2 + $0x1b0] ss:$2 sm:$0xff]  ;;  %v19609_v19 = vmax.f32 %v5302_v24, 0.0 }
 0x267   : > { %v4434_v12 = vmax.f32 %v14149_v4, %v4102_v20  ;;  %14279 = vmatmul.mubr.msk.f32.gmra.mrb[56].mxu1 %vm2334_vm7, %v2325_v32  ;;  %v1272_v57 = vpop.permute.xlu1 %1271 }
 0x268   : > { %v4101_v31 = vsel %vm808_vm3, %v4098_v37, %v4100_v7  ;;  %v4103_v33 = vsel %vm808_vm3, %v4100_v7, %v4102_v20  ;;  %v4605_v39 = vsel %vm1441_vm4, %v4602_v21, %v4604_v41  ;;  %v4607_v32 = vsel %vm1441_vm4, %v4604_v41, %v4606_v34  ;;  %v1270_v53 = vpop.permute.xlu0 %1269 }
 0x269   : > { %v4938_v4 = vmax.f32 %v4434_v12, %v4606_v34  ;;  %v4432_v45 = vmax.f32 %v19469_v61, %v4101_v31  ;;  %v4433_v47 = vmax.f32 %v2909_v54, %v4103_v33  ;;  %5939 = vrot.lane.b32.xlu1 %v5819_v5, %s23625_s18  ;;  %v2181_v37 = vsel %vm2074_vm5, %v16635_v46, %v1270_v53 }
 0x26a   : > { %v14177_v51 = vpop.f32.mrb[30].mxu1  ;;  %5643 = vrot.lane.b32.xlu0 %v5522_v14, %s23627_s21  ;;  %v5821_v21 = vsel %vm1441_vm4, %v5818_v10, %v5820_v27  ;;  %v5834_v20 = vsel %vm1441_vm4, %v5832_v3, %v5833_v43  ;;  %v5310_v61 = vadd.f32 %v19596_v9, %v5203_v40  ;;  %v19623_v33 = vmax.f32 %v5303_v8, 0.0 }
 0x26b   : > { %5068 = vst.msk [vmem:[#allocation2 + $0x178] sm:$0xf] %vm5035_vm9, %v4938_v4  ;;  %v4936_v5 = vmax.f32 %v4432_v45, %v4605_v39  ;;  %v4937_v34 = vmax.f32 %v4433_v47, %v4607_v32  ;;  %v4133_v54 = vrot.slane %v14177_v51, 1  ;;  %v4637_v24 = vrot.slane %v14177_v51, 2  ;;  %v3102_v46 = vpop.f32.mrb[31].mxu1  ;;  %v1903_v7 = vpop.permute.xlu1 %1902  ;;  %v16636_v45 = vld [vmem:[%s16891_s29 + $0x358] sm:$0xff] }
 0x26c   : > { %v4131_v41 = vrot.slane %v3102_v46, 1  ;;  %v4635_v14 = vrot.slane %v3102_v46, 2  ;;  %v2310_v12 = vsel %vm2203_vm6, %v2181_v37, %v1903_v7  ;;  %v1302_v31 = vpop.permute.xlu0 %1301  ;;  %v5524_v3 = vsel %vm808_vm3, %v5521_v58, %v5523_v26  ;;  %v5205_v39 = vld [vmem:[#allocation2 + $0x1c0] ss:$2 sm:$0xff] }
 0x26d   : > { %5066 = vst.msk [vmem:[#allocation2 + $0x168] sm:$0xff] %vm5019_vm8, %v4936_v5  ;;  %5067 = vst.msk [vmem:[#allocation2 + $0x170] sm:$0xff] %vm5019_vm8, %v4937_v34  ;;  %v4450_v10 = vmax.f32 %v14177_v51, %v4133_v54  ;;  %5941 = vrot.lane.b32.xlu1 %v5821_v21, %s23625_s18  ;;  %14253 = vmatprep.mubr.msk.f32.mxu0 %vm2334_vm7, %v2310_v12  ;;  %v5836_v8 = vsel %vm1441_vm4, %v5833_v43, %v5835_v44  ;;  %v5510_v40 = vrot.slane %v19609_v19, 1 }
 0x26e   : > { %v4132_v51 = vsel %vm808_vm3, %v4129_v59, %v4131_v41  ;;  %v4134_v32 = vsel %vm808_vm3, %v4131_v41, %v4133_v54  ;;  %v23647_v53 = vrot.slane %v19511_v30, 2  ;;  %v4638_v58 = vsel %vm1441_vm4, %v4635_v14, %v4637_v24  ;;  %5645 = vrot.lane.b32.xlu0 %v5524_v3, %s23627_s21  ;;  %v5191_v3 = vld [vmem:[#allocation2 + $0x150] ss:$2 sm:$0xff] }
 0x26f   : > { %v2182_v43 = vsel %vm2074_vm5, %v16636_v45, %v1272_v57  ;;  %v4954_v47 = vmax.f32 %v4450_v10, %v4637_v24  ;;  %v4448_v37 = vmax.f32 %v19511_v30, %v4132_v51  ;;  %v4449_v21 = vmax.f32 %v3102_v46, %v4134_v32  ;;  %v1905_v5 = vpop.permute.xlu1 %1904  ;;  %v16637_v57 = vld [vmem:[%s16891_s29 + $0x3d8] sm:$0xff] }
 0x270   : > { %v4636_v4 = vsel %vm1441_vm4, %v23647_v53, %v4635_v14  ;;  %v2311_v59 = vsel %vm2203_vm6, %v2182_v43, %v1905_v5  ;;  %v1304_v34 = vpop.permute.xlu0 %1303  ;;  %v5512_v54 = vrot.slane %v19623_v33, 1  ;;  %v19652_v7 = vmax.f32 %v5310_v61, 0.0 }
 0x271   : > { %v5311_v41 = vadd.f32 %v19596_v9, %v5205_v39  ;;  %5084 = vst.msk [vmem:[#allocation2 + $0x1f8] sm:$0xf] %vm5035_vm9, %v4954_v47  ;;  %v4952_v14 = vmax.f32 %v4448_v37, %v4636_v4  ;;  %v4953_v12 = vmax.f32 %v4449_v21, %v4638_v58  ;;  %v2198_v24 = vsel %vm2074_vm5, %v16637_v57, %v1304_v34  ;;  %v16638_v39 = vld [vmem:[%s16891_s29 + $0x3d0] sm:$0xff] }
 0x272   : > { %5957 = vrot.lane.b32.xlu1 %v5836_v8, %s23625_s18  ;;  %14254 = vmatmul.mubr.msk.f32.gmra.mrb[58].mxu0 %vm2334_vm7, %v2311_v59  ;;  %v23648_v61 = vrot.slane %v19520_v0, 1  ;;  %v5822_v10 = vrot.slane %v19609_v19, 2  ;;  %v2197_v51 = vsel %vm2074_vm5, %v16638_v39, %v1302_v31  ;;  %v5525_v4 = vrot.slane %v19652_v7, 1 }
 0x273   : > { %5955 = vrot.lane.b32.xlu0 %v5834_v20, %s23625_s18  ;;  %5082 = vst.msk [vmem:[#allocation2 + $0x1e8] sm:$0xff] %vm5019_vm8, %v4952_v14  ;;  %5083 = vst.msk [vmem:[#allocation2 + $0x1f0] sm:$0xff] %vm5019_vm8, %v4953_v12  ;;  %v1937_v30 = vpop.permute.xlu1 %1936  ;;  %v5513_v20 = vsel %vm808_vm3, %v5510_v40, %v5512_v54  ;;  %v19680_v47 = vmax.f32 %v5311_v41, 0.0  ;;  %v5304_v59 = vadd.f32 %v19596_v9, %v5191_v3 }
 0x274   : > { %v5511_v46 = vsel %vm808_vm3, %v23648_v61, %v5510_v40  ;;  %v2327_v8 = vsel %vm2203_vm6, %v2198_v24, %v1937_v30  ;;  %v1935_v32 = vpop.permute.xlu0 %1934  ;;  %v19670_v53 = vpop.f32.mrb[32].mxu0  ;;  %v5193_v37 = vld [vmem:[#allocation2 + $0x160] ss:$2 sm:$0xff]  ;;  %v5824_v40 = vrot.slane %v19623_v33, 2  ;;  %v5823_v57 = vsel %vm1441_vm4, %v5820_v27, %v5822_v10  ;;  %v5207_v30 = vld [vmem:[#allocation2 + $0x1d0] ss:$2 sm:$0xff] }
 0x275   : > { %v2326_v58 = vsel %vm2203_vm6, %v2197_v51, %v1935_v32  ;;  %v4136_v45 = vrot.slane %v19670_v53, 1  ;;  %v4640_v43 = vrot.slane %v19670_v53, 2  ;;  %v3225_v31 = vpop.f32.mrb[33].mxu0  ;;  %v5305_v24 = vadd.f32 %v19596_v9, %v5193_v37 }
 0x276   : > { %5633 = vrot.lane.b32.xlu1 %v5513_v20, %s23627_s21  ;;  %v4135_v21 = vrot.slane %v3225_v31, 1  ;;  %v4639_v5 = vrot.slane %v3225_v31, 2  ;;  %14281 = vmatprep.mubr.msk.f32.mxu1 %vm2334_vm7, %v2326_v58  ;;  %v5526_v39 = vsel %vm808_vm3, %v5523_v26, %v5525_v4  ;;  %v5527_v51 = vrot.slane %v19680_v47, 1 }
 0x277   : > { %5631 = vrot.lane.b32.xlu0 %v5511_v46, %s23627_s21  ;;  %14282 = vmatmul.mubr.msk.f32.gmra.mrb[58].mxu1 %vm2334_vm7, %v2327_v8  ;;  %v1276_v34 = vpop.permute.xlu1 %1275  ;;  %v16639_v46 = vld [vmem:[%s16891_s29 + $0x360] sm:$0xff]  ;;  %v5825_v27 = vsel %vm1441_vm4, %v5822_v10, %v5824_v40  ;;  %v5837_v32 = vrot.slane %v19652_v7, 2  ;;  %v23613_v20 = vrot.slane %v19680_v47, 2  ;;  %v19712_v58 = vmax.f32 %v5304_v59, 0.0 }
 0x278   : > { %v4137_v41 = vsel %vm808_vm3, %v4135_v21, %v4136_v45  ;;  %v4641_v14 = vsel %vm1441_vm4, %v4639_v5, %v4640_v43  ;;  %v1274_v12 = vpop.permute.xlu0 %1273  ;;  %v5528_v59 = vsel %vm808_vm3, %v5525_v4, %v5527_v51 }
 0x279   : > { %v4451_v61 = vmax.f32 %v3225_v31, %v4137_v41  ;;  %v2183_v3 = vsel %vm2074_vm5, %v16639_v46, %v1274_v12  ;;  %v5312_v41 = vadd.f32 %v19596_v9, %v5207_v30  ;;  %v5838_v4 = vsel %vm1441_vm4, %v5835_v44, %v5837_v32 }
 0x27a   : > { %5943 = vrot.lane.b32.xlu1 %v5823_v57, %s23625_s18  ;;  %v19704_v8 = vpop.f32.mrb[32].mxu1  ;;  %v5209_v30 = vld [vmem:[#allocation2 + $0x1e0] ss:$2 sm:$0xff] }
 0x27b   : > { %5647 = vrot.lane.b32.xlu0 %v5526_v39, %s23627_s21  ;;  %v4955_v31 = vmax.f32 %v4451_v61, %v4641_v14  ;;  %v23618_v37 = vrot.slane %v19704_v8, 1  ;;  %v23615_v26 = vrot.slane %v19704_v8, 2  ;;  %v3418_v21 = vpop.f32.mrb[33].mxu1  ;;  %v1907_v5 = vpop.permute.xlu1 %1906  ;;  %v19718_v39 = vmax.f32 %v5305_v24, 0.0  ;;  %v16640_v61 = vld [vmem:[%s16891_s29 + $0x368] sm:$0xff] }
 0x27c   : > { %v4166_v12 = vrot.slane %v3418_v21, 1  ;;  %v4670_v57 = vrot.slane %v3418_v21, 2  ;;  %v2312_v10 = vsel %vm2203_vm6, %v2183_v3, %v1907_v5  ;;  %v1306_v46 = vpop.permute.xlu0 %1305  ;;  %v2184_v3 = vsel %vm2074_vm5, %v16640_v61, %v1276_v34 }
 0x27d   : > { %5085 = vst.msk [vmem:[#allocation2 + $0x200] sm:$0xff] %vm5019_vm8, %v4955_v31  ;;  %14256 = vmatprep.mubr.msk.f32.mxu0 %vm2334_vm7, %v2312_v10  ;;  %v19738_v5 = vmax.f32 %v5312_v41, 0.0  ;;  %v23614_v34 = vrot.slane %v19718_v39, 1  ;;  %v5313_v44 = vadd.f32 %v19596_v9, %v5209_v30 }
 0x27e   : > { %5945 = vrot.lane.b32.xlu1 %v5825_v27, %s23625_s18  ;;  %v4168_v14 = vsel %vm808_vm3, %v4166_v12, %v23618_v37  ;;  %v4672_v24 = vsel %vm1441_vm4, %v4670_v57, %v23615_v26  ;;  %v5840_v57 = vsel %vm1441_vm4, %v5837_v32, %v23613_v20  ;;  %v5826_v32 = vrot.slane %v19712_v58, 2 }
 0x27f   : > { %5649 = vrot.lane.b32.xlu0 %v5528_v59, %s23627_s21  ;;  %v4467_v27 = vmax.f32 %v3418_v21, %v4168_v14  ;;  %v1909_v31 = vpop.permute.xlu1 %1908  ;;  %v5514_v59 = vrot.slane %v19712_v58, 1  ;;  %v16641_v14 = vld [vmem:[%s16891_s29 + $0x3e8] sm:$0xff] }
 0x280   : > { %v2313_v12 = vsel %vm2203_vm6, %v2184_v3, %v1909_v31  ;;  %v1308_v10 = vpop.permute.xlu0 %1307  ;;  %v5529_v3 = vrot.slane %v19738_v5, 1  ;;  %v5195_v31 = vld [vmem:[#allocation2 + $0x170] ss:$2 sm:$0x3f] }
 0x281   : > { %v4971_v21 = vmax.f32 %v4467_v27, %v4672_v24  ;;  %v2200_v61 = vsel %vm2074_vm5, %v16641_v14, %v1308_v10  ;;  %14257 = vmatmul.mubr.msk.f32.gmra.mrb[60].mxu0 %vm2334_vm7, %v2313_v12  ;;  %v16642_v24 = vld [vmem:[%s16891_s29 + $0x3e0] sm:$0xff]  ;;  %v5517_v30 = vsel %vm808_vm3, %v5514_v59, %v23614_v34  ;;  %v16643_v34 = vld [vmem:[%s16891_s29 + $0x370] sm:$0xff] }
 0x282   : > { %5961 = vrot.lane.b32.xlu1 %v5840_v57, %s23625_s18  ;;  %v2199_v27 = vsel %vm2074_vm5, %v16642_v24, %v1306_v46 }
 0x283   : > { %5959 = vrot.lane.b32.xlu0 %v5838_v4, %s23625_s18  ;;  %5101 = vst.msk [vmem:[#allocation2 + $0x280] sm:$0xff] %vm5019_vm8, %v4971_v21  ;;  %v1941_v41 = vpop.permute.xlu1 %1940  ;;  %v5515_v4 = vsel %vm808_vm3, %v5512_v54, %v5514_v59  ;;  %v5828_v54 = vrot.slane %v19718_v39, 2  ;;  %v5306_v59 = vadd.f32 %v19596_v9, %v5195_v31 }
 0x284   : > { %v2329_v10 = vsel %vm2203_vm6, %v2200_v61, %v1941_v41  ;;  %v1939_v57 = vpop.permute.xlu0 %1938  ;;  %v19758_v14 = vpop.f32.mrb[34].mxu0  ;;  %v19770_v61 = vmax.f32 %v5313_v44, 0.0  ;;  %v5530_v44 = vsel %vm808_vm3, %v5527_v51, %v5529_v3 }
 0x285   : > { %v2328_v12 = vsel %vm2203_vm6, %v2199_v27, %v1939_v57  ;;  %v23617_v21 = vrot.slane %v19758_v14, 1  ;;  %v23616_v20 = vrot.slane %v19758_v14, 2  ;;  %v3235_v46 = vpop.f32.mrb[35].mxu0  ;;  %v5827_v57 = vsel %vm1441_vm4, %v5824_v40, %v5826_v32 }
 0x286   : > { %5637 = vrot.lane.b32.xlu1 %v5517_v30, %s23627_s21  ;;  %v4138_v41 = vrot.slane %v3235_v46, 1  ;;  %v4642_v24 = vrot.slane %v3235_v46, 2  ;;  %14284 = vmatprep.mubr.msk.f32.mxu1 %vm2334_vm7, %v2328_v12 }
 0x287   : > { %5635 = vrot.lane.b32.xlu0 %v5515_v4, %s23627_s21  ;;  %14285 = vmatmul.mubr.msk.f32.gmra.mrb[60].mxu1 %vm2334_vm7, %v2329_v10  ;;  %v1280_v27 = vpop.permute.xlu1 %1279 }
 0x288   : > { %v4139_v30 = vsel %vm808_vm3, %v4136_v45, %v4138_v41  ;;  %v4141_v4 = vsel %vm808_vm3, %v4138_v41, %v23617_v21  ;;  %v4643_v31 = vsel %vm1441_vm4, %v4640_v43, %v4642_v24  ;;  %v4645_v40 = vsel %vm1441_vm4, %v4642_v24, %v23616_v20  ;;  %v1278_v10 = vpop.permute.xlu0 %1277 }
 0x289   : > { %v4452_v12 = vmax.f32 %v19670_v53, %v4139_v30  ;;  %v4453_v51 = vmax.f32 %v3235_v46, %v4141_v4  ;;  %v2185_v26 = vsel %vm2074_vm5, %v16643_v34, %v1278_v10  ;;  %v5829_v43 = vsel %vm1441_vm4, %v5826_v32, %v5828_v54  ;;  %v5211_v53 = vld [vmem:[#allocation2 + $0x1f0] ss:$2 sm:$0x3f] }
 0x28a   : > { %5947 = vrot.lane.b32.xlu1 %v5827_v57, %s23625_s18  ;;  %v19800_v41 = vpop.f32.mrb[34].mxu1  ;;  %v5841_v24 = vrot.slane %v19738_v5, 2  ;;  %v19807_v20 = vmax.f32 %v5306_v59, 0.0  ;;  %v5843_v32 = vrot.slane %v19770_v61, 2  ;;  %v23649_v59 = vrot.slane %v19770_v61, 1 }
 0x28b   : > { %5651 = vrot.lane.b32.xlu0 %v5530_v44, %s23627_s21  ;;  %v4956_v46 = vmax.f32 %v4452_v12, %v4643_v31  ;;  %v4957_v30 = vmax.f32 %v4453_v51, %v4645_v40  ;;  %v23619_v34 = vrot.slane %v19800_v41, 1  ;;  %v23620_v57 = vrot.slane %v19800_v41, 2  ;;  %v3428_v4 = vpop.f32.mrb[35].mxu1  ;;  %v1911_v10 = vpop.permute.xlu1 %1910 }
 0x28c   : > { %v4169_v21 = vrot.slane %v3428_v4, 1  ;;  %v4673_v44 = vrot.slane %v3428_v4, 2  ;;  %v2314_v37 = vsel %vm2203_vm6, %v2185_v26, %v1911_v10  ;;  %v1310_v45 = vpop.permute.xlu0 %1309  ;;  %v5532_v31 = vsel %vm808_vm3, %v5529_v3, %v23649_v59 }
 0x28d   : > { %5086 = vst.msk [vmem:[#allocation2 + $0x208] sm:$0xff] %vm5019_vm8, %v4956_v46  ;;  %5087 = vst.msk [vmem:[#allocation2 + $0x210] sm:$0xff] %vm5019_vm8, %v4957_v30  ;;  %14259 = vmatprep.mubr.msk.f32.mxu0 %vm2334_vm7, %v2314_v37  ;;  %v5314_v40 = vadd.f32 %v19596_v9, %v5211_v53  ;;  %v23650_v12 = vrot.slane %v19704_v8, 1  ;;  %v23651_v46 = vrot.slane %v19704_v8, 2  ;;  %v16644_v37 = vld [vmem:[%s16891_s29 + $0x378] sm:$0xff] }
 0x28e   : > { %5949 = vrot.lane.b32.xlu1 %v5829_v43, %s23625_s18  ;;  %v4172_v51 = vsel %vm808_vm3, %v4169_v21, %v23619_v34  ;;  %v4676_v3 = vsel %vm1441_vm4, %v4673_v44, %v23620_v57  ;;  %v2186_v53 = vsel %vm2074_vm5, %v16644_v37, %v1280_v27  ;;  %v23652_v34 = vrot.slane %v19680_v47, 2  ;;  %v16645_v37 = vld [vmem:[%s16891_s29 + $0x3f8] sm:$0xff] }
 0x28f   : > { %v4170_v26 = vsel %vm808_vm3, %v23650_v12, %v4169_v21  ;;  %v4674_v43 = vsel %vm1441_vm4, %v23651_v46, %v4673_v44  ;;  %5653 = vrot.lane.b32.xlu0 %v5532_v31, %s23627_s21  ;;  %v4469_v10 = vmax.f32 %v3428_v4, %v4172_v51  ;;  %v1913_v59 = vpop.permute.xlu1 %1912  ;;  %v5844_v46 = vsel %vm1441_vm4, %v5841_v24, %v5843_v32 }
 0x290   : > { %v4468_v30 = vmax.f32 %v19704_v8, %v4170_v26  ;;  %v2315_v21 = vsel %vm2203_vm6, %v2186_v53, %v1913_v59  ;;  %v1312_v12 = vpop.permute.xlu0 %1311  ;;  %v5842_v44 = vsel %vm1441_vm4, %v23652_v34, %v5841_v24  ;;  %v5518_v31 = vrot.slane %v19807_v20, 1  ;;  %v16646_v26 = vld [vmem:[%s16891_s29 + $0x3f0] sm:$0xff] }
 0x291   : > { %v4973_v27 = vmax.f32 %v4469_v10, %v4676_v3  ;;  %v2202_v8 = vsel %vm2074_vm5, %v16645_v37, %v1312_v12  ;;  %14260 = vmatmul.mubr.msk.f32.gmra.mrb[62].mxu0 %vm2334_vm7, %v2315_v21  ;;  %v19849_v4 = vmax.f32 %v5314_v40, 0.0  ;;  %v5830_v34 = vrot.slane %v19807_v20, 2 }
 0x292   : > { %v4972_v57 = vmax.f32 %v4468_v30, %v4674_v43  ;;  %5965 = vrot.lane.b32.xlu1 %v5844_v46, %s23625_s18  ;;  %v2201_v51 = vsel %vm2074_vm5, %v16646_v26, %v1310_v45  ;;  %v23653_v40 = vrot.slane %v19718_v39, 1  ;;  %v23654_v37 = vrot.slane %v19758_v14, 1 }
 0x293   : > { %5963 = vrot.lane.b32.xlu0 %v5842_v44, %s23625_s18  ;;  %5103 = vst.msk [vmem:[#allocation2 + $0x290] sm:$0xff] %vm5019_vm8, %v4973_v27  ;;  %v1945_v24 = vpop.permute.xlu1 %1944  ;;  %v5533_v45 = vrot.slane %v19849_v4, 1  ;;  %v5831_v27 = vsel %vm1441_vm4, %v5828_v54, %v5830_v34  ;;  %vm12085_vm5 = vcmask 1047559  }
 0x294   : > { %5102 = vst.msk [vmem:[#allocation2 + $0x288] sm:$0xff] %vm5019_vm8, %v4972_v57  ;;  %v2331_v43 = vsel %vm2203_vm6, %v2202_v8, %v1945_v24  ;;  %v1943_v3 = vpop.permute.xlu0 %1942  ;;  %v19858_v53 = vpop.f32.mrb[36].mxu0  ;;  %v5519_v30 = vsel %vm808_vm3, %v23653_v40, %v5518_v31  ;;  %v23655_v24 = vrot.slane %v19758_v14, 2  ;;  %v23656_v40 = vrot.slane %v19770_v61, 1 }
 0x295   : > { %v2330_v10 = vsel %vm2203_vm6, %v2201_v51, %v1943_v3  ;;  %v4144_v57 = vrot.slane %v19858_v53, 1  ;;  %v23621_v59 = vrot.slane %v19858_v53, 2  ;;  %v3245_v21 = vpop.f32.mrb[37].mxu0  ;;  %vm12800_vm6 = vcmask 23552  }
 0x296   : > { %5641 = vrot.lane.b32.xlu1 %v5518_v31, %s23627_s21  ;;  %v4142_v12 = vrot.slane %v3245_v21, 1  ;;  %v4646_v46 = vrot.slane %v3245_v21, 2  ;;  %14287 = vmatprep.mubr.msk.f32.mxu1 %vm2334_vm7, %v2330_v10 }
 0x297   : > { %5639 = vrot.lane.b32.xlu0 %v5519_v30, %s23627_s21  ;;  %14288 = vmatmul.mubr.msk.f32.gmra.mrb[62].mxu1 %vm2334_vm7, %v2331_v43  ;;  %v5598_v44 = vpop.permute.xlu1 %5597  ;;  %v5534_v30 = vsel %vm808_vm3, %v23656_v40, %v5533_v45 }
 0x298   : > { %v4143_v31 = vsel %vm808_vm3, %v23654_v37, %v4142_v12  ;;  %v4145_v8 = vsel %vm808_vm3, %v4142_v12, %v4144_v57  ;;  %v4647_v26 = vsel %vm1441_vm4, %v23655_v24, %v4646_v46  ;;  %v4649_v51 = vsel %vm1441_vm4, %v4646_v46, %v23621_v59  ;;  %v5596_v43 = vpop.permute.xlu0 %5595 }
 0x299   : > { %v4454_v3 = vmax.f32 %v19758_v14, %v4143_v31  ;;  %v4455_v54 = vmax.f32 %v3245_v21, %v4145_v8  ;;  %v6099_v10 = vsel %vm5019_vm8, %v19024_v23, %v5596_v43  ;;  %v5845_v23 = vrot.slane %v19849_v4, 2 }
 0x29a   : > { %5951 = vrot.lane.b32.xlu1 %v5831_v27, %s23625_s18  ;;  %v19893_v12 = vpop.f32.mrb[36].mxu1 }
 0x29b   : > { %5655 = vrot.lane.b32.xlu0 %v5534_v30, %s23627_s21  ;;  %v4958_v46 = vmax.f32 %v4454_v3, %v4647_v26  ;;  %v4959_v37 = vmax.f32 %v4455_v54, %v4649_v51  ;;  %v23622_v14 = vrot.slane %v19893_v12, 1  ;;  %v4679_v21 = vrot.slane %v19893_v12, 2  ;;  %v3438_v27 = vpop.f32.mrb[37].mxu1  ;;  %v5908_v31 = vpop.permute.xlu1 %5907 }
 0x29c   : > { %v4173_v8 = vrot.slane %v3438_v27, 1  ;;  %v4677_v24 = vrot.slane %v3438_v27, 2  ;;  %v6164_v40 = vsel %vm6163_vm10, %v6099_v10, %v5908_v31  ;;  %v5612_v59 = vpop.permute.xlu0 %5611  ;;  %v23657_v26 = vrot.slane %v19800_v41, 1  ;;  %v5213_v31 = vld [vmem:[#allocation2 + $0x200] ss:$2 sm:$0xff] }
 0x29d   : > { %5088 = vst.msk [vmem:[#allocation2 + $0x218] sm:$0xff] %vm5019_vm8, %v4958_v46  ;;  %5089 = vst.msk [vmem:[#allocation2 + $0x220] sm:$0xff] %vm5019_vm8, %v4959_v37  ;;  %14314 = vmatprep.mubr.msk.f32.mxu0 %vm6240_vm11, %v6164_v40  ;;  %v23658_v3 = vrot.slane %v19800_v41, 2  ;;  %v6100_v30 = vsel %vm5019_vm8, %v18997_v25, %v5598_v44  ;;  %v5315_v25 = vadd.f32 %v19596_v9, %v5213_v31 }
 0x29e   : > { %5953 = vrot.lane.b32.xlu1 %v5830_v34, %s23625_s18  ;;  %v4174_v51 = vsel %vm808_vm3, %v23657_v26, %v4173_v8  ;;  %v4176_v43 = vsel %vm808_vm3, %v4173_v8, %v23622_v14  ;;  %v4680_v34 = vsel %vm1441_vm4, %v4677_v24, %v4679_v21 }
 0x29f   : > { %v4678_v54 = vsel %vm1441_vm4, %v23658_v3, %v4677_v24  ;;  %5657 = vrot.lane.b32.xlu0 %v5533_v45, %s23627_s21  ;;  %v4470_v10 = vmax.f32 %v19800_v41, %v4174_v51  ;;  %v4471_v46 = vmax.f32 %v3438_v27, %v4176_v43  ;;  %v5910_v37 = vpop.permute.xlu1 %5909  ;;  %v5846_v24 = vsel %vm1441_vm4, %v5843_v32, %v5845_v23 }
 0x2a0   : > { %v6165_v8 = vsel %vm6163_vm10, %v6100_v30, %v5910_v37  ;;  %v5614_v40 = vpop.permute.xlu0 %5613  ;;  %v6107_v32 = vsel %vm5019_vm8, %v19026_v2, %v5612_v59  ;;  %v19944_v2 = vmax.f32 %v5315_v25, 0.0  ;;  %v5229_v59 = vld [vmem:[#allocation2 + $0x280] ss:$2 sm:$0xff] }
 0x2a1   : > { %v4974_v26 = vmax.f32 %v4470_v10, %v4678_v54  ;;  %v4975_v14 = vmax.f32 %v4471_v46, %v4680_v34  ;;  %14315 = vmatmul.mubr.msk.f32.vlgmr.msra.gmra.mrb[64].mxu0 %vm6240_vm11, %v6165_v8  ;;  %v6108_v41 = vsel %vm5019_vm8, %v19047_v13, %v5614_v40  ;;  %v23659_v8 = vrot.slane %v19858_v53, 2 }
 0x2a2   : > { %5969 = vrot.lane.b32.xlu1 %v5845_v23, %s23625_s18  ;;  %15565 = vmatpush3.bf16.msra.mxu0 %v18928_v36 }
 0x2a3   : > { %5967 = vrot.lane.b32.xlu0 %v5846_v24, %s23625_s18  ;;  %5104 = vst.msk [vmem:[#allocation2 + $0x298] sm:$0xff] %vm5019_vm8, %v4974_v26  ;;  %5105 = vst.msk [vmem:[#allocation2 + $0x2a0] sm:$0xff] %vm5019_vm8, %v4975_v14  ;;  %v5926_v45 = vpop.permute.xlu1 %5925  ;;  %15567 = vmatprep.subr.bf16.mxu0 %v19068_v62 }
 0x2a4   : > { %v6173_v44 = vsel %vm6163_vm10, %v6108_v41, %v5926_v45  ;;  %v5924_v27 = vpop.permute.xlu0 %5923  ;;  %v19937_v23 = vpop.f32.mrb[38].mxu0  ;;  %v5215_v51 = vld [vmem:[#allocation2 + $0x210] ss:$2 sm:$0xff] }
 0x2a5   : > { %v6172_v43 = vsel %vm6163_vm10, %v6107_v32, %v5924_v27  ;;  %v4148_v3 = vrot.slane %v19937_v23, 1  ;;  %v4652_v14 = vrot.slane %v19937_v23, 2  ;;  %v3255_v54 = vpop.f32.mrb[39].mxu0  ;;  %v5316_v13 = vadd.f32 %v19596_v9, %v5215_v51 }
 0x2a6   : > { %v4146_v34 = vrot.slane %v3255_v54, 1  ;;  %v4650_v30 = vrot.slane %v3255_v54, 2  ;;  %14350 = vmatprep.mubr.msk.f32.mxu1 %vm6240_vm11, %v6172_v43  ;;  %15569 = vmatpush3.bf16.msra.mxu0 %v19068_v62 }
 0x2a7   : > { %14351 = vmatmul.mubr.msk.f32.vlgmr.msra.gmra.mrb[64].mxu1 %vm6240_vm11, %v6173_v44  ;;  %v5602_v10 = vpop.permute.xlu1 %5601  ;;  %v19948_v46 = vmax.f32 %v5316_v13, 0.0  ;;  %15571 = vmatprep.subr.bf16.mxu0 %v19123_v15  ;;  %v5535_v44 = vrot.slane %v19944_v2, 1 }
 0x2a8   : > { %v4147_v37 = vsel %vm808_vm3, %v4144_v57, %v4146_v34  ;;  %v4149_v31 = vsel %vm808_vm3, %v4146_v34, %v4148_v3  ;;  %v4651_v40 = vsel %vm1441_vm4, %v23659_v8, %v4650_v30  ;;  %v4653_v26 = vsel %vm1441_vm4, %v4650_v30, %v4652_v14  ;;  %v5600_v24 = vpop.permute.xlu0 %5599  ;;  %15589 = vmatpush3.bf16.msra.mxu1 %v18928_v36 }
 0x2a9   : > { %v4456_v25 = vmax.f32 %v19858_v53, %v4147_v37  ;;  %v4457_v41 = vmax.f32 %v3255_v54, %v4149_v31  ;;  %v5323_v57 = vadd.f32 %v19596_v9, %v5229_v59  ;;  %15591 = vmatprep.subr.bf16.mxu1 %v19068_v62  ;;  %v6101_v45 = vsel %vm5019_vm8, %v19031_v1, %v5600_v24 }
 0x2aa   : > { %v19969_v32 = vpop.f32.mrb[38].mxu1  ;;  %v5536_v27 = vrot.slane %v19948_v46, 1  ;;  %v5231_v51 = vld [vmem:[#allocation2 + $0x290] ss:$2 sm:$0xff]  ;;  %15573 = vmatpush3.bf16.msra.mxu0 %v19123_v15  ;;  %v23660_v24 = vrot.slane %v19893_v12, 1 }
 0x2ab   : > { %v4960_v43 = vmax.f32 %v4456_v25, %v4651_v40  ;;  %v4961_v13 = vmax.f32 %v4457_v41, %v4653_v26  ;;  %v4179_v53 = vrot.slane %v19969_v32, 1  ;;  %v4683_v54 = vrot.slane %v19969_v32, 2  ;;  %v3448_v34 = vpop.f32.mrb[39].mxu1  ;;  %v5912_v30 = vpop.permute.xlu1 %5911  ;;  %15575 = vmatprep.subr.bf16.mxu0 %v19132_v50 }
 0x2ac   : > { %v4177_v1 = vrot.slane %v3448_v34, 1  ;;  %v4681_v59 = vrot.slane %v3448_v34, 2  ;;  %v6166_v37 = vsel %vm6163_vm10, %v6101_v45, %v5912_v30  ;;  %v5616_v31 = vpop.permute.xlu0 %5615  ;;  %v5537_v8 = vsel %vm808_vm3, %v5535_v44, %v5536_v27  ;;  %15593 = vmatpush3.bf16.msra.mxu1 %v19068_v62 }
 0x2ad   : > { %5090 = vst.msk [vmem:[#allocation2 + $0x228] sm:$0xff] %vm5019_vm8, %v4960_v43  ;;  %5091 = vst.msk [vmem:[#allocation2 + $0x230] sm:$0xff] %vm5019_vm8, %v4961_v13  ;;  %5659 = vrot.lane.b32.xlu0 %v5537_v8, %s23627_s21  ;;  %14317 = vmatprep.mubr.msk.f32.mxu0 %vm6240_vm11, %v6166_v37  ;;  %v5324_v40 = vadd.f32 %v19596_v9, %v5231_v51  ;;  %v19987_v26 = vmax.f32 %v5323_v57, 0.0  ;;  %v6102_v57 = vsel %vm5019_vm8, %v19151_v38, %v5602_v10 }
 0x2ae   : > { %v4178_v25 = vsel %vm808_vm3, %v23660_v24, %v4177_v1  ;;  %v4180_v41 = vsel %vm808_vm3, %v4177_v1, %v4179_v53  ;;  %v4682_v45 = vsel %vm1441_vm4, %v4679_v21, %v4681_v59  ;;  %v4684_v44 = vsel %vm1441_vm4, %v4681_v59, %v4683_v54  ;;  %15577 = vmatpush3.bf16.msra.mxu0 %v19132_v50 }
 0x2af   : > { %v4472_v51 = vmax.f32 %v19893_v12, %v4178_v25  ;;  %v4473_v43 = vmax.f32 %v3448_v34, %v4180_v41  ;;  %v5914_v13 = vpop.permute.xlu1 %5913  ;;  %v20005_v30 = vmax.f32 %v5324_v40, 0.0  ;;  %15595 = vmatprep.subr.bf16.mxu1 %v19123_v15  ;;  %15579 = vmatprep.subr.bf16.mxu0 %v19179_v18  ;;  %v5550_v8 = vrot.slane %v19987_v26, 1 }
 0x2b0   : > { %v6167_v21 = vsel %vm6163_vm10, %v6102_v57, %v5914_v13  ;;  %v5618_v1 = vpop.permute.xlu0 %5617  ;;  %15597 = vmatpush3.bf16.msra.mxu1 %v19123_v15  ;;  %v6109_v40 = vsel %vm5019_vm8, %v19091_v22, %v5616_v31 }
 0x2b1   : > { %v4976_v59 = vmax.f32 %v4472_v51, %v4682_v45  ;;  %v4977_v37 = vmax.f32 %v4473_v43, %v4684_v44  ;;  %v5551_v38 = vrot.slane %v20005_v30, 1  ;;  %14318 = vmatmul.mubr.msk.f32.gmra.mrb[66].mxu0 %vm6240_vm11, %v6167_v21  ;;  %15599 = vmatprep.subr.bf16.mxu1 %v19132_v50  ;;  %v6110_v12 = vsel %vm5019_vm8, %v19219_v49, %v5618_v1 }
 0x2b2   : > { %15581 = vmatpush3.bf16.msra.mxu0 %v19179_v18 }
 0x2b3   : > { %5106 = vst.msk [vmem:[#allocation2 + $0x2a8] sm:$0xff] %vm5019_vm8, %v4976_v59  ;;  %5107 = vst.msk [vmem:[#allocation2 + $0x2b0] sm:$0xff] %vm5019_vm8, %v4977_v37  ;;  %v5552_v10 = vsel %vm808_vm3, %v5550_v8, %v5551_v38  ;;  %v5930_v34 = vpop.permute.xlu1 %5929  ;;  %15583 = vmatprep.subr.bf16.mxu0 %v19232_v28 }
 0x2b4   : > { %5675 = vrot.lane.b32.xlu0 %v5552_v10, %s23627_s21  ;;  %v6175_v24 = vsel %vm6163_vm10, %v6110_v12, %v5930_v34  ;;  %v5928_v25 = vpop.permute.xlu0 %5927  ;;  %v20028_v41 = vpop.f32.mrb[40].mxu0  ;;  %v5217_v45 = vld [vmem:[#allocation2 + $0x220] ss:$2 sm:$0xff]  ;;  %15601 = vmatpush3.bf16.msra.mxu1 %v19132_v50 }
 0x2b5   : > { %v6174_v49 = vsel %vm6163_vm10, %v6109_v40, %v5928_v25  ;;  %v4152_v44 = vrot.slane %v20028_v41, 1  ;;  %v4656_v57 = vrot.slane %v20028_v41, 2  ;;  %v3265_v51 = vpop.f32.mrb[41].mxu0  ;;  %v5317_v43 = vadd.f32 %v19596_v9, %v5217_v45  ;;  %15603 = vmatprep.subr.bf16.mxu1 %v19179_v18 }
 0x2b6   : > { %v4150_v22 = vrot.slane %v3265_v51, 1  ;;  %v4654_v31 = vrot.slane %v3265_v51, 2  ;;  %14353 = vmatprep.mubr.msk.f32.mxu1 %vm6240_vm11, %v6174_v49  ;;  %15585 = vmatpush3.bf16.msra.mxu0 %v19232_v28 }
 0x2b7   : > { %14354 = vmatmul.mubr.msk.f32.gmra.mrb[66].mxu1 %vm6240_vm11, %v6175_v24  ;;  %v5606_v13 = vpop.permute.xlu1 %5605  ;;  %v20039_v21 = vmax.f32 %v5317_v43, 0.0  ;;  %15611 = vmatprep.subr.bf16.mxu0 %v18928_v36 }
 0x2b8   : > { %v4151_v1 = vsel %vm808_vm3, %v4148_v3, %v4150_v22  ;;  %v4153_v59 = vsel %vm808_vm3, %v4150_v22, %v4152_v44  ;;  %v4655_v37 = vsel %vm1441_vm4, %v4652_v14, %v4654_v31  ;;  %v4657_v8 = vsel %vm1441_vm4, %v4654_v31, %v4656_v57  ;;  %v5604_v12 = vpop.permute.xlu0 %5603  ;;  %15605 = vmatpush3.bf16.msra.mxu1 %v19179_v18 }
 0x2b9   : > { %v4458_v10 = vmax.f32 %v19937_v23, %v4151_v1  ;;  %v4459_v34 = vmax.f32 %v3265_v51, %v4153_v59  ;;  %15607 = vmatprep.subr.bf16.mxu1 %v19232_v28  ;;  %v6103_v3 = vsel %vm5019_vm8, %v19168_v60, %v5604_v12  ;;  %v5538_v24 = vrot.slane %v20039_v21, 1 }
 0x2ba   : > { %v20059_v40 = vpop.f32.mrb[40].mxu1  ;;  %v5848_v14 = vrot.slane %v19948_v46, 2  ;;  %v5233_v25 = vld [vmem:[#allocation2 + $0x2a0] ss:$2 sm:$0xff] }
 0x2bb   : > { %v4962_v45 = vmax.f32 %v4458_v10, %v4655_v37  ;;  %v4963_v49 = vmax.f32 %v4459_v34, %v4657_v8  ;;  %v23623_v43 = vrot.slane %v20059_v40, 1  ;;  %v23624_v22 = vrot.slane %v20059_v40, 2  ;;  %v3458_v23 = vpop.f32.mrb[41].mxu1  ;;  %v5916_v51 = vpop.permute.xlu1 %5915 }
 0x2bc   : > { %v4181_v31 = vrot.slane %v3458_v23, 1  ;;  %v4685_v1 = vrot.slane %v3458_v23, 2  ;;  %v6168_v59 = vsel %vm6163_vm10, %v6103_v3, %v5916_v51  ;;  %v5620_v60 = vpop.permute.xlu0 %5619  ;;  %v5539_v12 = vsel %vm808_vm3, %v5536_v27, %v5538_v24  ;;  %15609 = vmatpush3.bf16.msra.mxu1 %v19232_v28 }
 0x2bd   : > { %5092 = vst.msk [vmem:[#allocation2 + $0x238] sm:$0xff] %vm5019_vm8, %v4962_v45  ;;  %5093 = vst.msk [vmem:[#allocation2 + $0x240] sm:$0xff] %vm5019_vm8, %v4963_v49  ;;  %5661 = vrot.lane.b32.xlu1 %v5539_v12, %s23627_s21  ;;  %14320 = vmatprep.mubr.msk.f32.mxu0 %vm6240_vm11, %v6168_v59  ;;  %v5847_v37 = vrot.slane %v19944_v2, 2  ;;  %v5325_v8 = vadd.f32 %v19596_v9, %v5233_v25  ;;  %v6104_v25 = vsel %vm5019_vm8, %v19306_v16, %v5606_v13 }
 0x2be   : > { %v4182_v10 = vsel %vm808_vm3, %v4179_v53, %v4181_v31  ;;  %v4184_v27 = vsel %vm808_vm3, %v4181_v31, %v23623_v43  ;;  %v4686_v34 = vsel %vm1441_vm4, %v4683_v54, %v4685_v1  ;;  %v4688_v3 = vsel %vm1441_vm4, %v4685_v1, %v23624_v22  ;;  %15635 = vmatprep.subr.bf16.mxu1 %v18928_v36 }
 0x2bf   : > { %v4474_v45 = vmax.f32 %v19969_v32, %v4182_v10  ;;  %v4475_v53 = vmax.f32 %v3458_v23, %v4184_v27  ;;  %v5918_v49 = vpop.permute.xlu1 %5917  ;;  %v20094_v51 = vmax.f32 %v5325_v8, 0.0  ;;  %v5849_v54 = vsel %vm1441_vm4, %v5847_v37, %v5848_v14 }
 0x2c0   : > { %v6169_v31 = vsel %vm6163_vm10, %v6104_v25, %v5918_v49  ;;  %v5622_v59 = vpop.permute.xlu0 %5621  ;;  %v5850_v12 = vrot.slane %v20039_v21, 2  ;;  %v5863_v23 = vrot.slane %v20005_v30, 2  ;;  %v6111_v8 = vsel %vm5019_vm8, %v19247_v55, %v5620_v60 }
 0x2c1   : > { %v4978_v43 = vmax.f32 %v4474_v45, %v4686_v34  ;;  %v4979_v1 = vmax.f32 %v4475_v53, %v4688_v3  ;;  %5971 = vrot.lane.b32.xlu1 %v5849_v54, %s23625_s18  ;;  %v5553_v22 = vrot.slane %v20094_v51, 1  ;;  %14321 = vmatmul.mubr.msk.f32.gmra.mrb[68].mxu0 %vm6240_vm11, %v6169_v31  ;;  %v6112_v16 = vsel %vm5019_vm8, %v19348_v48, %v5622_v59 }
 0x2c2   : > { %v5865_v37 = vrot.slane %v20094_v51, 2  ;;  %v5851_v48 = vsel %vm1441_vm4, %v5848_v14, %v5850_v12 }
 0x2c3   : > { %5108 = vst.msk [vmem:[#allocation2 + $0x2b8] sm:$0xff] %vm5019_vm8, %v4978_v43  ;;  %5109 = vst.msk [vmem:[#allocation2 + $0x2c0] sm:$0xff] %vm5019_vm8, %v4979_v1  ;;  %v5554_v32 = vsel %vm808_vm3, %v5551_v38, %v5553_v22  ;;  %v5934_v13 = vpop.permute.xlu1 %5933  ;;  %v5862_v38 = vrot.slane %v19987_v26, 2 }
 0x2c4   : > { %5677 = vrot.lane.b32.xlu0 %v5554_v32, %s23627_s21  ;;  %v6177_v43 = vsel %vm6163_vm10, %v6112_v16, %v5934_v13  ;;  %v5932_v10 = vpop.permute.xlu0 %5931  ;;  %v5219_v34 = vld [vmem:[#allocation2 + $0x230] ss:$2 sm:$0xff]  ;;  %v5866_v59 = vsel %vm1441_vm4, %v5863_v23, %v5865_v37 }
 0x2c5   : > { %v20120_v27 = vpop.f32.mrb[42].mxu0  ;;  %v6176_v3 = vsel %vm6163_vm10, %v6111_v8, %v5932_v10  ;;  %5973 = vrot.lane.b32.xlu1 %v5851_v48, %s23625_s18  ;;  %v5318_v45 = vadd.f32 %v19596_v9, %v5219_v34  ;;  %v5864_v14 = vsel %vm1441_vm4, %v5862_v38, %v5863_v23 }
 0x2c6   : > { %v4156_v55 = vrot.slane %v20120_v27, 1  ;;  %v4660_v60 = vrot.slane %v20120_v27, 2  ;;  %v3275_v25 = vpop.f32.mrb[43].mxu0  ;;  %14356 = vmatprep.mubr.msk.f32.mxu1 %vm6240_vm11, %v6176_v3 }
 0x2c7   : > { %v4154_v53 = vrot.slane %v3275_v25, 1  ;;  %v4658_v49 = vrot.slane %v3275_v25, 2  ;;  %14357 = vmatmul.mubr.msk.f32.gmra.mrb[68].mxu1 %vm6240_vm11, %v6177_v43  ;;  %v5610_v31 = vpop.permute.xlu1 %5609  ;;  %v20134_v54 = vmax.f32 %v5318_v45, 0.0 }
 0x2c8   : > { %5987 = vrot.lane.b32.xlu0 %v5864_v14, %s23625_s18  ;;  %v5608_v23 = vpop.permute.xlu0 %5607 }
 0x2c9   : > { %v4155_v1 = vsel %vm808_vm3, %v4152_v44, %v4154_v53  ;;  %v4157_v16 = vsel %vm808_vm3, %v4154_v53, %v4156_v55  ;;  %v4659_v32 = vsel %vm1441_vm4, %v4656_v57, %v4658_v49  ;;  %v4661_v13 = vsel %vm1441_vm4, %v4658_v49, %v4660_v60  ;;  %5989 = vrot.lane.b32.xlu1 %v5866_v59, %s23625_s18 }
 0x2ca   : > { %v4460_v8 = vmax.f32 %v20028_v41, %v4155_v1  ;;  %v4461_v43 = vmax.f32 %v3275_v25, %v4157_v16  ;;  %v6105_v44 = vsel %vm5019_vm8, %v19314_v56, %v5608_v23  ;;  %v20153_v10 = vpop.f32.mrb[42].mxu1  ;;  %v5540_v48 = vrot.slane %v20134_v54, 1  ;;  %v5235_v57 = vld [vmem:[#allocation2 + $0x2b0] ss:$2 sm:$0xff] }
 0x2cb   : > { %v4187_v3 = vrot.slane %v20153_v10, 1  ;;  %v4691_v45 = vrot.slane %v20153_v10, 2  ;;  %v3468_v53 = vpop.f32.mrb[43].mxu1  ;;  %v5920_v49 = vpop.permute.xlu1 %5919  ;;  %v5326_v1 = vadd.f32 %v19596_v9, %v5235_v57  ;;  %v23661_v16 = vrot.slane %v20059_v40, 1 }
 0x2cc   : > { %v4964_v38 = vmax.f32 %v4460_v8, %v4659_v32  ;;  %v4965_v34 = vmax.f32 %v4461_v43, %v4661_v13  ;;  %v4185_v41 = vrot.slane %v3468_v53, 1  ;;  %v4689_v25 = vrot.slane %v3468_v53, 2  ;;  %v5624_v59 = vpop.permute.xlu0 %5623 }
 0x2cd   : > { %v6170_v14 = vsel %vm6163_vm10, %v6105_v44, %v5920_v49  ;;  %v5541_v56 = vsel %vm808_vm3, %v5538_v24, %v5540_v48  ;;  %v23662_v24 = vrot.slane %v20059_v40, 2  ;;  %v6106_v43 = vsel %vm5019_vm8, %v19428_v6, %v5610_v31 }
 0x2ce   : > { %5094 = vst.msk [vmem:[#allocation2 + $0x248] sm:$0xff] %vm5019_vm8, %v4964_v38  ;;  %5095 = vst.msk [vmem:[#allocation2 + $0x250] sm:$0xff] %vm5019_vm8, %v4965_v34  ;;  %5663 = vrot.lane.b32.xlu0 %v5541_v56, %s23627_s21  ;;  %14323 = vmatprep.mubr.msk.f32.mxu0 %vm6240_vm11, %v6170_v14  ;;  %v4186_v32 = vsel %vm808_vm3, %v23661_v16, %v4185_v41  ;;  %v4188_v13 = vsel %vm808_vm3, %v4185_v41, %v4187_v3  ;;  %v20184_v38 = vmax.f32 %v5326_v1, 0.0 }
 0x2cf   : > { %v4690_v23 = vsel %vm1441_vm4, %v23662_v24, %v4689_v25  ;;  %v4692_v8 = vsel %vm1441_vm4, %v4689_v25, %v4691_v45  ;;  %v4476_v9 = vmax.f32 %v20059_v40, %v4186_v32  ;;  %v4477_v44 = vmax.f32 %v3468_v53, %v4188_v13  ;;  %v5922_v57 = vpop.permute.xlu1 %5921 }
 0x2d0   : > { %v6171_v34 = vsel %vm6163_vm10, %v6106_v43, %v5922_v57  ;;  %v5626_v49 = vpop.permute.xlu0 %5625  ;;  %v5555_v56 = vrot.slane %v20184_v38, 1  ;;  %v6113_v53 = vsel %vm5019_vm8, %v19379_v63, %v5624_v59 }
 0x2d1   : > { %v4980_v41 = vmax.f32 %v4476_v9, %v4690_v23  ;;  %v4981_v14 = vmax.f32 %v4477_v44, %v4692_v8  ;;  %14324 = vmatmul.mubr.msk.f32.gmra.mrb[70].mxu0 %vm6240_vm11, %v6171_v34  ;;  %v6114_v6 = vsel %vm5019_vm8, %v19446_v35, %v5626_v49 }
 0x2d2   : > { %v5556_v40 = vsel %vm808_vm3, %v5553_v22, %v5555_v56  ;;  %v20210_v22 = vld [vmem:[%s23645_s2] ss:$0 sm:$0xff] }
 0x2d3   : > { %5110 = vst.msk [vmem:[#allocation2 + $0x2c8] sm:$0xff] %vm5019_vm8, %v4980_v41  ;;  %5111 = vst.msk [vmem:[#allocation2 + $0x2d0] sm:$0xff] %vm5019_vm8, %v4981_v14  ;;  %v5938_v31 = vpop.permute.xlu1 %5937  ;;  %5679 = vrot.lane.b32.xlu0 %v5556_v40, %s23627_s21 }
 0x2d4   : > { %v6179_v25 = vsel %vm6163_vm10, %v6114_v6, %v5938_v31  ;;  %v5936_v1 = vpop.permute.xlu0 %5935  ;;  %v20202_v16 = vpop.f32.mrb[44].mxu0 }
 0x2d5   : > { %v5221_v32 = vld [vmem:[#allocation2 + $0x240] ss:$2 sm:$0xff]  ;;  %v6178_v35 = vsel %vm6163_vm10, %v6113_v53, %v5936_v1  ;;  %v4160_v13 = vrot.slane %v20202_v16, 1  ;;  %v4664_v24 = vrot.slane %v20202_v16, 2  ;;  %v3285_v23 = vpop.f32.mrb[45].mxu0  ;;  %v5852_v53 = vrot.slane %v20134_v54, 2 }
 0x2d6   : > { %v5319_v63 = vadd.f32 %v20210_v22, %v5221_v32  ;;  %v4158_v59 = vrot.slane %v3285_v23, 1  ;;  %v4662_v8 = vrot.slane %v3285_v23, 2  ;;  %14359 = vmatprep.mubr.msk.f32.mxu1 %vm6240_vm11, %v6178_v35 }
 0x2d7   : > { %14360 = vmatmul.mubr.msk.f32.gmra.mrb[70].mxu1 %vm6240_vm11, %v6179_v25  ;;  %v5630_v43 = vpop.permute.xlu1 %5629 }
 0x2d8   : > { %v20215_v9 = vmax.f32 %v5319_v63, 0.0  ;;  %v4159_v44 = vsel %vm808_vm3, %v4156_v55, %v4158_v59  ;;  %v4161_v57 = vsel %vm808_vm3, %v4158_v59, %v4160_v13  ;;  %v4663_v34 = vsel %vm1441_vm4, %v4660_v60, %v4662_v8  ;;  %v5628_v41 = vpop.permute.xlu0 %5627 }
 0x2d9   : > { %v4665_v49 = vsel %vm1441_vm4, %v4662_v8, %v4664_v24  ;;  %v4462_v14 = vmax.f32 %v20120_v27, %v4159_v44  ;;  %v4463_v6 = vmax.f32 %v3285_v23, %v4161_v57  ;;  %v6115_v40 = vsel %vm5019_vm8, %v19515_v29, %v5628_v41 }
 0x2da   : > { %v20232_v55 = vpop.f32.mrb[44].mxu1  ;;  %v5542_v31 = vrot.slane %v20215_v9, 1  ;;  %v5237_v25 = vld [vmem:[#allocation2 + $0x2c0] ss:$2 sm:$0xff] }
 0x2db   : > { %v4966_v1 = vmax.f32 %v4462_v14, %v4663_v34  ;;  %v4967_v60 = vmax.f32 %v4463_v6, %v4665_v49  ;;  %v4191_v32 = vrot.slane %v20232_v55, 1  ;;  %v4695_v35 = vrot.slane %v20232_v55, 2  ;;  %v3478_v63 = vpop.f32.mrb[45].mxu1  ;;  %v5940_v59 = vpop.permute.xlu1 %5939 }
 0x2dc   : > { %v4189_v27 = vrot.slane %v3478_v63, 1  ;;  %v4693_v23 = vrot.slane %v3478_v63, 2  ;;  %v6180_v8 = vsel %vm6163_vm10, %v6115_v40, %v5940_v59  ;;  %v5644_v29 = vpop.permute.xlu0 %5643  ;;  %v5543_v44 = vsel %vm808_vm3, %v5540_v48, %v5542_v31 }
 0x2dd   : > { %5096 = vst.msk [vmem:[#allocation2 + $0x258] sm:$0xff] %vm5019_vm8, %v4966_v1  ;;  %5097 = vst.msk [vmem:[#allocation2 + $0x260] sm:$0xff] %vm5019_vm8, %v4967_v60  ;;  %5665 = vrot.lane.b32.xlu1 %v5543_v44, %s23627_s21  ;;  %14386 = vmatprep.mubr.msk.f32.mxu0 %vm6240_vm11, %v6180_v8  ;;  %v5327_v57 = vadd.f32 %v20210_v22, %v5237_v25  ;;  %v6116_v14 = vsel %vm5019_vm8, %v19491_v42, %v5630_v43  ;;  %v5854_v59 = vrot.slane %v20215_v9, 2 }
 0x2de   : > { %v4190_v34 = vsel %vm808_vm3, %v4187_v3, %v4189_v27  ;;  %v4192_v49 = vsel %vm808_vm3, %v4189_v27, %v4191_v32  ;;  %v4694_v48 = vsel %vm1441_vm4, %v4691_v45, %v4693_v23  ;;  %v4696_v41 = vsel %vm1441_vm4, %v4693_v23, %v4695_v35 }
 0x2df   : > { %v4478_v6 = vmax.f32 %v20153_v10, %v4190_v34  ;;  %v4479_v40 = vmax.f32 %v3478_v63, %v4192_v49  ;;  %v5942_v25 = vpop.permute.xlu1 %5941  ;;  %v20264_v3 = vmax.f32 %v5327_v57, 0.0  ;;  %v5853_v45 = vsel %vm1441_vm4, %v5850_v12, %v5852_v53 }
 0x2e0   : > { %v6181_v1 = vsel %vm6163_vm10, %v6116_v14, %v5942_v25  ;;  %v5646_v60 = vpop.permute.xlu0 %5645  ;;  %v5867_v63 = vrot.slane %v20184_v38, 2  ;;  %v6123_v44 = vsel %vm5019_vm8, %v19528_v17, %v5644_v29  ;;  %v5855_v34 = vsel %vm1441_vm4, %v5852_v53, %v5854_v59 }
 0x2e1   : > { %v4982_v27 = vmax.f32 %v4478_v6, %v4694_v48  ;;  %v4983_v23 = vmax.f32 %v4479_v40, %v4696_v41  ;;  %5975 = vrot.lane.b32.xlu1 %v5853_v45, %s23625_s18  ;;  %v5557_v42 = vrot.slane %v20264_v3, 1  ;;  %14387 = vmatmul.mubr.msk.f32.vlgmr.msra.gmra.mrb[72].mxu0 %vm6240_vm11, %v6181_v1  ;;  %v6124_v10 = vsel %vm5019_vm8, %v19530_v11, %v5646_v60 }
 0x2e2   : > { %15613 = vmatpush3.bf16.msra.mxu0 %v18928_v36  ;;  %v5869_v8 = vrot.slane %v20264_v3, 2  ;;  %v5868_v53 = vsel %vm1441_vm4, %v5865_v37, %v5867_v63 }
 0x2e3   : > { %5112 = vst.msk [vmem:[#allocation2 + $0x2d8] sm:$0xff] %vm5019_vm8, %v4982_v27  ;;  %5113 = vst.msk [vmem:[#allocation2 + $0x2e0] sm:$0xff] %vm5019_vm8, %v4983_v23  ;;  %v5558_v12 = vsel %vm808_vm3, %v5555_v56, %v5557_v42  ;;  %15615 = vmatprep.subr.bf16.mxu0 %v19068_v62 }
 0x2e4   : > { %v5958_v43 = vpop.permute.xlu1 %5957  ;;  %5681 = vrot.lane.b32.xlu0 %v5558_v12, %s23627_s21  ;;  %v14205_v56 = vpop.f32.mrb[46].mxu0  ;;  %v5223_v49 = vld [vmem:[#allocation2 + $0x250] ss:$2 sm:$0xff]  ;;  %v5870_v60 = vsel %vm1441_vm4, %v5867_v63, %v5869_v8 }
 0x2e5   : > { %v6189_v11 = vsel %vm6163_vm10, %v6124_v10, %v5958_v43  ;;  %v5956_v57 = vpop.permute.xlu0 %5955  ;;  %5977 = vrot.lane.b32.xlu1 %v5855_v34, %s23625_s18  ;;  %v4164_v41 = vrot.slane %v14205_v56, 1  ;;  %v4668_v14 = vrot.slane %v14205_v56, 2  ;;  %v3295_v6 = vpop.f32.mrb[47].mxu0  ;;  %v5320_v17 = vadd.f32 %v20210_v22, %v5223_v49 }
 0x2e6   : > { %v6188_v48 = vsel %vm6163_vm10, %v6123_v44, %v5956_v57  ;;  %v4162_v29 = vrot.slane %v3295_v6, 1  ;;  %v4666_v40 = vrot.slane %v3295_v6, 2  ;;  %15617 = vmatpush3.bf16.msra.mxu0 %v19068_v62 }
 0x2e7   : > { %14422 = vmatprep.mubr.msk.f32.mxu1 %vm6240_vm11, %v6188_v48  ;;  %v4466_v25 = vmax.f32 %v14205_v56, %v4164_v41  ;;  %v20306_v45 = vmax.f32 %v5320_v17, 0.0  ;;  %15619 = vmatprep.subr.bf16.mxu0 %v19123_v15 }
 0x2e8   : > { %14423 = vmatmul.mubr.msk.f32.vlgmr.msra.gmra.mrb[72].mxu1 %vm6240_vm11, %v6189_v11  ;;  %v5634_v1 = vpop.permute.xlu1 %5633  ;;  %v4163_v27 = vsel %vm808_vm3, %v4160_v13, %v4162_v29  ;;  %v4165_v23 = vsel %vm808_vm3, %v4162_v29, %v4164_v41  ;;  %v4667_v37 = vsel %vm1441_vm4, %v4664_v24, %v4666_v40  ;;  %v4669_v10 = vsel %vm1441_vm4, %v4666_v40, %v4668_v14 }
 0x2e9   : > { %5991 = vrot.lane.b32.xlu0 %v5868_v53, %s23625_s18  ;;  %v5632_v12 = vpop.permute.xlu0 %5631  ;;  %v4970_v43 = vmax.f32 %v4466_v25, %v4668_v14  ;;  %v4464_v63 = vmax.f32 %v20202_v16, %v4163_v27  ;;  %v4465_v44 = vmax.f32 %v3295_v6, %v4165_v23  ;;  %5993 = vrot.lane.b32.xlu1 %v5870_v60, %s23625_s18  ;;  %v5544_v57 = vrot.slane %v20306_v45, 1 }
 0x2ea   : > { %v6117_v13 = vsel %vm5019_vm8, %v19520_v0, %v5632_v12  ;;  %v14233_v11 = vpop.f32.mrb[46].mxu1  ;;  %v5239_v34 = vld [vmem:[#allocation2 + $0x2d0] ss:$2 sm:$0xff]  ;;  %15637 = vmatpush3.bf16.msra.mxu1 %v18928_v36  ;;  %15621 = vmatpush3.bf16.msra.mxu0 %v19123_v15  ;;  %v6118_v40 = vsel %vm5019_vm8, %v19609_v19, %v5634_v1 }
 0x2eb   : > { %5100 = vst.msk [vmem:[#allocation2 + $0x278] sm:$0xf] %vm5035_vm9, %v4970_v43  ;;  %v4968_v24 = vmax.f32 %v4464_v63, %v4667_v37  ;;  %v4969_v56 = vmax.f32 %v4465_v44, %v4669_v10  ;;  %v4195_v49 = vrot.slane %v14233_v11, 1  ;;  %v4699_v16 = vrot.slane %v14233_v11, 2  ;;  %v3488_v48 = vpop.f32.mrb[47].mxu1  ;;  %15639 = vmatprep.subr.bf16.mxu1 %v19068_v62  ;;  %15623 = vmatprep.subr.bf16.mxu0 %v19132_v50 }
 0x2ec   : > { %v5944_v41 = vpop.permute.xlu1 %5943  ;;  %v4193_v0 = vrot.slane %v3488_v48, 1  ;;  %v4697_v14 = vrot.slane %v3488_v48, 2  ;;  %v5545_v29 = vsel %vm808_vm3, %v5542_v31, %v5544_v57  ;;  %v5328_v53 = vadd.f32 %v20210_v22, %v5239_v34 }
 0x2ed   : > { %v6182_v6 = vsel %vm6163_vm10, %v6117_v13, %v5944_v41  ;;  %v5648_v17 = vpop.permute.xlu0 %5647  ;;  %5098 = vst.msk [vmem:[#allocation2 + $0x268] sm:$0xff] %vm5019_vm8, %v4968_v24  ;;  %5099 = vst.msk [vmem:[#allocation2 + $0x270] sm:$0xff] %vm5019_vm8, %v4969_v56  ;;  %v4482_v25 = vmax.f32 %v14233_v11, %v4195_v49  ;;  %5667 = vrot.lane.b32.xlu0 %v5545_v29, %s23627_s21 }
 0x2ee   : > { %14389 = vmatprep.mubr.msk.f32.mxu0 %vm6240_vm11, %v6182_v6  ;;  %v4194_v60 = vsel %vm808_vm3, %v4191_v32, %v4193_v0  ;;  %v4196_v31 = vsel %vm808_vm3, %v4193_v0, %v4195_v49  ;;  %v4698_v27 = vsel %vm1441_vm4, %v4695_v35, %v4697_v14  ;;  %v4700_v23 = vsel %vm1441_vm4, %v4697_v14, %v4699_v16 }
 0x2ef   : > { %15641 = vmatpush3.bf16.msra.mxu1 %v19068_v62  ;;  %v4986_v19 = vmax.f32 %v4482_v25, %v4699_v16  ;;  %v4480_v1 = vmax.f32 %v20232_v55, %v4194_v60  ;;  %v4481_v37 = vmax.f32 %v3488_v48, %v4196_v31  ;;  %v20351_v12 = vmax.f32 %v5328_v53, 0.0  ;;  %15625 = vmatpush3.bf16.msra.mxu0 %v19132_v50 }
 0x2f0   : > { %v5946_v10 = vpop.permute.xlu1 %5945  ;;  %15643 = vmatprep.subr.bf16.mxu1 %v19123_v15  ;;  %15627 = vmatprep.subr.bf16.mxu0 %v19179_v18  ;;  %v6125_v34 = vsel %vm5019_vm8, %v19571_v52, %v5648_v17 }
 0x2f1   : > { %v6183_v32 = vsel %vm6163_vm10, %v6118_v40, %v5946_v10  ;;  %v5650_v43 = vpop.permute.xlu0 %5649  ;;  %5116 = vst.msk [vmem:[#allocation2 + $0x2f8] sm:$0xf] %vm5035_vm9, %v4986_v19  ;;  %v4984_v35 = vmax.f32 %v4480_v1, %v4698_v27  ;;  %v4985_v63 = vmax.f32 %v4481_v37, %v4700_v23  ;;  %v5559_v44 = vrot.slane %v20351_v12, 1 }
 0x2f2   : > { %14390 = vmatmul.mubr.msk.f32.gmra.mrb[74].mxu0 %vm6240_vm11, %v6183_v32  ;;  %v6126_v55 = vsel %vm5019_vm8, %v19652_v7, %v5650_v43  ;;  %v5856_v23 = vrot.slane %v20306_v45, 2 }
 0x2f3   : > { %15645 = vmatpush3.bf16.msra.mxu1 %v19123_v15  ;;  %5114 = vst.msk [vmem:[#allocation2 + $0x2e8] sm:$0xff] %vm5019_vm8, %v4984_v35  ;;  %5115 = vst.msk [vmem:[#allocation2 + $0x2f0] sm:$0xff] %vm5019_vm8, %v4985_v63  ;;  %v5560_v13 = vsel %vm808_vm3, %v5557_v42, %v5559_v44  ;;  %15629 = vmatpush3.bf16.msra.mxu0 %v19179_v18 }
 0x2f4   : > { %v5962_v11 = vpop.permute.xlu1 %5961  ;;  %15647 = vmatprep.subr.bf16.mxu1 %v19132_v50  ;;  %5683 = vrot.lane.b32.xlu0 %v5560_v13, %s23627_s21  ;;  %v20376_v7 = vpop.f32.mrb[48].mxu0  ;;  %v5225_v49 = vld [vmem:[#allocation2 + $0x260] ss:$2 sm:$0xff]  ;;  %v5227_v35 = vld [vmem:[#allocation2 + $0x270] ss:$2 sm:$0x3f] }
 0x2f5   : > { %v6191_v24 = vsel %vm6163_vm10, %v6126_v55, %v5962_v11  ;;  %v5960_v56 = vpop.permute.xlu0 %5959  ;;  %15631 = vmatprep.subr.bf16.mxu0 %v19232_v28  ;;  %v4198_v16 = vrot.slane %v20376_v7, 1  ;;  %v4702_v48 = vrot.slane %v20376_v7, 2  ;;  %v3611_v41 = vpop.f32.mrb[49].mxu0  ;;  %v5321_v0 = vadd.f32 %v20210_v22, %v5225_v49 }
 0x2f6   : > { %v6190_v42 = vsel %vm6163_vm10, %v6125_v34, %v5960_v56  ;;  %v4197_v52 = vrot.slane %v3611_v41, 1  ;;  %v4701_v14 = vrot.slane %v3611_v41, 2  ;;  %v5322_v49 = vadd.f32 %v20210_v22, %v5227_v35 }
 0x2f7   : > { %14425 = vmatprep.mubr.msk.f32.mxu1 %vm6240_vm11, %v6190_v42  ;;  %15649 = vmatpush3.bf16.msra.mxu1 %v19132_v50  ;;  %v20386_v17 = vmax.f32 %v5321_v0, 0.0 }
 0x2f8   : > { %14426 = vmatmul.mubr.msk.f32.gmra.mrb[74].mxu1 %vm6240_vm11, %v6191_v24  ;;  %v5638_v6 = vpop.permute.xlu1 %5637  ;;  %15651 = vmatprep.subr.bf16.mxu1 %v19179_v18  ;;  %v4199_v29 = vsel %vm808_vm3, %v4197_v52, %v4198_v16  ;;  %v4703_v40 = vsel %vm1441_vm4, %v4701_v14, %v4702_v48  ;;  %v5857_v14 = vsel %vm1441_vm4, %v5854_v59, %v5856_v23 }
 0x2f9   : > { %v5636_v25 = vpop.permute.xlu0 %5635  ;;  %15633 = vmatpush3.bf16.msra.mxu0 %v19232_v28  ;;  %v4483_v53 = vmax.f32 %v3611_v41, %v4199_v29  ;;  %v5546_v60 = vrot.slane %v20386_v17, 1  ;;  %v6120_v41 = vsel %vm5019_vm8, %v19712_v58, %v5638_v6  ;;  %v5858_v29 = vrot.slane %v20386_v17, 2 }
 0x2fa   : > { %15659 = vmatprep.subr.bf16.mxu0 %v18928_v36  ;;  %v6119_v31 = vsel %vm5019_vm8, %v19623_v33, %v5636_v25  ;;  %v20400_v27 = vpop.f32.mrb[48].mxu1  ;;  %v5241_v19 = vld [vmem:[#allocation2 + $0x2e0] ss:$2 sm:$0xff]  ;;  %v5243_v42 = vld [vmem:[#allocation2 + $0x2f0] ss:$2 sm:$0x3f] }
 0x2fb   : > { %15653 = vmatpush3.bf16.msra.mxu1 %v19179_v18  ;;  %v4987_v1 = vmax.f32 %v4483_v53, %v4703_v40  ;;  %v4229_v37 = vrot.slane %v20400_v27, 1  ;;  %v4733_v10 = vrot.slane %v20400_v27, 2  ;;  %v3804_v32 = vpop.f32.mrb[49].mxu1  ;;  %v5547_v33 = vsel %vm808_vm3, %v5544_v57, %v5546_v60 }
 0x2fc   : > { %v5948_v43 = vpop.permute.xlu1 %5947  ;;  %15655 = vmatprep.subr.bf16.mxu1 %v19232_v28  ;;  %v4228_v63 = vrot.slane %v3804_v32, 1  ;;  %v4732_v55 = vrot.slane %v3804_v32, 2  ;;  %5669 = vrot.lane.b32.xlu1 %v5547_v33, %s23627_s21  ;;  %v5329_v34 = vadd.f32 %v20210_v22, %v5241_v19  ;;  %v5330_v58 = vadd.f32 %v20210_v22, %v5243_v42 }
 0x2fd   : > { %v6184_v13 = vsel %vm6163_vm10, %v6119_v31, %v5948_v43  ;;  %v5652_v11 = vpop.permute.xlu0 %5651  ;;  %5117 = vst.msk [vmem:[#allocation2 + $0x300] sm:$0xff] %vm5019_vm8, %v4987_v1  ;;  %v5871_v6 = vrot.slane %v20351_v12, 2  ;;  %v20443_v19 = vmax.f32 %v5322_v49, 0.0  ;;  %v5859_v43 = vsel %vm1441_vm4, %v5856_v23, %v5858_v29 }
 0x2fe   : > { %14392 = vmatprep.mubr.msk.f32.mxu0 %vm6240_vm11, %v6184_v13  ;;  %v4230_v57 = vsel %vm808_vm3, %v4228_v63, %v4229_v37  ;;  %v4734_v24 = vsel %vm1441_vm4, %v4732_v55, %v4733_v10  ;;  %v20423_v56 = vmax.f32 %v5329_v34, 0.0  ;;  %v20462_v23 = vmax.f32 %v5330_v58, 0.0 }
 0x2ff   : > { %15657 = vmatpush3.bf16.msra.mxu1 %v19232_v28  ;;  %v4499_v0 = vmax.f32 %v3804_v32, %v4230_v57 }
 0x300   : > { %v5950_v52 = vpop.permute.xlu1 %5949  ;;  %15683 = vmatprep.subr.bf16.mxu1 %v18928_v36  ;;  %5979 = vrot.lane.b32.xlu1 %v5857_v14, %s23625_s18  ;;  %v5561_v53 = vrot.slane %v20423_v56, 1  ;;  %v5873_v33 = vrot.slane %v20423_v56, 2 }
 0x301   : > { %v6185_v40 = vsel %vm6163_vm10, %v6120_v41, %v5950_v52  ;;  %v5654_v25 = vpop.permute.xlu0 %5653  ;;  %v5003_v31 = vmax.f32 %v4499_v0, %v4734_v24 }
 0x302   : > { %14393 = vmatmul.mubr.msk.f32.gmra.mrb[76].mxu0 %vm6240_vm11, %v6185_v40  ;;  %v5562_v59 = vsel %vm808_vm3, %v5559_v44, %v5561_v53  ;;  %v6128_v1 = vsel %vm5019_vm8, %v19738_v5, %v5654_v25  ;;  %v6127_v44 = vsel %vm5019_vm8, %v19680_v47, %v5652_v11  ;;  %v5872_v47 = vsel %vm1441_vm4, %v5869_v8, %v5871_v6 }
 0x303   : > { %5133 = vst.msk [vmem:[#allocation2 + $0x380] sm:$0xff] %vm5019_vm8, %v5003_v31  ;;  %5685 = vrot.lane.b32.xlu0 %v5562_v59, %s23627_s21  ;;  %v5548_v11 = vrot.slane %v20443_v19, 1  ;;  %v5874_v41 = vsel %vm1441_vm4, %v5871_v6, %v5873_v33  ;;  %v5860_v6 = vrot.slane %v20443_v19, 2 }
 0x304   : > { %v5966_v32 = vpop.permute.xlu1 %5965  ;;  %5981 = vrot.lane.b32.xlu1 %v5859_v43, %s23625_s18  ;;  %v20457_v55 = vpop.f32.mrb[50].mxu0 }
 0x305   : > { %v6193_v35 = vsel %vm6163_vm10, %v6128_v1, %v5966_v32  ;;  %v5964_v63 = vpop.permute.xlu0 %5963  ;;  %v4202_v13 = vrot.slane %v20457_v55, 1  ;;  %v4706_v34 = vrot.slane %v20457_v55, 2  ;;  %v3621_v57 = vpop.f32.mrb[51].mxu0 }
 0x306   : > { %v6192_v5 = vsel %vm6163_vm10, %v6127_v44, %v5964_v63  ;;  %v4200_v24 = vrot.slane %v3621_v57, 1  ;;  %v4704_v49 = vrot.slane %v3621_v57, 2 }
 0x307   : > { %14428 = vmatprep.mubr.msk.f32.mxu1 %vm6240_vm11, %v6192_v5  ;;  %5995 = vrot.lane.b32.xlu0 %v5872_v47, %s23625_s18 }
 0x308   : > { %14429 = vmatmul.mubr.msk.f32.gmra.mrb[76].mxu1 %vm6240_vm11, %v6193_v35  ;;  %v5642_v42 = vpop.permute.xlu1 %5641  ;;  %v4201_v0 = vsel %vm808_vm3, %v4198_v16, %v4200_v24  ;;  %v4203_v8 = vsel %vm808_vm3, %v4200_v24, %v4202_v13  ;;  %v4705_v52 = vsel %vm1441_vm4, %v4702_v48, %v4704_v49  ;;  %v4707_v14 = vsel %vm1441_vm4, %v4704_v49, %v4706_v34 }
 0x309   : > { %v5640_v40 = vpop.permute.xlu0 %5639  ;;  %5997 = vrot.lane.b32.xlu1 %v5874_v41, %s23625_s18  ;;  %v4484_v25 = vmax.f32 %v20376_v7, %v4201_v0  ;;  %v4485_v31 = vmax.f32 %v3621_v57, %v4203_v8  ;;  %v5563_v16 = vrot.slane %v20462_v23, 1  ;;  %v5549_v48 = vsel %vm808_vm3, %v5546_v60, %v5548_v11 }
 0x30a   : > { %v6121_v58 = vsel %vm5019_vm8, %v19718_v39, %v5640_v40  ;;  %v20491_v59 = vpop.f32.mrb[50].mxu1  ;;  %v5861_v8 = vsel %vm1441_vm4, %v5858_v29, %v5860_v6 }
 0x30b   : > { %v4988_v1 = vmax.f32 %v4484_v25, %v4705_v52  ;;  %v4989_v32 = vmax.f32 %v4485_v31, %v4707_v14  ;;  %v4233_v43 = vrot.slane %v20491_v59, 1  ;;  %v4737_v7 = vrot.slane %v20491_v59, 2  ;;  %5671 = vrot.lane.b32.xlu0 %v5549_v48, %s23627_s21  ;;  %v3814_v44 = vpop.f32.mrb[51].mxu1 }
 0x30c   : > { %v5952_v35 = vpop.permute.xlu1 %5951  ;;  %v4231_v63 = vrot.slane %v3814_v44, 1  ;;  %v4735_v39 = vrot.slane %v3814_v44, 2  ;;  %v5564_v60 = vsel %vm808_vm3, %v5561_v53, %v5563_v16  ;;  %v6122_v53 = vsel %vm5019_vm8, %v19807_v20, %v5642_v42 }
 0x30d   : > { %v6186_v5 = vsel %vm6163_vm10, %v6121_v58, %v5952_v35  ;;  %v5656_v57 = vpop.permute.xlu0 %5655  ;;  %5673 = vrot.lane.b32.xlu1 %v5548_v11, %s23627_s21  ;;  %5118 = vst.msk [vmem:[#allocation2 + $0x308] sm:$0xff] %vm5019_vm8, %v4988_v1  ;;  %5119 = vst.msk [vmem:[#allocation2 + $0x310] sm:$0xff] %vm5019_vm8, %v4989_v32  ;;  %v5875_v20 = vrot.slane %v20462_v23, 2 }
 0x30e   : > { %14395 = vmatprep.mubr.msk.f32.mxu0 %vm6240_vm11, %v6186_v5  ;;  %v4232_v24 = vsel %vm808_vm3, %v4229_v37, %v4231_v63  ;;  %v4234_v49 = vsel %vm808_vm3, %v4231_v63, %v4233_v43  ;;  %v4736_v47 = vsel %vm1441_vm4, %v4733_v10, %v4735_v39  ;;  %v4738_v11 = vsel %vm1441_vm4, %v4735_v39, %v4737_v7 }
 0x30f   : > { %v4500_v41 = vmax.f32 %v20400_v27, %v4232_v24  ;;  %v4501_v0 = vmax.f32 %v3814_v44, %v4234_v49  ;;  %5687 = vrot.lane.b32.xlu0 %v5564_v60, %s23627_s21  ;;  %v6129_v42 = vsel %vm5019_vm8, %v19770_v61, %v5656_v57  ;;  %v5876_v61 = vsel %vm1441_vm4, %v5873_v33, %v5875_v20 }
 0x310   : > { %v5954_v37 = vpop.permute.xlu1 %5953 }
 0x311   : > { %v6187_v52 = vsel %vm6163_vm10, %v6122_v53, %v5954_v37  ;;  %v5658_v10 = vpop.permute.xlu0 %5657  ;;  %5983 = vrot.lane.b32.xlu1 %v5861_v8, %s23625_s18  ;;  %v5004_v14 = vmax.f32 %v4500_v41, %v4736_v47  ;;  %v5005_v40 = vmax.f32 %v4501_v0, %v4738_v11 }
 0x312   : > { %14396 = vmatmul.mubr.msk.f32.gmra.mrb[78].mxu0 %vm6240_vm11, %v6187_v52  ;;  %v6130_v27 = vsel %vm5019_vm8, %v19849_v4, %v5658_v10 }
 0x313   : > { %5134 = vst.msk [vmem:[#allocation2 + $0x388] sm:$0xff] %vm5019_vm8, %v5004_v14  ;;  %5135 = vst.msk [vmem:[#allocation2 + $0x390] sm:$0xff] %vm5019_vm8, %v5005_v40  ;;  %5689 = vrot.lane.b32.xlu0 %v5563_v16, %s23627_s21 }
 0x314   : > { %v5970_v29 = vpop.permute.xlu1 %5969  ;;  %v20538_v58 = vpop.f32.mrb[52].mxu0  ;;  %v5245_v52 = vld [vmem:[#allocation2 + $0x300] ss:$2 sm:$0xff] }
 0x315   : > { %v6195_v25 = vsel %vm6163_vm10, %v6130_v27, %v5970_v29  ;;  %v5968_v31 = vpop.permute.xlu0 %5967  ;;  %5985 = vrot.lane.b32.xlu1 %v5860_v6, %s23625_s18  ;;  %v4206_v1 = vrot.slane %v20538_v58, 1  ;;  %v4710_v32 = vrot.slane %v20538_v58, 2  ;;  %v3631_v4 = vpop.f32.mrb[53].mxu0  ;;  %v5331_v40 = vadd.f32 %v20210_v22, %v5245_v52 }
 0x316   : > { %v6194_v48 = vsel %vm6163_vm10, %v6129_v42, %v5968_v31  ;;  %v4204_v44 = vrot.slane %v3631_v4, 1  ;;  %v4708_v16 = vrot.slane %v3631_v4, 2 }
 0x317   : > { %14431 = vmatprep.mubr.msk.f32.mxu1 %vm6240_vm11, %v6194_v48  ;;  %5999 = vrot.lane.b32.xlu0 %v5876_v61, %s23625_s18  ;;  %v20582_v31 = vmax.f32 %v5331_v40, 0.0 }
 0x318   : > { %14432 = vmatmul.mubr.msk.f32.gmra.mrb[78].mxu1 %vm6240_vm11, %v6195_v25  ;;  %v4205_v6 = vsel %vm808_vm3, %v4202_v13, %v4204_v44  ;;  %v4207_v35 = vsel %vm808_vm3, %v4204_v44, %v4206_v1  ;;  %v4709_v63 = vsel %vm1441_vm4, %v4706_v34, %v4708_v16  ;;  %v4711_v39 = vsel %vm1441_vm4, %v4708_v16, %v4710_v32 }
 0x319   : > { %6001 = vrot.lane.b32.xlu1 %v5875_v20, %s23625_s18  ;;  %v4486_v33 = vmax.f32 %v20457_v55, %v4205_v6  ;;  %v4487_v5 = vmax.f32 %v3631_v4, %v4207_v35 }
 0x31a   : > { %v20559_v57 = vpop.f32.mrb[52].mxu1  ;;  %v5261_v48 = vld [vmem:[#allocation2 + $0x380] ss:$2 sm:$0xff] }
 0x31b   : > { %v4990_v60 = vmax.f32 %v4486_v33, %v4709_v63  ;;  %v4991_v24 = vmax.f32 %v4487_v5, %v4711_v39  ;;  %v4237_v49 = vrot.slane %v20559_v57, 1  ;;  %v4741_v13 = vrot.slane %v20559_v57, 2  ;;  %v3824_v47 = vpop.f32.mrb[53].mxu1 }
 0x31c   : > { %v4235_v11 = vrot.slane %v3824_v47, 1  ;;  %v4739_v53 = vrot.slane %v3824_v47, 2  ;;  %v5339_v33 = vadd.f32 %v20210_v22, %v5261_v48 }
 0x31d   : > { %5120 = vst.msk [vmem:[#allocation2 + $0x318] sm:$0xff] %vm5019_vm8, %v4990_v60  ;;  %5121 = vst.msk [vmem:[#allocation2 + $0x320] sm:$0xff] %vm5019_vm8, %v4991_v24 }
 0x31e   : > { %v4236_v55 = vsel %vm808_vm3, %v4233_v43, %v4235_v11  ;;  %v4238_v34 = vsel %vm808_vm3, %v4235_v11, %v4237_v49  ;;  %v4740_v41 = vsel %vm1441_vm4, %v4737_v7, %v4739_v53  ;;  %v4742_v0 = vsel %vm1441_vm4, %v4739_v53, %v4741_v13 }
 0x31f   : > { %v4502_v37 = vmax.f32 %v20491_v59, %v4236_v55  ;;  %v4503_v8 = vmax.f32 %v3824_v47, %v4238_v34  ;;  %v5660_v55 = vpop.permute.xlu0 %5659 }
 0x321   : > { %v5006_v10 = vmax.f32 %v4502_v37, %v4740_v41  ;;  %v5007_v14 = vmax.f32 %v4503_v8, %v4742_v0  ;;  %v20609_v37 = vmax.f32 %v5339_v33, 0.0 }
 0x323   : > { %5136 = vst.msk [vmem:[#allocation2 + $0x398] sm:$0xff] %vm5019_vm8, %v5006_v10  ;;  %5137 = vst.msk [vmem:[#allocation2 + $0x3a0] sm:$0xff] %vm5019_vm8, %v5007_v14 }
 0x324   : > { %v20577_v43 = vpop.f32.mrb[54].mxu0  ;;  %v5247_v20 = vld [vmem:[#allocation2 + $0x310] ss:$2 sm:$0xff] }
 0x325   : > { %v4210_v27 = vrot.slane %v20577_v43, 1  ;;  %v4714_v7 = vrot.slane %v20577_v43, 2  ;;  %v3641_v29 = vpop.f32.mrb[55].mxu0  ;;  %v5332_v59 = vadd.f32 %v20210_v22, %v5247_v20 }
 0x326   : > { %v4208_v42 = vrot.slane %v3641_v29, 1  ;;  %v4712_v25 = vrot.slane %v3641_v29, 2 }
 0x327   : > { %v20584_v4 = vmax.f32 %v5332_v59, 0.0 }
 0x328   : > { %v4209_v44 = vsel %vm808_vm3, %v4206_v1, %v4208_v42  ;;  %v4211_v16 = vsel %vm808_vm3, %v4208_v42, %v4210_v27  ;;  %v4713_v61 = vsel %vm1441_vm4, %v4710_v32, %v4712_v25  ;;  %v4715_v6 = vsel %vm1441_vm4, %v4712_v25, %v4714_v7 }
 0x329   : > { %v4488_v35 = vmax.f32 %v20538_v58, %v4209_v44  ;;  %v4489_v63 = vmax.f32 %v3641_v29, %v4211_v16  ;;  %v5566_v39 = vrot.slane %v20584_v4, 1  ;;  %v5565_v1 = vrot.slane %v20582_v31, 1  ;;  %v5676_v44 = vpop.permute.xlu0 %5675 }
 0x32a   : > { %v20597_v5 = vpop.f32.mrb[54].mxu1  ;;  %v5263_v60 = vld [vmem:[#allocation2 + $0x390] ss:$2 sm:$0xff] }
 0x32b   : > { %v4992_v24 = vmax.f32 %v4488_v35, %v4713_v61  ;;  %v4993_v47 = vmax.f32 %v4489_v63, %v4715_v6  ;;  %v4241_v32 = vrot.slane %v20597_v5, 1  ;;  %v4745_v11 = vrot.slane %v20597_v5, 2  ;;  %v3834_v53 = vpop.f32.mrb[55].mxu1 }
 0x32c   : > { %v4239_v34 = vrot.slane %v3834_v53, 1  ;;  %v4743_v58 = vrot.slane %v3834_v53, 2  ;;  %v5567_v41 = vsel %vm808_vm3, %v5565_v1, %v5566_v39  ;;  %v5340_v0 = vadd.f32 %v20210_v22, %v5263_v60 }
 0x32d   : > { %5122 = vst.msk [vmem:[#allocation2 + $0x328] sm:$0xff] %vm5019_vm8, %v4992_v24  ;;  %5123 = vst.msk [vmem:[#allocation2 + $0x330] sm:$0xff] %vm5019_vm8, %v4993_v47  ;;  %5691 = vrot.lane.b32.xlu0 %v5567_v41, %s23627_s21 }
 0x32e   : > { %v4240_v8 = vsel %vm808_vm3, %v4237_v49, %v4239_v34  ;;  %v4242_v52 = vsel %vm808_vm3, %v4239_v34, %v4241_v32  ;;  %v4744_v10 = vsel %vm1441_vm4, %v4741_v13, %v4743_v58  ;;  %v4746_v14 = vsel %vm1441_vm4, %v4743_v58, %v4745_v11 }
 0x32f   : > { %v4504_v40 = vmax.f32 %v20559_v57, %v4240_v8  ;;  %v4505_v20 = vmax.f32 %v3834_v53, %v4242_v52  ;;  %v5662_v29 = vpop.permute.xlu1 %5661  ;;  %v20620_v59 = vmax.f32 %v5340_v0, 0.0  ;;  %v5580_v49 = vrot.slane %v20609_v37, 1 }
 0x330   : > { %v6131_v13 = vsel %vm5019_vm8, %v19944_v2, %v5660_v55  ;;  %v6132_v53 = vsel %vm5019_vm8, %v19948_v46, %v5662_v29 }
 0x331   : > { %v5008_v42 = vmax.f32 %v4504_v40, %v4744_v10  ;;  %v5009_v25 = vmax.f32 %v4505_v20, %v4746_v14  ;;  %v5581_v48 = vrot.slane %v20620_v59, 1 }
 0x333   : > { %5138 = vst.msk [vmem:[#allocation2 + $0x3a8] sm:$0xff] %vm5019_vm8, %v5008_v42  ;;  %5139 = vst.msk [vmem:[#allocation2 + $0x3b0] sm:$0xff] %vm5019_vm8, %v5009_v25  ;;  %v5582_v57 = vsel %vm808_vm3, %v5580_v49, %v5581_v48  ;;  %v5972_v16 = vpop.permute.xlu1 %5971 }
 0x334   : > { %5707 = vrot.lane.b32.xlu0 %v5582_v57, %s23627_s21  ;;  %v6196_v61 = vsel %vm6163_vm10, %v6131_v13, %v5972_v16  ;;  %v20633_v6 = vpop.f32.mrb[56].mxu0  ;;  %v5249_v35 = vld [vmem:[#allocation2 + $0x320] ss:$2 sm:$0xff] }
 0x335   : > { %v4214_v63 = vrot.slane %v20633_v6, 1  ;;  %v4718_v2 = vrot.slane %v20633_v6, 2  ;;  %14458 = vmatprep.mubr.msk.f32.mxu0 %vm6240_vm11, %v6196_v61  ;;  %v3651_v33 = vpop.f32.mrb[57].mxu0  ;;  %v5333_v1 = vadd.f32 %v20210_v22, %v5249_v35  ;;  %v5878_v35 = vrot.slane %v20584_v4, 2 }
 0x336   : > { %v5678_v60 = vpop.permute.xlu0 %5677  ;;  %v4212_v24 = vrot.slane %v3651_v33, 1  ;;  %v4716_v47 = vrot.slane %v3651_v33, 2 }
 0x337   : > { %v5974_v55 = vpop.permute.xlu1 %5973  ;;  %v20641_v34 = vmax.f32 %v5333_v1, 0.0  ;;  %v6140_v40 = vsel %vm5019_vm8, %v20005_v30, %v5678_v60 }
 0x338   : > { %v4213_v58 = vsel %vm808_vm3, %v4210_v27, %v4212_v24  ;;  %v4215_v41 = vsel %vm808_vm3, %v4212_v24, %v4214_v63  ;;  %v4717_v0 = vsel %vm1441_vm4, %v4714_v7, %v4716_v47  ;;  %v4719_v8 = vsel %vm1441_vm4, %v4716_v47, %v4718_v2 }
 0x339   : > { %v4490_v46 = vmax.f32 %v20577_v43, %v4213_v58  ;;  %v4491_v52 = vmax.f32 %v3651_v33, %v4215_v41  ;;  %v6197_v10 = vsel %vm6163_vm10, %v6132_v53, %v5974_v55  ;;  %v5568_v14 = vrot.slane %v20641_v34, 1 }
 0x33a   : > { %v6139_v27 = vsel %vm5019_vm8, %v19987_v26, %v5676_v44  ;;  %v5988_v20 = vpop.permute.xlu0 %5987  ;;  %14459 = vmatmul.mubr.msk.f32.vlgmr.msra.gmra.mrb[80].mxu0 %vm6240_vm11, %v6197_v10  ;;  %v20663_v7 = vpop.f32.mrb[56].mxu1  ;;  %v5265_v29 = vld [vmem:[#allocation2 + $0x3a0] ss:$2 sm:$0xff]  ;;  %v5877_v55 = vrot.slane %v20582_v31, 2  ;;  %v5880_v58 = vrot.slane %v20641_v34, 2  ;;  %v5892_v10 = vrot.slane %v20609_v37, 2 }
 0x33b   : > { %v4994_v42 = vmax.f32 %v4490_v46, %v4717_v0  ;;  %v4995_v25 = vmax.f32 %v4491_v52, %v4719_v8  ;;  %v6204_v43 = vsel %vm6163_vm10, %v6139_v27, %v5988_v20  ;;  %v4245_v49 = vrot.slane %v20663_v7, 1  ;;  %v5990_v13 = vpop.permute.xlu1 %5989  ;;  %v3844_v57 = vpop.f32.mrb[57].mxu1  ;;  %15661 = vmatpush3.bf16.msra.mxu0 %v18928_v36 }
 0x33c   : > { %v4749_v26 = vrot.slane %v20663_v7, 2  ;;  %14494 = vmatprep.mubr.msk.f32.mxu1 %vm6240_vm11, %v6204_v43  ;;  %v6205_v30 = vsel %vm6163_vm10, %v6140_v40, %v5990_v13  ;;  %v4243_v44 = vrot.slane %v3844_v57, 1  ;;  %v4747_v16 = vrot.slane %v3844_v57, 2  ;;  %15663 = vmatprep.subr.bf16.mxu0 %v19068_v62 }
 0x33d   : > { %5124 = vst.msk [vmem:[#allocation2 + $0x338] sm:$0xff] %vm5019_vm8, %v4994_v42  ;;  %5125 = vst.msk [vmem:[#allocation2 + $0x340] sm:$0xff] %vm5019_vm8, %v4995_v25  ;;  %v5569_v61 = vsel %vm808_vm3, %v5566_v39, %v5568_v14  ;;  %14495 = vmatmul.mubr.msk.f32.vlgmr.msra.gmra.mrb[80].mxu1 %vm6240_vm11, %v6205_v30  ;;  %v5341_v33 = vadd.f32 %v20210_v22, %v5265_v29  ;;  %v5879_v0 = vsel %vm1441_vm4, %v5877_v55, %v5878_v35 }
 0x33e   : > { %v4244_v1 = vsel %vm808_vm3, %v4241_v32, %v4243_v44  ;;  %v4246_v60 = vsel %vm808_vm3, %v4243_v44, %v4245_v49  ;;  %v4748_v24 = vsel %vm1441_vm4, %v4745_v11, %v4747_v16  ;;  %v4750_v39 = vsel %vm1441_vm4, %v4747_v16, %v4749_v26  ;;  %5693 = vrot.lane.b32.xlu1 %v5569_v61, %s23627_s21 }
 0x33f   : > { %v4506_v47 = vmax.f32 %v20597_v5, %v4244_v1  ;;  %v4507_v53 = vmax.f32 %v3844_v57, %v4246_v60  ;;  %v20697_v32 = vmax.f32 %v5341_v33, 0.0  ;;  %15665 = vmatpush3.bf16.msra.mxu0 %v19068_v62  ;;  %15685 = vmatpush3.bf16.msra.mxu1 %v18928_v36  ;;  %v5893_v8 = vrot.slane %v20620_v59, 2 }
 0x340   : > { %15667 = vmatprep.subr.bf16.mxu0 %v19123_v15  ;;  %15687 = vmatprep.subr.bf16.mxu1 %v19068_v62  ;;  %v5881_v46 = vsel %vm1441_vm4, %v5878_v35, %v5880_v58 }
 0x341   : > { %v5010_v11 = vmax.f32 %v4506_v47, %v4748_v24  ;;  %v5011_v41 = vmax.f32 %v4507_v53, %v4750_v39  ;;  %v5583_v5 = vrot.slane %v20697_v32, 1  ;;  %v5894_v43 = vsel %vm1441_vm4, %v5892_v10, %v5893_v8  ;;  %v5664_v39 = vpop.permute.xlu0 %5663 }
 0x342   : > { %6003 = vrot.lane.b32.xlu1 %v5879_v0, %s23625_s18 }
 0x343   : > { %5140 = vst.msk [vmem:[#allocation2 + $0x3b8] sm:$0xff] %vm5019_vm8, %v5010_v11  ;;  %5141 = vst.msk [vmem:[#allocation2 + $0x3c0] sm:$0xff] %vm5019_vm8, %v5011_v41  ;;  %v5584_v36 = vsel %vm808_vm3, %v5581_v48, %v5583_v5  ;;  %15669 = vmatpush3.bf16.msra.mxu0 %v19123_v15  ;;  %15689 = vmatpush3.bf16.msra.mxu1 %v19068_v62  ;;  %v5895_v62 = vrot.slane %v20697_v32, 2  ;;  %v20771_v11 = vld [vmem:[%s23645_s2] ss:$0 sm:$0xff]  ;;  %s23665_s2 = smov 32  }
 0x344   : > { %5709 = vrot.lane.b32.xlu0 %v5584_v36, %s23627_s21  ;;  %v5251_v27 = vld [vmem:[#allocation2 + $0x330] ss:$2 sm:$0xff]  ;;  %15671 = vmatprep.subr.bf16.mxu0 %v19132_v50 }
 0x345   : > { %v20721_v52 = vpop.f32.mrb[58].mxu0  ;;  %v5334_v29 = vadd.f32 %v20210_v22, %v5251_v27  ;;  %15691 = vmatprep.subr.bf16.mxu1 %v19123_v15 }
 0x346   : > { %v4218_v48 = vrot.slane %v20721_v52, 1  ;;  %v4722_v40 = vrot.slane %v20721_v52, 2  ;;  %v3661_v20 = vpop.f32.mrb[59].mxu0  ;;  %6005 = vrot.lane.b32.xlu1 %v5881_v46, %s23625_s18 }
 0x347   : > { %v4216_v42 = vrot.slane %v3661_v20, 1  ;;  %v4720_v25 = vrot.slane %v3661_v20, 2  ;;  %v20732_v13 = vmax.f32 %v5334_v29, 0.0  ;;  %15673 = vmatpush3.bf16.msra.mxu0 %v19132_v50  ;;  %15693 = vmatpush3.bf16.msra.mxu1 %v19123_v15  ;;  %v5680_v29 = vpop.permute.xlu0 %5679 }
 0x348   : > { %6019 = vrot.lane.b32.xlu0 %v5894_v43, %s23625_s18  ;;  %15675 = vmatprep.subr.bf16.mxu0 %v19179_v18 }
 0x349   : > { %v4217_v57 = vsel %vm808_vm3, %v4214_v63, %v4216_v42  ;;  %v4219_v22 = vsel %vm808_vm3, %v4216_v42, %v4218_v48  ;;  %v4721_v30 = vsel %vm1441_vm4, %v4718_v2, %v4720_v25  ;;  %v4723_v44 = vsel %vm1441_vm4, %v4720_v25, %v4722_v40  ;;  %15695 = vmatprep.subr.bf16.mxu1 %v19132_v50 }
 0x34a   : > { %v4492_v15 = vmax.f32 %v20633_v6, %v4217_v57  ;;  %v4493_v16 = vmax.f32 %v3661_v20, %v4219_v22  ;;  %v5896_v63 = vsel %vm1441_vm4, %v5893_v8, %v5895_v62  ;;  %v5570_v61 = vrot.slane %v20732_v13, 1  ;;  %v20757_v2 = vpop.f32.mrb[58].mxu1  ;;  %v5267_v35 = vld [vmem:[#allocation2 + $0x3b0] ss:$2 sm:$0xff] }
 0x34b   : > { %6021 = vrot.lane.b32.xlu1 %v5896_v63, %s23625_s18  ;;  %v4249_v6 = vrot.slane %v20757_v2, 1  ;;  %v4753_v60 = vrot.slane %v20757_v2, 2  ;;  %v3854_v24 = vpop.f32.mrb[59].mxu1  ;;  %15677 = vmatpush3.bf16.msra.mxu0 %v19179_v18  ;;  %v5342_v41 = vadd.f32 %v20771_v11, %v5267_v35  ;;  %v6133_v42 = vsel %vm5019_vm8, %v20039_v21, %v5664_v39 }
 0x34c   : > { %v4996_v33 = vmax.f32 %v4492_v15, %v4721_v30  ;;  %v4997_v1 = vmax.f32 %v4493_v16, %v4723_v44  ;;  %15697 = vmatpush3.bf16.msra.mxu1 %v19132_v50  ;;  %v4247_v47 = vrot.slane %v3854_v24, 1  ;;  %v4751_v53 = vrot.slane %v3854_v24, 2  ;;  %15679 = vmatprep.subr.bf16.mxu0 %v19232_v28 }
 0x34d   : > { %v5571_v55 = vsel %vm808_vm3, %v5568_v14, %v5570_v61  ;;  %15699 = vmatprep.subr.bf16.mxu1 %v19179_v18  ;;  %v20792_v27 = vmax.f32 %v5342_v41, 0.0 }
 0x34e   : > { %5126 = vst.msk [vmem:[#allocation2 + $0x348] sm:$0xff] %vm5019_vm8, %v4996_v33  ;;  %5127 = vst.msk [vmem:[#allocation2 + $0x350] sm:$0xff] %vm5019_vm8, %v4997_v1  ;;  %5695 = vrot.lane.b32.xlu0 %v5571_v55, %s23627_s21  ;;  %v4248_v50 = vsel %vm808_vm3, %v4245_v49, %v4247_v47  ;;  %v4250_v14 = vsel %vm808_vm3, %v4247_v47, %v4249_v6  ;;  %v4752_v0 = vsel %vm1441_vm4, %v4749_v26, %v4751_v53 }
 0x34f   : > { %v4754_v36 = vsel %vm1441_vm4, %v4751_v53, %v4753_v60  ;;  %v4508_v8 = vmax.f32 %v20663_v7, %v4248_v50  ;;  %v4509_v46 = vmax.f32 %v3854_v24, %v4250_v14  ;;  %v5666_v10 = vpop.permute.xlu1 %5665  ;;  %15681 = vmatpush3.bf16.msra.mxu0 %v19232_v28  ;;  %v5585_v26 = vrot.slane %v20792_v27, 1 }
 0x350   : > { %15701 = vmatpush3.bf16.msra.mxu1 %v19179_v18  ;;  %v5882_v14 = vrot.slane %v20732_v13, 2 }
 0x351   : > { %15703 = vmatprep.subr.bf16.mxu1 %v19232_v28  ;;  %v5012_v49 = vmax.f32 %v4508_v8, %v4752_v0  ;;  %v5013_v20 = vmax.f32 %v4509_v46, %v4754_v36  ;;  %v5586_v18 = vsel %vm808_vm3, %v5583_v5, %v5585_v26 }
 0x352   : > { %5711 = vrot.lane.b32.xlu0 %v5586_v18, %s23627_s21 }
 0x353   : > { %5142 = vst.msk [vmem:[#allocation2 + $0x3c8] sm:$0xff] %vm5019_vm8, %v5012_v49  ;;  %5143 = vst.msk [vmem:[#allocation2 + $0x3d0] sm:$0xff] %vm5019_vm8, %v5013_v20  ;;  %v5976_v7 = vpop.permute.xlu1 %5975 }
 0x354   : > { %15705 = vmatpush3.bf16.msra.mxu1 %v19232_v28  ;;  %v6198_v25 = vsel %vm6163_vm10, %v6133_v42, %v5976_v7  ;;  %v20810_v43 = vpop.f32.mrb[60].mxu0  ;;  %v6134_v28 = vsel %vm5019_vm8, %v20134_v54, %v5666_v10 }
 0x355   : > { %v5253_v21 = vld [vmem:[#allocation2 + $0x340] ss:$2 sm:$0xff]  ;;  %v4222_v57 = vrot.slane %v20810_v43, 1  ;;  %v4726_v22 = vrot.slane %v20810_v43, 2  ;;  %14461 = vmatprep.mubr.msk.f32.mxu0 %vm6240_vm11, %v6198_v25  ;;  %v3671_v30 = vpop.f32.mrb[61].mxu0 }
 0x356   : > { %v5335_v44 = vadd.f32 %v20771_v11, %v5253_v21  ;;  %v5682_v5 = vpop.permute.xlu0 %5681  ;;  %v4220_v15 = vrot.slane %v3671_v30, 1  ;;  %v4724_v16 = vrot.slane %v3671_v30, 2 }
 0x357   : > { %v5978_v63 = vpop.permute.xlu1 %5977  ;;  %v6142_v41 = vsel %vm5019_vm8, %v20184_v38, %v5682_v5 }
 0x358   : > { %v20818_v35 = vmax.f32 %v5335_v44, 0.0  ;;  %v4221_v33 = vsel %vm808_vm3, %v4218_v48, %v4220_v15  ;;  %v4223_v1 = vsel %vm808_vm3, %v4220_v15, %v4222_v57  ;;  %v4725_v24 = vsel %vm1441_vm4, %v4722_v40, %v4724_v16 }
 0x359   : > { %v4727_v39 = vsel %vm1441_vm4, %v4724_v16, %v4726_v22  ;;  %v4494_v54 = vmax.f32 %v20721_v52, %v4221_v33  ;;  %v4495_v47 = vmax.f32 %v3671_v30, %v4223_v1  ;;  %v6199_v53 = vsel %vm6163_vm10, %v6134_v28, %v5978_v63 }
 0x35a   : > { %v5572_v55 = vrot.slane %v20818_v35, 1  ;;  %v6141_v48 = vsel %vm5019_vm8, %v20094_v51, %v5680_v29  ;;  %14462 = vmatmul.mubr.msk.f32.gmra.mrb[82].mxu0 %vm6240_vm11, %v6199_v53  ;;  %v20840_v40 = vpop.f32.mrb[60].mxu1  ;;  %v5269_v0 = vld [vmem:[#allocation2 + $0x3c0] ss:$2 sm:$0xff] }
 0x35b   : > { %v5992_v50 = vpop.permute.xlu0 %5991  ;;  %v4998_v52 = vmax.f32 %v4494_v54, %v4725_v24  ;;  %v4999_v36 = vmax.f32 %v4495_v47, %v4727_v39  ;;  %v4253_v46 = vrot.slane %v20840_v40, 1  ;;  %v5994_v10 = vpop.permute.xlu1 %5993  ;;  %v4757_v51 = vrot.slane %v20840_v40, 2 }
 0x35c   : > { %v6206_v8 = vsel %vm6163_vm10, %v6141_v48, %v5992_v50  ;;  %v3864_v49 = vpop.f32.mrb[61].mxu1  ;;  %v6207_v38 = vsel %vm6163_vm10, %v6142_v41, %v5994_v10  ;;  %v5573_v42 = vsel %vm808_vm3, %v5570_v61, %v5572_v55  ;;  %v5343_v18 = vadd.f32 %v20771_v11, %v5269_v0 }
 0x35d   : > { %14497 = vmatprep.mubr.msk.f32.mxu1 %vm6240_vm11, %v6206_v8  ;;  %v4251_v20 = vrot.slane %v3864_v49, 1  ;;  %v4755_v29 = vrot.slane %v3864_v49, 2  ;;  %5128 = vst.msk [vmem:[#allocation2 + $0x358] sm:$0xff] %vm5019_vm8, %v4998_v52  ;;  %5129 = vst.msk [vmem:[#allocation2 + $0x360] sm:$0xff] %vm5019_vm8, %v4999_v36  ;;  %5697 = vrot.lane.b32.xlu1 %v5573_v42, %s23627_s21 }
 0x35e   : > { %14498 = vmatmul.mubr.msk.f32.gmra.mrb[82].mxu1 %vm6240_vm11, %v6207_v38  ;;  %v20871_v5 = vmax.f32 %v5343_v18, 0.0 }
 0x35f   : > { %v4252_v7 = vsel %vm808_vm3, %v4249_v6, %v4251_v20  ;;  %v4254_v25 = vsel %vm808_vm3, %v4251_v20, %v4253_v46  ;;  %v4756_v21 = vsel %vm1441_vm4, %v4753_v60, %v4755_v29  ;;  %v4758_v61 = vsel %vm1441_vm4, %v4755_v29, %v4757_v51  ;;  %v5668_v42 = vpop.permute.xlu0 %5667 }
 0x360   : > { %v4510_v30 = vmax.f32 %v20757_v2, %v4252_v7  ;;  %v4511_v44 = vmax.f32 %v3864_v49, %v4254_v25  ;;  %v5883_v6 = vsel %vm1441_vm4, %v5880_v58, %v5882_v14  ;;  %v5587_v28 = vrot.slane %v20871_v5, 1 }
 0x361   : > { %v5884_v60 = vrot.slane %v20818_v35, 2  ;;  %6007 = vrot.lane.b32.xlu1 %v5883_v6, %s23625_s18  ;;  %v5897_v58 = vrot.slane %v20792_v27, 2  ;;  %v5899_v63 = vrot.slane %v20871_v5, 2 }
 0x362   : > { %v5014_v15 = vmax.f32 %v4510_v30, %v4756_v21  ;;  %v5015_v16 = vmax.f32 %v4511_v44, %v4758_v61  ;;  %v5588_v2 = vsel %vm808_vm3, %v5585_v26, %v5587_v28 }
 0x363   : > { %5713 = vrot.lane.b32.xlu0 %v5588_v2, %s23627_s21  ;;  %v5885_v24 = vsel %vm1441_vm4, %v5882_v14, %v5884_v60  ;;  %v5898_v50 = vsel %vm1441_vm4, %v5895_v62, %v5897_v58  ;;  %v5900_v0 = vsel %vm1441_vm4, %v5897_v58, %v5899_v63 }
 0x364   : > { %5144 = vst.msk [vmem:[#allocation2 + $0x3d8] sm:$0xff] %vm5019_vm8, %v5014_v15  ;;  %5145 = vst.msk [vmem:[#allocation2 + $0x3e0] sm:$0xff] %vm5019_vm8, %v5015_v16  ;;  %v14261_v33 = vpop.f32.mrb[62].mxu0  ;;  %v5255_v1 = vld [vmem:[#allocation2 + $0x350] ss:$2 sm:$0xff] }
 0x365   : > { %v4226_v39 = vrot.slane %v14261_v33, 1  ;;  %v4730_v54 = vrot.slane %v14261_v33, 2  ;;  %v3681_v47 = vpop.f32.mrb[63].mxu0  ;;  %v5336_v53 = vadd.f32 %v20771_v11, %v5255_v1  ;;  %6009 = vrot.lane.b32.xlu1 %v5885_v24, %s23625_s18 }
 0x366   : > { %v4224_v26 = vrot.slane %v3681_v47, 1  ;;  %v4728_v48 = vrot.slane %v3681_v47, 2 }
 0x367   : > { %v4498_v41 = vmax.f32 %v14261_v33, %v4226_v39  ;;  %v20900_v52 = vmax.f32 %v5336_v53, 0.0  ;;  %6023 = vrot.lane.b32.xlu0 %v5898_v50, %s23625_s18  ;;  %v6135_v53 = vsel %vm5019_vm8, %v20215_v9, %v5668_v42 }
 0x368   : > { %v4225_v14 = vsel %vm808_vm3, %v4222_v57, %v4224_v26  ;;  %v4227_v36 = vsel %vm808_vm3, %v4224_v26, %v4226_v39  ;;  %v4729_v8 = vsel %vm1441_vm4, %v4726_v22, %v4728_v48  ;;  %v4731_v10 = vsel %vm1441_vm4, %v4728_v48, %v4730_v54 }
 0x369   : > { %v5002_v62 = vmax.f32 %v4498_v41, %v4730_v54  ;;  %v4496_v49 = vmax.f32 %v20810_v43, %v4225_v14  ;;  %v4497_v38 = vmax.f32 %v3681_v47, %v4227_v36  ;;  %v5574_v20 = vrot.slane %v20900_v52, 1  ;;  %6025 = vrot.lane.b32.xlu1 %v5900_v0, %s23625_s18  ;;  %v5684_v54 = vpop.permute.xlu0 %5683 }
 0x36a   : > { %v14289_v29 = vpop.f32.mrb[62].mxu1 }
 0x36b   : > { %v5271_v57 = vld [vmem:[#allocation2 + $0x3d0] ss:$2 sm:$0xff]  ;;  %5132 = vst.msk [vmem:[#allocation2 + $0x378] sm:$0xf] %vm5035_vm9, %v5002_v62  ;;  %v5000_v18 = vmax.f32 %v4496_v49, %v4729_v8  ;;  %v5001_v7 = vmax.f32 %v4497_v38, %v4731_v10  ;;  %v4257_v22 = vrot.slane %v14289_v29, 1  ;;  %v4761_v25 = vrot.slane %v14289_v29, 2 }
 0x36c   : > { %v3874_v21 = vpop.f32.mrb[63].mxu1  ;;  %v5575_v43 = vsel %vm808_vm3, %v5572_v55, %v5574_v20  ;;  %v5344_v44 = vadd.f32 %v20771_v11, %v5271_v57 }
 0x36d   : > { %v4255_v61 = vrot.slane %v3874_v21, 1  ;;  %v4759_v30 = vrot.slane %v3874_v21, 2  ;;  %5130 = vst.msk [vmem:[#allocation2 + $0x368] sm:$0xff] %vm5019_vm8, %v5000_v18  ;;  %5131 = vst.msk [vmem:[#allocation2 + $0x370] sm:$0xff] %vm5019_vm8, %v5001_v7  ;;  %v4514_v6 = vmax.f32 %v14289_v29, %v4257_v22  ;;  %5699 = vrot.lane.b32.xlu0 %v5575_v43, %s23627_s21  ;;  %v5886_v43 = vrot.slane %v20900_v52, 2 }
 0x36e   : > { %v5670_v58 = vpop.permute.xlu1 %5669  ;;  %v20933_v39 = vmax.f32 %v5344_v44, 0.0 }
 0x36f   : > { %v4256_v15 = vsel %vm808_vm3, %v4253_v46, %v4255_v61  ;;  %v4258_v16 = vsel %vm808_vm3, %v4255_v61, %v4257_v22  ;;  %v4760_v2 = vsel %vm1441_vm4, %v4757_v51, %v4759_v30  ;;  %v4762_v55 = vsel %vm1441_vm4, %v4759_v30, %v4761_v25 }
 0x370   : > { %v5018_v33 = vmax.f32 %v4514_v6, %v4761_v25  ;;  %v4512_v1 = vmax.f32 %v20840_v40, %v4256_v15  ;;  %v4513_v24 = vmax.f32 %v3874_v21, %v4258_v16  ;;  %v5589_v26 = vrot.slane %v20933_v39, 1 }
 0x371   : > { %v6136_v10 = vsel %vm5019_vm8, %v20306_v45, %v5670_v58  ;;  %v6143_v45 = vsel %vm5019_vm8, %v20264_v3, %v5684_v54 }
 0x372   : > { %5148 = vst.msk [vmem:[#allocation2 + $0x3f8] sm:$0xf] %vm5035_vm9, %v5018_v33  ;;  %v5016_v47 = vmax.f32 %v4512_v1, %v4760_v2  ;;  %v5017_v46 = vmax.f32 %v4513_v24, %v4762_v55  ;;  %v5980_v51 = vpop.permute.xlu1 %5979  ;;  %v5590_v48 = vsel %vm808_vm3, %v5587_v28, %v5589_v26 }
 0x373   : > { %v6200_v40 = vsel %vm6163_vm10, %v6135_v53, %v5980_v51  ;;  %5715 = vrot.lane.b32.xlu0 %v5590_v48, %s23627_s21  ;;  %v5887_v48 = vsel %vm1441_vm4, %v5884_v60, %v5886_v43 }
 0x374   : > { %5146 = vst.msk [vmem:[#allocation2 + $0x3e8] sm:$0xff] %vm5019_vm8, %v5016_v47  ;;  %5147 = vst.msk [vmem:[#allocation2 + $0x3f0] sm:$0xff] %vm5019_vm8, %v5017_v46  ;;  %v20947_v41 = vpop.f32.mrb[64].mxu0  ;;  %14464 = vmatprep.mubr.msk.f32.mxu0 %vm6240_vm11, %v6200_v40  ;;  %v5257_v9 = vld [vmem:[#allocation2 + $0x360] ss:$2 sm:$0xff] }
 0x375   : > { %v5686_v50 = vpop.permute.xlu0 %5685  ;;  %v7338_v0 = vrot.slane %v20947_v41, 1  ;;  %v7586_v14 = vrot.slane %v20947_v41, 2  ;;  %v6331_v36 = vpop.f32.mrb[65].mxu0  ;;  %v5337_v8 = vadd.f32 %v20771_v11, %v5257_v9  ;;  %v5259_v55 = vld [vmem:[#allocation2 + $0x370] ss:$2 sm:$0x3f] }
 0x376   : > { %v7337_v62 = vrot.slane %v6331_v36, 1  ;;  %v7585_v28 = vrot.slane %v6331_v36, 2  ;;  %v5982_v49 = vpop.permute.xlu1 %5981  ;;  %v6144_v25 = vsel %vm5019_vm8, %v20351_v12, %v5686_v50 }
 0x377   : > { %v6201_v38 = vsel %vm6163_vm10, %v6136_v10, %v5982_v49  ;;  %v20957_v29 = vmax.f32 %v5337_v8, 0.0  ;;  %v5901_v10 = vrot.slane %v20933_v39, 2 }
 0x378   : > { %v7339_v57 = vsel %vm808_vm3, %v7337_v62, %v7338_v0  ;;  %v7587_v42 = vsel %vm1441_vm4, %v7585_v28, %v7586_v14  ;;  %14465 = vmatmul.mubr.msk.f32.gmra.mrb[84].mxu0 %vm6240_vm11, %v6201_v38 }
 0x379   : > { %v7521_v18 = vmax.f32 %v6331_v36, %v7339_v57  ;;  %v5996_v7 = vpop.permute.xlu0 %5995  ;;  %v5576_v22 = vrot.slane %v20957_v29, 1  ;;  %v5888_v50 = vrot.slane %v20957_v29, 2 }
 0x37a   : > { %v6208_v21 = vsel %vm6163_vm10, %v6143_v45, %v5996_v7  ;;  %v20972_v61 = vpop.f32.mrb[64].mxu1 }
 0x37b   : > { %v5998_v30 = vpop.permute.xlu1 %5997  ;;  %v5273_v44 = vld [vmem:[#allocation2 + $0x3e0] ss:$2 sm:$0xff]  ;;  %v7769_v6 = vmax.f32 %v7521_v18, %v7587_v42  ;;  %v7353_v15 = vrot.slane %v20972_v61, 1  ;;  %v7601_v3 = vrot.slane %v20972_v61, 2  ;;  %14500 = vmatprep.mubr.msk.f32.mxu1 %vm6240_vm11, %v6208_v21  ;;  %v6460_v2 = vpop.f32.mrb[65].mxu1  ;;  %v5577_v33 = vsel %vm808_vm3, %v5574_v20, %v5576_v22 }
 0x37c   : > { %v6209_v16 = vsel %vm6163_vm10, %v6144_v25, %v5998_v30  ;;  %v7352_v12 = vrot.slane %v6460_v2, 1  ;;  %v7600_v58 = vrot.slane %v6460_v2, 2  ;;  %v5345_v1 = vadd.f32 %v20771_v11, %v5273_v44  ;;  %5701 = vrot.lane.b32.xlu1 %v5577_v33, %s23627_s21  ;;  %v5275_v51 = vld [vmem:[#allocation2 + $0x3f0] ss:$2 sm:$0x3f] }
 0x37d   : > { %14501 = vmatmul.mubr.msk.f32.gmra.mrb[84].mxu1 %vm6240_vm11, %v6209_v16  ;;  %7833 = vst.msk [vmem:[#allocation2] sm:$0xff] %vm5019_vm8, %v7769_v6  ;;  %v5672_v24 = vpop.permute.xlu0 %5671  ;;  %v5338_v20 = vadd.f32 %v20771_v11, %v5259_v55  ;;  %v5346_v62 = vadd.f32 %v20771_v11, %v5275_v51  ;;  %v5902_v25 = vsel %vm1441_vm4, %v5899_v63, %v5901_v10 }
 0x37e   : > { %v7354_v54 = vsel %vm808_vm3, %v7352_v12, %v7353_v15  ;;  %v7602_v47 = vsel %vm1441_vm4, %v7600_v58, %v7601_v3  ;;  %v20994_v53 = vmax.f32 %v5345_v1, 0.0  ;;  %v6137_v28 = vsel %vm5019_vm8, %v20386_v17, %v5672_v24 }
 0x37f   : > { %v5674_v46 = vpop.permute.xlu1 %5673  ;;  %v7529_v40 = vmax.f32 %v6460_v2, %v7354_v54  ;;  %v21012_v38 = vmax.f32 %v5338_v20, 0.0  ;;  %v5889_v17 = vsel %vm1441_vm4, %v5886_v43, %v5888_v50  ;;  %v21030_v21 = vmax.f32 %v5346_v62, 0.0 }
 0x380   : > { %v5591_v9 = vrot.slane %v20994_v53, 1  ;;  %6011 = vrot.lane.b32.xlu1 %v5887_v48, %s23625_s18  ;;  %v5903_v11 = vrot.slane %v20994_v53, 2  ;;  %v6138_v30 = vsel %vm5019_vm8, %v20443_v19, %v5674_v46 }
 0x381   : > { %v7777_v36 = vmax.f32 %v7529_v40, %v7602_v47  ;;  %v5688_v8 = vpop.permute.xlu0 %5687  ;;  %v5578_v16 = vrot.slane %v21012_v38, 1  ;;  %v5593_v54 = vrot.slane %v21030_v21, 1  ;;  %v5890_v62 = vrot.slane %v21012_v38, 2 }
 0x382   : > { %v5592_v60 = vsel %vm808_vm3, %v5589_v26, %v5591_v9  ;;  %v5904_v55 = vsel %vm1441_vm4, %v5901_v10, %v5903_v11  ;;  %v6145_v33 = vsel %vm5019_vm8, %v20423_v56, %v5688_v8 }
 0x383   : > { %v5984_v49 = vpop.permute.xlu1 %5983  ;;  %7842 = vst.msk [vmem:[#allocation2 + $0x80] sm:$0xff] %vm5019_vm8, %v7777_v36  ;;  %5717 = vrot.lane.b32.xlu0 %v5592_v60, %s23627_s21  ;;  %v5579_v20 = vsel %vm808_vm3, %v5576_v22, %v5578_v16  ;;  %v5594_v22 = vsel %vm808_vm3, %v5591_v9, %v5593_v54  ;;  %v5891_v9 = vsel %vm1441_vm4, %v5888_v50, %v5890_v62 }
 0x384   : > { %v6202_v57 = vsel %vm6163_vm10, %v6137_v28, %v5984_v49  ;;  %v21021_v42 = vpop.f32.mrb[66].mxu0  ;;  %6013 = vrot.lane.b32.xlu1 %v5889_v17, %s23625_s18 }
 0x385   : > { %14467 = vmatprep.mubr.msk.f32.mxu0 %vm6240_vm11, %v6202_v57  ;;  %v5690_v26 = vpop.permute.xlu0 %5689  ;;  %v7342_v45 = vrot.slane %v21021_v42, 1  ;;  %v7590_v18 = vrot.slane %v21021_v42, 2  ;;  %v6341_v7 = vpop.f32.mrb[67].mxu0 }
 0x386   : > { %v7340_v43 = vrot.slane %v6341_v7, 1  ;;  %v7588_v44 = vrot.slane %v6341_v7, 2 }
 0x387   : > { %v5986_v6 = vpop.permute.xlu1 %5985  ;;  %6027 = vrot.lane.b32.xlu0 %v5902_v25, %s23625_s18 }
 0x388   : > { %v6203_v2 = vsel %vm6163_vm10, %v6138_v30, %v5986_v6  ;;  %v7341_v63 = vsel %vm808_vm3, %v7338_v0, %v7340_v43  ;;  %v7343_v19 = vsel %vm808_vm3, %v7340_v43, %v7342_v45  ;;  %v7589_v12 = vsel %vm1441_vm4, %v7586_v14, %v7588_v44  ;;  %6029 = vrot.lane.b32.xlu1 %v5904_v55, %s23625_s18 }
 0x389   : > { %v7591_v58 = vsel %vm1441_vm4, %v7588_v44, %v7590_v18  ;;  %14468 = vmatmul.mubr.msk.f32.gmra.mrb[86].mxu0 %vm6240_vm11, %v6203_v2  ;;  %v7522_v1 = vmax.f32 %v20947_v41, %v7341_v63  ;;  %v7523_v0 = vmax.f32 %v6341_v7, %v7343_v19  ;;  %v6000_v24 = vpop.permute.xlu0 %5999  ;;  %v6146_v14 = vsel %vm5019_vm8, %v20462_v23, %v5690_v26 }
 0x38a   : > { %v6210_v47 = vsel %vm6163_vm10, %v6145_v33, %v6000_v24  ;;  %v21061_v46 = vpop.f32.mrb[66].mxu1 }
 0x38b   : > { %v6002_v56 = vpop.permute.xlu1 %6001  ;;  %v7770_v51 = vmax.f32 %v7522_v1, %v7589_v12  ;;  %v7771_v41 = vmax.f32 %v7523_v0, %v7591_v58  ;;  %v7357_v40 = vrot.slane %v21061_v46, 1  ;;  %v7605_v48 = vrot.slane %v21061_v46, 2  ;;  %5703 = vrot.lane.b32.xlu0 %v5579_v20, %s23627_s21  ;;  %14503 = vmatprep.mubr.msk.f32.mxu1 %vm6240_vm11, %v6210_v47  ;;  %v6470_v23 = vpop.f32.mrb[67].mxu1 }
 0x38c   : > { %v6211_v36 = vsel %vm6163_vm10, %v6146_v14, %v6002_v56  ;;  %v7355_v8 = vrot.slane %v6470_v23, 1  ;;  %v7603_v10 = vrot.slane %v6470_v23, 2  ;;  %5705 = vrot.lane.b32.xlu1 %v5578_v16, %s23627_s21 }
 0x38d   : > { %7834 = vst.msk [vmem:[#allocation2 + $0x8] sm:$0xff] %vm5019_vm8, %v7770_v51  ;;  %7835 = vst.msk [vmem:[#allocation2 + $0x10] sm:$0xff] %vm5019_vm8, %v7771_v41  ;;  %14504 = vmatmul.mubr.msk.f32.gmra.mrb[86].mxu1 %vm6240_vm11, %v6211_v36  ;;  %v21134_v41 = vld [vmem:[%s23663_s4] ss:$0 sm:$0xff] }
 0x38e   : > { %v7356_v28 = vsel %vm808_vm3, %v7353_v15, %v7355_v8  ;;  %v7358_v60 = vsel %vm808_vm3, %v7355_v8, %v7357_v40  ;;  %v7604_v49 = vsel %vm1441_vm4, %v7601_v3, %v7603_v10  ;;  %v7606_v57 = vsel %vm1441_vm4, %v7603_v10, %v7605_v48 }
 0x38f   : > { %v7530_v17 = vmax.f32 %v20972_v61, %v7356_v28  ;;  %v7531_v26 = vmax.f32 %v6470_v23, %v7358_v60  ;;  %5719 = vrot.lane.b32.xlu0 %v5594_v22, %s23627_s21  ;;  %v5905_v15 = vrot.slane %v21030_v21, 2 }
 0x390   : > { %6015 = vrot.lane.b32.xlu1 %v5891_v9, %s23625_s18 }
 0x391   : > { %v7778_v7 = vmax.f32 %v7530_v17, %v7604_v49  ;;  %v7779_v25 = vmax.f32 %v7531_v26, %v7606_v57  ;;  %v5906_v6 = vsel %vm1441_vm4, %v5903_v11, %v5905_v15 }
 0x393   : > { %7843 = vst.msk [vmem:[#allocation2 + $0x88] sm:$0xff] %vm5019_vm8, %v7778_v7  ;;  %7844 = vst.msk [vmem:[#allocation2 + $0x90] sm:$0xff] %vm5019_vm8, %v7779_v25  ;;  %5721 = vrot.lane.b32.xlu0 %v5593_v54, %s23627_s21 }
 0x394   : > { %v21097_v61 = vpop.f32.mrb[68].mxu0  ;;  %6017 = vrot.lane.b32.xlu1 %v5890_v62, %s23625_s18  ;;  %v7898_v51 = vld [vmem:[#allocation2] ss:$2 sm:$0xff] }
 0x395   : > { %v7346_v3 = vrot.slane %v21097_v61, 1  ;;  %v7594_v50 = vrot.slane %v21097_v61, 2  ;;  %v6351_v30 = vpop.f32.mrb[69].mxu0  ;;  %v7937_v8 = vadd.f32 %v21134_v41, %v7898_v51 }
 0x396   : > { %v7344_v43 = vrot.slane %v6351_v30, 1  ;;  %v7592_v44 = vrot.slane %v6351_v30, 2 }
 0x397   : > { %6031 = vrot.lane.b32.xlu0 %v5906_v6, %s23625_s18  ;;  %v21150_v9 = vmax.f32 %v7937_v8, 0.0 }
 0x398   : > { %v7345_v16 = vsel %vm808_vm3, %v7342_v45, %v7344_v43  ;;  %v7347_v2 = vsel %vm808_vm3, %v7344_v43, %v7346_v3  ;;  %v7593_v55 = vsel %vm1441_vm4, %v7590_v18, %v7592_v44  ;;  %v7595_v63 = vsel %vm1441_vm4, %v7592_v44, %v7594_v50  ;;  %6033 = vrot.lane.b32.xlu1 %v5905_v15, %s23625_s18  ;;  %s16654_s18 = sshll.u32 %s16724_s28, 4  ;;  %s16655_s18 = int_to_ptr.vmem [resolvable:$false] %s16654_s18 }
 0x399   : > { %v7524_v19 = vmax.f32 %v21021_v42, %v7345_v16  ;;  %v7525_v12 = vmax.f32 %v6351_v30, %v7347_v2 }
 0x39a   : > { %v21116_v11 = vpop.f32.mrb[68].mxu1  ;;  %v7902_v22 = vld [vmem:[#allocation2 + $0x80] ss:$2 sm:$0xff] }
 0x39b   : > { %v7772_v58 = vmax.f32 %v7524_v19, %v7593_v55  ;;  %v7773_v33 = vmax.f32 %v7525_v12, %v7595_v63  ;;  %v7361_v1 = vrot.slane %v21116_v11, 1  ;;  %v7609_v45 = vrot.slane %v21116_v11, 2  ;;  %v6480_v0 = vpop.f32.mrb[69].mxu1 }
 0x39c   : > { %v7359_v24 = vrot.slane %v6480_v0, 1  ;;  %v7607_v54 = vrot.slane %v6480_v0, 2  ;;  %v7941_v15 = vadd.f32 %v21134_v41, %v7902_v22  ;;  %v8033_v12 = vrot.slane %v21150_v9, 1 }
 0x39d   : > { %7836 = vst.msk [vmem:[#allocation2 + $0x18] sm:$0xff] %vm5019_vm8, %v7772_v58  ;;  %7837 = vst.msk [vmem:[#allocation2 + $0x20] sm:$0xff] %vm5019_vm8, %v7773_v33 }
 0x39e   : > { %v7360_v42 = vsel %vm808_vm3, %v7357_v40, %v7359_v24  ;;  %v7362_v18 = vsel %vm808_vm3, %v7359_v24, %v7361_v1  ;;  %v7608_v14 = vsel %vm1441_vm4, %v7605_v48, %v7607_v54  ;;  %v7610_v47 = vsel %vm1441_vm4, %v7607_v54, %v7609_v45  ;;  %v8401_v40 = vld [vmem:[%s23664_s5] sm:$0xff]  ;;  %v8402_v48 = vld [vmem:[%s23664_s5 + $0x8] sm:$0xff] }
 0x39f   : > { %v7532_v20 = vmax.f32 %v21061_v46, %v7360_v42  ;;  %v7533_v56 = vmax.f32 %v6480_v0, %v7362_v18  ;;  %v21143_v46 = vpack.c.bf16 %v8402_v48, %v8401_v40 }
 0x3a1   : > { %v7780_v23 = vmax.f32 %v7532_v20, %v7608_v14  ;;  %v7781_v36 = vmax.f32 %v7533_v56, %v7610_v47  ;;  %15707 = vmatprep.subr.bf16.mxu0 %v21143_v46  ;;  %15731 = vmatprep.subr.bf16.mxu1 %v21143_v46  ;;  %v21170_v20 = vmax.f32 %v7941_v15, 0.0 }
 0x3a3   : > { %7845 = vst.msk [vmem:[#allocation2 + $0x98] sm:$0xff] %vm5019_vm8, %v7780_v23  ;;  %7846 = vst.msk [vmem:[#allocation2 + $0xa0] sm:$0xff] %vm5019_vm8, %v7781_v36 }
 0x3a4   : > { %v14325_v10 = vpop.f32.mrb[70].mxu0  ;;  %v7899_v62 = vld [vmem:[#allocation2 + $0x10] ss:$2 sm:$0xff] }
 0x3a5   : > { %v7350_v28 = vrot.slane %v14325_v10, 1  ;;  %v7598_v60 = vrot.slane %v14325_v10, 2  ;;  %v6361_v49 = vpop.f32.mrb[71].mxu0  ;;  %v7938_v57 = vadd.f32 %v21134_v41, %v7899_v62 }
 0x3a6   : > { %v7348_v17 = vrot.slane %v6361_v49, 1  ;;  %v7596_v26 = vrot.slane %v6361_v49, 2 }
 0x3a7   : > { %v7528_v7 = vmax.f32 %v14325_v10, %v7350_v28  ;;  %v21152_v25 = vmax.f32 %v7938_v57, 0.0 }
 0x3a8   : > { %v7349_v30 = vsel %vm808_vm3, %v7346_v3, %v7348_v17  ;;  %v7351_v43 = vsel %vm808_vm3, %v7348_v17, %v7350_v28  ;;  %v7597_v44 = vsel %vm1441_vm4, %v7594_v50, %v7596_v26  ;;  %v7599_v6 = vsel %vm1441_vm4, %v7596_v26, %v7598_v60  ;;  %v5692_v50 = vpop.permute.xlu0 %5691 }
 0x3a9   : > { %v7776_v16 = vmax.f32 %v7528_v7, %v7598_v60  ;;  %v7526_v2 = vmax.f32 %v21097_v61, %v7349_v30  ;;  %v7527_v55 = vmax.f32 %v6361_v49, %v7351_v43  ;;  %v8034_v63 = vrot.slane %v21152_v25, 1 }
 0x3aa   : > { %v14361_v19 = vpop.f32.mrb[70].mxu1  ;;  %v7903_v58 = vld [vmem:[#allocation2 + $0x90] ss:$2 sm:$0xff] }
 0x3ab   : > { %7841 = vst.msk [vmem:[#allocation2 + $0x38] sm:$0x3] %vm7840_vm12, %v7776_v16  ;;  %v7774_v33 = vmax.f32 %v7526_v2, %v7597_v44  ;;  %v7775_v3 = vmax.f32 %v7527_v55, %v7599_v6  ;;  %v7365_v0 = vrot.slane %v14361_v19, 1  ;;  %v7613_v24 = vrot.slane %v14361_v19, 2  ;;  %v6490_v54 = vpop.f32.mrb[71].mxu1  ;;  %v8403_v6 = vld [vmem:[%s23664_s5 + $0x10] sm:$0xff] }
 0x3ac   : > { %v7363_v42 = vrot.slane %v6490_v54, 1  ;;  %v7611_v18 = vrot.slane %v6490_v54, 2  ;;  %v8035_v61 = vsel %vm808_vm3, %v8033_v12, %v8034_v63  ;;  %v7942_v14 = vadd.f32 %v21134_v41, %v7903_v58  ;;  %v5708_v49 = vpop.permute.xlu0 %5707  ;;  %v8405_v12 = vld [vmem:[%s23664_s5 + $0x20] sm:$0xff]  ;;  %v8406_v58 = vld [vmem:[%s23664_s5 + $0x28] sm:$0xff] }
 0x3ad   : > { %7838 = vst.msk [vmem:[#allocation2 + $0x28] sm:$0xff] %vm5019_vm8, %v7774_v33  ;;  %7839 = vst.msk [vmem:[#allocation2 + $0x30] sm:$0xff] %vm5019_vm8, %v7775_v3  ;;  %v7536_v47 = vmax.f32 %v14361_v19, %v7365_v0  ;;  %8089 = vrot.lane.b32.xlu0 %v8035_v61, %s23627_s21  ;;  %v6155_v61 = vsel %vm5019_vm8, %v20609_v37, %v5708_v49 }
 0x3ae   : > { %v7364_v56 = vsel %vm808_vm3, %v7361_v1, %v7363_v42  ;;  %v7366_v51 = vsel %vm808_vm3, %v7363_v42, %v7365_v0  ;;  %v7612_v40 = vsel %vm1441_vm4, %v7609_v45, %v7611_v18  ;;  %v7614_v48 = vsel %vm1441_vm4, %v7611_v18, %v7613_v24 }
 0x3af   : > { %v7784_v23 = vmax.f32 %v7536_v47, %v7613_v24  ;;  %v7534_v36 = vmax.f32 %v21116_v11, %v7364_v56  ;;  %v7535_v8 = vmax.f32 %v6490_v54, %v7366_v51  ;;  %v21181_v10 = vmax.f32 %v7942_v14, 0.0 }
 0x3b0   : > { %v5694_v62 = vpop.permute.xlu1 %5693  ;;  %v8040_v1 = vrot.slane %v21170_v20, 1  ;;  %v6147_v45 = vsel %vm5019_vm8, %v20582_v31, %v5692_v50  ;;  %v8404_v31 = vld [vmem:[%s23664_s5 + $0x18] sm:$0xff]  ;;  %v8186_v56 = vrot.slane %v21152_v25, 2 }
 0x3b1   : > { %7849 = vst.msk [vmem:[#allocation2 + $0xb8] sm:$0x3] %vm7840_vm12, %v7784_v23  ;;  %v7782_v22 = vmax.f32 %v7534_v36, %v7612_v40  ;;  %v7783_v28 = vmax.f32 %v7535_v8, %v7614_v48  ;;  %v8041_v60 = vrot.slane %v21181_v10, 1  ;;  %v6148_v33 = vsel %vm5019_vm8, %v20584_v4, %v5694_v62 }
 0x3b2   : > { %v21223_v54 = vpack.c.bf16 %v8404_v31, %v8403_v6  ;;  %v21235_v40 = vpack.c.bf16 %v8406_v58, %v8405_v12 }
 0x3b3   : > { %7847 = vst.msk [vmem:[#allocation2 + $0xa8] sm:$0xff] %vm5019_vm8, %v7782_v22  ;;  %7848 = vst.msk [vmem:[#allocation2 + $0xb0] sm:$0xff] %vm5019_vm8, %v7783_v28  ;;  %v8042_v11 = vsel %vm808_vm3, %v8040_v1, %v8041_v60 }
 0x3b4   : > { %8097 = vrot.lane.b32.xlu0 %v8042_v11, %s23627_s21  ;;  %v6004_v57 = vpop.permute.xlu1 %6003  ;;  %v21194_v17 = vpop.f32.mrb[72].mxu0  ;;  %v7900_v26 = vld [vmem:[#allocation2 + $0x20] ss:$2 sm:$0xff]  ;;  %v7901_v62 = vld [vmem:[#allocation2 + $0x30] ss:$2 sm:$0x1f] }
 0x3b5   : > { %v6212_v7 = vsel %vm6163_vm10, %v6147_v45, %v6004_v57  ;;  %v7368_v15 = vrot.slane %v21194_v17, 1  ;;  %v7616_v30 = vrot.slane %v21194_v17, 2  ;;  %v6589_v43 = vpop.f32.mrb[73].mxu0  ;;  %v7939_v44 = vadd.f32 %v21134_v41, %v7900_v26  ;;  %v8407_v57 = vld [vmem:[%s23664_s5 + $0x30] sm:$0xff] }
 0x3b6   : > { %v5710_v16 = vpop.permute.xlu0 %5709  ;;  %14530 = vmatprep.mubr.msk.f32.mxu0 %vm6240_vm11, %v6212_v7  ;;  %v7367_v2 = vrot.slane %v6589_v43, 1  ;;  %v7615_v55 = vrot.slane %v6589_v43, 2  ;;  %v8185_v45 = vrot.slane %v21150_v9, 2 }
 0x3b7   : > { %v21207_v19 = vmax.f32 %v7939_v44, 0.0  ;;  %v6156_v4 = vsel %vm5019_vm8, %v20620_v59, %v5710_v16  ;;  %v7940_v44 = vadd.f32 %v21134_v41, %v7901_v62 }
 0x3b8   : > { %v7369_v3 = vsel %vm808_vm3, %v7367_v2, %v7368_v15  ;;  %v7617_v0 = vsel %vm1441_vm4, %v7615_v55, %v7616_v30  ;;  %v6006_v24 = vpop.permute.xlu1 %6005  ;;  %v8187_v16 = vsel %vm1441_vm4, %v8185_v45, %v8186_v56 }
 0x3b9   : > { %v7537_v50 = vmax.f32 %v6589_v43, %v7369_v3  ;;  %v6213_v42 = vsel %vm6163_vm10, %v6148_v33, %v6006_v24  ;;  %v8036_v18 = vrot.slane %v21207_v19, 1  ;;  %v8188_v55 = vrot.slane %v21207_v19, 2 }
 0x3ba   : > { %v6020_v14 = vpop.permute.xlu0 %6019  ;;  %14531 = vmatmul.mubr.msk.f32.vlgmr.msra.gmra.mrb[88].mxu0 %vm6240_vm11, %v6213_v42  ;;  %v7904_v51 = vld [vmem:[#allocation2 + $0xa0] ss:$2 sm:$0xff]  ;;  %v7905_v6 = vld [vmem:[#allocation2 + $0xb0] ss:$2 sm:$0x1f]  ;;  %v21286_v24 = vmax.f32 %v7940_v44, 0.0 }
 0x3bb   : > { %v21232_v47 = vpop.f32.mrb[72].mxu1  ;;  %v7785_v48 = vmax.f32 %v7537_v50, %v7617_v0  ;;  %v6220_v23 = vsel %vm6163_vm10, %v6155_v61, %v6020_v14  ;;  %15709 = vmatpush3.bf16.msra.mxu0 %v21143_v46  ;;  %v8037_v1 = vsel %vm808_vm3, %v8034_v63, %v8036_v18  ;;  %v7943_v49 = vadd.f32 %v21134_v41, %v7904_v51  ;;  %v8408_v63 = vld [vmem:[%s23664_s5 + $0x38] sm:$0xff]  ;;  %v8409_v50 = vld [vmem:[%s23664_s5 + $0x40] sm:$0xff]  ;;  %v8410_v42 = vld [vmem:[%s23664_s5 + $0x48] sm:$0xff] }
 0x3bc   : > { %v7383_v36 = vrot.slane %v21232_v47, 1  ;;  %v7631_v37 = vrot.slane %v21232_v47, 2  ;;  %v6718_v8 = vpop.f32.mrb[73].mxu1  ;;  %14566 = vmatprep.mubr.msk.f32.mxu1 %vm6240_vm11, %v6220_v23  ;;  %15711 = vmatprep.subr.bf16.mxu0 %v21223_v54  ;;  %v21276_v12 = vpack.c.bf16 %v8408_v63, %v8407_v57  ;;  %v7944_v33 = vadd.f32 %v21134_v41, %v7905_v6  ;;  %v8411_v51 = vld [vmem:[%s23664_s5 + $0x50] sm:$0xff] }
 0x3bd   : > { %v6022_v59 = vpop.permute.xlu1 %6021  ;;  %v7382_v22 = vrot.slane %v6718_v8, 1  ;;  %v7630_v28 = vrot.slane %v6718_v8, 2  ;;  %7850 = vst.msk [vmem:[#allocation2 + $0x100] sm:$0xff] %vm5019_vm8, %v7785_v48  ;;  %8091 = vrot.lane.b32.xlu1 %v8037_v1, %s23665_s2  ;;  %v21266_v43 = vmax.f32 %v7943_v49, 0.0  ;;  %v8193_v0 = vrot.slane %v21181_v10, 2  ;;  %v8412_v48 = vld [vmem:[%s23664_s5 + $0x58] sm:$0xff] }
 0x3be   : > { %v6221_v11 = vsel %vm6163_vm10, %v6156_v4, %v6022_v59  ;;  %v8192_v14 = vrot.slane %v21170_v20, 2  ;;  %v21315_v62 = vmax.f32 %v7944_v33, 0.0  ;;  %v21318_v59 = vpack.c.bf16 %v8410_v42, %v8409_v50 }
 0x3bf   : > { %v7384_v26 = vsel %vm808_vm3, %v7382_v22, %v7383_v36  ;;  %v7632_v7 = vsel %vm1441_vm4, %v7630_v28, %v7631_v37  ;;  %14567 = vmatmul.mubr.msk.f32.vlgmr.msra.gmra.mrb[88].mxu1 %vm6240_vm11, %v6221_v11  ;;  %15713 = vmatpush3.bf16.msra.mxu0 %v21223_v54  ;;  %v8043_v2 = vrot.slane %v21266_v43, 1  ;;  %v8195_v61 = vrot.slane %v21266_v43, 2 }
 0x3c0   : > { %v7545_v31 = vmax.f32 %v6718_v8, %v7384_v26  ;;  %15733 = vmatpush3.bf16.msra.mxu1 %v21143_v46  ;;  %15715 = vmatprep.subr.bf16.mxu0 %v21235_v40  ;;  %v8194_v22 = vsel %vm1441_vm4, %v8192_v14, %v8193_v0  ;;  %v8038_v49 = vrot.slane %v21286_v24, 1  ;;  %v21327_v45 = vpack.c.bf16 %v8412_v48, %v8411_v51 }
 0x3c1   : > { %15735 = vmatprep.subr.bf16.mxu1 %v21223_v54  ;;  %8241 = vrot.lane.b32.xlu1 %v8187_v16, %s23666_s19  ;;  %v8044_v3 = vsel %vm808_vm3, %v8041_v60, %v8043_v2  ;;  %v8189_v60 = vsel %vm1441_vm4, %v8186_v56, %v8188_v55  ;;  %v8196_v11 = vsel %vm1441_vm4, %v8193_v0, %v8195_v61  ;;  %v5696_v0 = vpop.permute.xlu0 %5695 }
 0x3c2   : > { %v7793_v58 = vmax.f32 %v7545_v31, %v7632_v7  ;;  %8099 = vrot.lane.b32.xlu0 %v8044_v3, %s23665_s2  ;;  %v8039_v31 = vsel %vm808_vm3, %v8036_v18, %v8038_v49  ;;  %v8190_v18 = vrot.slane %v21286_v24, 2 }
 0x3c3   : > { %15717 = vmatpush3.bf16.msra.mxu0 %v21235_v40 }
 0x3c4   : > { %7858 = vst.msk [vmem:[#allocation2 + $0x180] sm:$0xff] %vm5019_vm8, %v7793_v58  ;;  %15737 = vmatpush3.bf16.msra.mxu1 %v21223_v54  ;;  %15719 = vmatprep.subr.bf16.mxu0 %v21276_v12 }
 0x3c5   : > { %v21301_v4 = vpop.f32.mrb[74].mxu0  ;;  %8243 = vrot.lane.b32.xlu1 %v8189_v60, %s23666_s19  ;;  %15739 = vmatprep.subr.bf16.mxu1 %v21235_v40 }
 0x3c6   : > { %v7372_v56 = vrot.slane %v21301_v4, 1  ;;  %v7620_v23 = vrot.slane %v21301_v4, 2  ;;  %v6599_v8 = vpop.f32.mrb[75].mxu0  ;;  %8249 = vrot.lane.b32.xlu0 %v8194_v22, %s23666_s19 }
 0x3c7   : > { %v7370_v28 = vrot.slane %v6599_v8, 1  ;;  %v7618_v1 = vrot.slane %v6599_v8, 2  ;;  %15721 = vmatpush3.bf16.msra.mxu0 %v21276_v12 }
 0x3c8   : > { %15741 = vmatpush3.bf16.msra.mxu1 %v21235_v40  ;;  %15723 = vmatprep.subr.bf16.mxu0 %v21318_v59 }
 0x3c9   : > { %v7371_v57 = vsel %vm808_vm3, %v7368_v15, %v7370_v28  ;;  %v7373_v63 = vsel %vm808_vm3, %v7370_v28, %v7372_v56  ;;  %v7619_v26 = vsel %vm1441_vm4, %v7616_v30, %v7618_v1  ;;  %v7621_v7 = vsel %vm1441_vm4, %v7618_v1, %v7620_v23  ;;  %8251 = vrot.lane.b32.xlu1 %v8196_v11, %s23666_s19 }
 0x3ca   : > { %v7538_v44 = vmax.f32 %v21194_v17, %v7371_v57  ;;  %v7539_v6 = vmax.f32 %v6599_v8, %v7373_v63  ;;  %v8045_v15 = vrot.slane %v21315_v62, 1  ;;  %15743 = vmatprep.subr.bf16.mxu1 %v21276_v12  ;;  %8093 = vrot.lane.b32.xlu0 %v8039_v31, %s23665_s2  ;;  %v8191_v28 = vsel %vm1441_vm4, %v8188_v55, %v8190_v18 }
 0x3cb   : > { %v21349_v30 = vpop.f32.mrb[74].mxu1  ;;  %15725 = vmatpush3.bf16.msra.mxu0 %v21318_v59  ;;  %v6149_v55 = vsel %vm5019_vm8, %v20641_v34, %v5696_v0 }
 0x3cc   : > { %v7786_v16 = vmax.f32 %v7538_v44, %v7619_v26  ;;  %v7787_v58 = vmax.f32 %v7539_v6, %v7621_v7  ;;  %v7387_v17 = vrot.slane %v21349_v30, 1  ;;  %v7635_v33 = vrot.slane %v21349_v30, 2  ;;  %v6728_v3 = vpop.f32.mrb[75].mxu1  ;;  %15745 = vmatpush3.bf16.msra.mxu1 %v21276_v12  ;;  %15727 = vmatprep.subr.bf16.mxu0 %v21327_v45 }
 0x3cd   : > { %v7385_v50 = vrot.slane %v6728_v3, 1  ;;  %v7633_v42 = vrot.slane %v6728_v3, 2  ;;  %8095 = vrot.lane.b32.xlu1 %v8038_v49, %s23665_s2  ;;  %v8046_v60 = vsel %vm808_vm3, %v8043_v2, %v8045_v15  ;;  %15747 = vmatprep.subr.bf16.mxu1 %v21318_v59  ;;  %v8197_v49 = vrot.slane %v21315_v62, 2 }
 0x3ce   : > { %7851 = vst.msk [vmem:[#allocation2 + $0x108] sm:$0xff] %vm5019_vm8, %v7786_v16  ;;  %7852 = vst.msk [vmem:[#allocation2 + $0x110] sm:$0xff] %vm5019_vm8, %v7787_v58  ;;  %8101 = vrot.lane.b32.xlu0 %v8046_v60, %s23665_s2 }
 0x3cf   : > { %v7386_v14 = vsel %vm808_vm3, %v7383_v36, %v7385_v50  ;;  %v7388_v51 = vsel %vm808_vm3, %v7385_v50, %v7387_v17  ;;  %v7634_v48 = vsel %vm1441_vm4, %v7631_v37, %v7633_v42  ;;  %v7636_v8 = vsel %vm1441_vm4, %v7633_v42, %v7635_v33  ;;  %15729 = vmatpush3.bf16.msra.mxu0 %v21327_v45  ;;  %v5698_v36 = vpop.permute.xlu1 %5697 }
 0x3d0   : > { %v7546_v2 = vmax.f32 %v21232_v47, %v7386_v14  ;;  %v7547_v22 = vmax.f32 %v6728_v3, %v7388_v51  ;;  %15749 = vmatpush3.bf16.msra.mxu1 %v21318_v59  ;;  %15755 = vmatprep.subr.bf16.mxu0 %v21143_v46  ;;  %v5712_v47 = vpop.permute.xlu0 %5711  ;;  %v8198_v34 = vsel %vm1441_vm4, %v8195_v61, %v8197_v49 }
 0x3d1   : > { %8245 = vrot.lane.b32.xlu1 %v8191_v28, %s23666_s19  ;;  %15751 = vmatprep.subr.bf16.mxu1 %v21327_v45  ;;  %v6150_v16 = vsel %vm5019_vm8, %v20732_v13, %v5698_v36 }
 0x3d2   : > { %v7794_v37 = vmax.f32 %v7546_v2, %v7634_v48  ;;  %v7795_v1 = vmax.f32 %v7547_v22, %v7636_v8  ;;  %8103 = vrot.lane.b32.xlu0 %v8045_v15, %s23665_s2 }
 0x3d3   : > { %v6008_v11 = vpop.permute.xlu1 %6007 }
 0x3d4   : > { %7859 = vst.msk [vmem:[#allocation2 + $0x188] sm:$0xff] %vm5019_vm8, %v7794_v37  ;;  %7860 = vst.msk [vmem:[#allocation2 + $0x190] sm:$0xff] %vm5019_vm8, %v7795_v1  ;;  %15753 = vmatpush3.bf16.msra.mxu1 %v21327_v45  ;;  %v6214_v63 = vsel %vm6163_vm10, %v6149_v55, %v6008_v11 }
 0x3d5   : > { %v21394_v57 = vpop.f32.mrb[76].mxu0  ;;  %8247 = vrot.lane.b32.xlu1 %v8190_v18, %s23666_s19  ;;  %15779 = vmatprep.subr.bf16.mxu1 %v21143_v46  ;;  %v5714_v6 = vpop.permute.xlu0 %5713 }
 0x3d6   : > { %v7376_v26 = vrot.slane %v21394_v57, 1  ;;  %v7624_v7 = vrot.slane %v21394_v57, 2  ;;  %v6609_v44 = vpop.f32.mrb[77].mxu0  ;;  %14533 = vmatprep.mubr.msk.f32.mxu0 %vm6240_vm11, %v6214_v63  ;;  %8253 = vrot.lane.b32.xlu0 %v8198_v34, %s23666_s19  ;;  %v6158_v2 = vsel %vm5019_vm8, %v20792_v27, %v5714_v6  ;;  %v7906_v63 = vld [vmem:[#allocation2 + $0x100] ss:$2 sm:$0xff] }
 0x3d7   : > { %v7374_v15 = vrot.slane %v6609_v44, 1  ;;  %v7622_v31 = vrot.slane %v6609_v44, 2  ;;  %v6010_v50 = vpop.permute.xlu1 %6009  ;;  %v7945_v6 = vadd.f32 %v21134_v41, %v7906_v63 }
 0x3d8   : > { %v6215_v18 = vsel %vm6163_vm10, %v6150_v16, %v6010_v50 }
 0x3d9   : > { %v7375_v58 = vsel %vm808_vm3, %v7372_v56, %v7374_v15  ;;  %v7377_v3 = vsel %vm808_vm3, %v7374_v15, %v7376_v26  ;;  %v7623_v0 = vsel %vm1441_vm4, %v7620_v23, %v7622_v31  ;;  %v7625_v61 = vsel %vm1441_vm4, %v7622_v31, %v7624_v7  ;;  %8255 = vrot.lane.b32.xlu1 %v8197_v49, %s23666_s19  ;;  %v6024_v60 = vpop.permute.xlu0 %6023 }
 0x3da   : > { %v7540_v13 = vmax.f32 %v21301_v4, %v7375_v58  ;;  %v7541_v42 = vmax.f32 %v6609_v44, %v7377_v3  ;;  %v6157_v56 = vsel %vm5019_vm8, %v20697_v32, %v5712_v47  ;;  %14534 = vmatmul.mubr.msk.f32.gmra.mrb[90].mxu0 %vm6240_vm11, %v6215_v18 }
 0x3db   : > { %v21427_v14 = vpop.f32.mrb[76].mxu1  ;;  %v6222_v48 = vsel %vm6163_vm10, %v6157_v56, %v6024_v60  ;;  %v6026_v32 = vpop.permute.xlu1 %6025  ;;  %v7910_v3 = vld [vmem:[#allocation2 + $0x180] ss:$2 sm:$0xff] }
 0x3dc   : > { %v7788_v23 = vmax.f32 %v7540_v13, %v7623_v0  ;;  %v7789_v51 = vmax.f32 %v7541_v42, %v7625_v61  ;;  %v7391_v8 = vrot.slane %v21427_v14, 1  ;;  %v6738_v4 = vpop.f32.mrb[77].mxu1  ;;  %v7639_v22 = vrot.slane %v21427_v14, 2  ;;  %14569 = vmatprep.mubr.msk.f32.mxu1 %vm6240_vm11, %v6222_v48 }
 0x3dd   : > { %v7389_v36 = vrot.slane %v6738_v4, 1  ;;  %v7637_v28 = vrot.slane %v6738_v4, 2  ;;  %v6223_v37 = vsel %vm6163_vm10, %v6158_v2, %v6026_v32  ;;  %v21456_v61 = vmax.f32 %v7945_v6, 0.0 }
 0x3de   : > { %7853 = vst.msk [vmem:[#allocation2 + $0x118] sm:$0xff] %vm5019_vm8, %v7788_v23  ;;  %7854 = vst.msk [vmem:[#allocation2 + $0x120] sm:$0xff] %vm5019_vm8, %v7789_v51  ;;  %14570 = vmatmul.mubr.msk.f32.gmra.mrb[90].mxu1 %vm6240_vm11, %v6223_v37  ;;  %v7949_v60 = vadd.f32 %v21134_v41, %v7910_v3 }
 0x3df   : > { %v7390_v1 = vsel %vm808_vm3, %v7387_v17, %v7389_v36  ;;  %v7392_v27 = vsel %vm808_vm3, %v7389_v36, %v7391_v8  ;;  %v7638_v47 = vsel %vm1441_vm4, %v7635_v33, %v7637_v28  ;;  %v7640_v49 = vsel %vm1441_vm4, %v7637_v28, %v7639_v22  ;;  %v5700_v28 = vpop.permute.xlu0 %5699 }
 0x3e0   : > { %v7548_v55 = vmax.f32 %v21349_v30, %v7390_v1  ;;  %v7549_v11 = vmax.f32 %v6738_v4, %v7392_v27  ;;  %v8047_v32 = vrot.slane %v21456_v61, 1 }
 0x3e2   : > { %v7796_v44 = vmax.f32 %v7548_v55, %v7638_v47  ;;  %v7797_v17 = vmax.f32 %v7549_v11, %v7640_v49 }
 0x3e4   : > { %7861 = vst.msk [vmem:[#allocation2 + $0x198] sm:$0xff] %vm5019_vm8, %v7796_v44  ;;  %7862 = vst.msk [vmem:[#allocation2 + $0x1a0] sm:$0xff] %vm5019_vm8, %v7797_v17  ;;  %v21478_v44 = vmax.f32 %v7949_v60, 0.0 }
 0x3e5   : > { %v14397_v34 = vpop.f32.mrb[78].mxu0  ;;  %v7907_v33 = vld [vmem:[#allocation2 + $0x110] ss:$2 sm:$0xff] }
 0x3e6   : > { %v7380_v15 = vrot.slane %v14397_v34, 1  ;;  %v7628_v31 = vrot.slane %v14397_v34, 2  ;;  %v6619_v16 = vpop.f32.mrb[79].mxu0  ;;  %v7946_v58 = vadd.f32 %v21134_v41, %v7907_v33 }
 0x3e7   : > { %v7378_v0 = vrot.slane %v6619_v16, 1  ;;  %v7626_v30 = vrot.slane %v6619_v16, 2 }
 0x3e8   : > { %v7544_v50 = vmax.f32 %v14397_v34, %v7380_v15  ;;  %v21458_v13 = vmax.f32 %v7946_v58, 0.0 }
 0x3e9   : > { %v7379_v42 = vsel %vm808_vm3, %v7376_v26, %v7378_v0  ;;  %v7381_v18 = vsel %vm808_vm3, %v7378_v0, %v7380_v15  ;;  %v7627_v56 = vsel %vm1441_vm4, %v7624_v7, %v7626_v30  ;;  %v7629_v4 = vsel %vm1441_vm4, %v7626_v30, %v7628_v31  ;;  %v5716_v0 = vpop.permute.xlu0 %5715 }
 0x3ea   : > { %v7792_v23 = vmax.f32 %v7544_v50, %v7628_v31  ;;  %v7542_v51 = vmax.f32 %v21394_v57, %v7379_v42  ;;  %v7543_v48 = vmax.f32 %v6619_v16, %v7381_v18  ;;  %v8048_v36 = vrot.slane %v21458_v13, 1 }
 0x3eb   : > { %v14433_v2 = vpop.f32.mrb[78].mxu1  ;;  %v7911_v26 = vld [vmem:[#allocation2 + $0x190] ss:$2 sm:$0xff]  ;;  %v8054_v50 = vrot.slane %v21478_v44, 1 }
 0x3ec   : > { %7857 = vst.msk [vmem:[#allocation2 + $0x138] sm:$0x3] %vm7840_vm12, %v7792_v23  ;;  %v7790_v37 = vmax.f32 %v7542_v51, %v7627_v56  ;;  %v7791_v1 = vmax.f32 %v7543_v48, %v7629_v4  ;;  %v7395_v7 = vrot.slane %v14433_v2, 1  ;;  %v7643_v27 = vrot.slane %v14433_v2, 2  ;;  %v6748_v47 = vpop.f32.mrb[79].mxu1 }
 0x3ed   : > { %v7393_v49 = vrot.slane %v6748_v47, 1  ;;  %v7641_v55 = vrot.slane %v6748_v47, 2  ;;  %v8049_v57 = vsel %vm808_vm3, %v8047_v32, %v8048_v36  ;;  %v7950_v11 = vadd.f32 %v21134_v41, %v7911_v26 }
 0x3ee   : > { %7855 = vst.msk [vmem:[#allocation2 + $0x128] sm:$0xff] %vm5019_vm8, %v7790_v37  ;;  %7856 = vst.msk [vmem:[#allocation2 + $0x130] sm:$0xff] %vm5019_vm8, %v7791_v1  ;;  %v7552_v63 = vmax.f32 %v14433_v2, %v7395_v7  ;;  %8105 = vrot.lane.b32.xlu0 %v8049_v57, %s23665_s2  ;;  %v5702_v58 = vpop.permute.xlu1 %5701  ;;  %v6159_v32 = vsel %vm5019_vm8, %v20871_v5, %v5716_v0 }
 0x3ef   : > { %v7394_v17 = vsel %vm808_vm3, %v7391_v8, %v7393_v49  ;;  %v7396_v6 = vsel %vm808_vm3, %v7393_v49, %v7395_v7  ;;  %v7642_v34 = vsel %vm1441_vm4, %v7639_v22, %v7641_v55  ;;  %v7644_v33 = vsel %vm1441_vm4, %v7641_v55, %v7643_v27 }
 0x3f0   : > { %v7800_v15 = vmax.f32 %v7552_v63, %v7643_v27  ;;  %v7550_v31 = vmax.f32 %v21427_v14, %v7394_v17  ;;  %v7551_v16 = vmax.f32 %v6748_v47, %v7396_v6  ;;  %v21489_v3 = vmax.f32 %v7950_v11, 0.0 }
 0x3f1   : > { %v6151_v22 = vsel %vm5019_vm8, %v20818_v35, %v5700_v28  ;;  %v6152_v35 = vsel %vm5019_vm8, %v20900_v52, %v5702_v58  ;;  %v8200_v49 = vrot.slane %v21458_v13, 2  ;;  %v8199_v11 = vrot.slane %v21456_v61, 2 }
 0x3f2   : > { %7865 = vst.msk [vmem:[#allocation2 + $0x1b8] sm:$0x3] %vm7840_vm12, %v7800_v15  ;;  %v7798_v30 = vmax.f32 %v7550_v31, %v7642_v34  ;;  %v7799_v8 = vmax.f32 %v7551_v16, %v7644_v33  ;;  %v8055_v42 = vrot.slane %v21489_v3, 1  ;;  %v6012_v18 = vpop.permute.xlu1 %6011  ;;  %v8207_v16 = vrot.slane %v21489_v3, 2 }
 0x3f3   : > { %v6216_v56 = vsel %vm6163_vm10, %v6151_v22, %v6012_v18  ;;  %v8206_v22 = vrot.slane %v21478_v44, 2 }
 0x3f4   : > { %7863 = vst.msk [vmem:[#allocation2 + $0x1a8] sm:$0xff] %vm5019_vm8, %v7798_v30  ;;  %7864 = vst.msk [vmem:[#allocation2 + $0x1b0] sm:$0xff] %vm5019_vm8, %v7799_v8  ;;  %v8056_v14 = vsel %vm808_vm3, %v8054_v50, %v8055_v42  ;;  %14536 = vmatprep.mubr.msk.f32.mxu0 %vm6240_vm11, %v6216_v56 }
 0x3f5   : > { %8113 = vrot.lane.b32.xlu0 %v8056_v14, %s23665_s2  ;;  %v7908_v60 = vld [vmem:[#allocation2 + $0x120] ss:$2 sm:$0xff]  ;;  %v5718_v23 = vpop.permute.xlu0 %5717  ;;  %v7909_v7 = vld [vmem:[#allocation2 + $0x130] ss:$2 sm:$0x1f] }
 0x3f6   : > { %v7947_v51 = vadd.f32 %v21134_v41, %v7908_v60  ;;  %v6014_v48 = vpop.permute.xlu1 %6013  ;;  %v6160_v52 = vsel %vm5019_vm8, %v20933_v39, %v5718_v23  ;;  %v7948_v39 = vadd.f32 %v21134_v41, %v7909_v7 }
 0x3f7   : > { %v6217_v2 = vsel %vm6163_vm10, %v6152_v35, %v6014_v48 }
 0x3f8   : > { %v21505_v4 = vmax.f32 %v7947_v51, 0.0  ;;  %14537 = vmatmul.mubr.msk.f32.gmra.mrb[92].mxu0 %vm6240_vm11, %v6217_v2  ;;  %v21532_v58 = vmax.f32 %v7948_v39, 0.0 }
 0x3f9   : > { %v6028_v26 = vpop.permute.xlu0 %6027 }
 0x3fa   : > { %v8050_v28 = vrot.slane %v21505_v4, 1  ;;  %v6224_v37 = vsel %vm6163_vm10, %v6159_v32, %v6028_v26  ;;  %v6030_v27 = vpop.permute.xlu1 %6029  ;;  %v8202_v33 = vrot.slane %v21505_v4, 2  ;;  %v8052_v56 = vrot.slane %v21532_v58, 1 }
 0x3fb   : > { %v7912_v1 = vld [vmem:[#allocation2 + $0x1a0] ss:$2 sm:$0xff]  ;;  %14572 = vmatprep.mubr.msk.f32.mxu1 %vm6240_vm11, %v6224_v37  ;;  %v6225_v55 = vsel %vm6163_vm10, %v6160_v52, %v6030_v27  ;;  %v7913_v17 = vld [vmem:[#allocation2 + $0x1b0] ss:$2 sm:$0x1f]  ;;  %v8204_v7 = vrot.slane %v21532_v58, 2 }
 0x3fc   : > { %v8051_v47 = vsel %vm808_vm3, %v8048_v36, %v8050_v28  ;;  %v7951_v5 = vadd.f32 %v21134_v41, %v7912_v1  ;;  %14573 = vmatmul.mubr.msk.f32.gmra.mrb[92].mxu1 %vm6240_vm11, %v6225_v55  ;;  %v8201_v36 = vsel %vm1441_vm4, %v8199_v11, %v8200_v49  ;;  %v7952_v0 = vadd.f32 %v21134_v41, %v7913_v17 }
 0x3fd   : > { %8107 = vrot.lane.b32.xlu1 %v8051_v47, %s23665_s2  ;;  %v5704_v57 = vpop.permute.xlu0 %5703  ;;  %v8203_v50 = vsel %vm1441_vm4, %v8200_v49, %v8202_v33  ;;  %v8208_v41 = vsel %vm1441_vm4, %v8206_v22, %v8207_v16  ;;  %v8053_v32 = vsel %vm808_vm3, %v8050_v28, %v8052_v56  ;;  %v8205_v55 = vsel %vm1441_vm4, %v8202_v33, %v8204_v7 }
 0x3fe   : > { %v21523_v63 = vmax.f32 %v7951_v5, 0.0  ;;  %v5706_v6 = vpop.permute.xlu1 %5705  ;;  %v6153_v30 = vsel %vm5019_vm8, %v20957_v29, %v5704_v57  ;;  %v21546_v60 = vmax.f32 %v7952_v0, 0.0 }
 0x3ff   : > { %v6154_v29 = vsel %vm5019_vm8, %v21012_v38, %v5706_v6 }
 0x400   : > { %v8057_v34 = vrot.slane %v21523_v63, 1  ;;  %v8209_v14 = vrot.slane %v21523_v63, 2  ;;  %v8059_v26 = vrot.slane %v21546_v60, 1  ;;  %v8211_v11 = vrot.slane %v21546_v60, 2 }
 0x401   : > { %8257 = vrot.lane.b32.xlu1 %v8201_v36, %s23666_s19  ;;  %v5720_v15 = vpop.permute.xlu0 %5719 }
 0x402   : > { %v8058_v31 = vsel %vm808_vm3, %v8055_v42, %v8057_v34  ;;  %v6016_v8 = vpop.permute.xlu1 %6015  ;;  %v8210_v51 = vsel %vm1441_vm4, %v8207_v16, %v8209_v14  ;;  %v6161_v48 = vsel %vm5019_vm8, %v20994_v53, %v5720_v15  ;;  %v8060_v28 = vsel %vm808_vm3, %v8057_v34, %v8059_v26 }
 0x403   : > { %8115 = vrot.lane.b32.xlu0 %v8058_v31, %s23665_s2  ;;  %v6218_v42 = vsel %vm6163_vm10, %v6153_v30, %v6016_v8 }
 0x404   : > { %14539 = vmatprep.mubr.msk.f32.mxu0 %vm6240_vm11, %v6218_v42 }
 0x405   : > { %8259 = vrot.lane.b32.xlu1 %v8203_v50, %s23666_s19  ;;  %v5722_v18 = vpop.permute.xlu0 %5721  ;;  %v8212_v50 = vsel %vm1441_vm4, %v8209_v14, %v8211_v11 }
 0x406   : > { %v6018_v23 = vpop.permute.xlu1 %6017  ;;  %v6162_v38 = vsel %vm5019_vm8, %v21030_v21, %v5722_v18 }
 0x407   : > { %8265 = vrot.lane.b32.xlu0 %v8208_v41, %s23666_s19  ;;  %v6219_v35 = vsel %vm6163_vm10, %v6154_v29, %v6018_v23 }
 0x408   : > { %14540 = vmatmul.mubr.msk.f32.gmra.mrb[94].mxu0 %vm6240_vm11, %v6219_v35 }
 0x409   : > { %8267 = vrot.lane.b32.xlu1 %v8210_v51, %s23666_s19  ;;  %v6032_v2 = vpop.permute.xlu0 %6031 }
 0x40a   : > { %v6226_v37 = vsel %vm6163_vm10, %v6161_v48, %v6032_v2  ;;  %v6034_v1 = vpop.permute.xlu1 %6033 }
 0x40b   : > { %8109 = vrot.lane.b32.xlu0 %v8053_v32, %s23665_s2  ;;  %14575 = vmatprep.mubr.msk.f32.mxu1 %vm6240_vm11, %v6226_v37  ;;  %v6227_v53 = vsel %vm6163_vm10, %v6162_v38, %v6034_v1 }
 0x40c   : > { %14576 = vmatmul.mubr.msk.f32.gmra.mrb[94].mxu1 %vm6240_vm11, %v6227_v53 }
 0x40d   : > { %8111 = vrot.lane.b32.xlu1 %v8052_v56, %s23665_s2  ;;  %v14460_v52 = vpop.f32.mrb[80].mxu0 }
 0x40e   : > { %v7398_v27 = vrot.slane %v14460_v52, 1  ;;  %v7646_v47 = vrot.slane %v14460_v52, 2  ;;  %v6847_v49 = vpop.f32.mrb[81].mxu0 }
 0x40f   : > { %8117 = vrot.lane.b32.xlu0 %v8060_v28, %s23665_s2  ;;  %v7397_v21 = vrot.slane %v6847_v49, 1  ;;  %v7645_v5 = vrot.slane %v6847_v49, 2 }
 0x410   : > { %v14496_v57 = vpop.f32.mrb[80].mxu1 }
 0x411   : > { %8261 = vrot.lane.b32.xlu1 %v8205_v55, %s23666_s19  ;;  %v7399_v39 = vsel %vm808_vm3, %v7397_v21, %v7398_v27  ;;  %v7647_v17 = vsel %vm1441_vm4, %v7645_v5, %v7646_v47  ;;  %v7413_v6 = vrot.slane %v14496_v57, 1  ;;  %v7661_v36 = vrot.slane %v14496_v57, 2  ;;  %v6976_v34 = vpop.f32.mrb[81].mxu1 }
 0x412   : > { %v7553_v15 = vmax.f32 %v6847_v49, %v7399_v39  ;;  %v7412_v31 = vrot.slane %v6976_v34, 1  ;;  %v7660_v16 = vrot.slane %v6976_v34, 2 }
 0x413   : > { %8119 = vrot.lane.b32.xlu0 %v8059_v26, %s23665_s2 }
 0x414   : > { %v7801_v0 = vmax.f32 %v7553_v15, %v7647_v17  ;;  %v7414_v33 = vsel %vm808_vm3, %v7412_v31, %v7413_v6  ;;  %v7662_v30 = vsel %vm1441_vm4, %v7660_v16, %v7661_v36 }
 0x415   : > { %8263 = vrot.lane.b32.xlu1 %v8204_v7, %s23666_s19  ;;  %v7561_v8 = vmax.f32 %v6976_v34, %v7414_v33 }
 0x416   : > { %7866 = vst.msk [vmem:[#allocation2 + $0x200] sm:$0xff] %vm5019_vm8, %v7801_v0 }
 0x417   : > { %8269 = vrot.lane.b32.xlu0 %v8212_v50, %s23666_s19  ;;  %v7809_v22 = vmax.f32 %v7561_v8, %v7662_v30 }
 0x419   : > { %8271 = vrot.lane.b32.xlu1 %v8211_v11, %s23666_s19  ;;  %7874 = vst.msk [vmem:[#allocation2 + $0x280] sm:$0xff] %vm5019_vm8, %v7809_v22 }
 0x41f   : > { %v8090_v42 = vpop.permute.xlu0 %8089 }
 0x426   : > { %v8098_v48 = vpop.permute.xlu0 %8097 }
 0x427   : > { %v8341_v30 = vsel %vm5019_vm8, %v21170_v20, %v8098_v48 }
 0x42d   : > { %v21584_v18 = vpop.f32.mrb[82].mxu0 }
 0x42e   : > { %v7402_v41 = vrot.slane %v21584_v18, 1  ;;  %v7650_v56 = vrot.slane %v21584_v18, 2  ;;  %v6857_v29 = vpop.f32.mrb[83].mxu0 }
 0x42f   : > { %v7400_v23 = vrot.slane %v6857_v29, 1  ;;  %v7648_v51 = vrot.slane %v6857_v29, 2  ;;  %v8092_v14 = vpop.permute.xlu1 %8091 }
 0x431   : > { %v21588_v35 = vpop.f32.mrb[82].mxu1  ;;  %v7401_v2 = vsel %vm808_vm3, %v7398_v27, %v7400_v23  ;;  %v7403_v32 = vsel %vm808_vm3, %v7400_v23, %v7402_v41  ;;  %v7649_v26 = vsel %vm1441_vm4, %v7646_v47, %v7648_v51  ;;  %v7651_v37 = vsel %vm1441_vm4, %v7648_v51, %v7650_v56 }
 0x432   : > { %v6986_v38 = vpop.f32.mrb[83].mxu1  ;;  %v7554_v1 = vmax.f32 %v14460_v52, %v7401_v2  ;;  %v7555_v7 = vmax.f32 %v6857_v29, %v7403_v32  ;;  %v7417_v53 = vrot.slane %v21588_v35, 1  ;;  %v7665_v28 = vrot.slane %v21588_v35, 2 }
 0x433   : > { %v8337_v27 = vsel %vm5019_vm8, %v21150_v9, %v8090_v42  ;;  %v7415_v49 = vrot.slane %v6986_v38, 1  ;;  %v7663_v21 = vrot.slane %v6986_v38, 2  ;;  %v8242_v5 = vpop.permute.xlu1 %8241 }
 0x434   : > { %v7802_v55 = vmax.f32 %v7554_v1, %v7649_v26  ;;  %v7803_v11 = vmax.f32 %v7555_v7, %v7651_v37  ;;  %v8369_v47 = vsel %vm6163_vm10, %v8337_v27, %v8242_v5  ;;  %v8100_v9 = vpop.permute.xlu0 %8099 }
 0x435   : > { %v7416_v39 = vsel %vm808_vm3, %v7413_v6, %v7415_v49  ;;  %v7418_v52 = vsel %vm808_vm3, %v7415_v49, %v7417_v53  ;;  %v7664_v17 = vsel %vm1441_vm4, %v7661_v36, %v7663_v21  ;;  %v7666_v34 = vsel %vm1441_vm4, %v7663_v21, %v7665_v28  ;;  %14602 = vmatprep.mubr.msk.f32.mxu0 %vm6240_vm11, %v8369_v47 }
 0x436   : > { %7867 = vst.msk [vmem:[#allocation2 + $0x208] sm:$0xff] %vm5019_vm8, %v7802_v55  ;;  %7868 = vst.msk [vmem:[#allocation2 + $0x210] sm:$0xff] %vm5019_vm8, %v7803_v11  ;;  %v7562_v15 = vmax.f32 %v14496_v57, %v7416_v39  ;;  %v7563_v31 = vmax.f32 %v6986_v38, %v7418_v52  ;;  %v8338_v6 = vsel %vm5019_vm8, %v21152_v25, %v8092_v14 }
 0x437   : > { %v8244_v16 = vpop.permute.xlu1 %8243  ;;  %v8342_v25 = vsel %vm5019_vm8, %v21181_v10, %v8100_v9 }
 0x438   : > { %v7810_v0 = vmax.f32 %v7562_v15, %v7664_v17  ;;  %v7811_v33 = vmax.f32 %v7563_v31, %v7666_v34  ;;  %v8370_v36 = vsel %vm6163_vm10, %v8338_v6, %v8244_v16  ;;  %v8250_v8 = vpop.permute.xlu0 %8249 }
 0x439   : > { %14603 = vmatmul.mubr.msk.f32.vlgmr.msra.gmra.mrb[96].mxu0 %vm6240_vm11, %v8370_v36  ;;  %v8373_v57 = vsel %vm6163_vm10, %v8341_v30, %v8250_v8 }
 0x43a   : > { %7875 = vst.msk [vmem:[#allocation2 + $0x288] sm:$0xff] %vm5019_vm8, %v7810_v0  ;;  %7876 = vst.msk [vmem:[#allocation2 + $0x290] sm:$0xff] %vm5019_vm8, %v7811_v33  ;;  %15757 = vmatpush3.bf16.msra.mxu0 %v21143_v46  ;;  %14632 = vmatprep.mubr.msk.f32.mxu1 %vm6240_vm11, %v8373_v57 }
 0x43b   : > { %v8252_v50 = vpop.permute.xlu1 %8251  ;;  %15759 = vmatprep.subr.bf16.mxu0 %v21223_v54 }
 0x43c   : > { %v8374_v20 = vsel %vm6163_vm10, %v8342_v25, %v8252_v50  ;;  %v8094_v22 = vpop.permute.xlu0 %8093 }
 0x43d   : > { %14633 = vmatmul.mubr.msk.f32.vlgmr.msra.gmra.mrb[96].mxu1 %vm6240_vm11, %v8374_v20  ;;  %v8339_v29 = vsel %vm5019_vm8, %v21207_v19, %v8094_v22  ;;  %v7914_v30 = vld [vmem:[#allocation2 + $0x200] ss:$2 sm:$0xff] }
 0x43e   : > { %15761 = vmatpush3.bf16.msra.mxu0 %v21223_v54  ;;  %15781 = vmatpush3.bf16.msra.mxu1 %v21143_v46 }
 0x43f   : > { %v8096_v42 = vpop.permute.xlu1 %8095  ;;  %15763 = vmatprep.subr.bf16.mxu0 %v21235_v40  ;;  %15783 = vmatprep.subr.bf16.mxu1 %v21223_v54 }
 0x440   : > { %v8102_v10 = vpop.permute.xlu0 %8101  ;;  %v8340_v48 = vsel %vm5019_vm8, %v21286_v24, %v8096_v42 }
 0x441   : > { %v8343_v32 = vsel %vm5019_vm8, %v21266_v43, %v8102_v10  ;;  %v7918_v25 = vld [vmem:[#allocation2 + $0x280] ss:$2 sm:$0xff] }
 0x442   : > { %15765 = vmatpush3.bf16.msra.mxu0 %v21235_v40  ;;  %15785 = vmatpush3.bf16.msra.mxu1 %v21223_v54 }
 0x443   : > { %v8246_v23 = vpop.permute.xlu1 %8245  ;;  %15767 = vmatprep.subr.bf16.mxu0 %v21276_v12  ;;  %15787 = vmatprep.subr.bf16.mxu1 %v21235_v40 }
 0x444   : > { %v8371_v51 = vsel %vm6163_vm10, %v8339_v29, %v8246_v23  ;;  %v8104_v14 = vpop.permute.xlu0 %8103 }
 0x445   : > { %14605 = vmatprep.mubr.msk.f32.mxu0 %vm6240_vm11, %v8371_v51  ;;  %v8344_v24 = vsel %vm5019_vm8, %v21315_v62, %v8104_v14 }
 0x446   : > { %15769 = vmatpush3.bf16.msra.mxu0 %v21276_v12  ;;  %15789 = vmatpush3.bf16.msra.mxu1 %v21235_v40 }
 0x447   : > { %v8248_v2 = vpop.permute.xlu1 %8247  ;;  %15771 = vmatprep.subr.bf16.mxu0 %v21318_v59  ;;  %15791 = vmatprep.subr.bf16.mxu1 %v21276_v12 }
 0x448   : > { %v8372_v19 = vsel %vm6163_vm10, %v8340_v48, %v8248_v2  ;;  %v8254_v26 = vpop.permute.xlu0 %8253 }
 0x449   : > { %14606 = vmatmul.mubr.msk.f32.gmra.mrb[98].mxu0 %vm6240_vm11, %v8372_v19  ;;  %v8375_v37 = vsel %vm6163_vm10, %v8343_v32, %v8254_v26 }
 0x44a   : > { %15773 = vmatpush3.bf16.msra.mxu0 %v21318_v59  ;;  %15793 = vmatpush3.bf16.msra.mxu1 %v21276_v12 }
 0x44b   : > { %14635 = vmatprep.mubr.msk.f32.mxu1 %vm6240_vm11, %v8375_v37  ;;  %v8256_v38 = vpop.permute.xlu1 %8255  ;;  %v21658_v1 = vpop.f32.mrb[84].mxu0  ;;  %15775 = vmatprep.subr.bf16.mxu0 %v21327_v45 }
 0x44c   : > { %v8376_v43 = vsel %vm6163_vm10, %v8344_v24, %v8256_v38  ;;  %v7406_v7 = vrot.slane %v21658_v1, 1  ;;  %v7654_v27 = vrot.slane %v21658_v1, 2  ;;  %v6867_v49 = vpop.f32.mrb[85].mxu0  ;;  %15795 = vmatprep.subr.bf16.mxu1 %v21318_v59 }
 0x44d   : > { %v7404_v21 = vrot.slane %v6867_v49, 1  ;;  %v7652_v5 = vrot.slane %v6867_v49, 2  ;;  %14636 = vmatmul.mubr.msk.f32.gmra.mrb[98].mxu1 %vm6240_vm11, %v8376_v43 }
 0x44e   : > { %15777 = vmatpush3.bf16.msra.mxu0 %v21327_v45  ;;  %15797 = vmatpush3.bf16.msra.mxu1 %v21318_v59 }
 0x44f   : > { %v7405_v62 = vsel %vm808_vm3, %v7402_v41, %v7404_v21  ;;  %v7407_v55 = vsel %vm808_vm3, %v7404_v21, %v7406_v7  ;;  %v7653_v11 = vsel %vm1441_vm4, %v7650_v56, %v7652_v5  ;;  %v7655_v47 = vsel %vm1441_vm4, %v7652_v5, %v7654_v27  ;;  %15799 = vmatprep.subr.bf16.mxu1 %v21327_v45 }
 0x450   : > { %v21676_v39 = vpop.f32.mrb[84].mxu1  ;;  %v7556_v52 = vmax.f32 %v21584_v18, %v7405_v62  ;;  %v7557_v17 = vmax.f32 %v6867_v49, %v7407_v55  ;;  %15803 = vmatprep.subr.bf16.mxu0 %v21143_v46 }
 0x451   : > { %v7421_v34 = vrot.slane %v21676_v39, 1  ;;  %v7669_v9 = vrot.slane %v21676_v39, 2  ;;  %v6996_v41 = vpop.f32.mrb[85].mxu1 }
 0x452   : > { %v7419_v15 = vrot.slane %v6996_v41, 1  ;;  %v7667_v31 = vrot.slane %v6996_v41, 2  ;;  %v7804_v6 = vmax.f32 %v7556_v52, %v7653_v11  ;;  %v7805_v56 = vmax.f32 %v7557_v17, %v7655_v47  ;;  %15801 = vmatpush3.bf16.msra.mxu1 %v21327_v45 }
 0x453   : > { %15827 = vmatprep.subr.bf16.mxu1 %v21143_v46 }
 0x454   : > { %v7420_v16 = vsel %vm808_vm3, %v7417_v53, %v7419_v15  ;;  %v7422_v18 = vsel %vm808_vm3, %v7419_v15, %v7421_v34  ;;  %v7668_v0 = vsel %vm1441_vm4, %v7665_v28, %v7667_v31  ;;  %v7670_v33 = vsel %vm1441_vm4, %v7667_v31, %v7669_v9  ;;  %7869 = vst.msk [vmem:[#allocation2 + $0x218] sm:$0xff] %vm5019_vm8, %v7804_v6  ;;  %v21705_v28 = vld [vmem:[%s23663_s4] ss:$0 sm:$0xff] }
 0x455   : > { %7870 = vst.msk [vmem:[#allocation2 + $0x220] sm:$0xff] %vm5019_vm8, %v7805_v56  ;;  %v7564_v53 = vmax.f32 %v21588_v35, %v7420_v16  ;;  %v7565_v36 = vmax.f32 %v6996_v41, %v7422_v18  ;;  %v7953_v50 = vadd.f32 %v21705_v28, %v7914_v30  ;;  %v7957_v20 = vadd.f32 %v21705_v28, %v7918_v25 }
 0x457   : > { %v7812_v8 = vmax.f32 %v7564_v53, %v7668_v0  ;;  %v7813_v57 = vmax.f32 %v7565_v36, %v7670_v33  ;;  %v21710_v51 = vmax.f32 %v7953_v50, 0.0  ;;  %v21714_v32 = vmax.f32 %v7957_v20, 0.0 }
 0x459   : > { %7877 = vst.msk [vmem:[#allocation2 + $0x298] sm:$0xff] %vm5019_vm8, %v7812_v8  ;;  %7878 = vst.msk [vmem:[#allocation2 + $0x2a0] sm:$0xff] %vm5019_vm8, %v7813_v57  ;;  %v8061_v55 = vrot.slane %v21710_v51, 1  ;;  %v8068_v16 = vrot.slane %v21714_v32, 1 }
 0x45b   : > { %v7915_v35 = vld [vmem:[#allocation2 + $0x210] ss:$2 sm:$0xff] }
 0x45c   : > { %v14469_v22 = vpop.f32.mrb[86].mxu0  ;;  %v7954_v23 = vadd.f32 %v21705_v28, %v7915_v35 }
 0x45d   : > { %v7410_v42 = vrot.slane %v14469_v22, 1  ;;  %v7658_v10 = vrot.slane %v14469_v22, 2  ;;  %v6877_v29 = vpop.f32.mrb[87].mxu0 }
 0x45e   : > { %v7408_v14 = vrot.slane %v6877_v29, 1  ;;  %v7656_v48 = vrot.slane %v6877_v29, 2  ;;  %v21712_v19 = vmax.f32 %v7954_v23, 0.0 }
 0x45f   : > { %v7560_v2 = vmax.f32 %v14469_v22, %v7410_v42 }
 0x460   : > { %v7409_v26 = vsel %vm808_vm3, %v7406_v7, %v7408_v14  ;;  %v7411_v37 = vsel %vm808_vm3, %v7408_v14, %v7410_v42  ;;  %v7657_v24 = vsel %vm1441_vm4, %v7654_v27, %v7656_v48  ;;  %v7659_v38 = vsel %vm1441_vm4, %v7656_v48, %v7658_v10  ;;  %v7919_v43 = vld [vmem:[#allocation2 + $0x290] ss:$2 sm:$0xff]  ;;  %v14505_v62 = vpop.f32.mrb[86].mxu1 }
 0x461   : > { %v7808_v49 = vmax.f32 %v7560_v2, %v7658_v10  ;;  %v7558_v21 = vmax.f32 %v21658_v1, %v7409_v26  ;;  %v7559_v5 = vmax.f32 %v6877_v29, %v7411_v37  ;;  %v7425_v11 = vrot.slane %v14505_v62, 1  ;;  %v7006_v52 = vpop.f32.mrb[87].mxu1 }
 0x462   : > { %v7673_v47 = vrot.slane %v14505_v62, 2  ;;  %v8062_v17 = vrot.slane %v21712_v19, 1  ;;  %v7958_v7 = vadd.f32 %v21705_v28, %v7919_v43  ;;  %v7423_v15 = vrot.slane %v7006_v52, 1 }
 0x463   : > { %7873 = vst.msk [vmem:[#allocation2 + $0x238] sm:$0x3] %vm7840_vm12, %v7808_v49  ;;  %v7806_v27 = vmax.f32 %v7558_v21, %v7657_v24  ;;  %v7807_v41 = vmax.f32 %v7559_v5, %v7659_v38  ;;  %v7671_v31 = vrot.slane %v7006_v52, 2  ;;  %v7568_v6 = vmax.f32 %v14505_v62, %v7425_v11 }
 0x464   : > { %v8063_v1 = vsel %vm808_vm3, %v8061_v55, %v8062_v17  ;;  %v21726_v56 = vmax.f32 %v7958_v7, 0.0  ;;  %v7424_v18 = vsel %vm808_vm3, %v7421_v34, %v7423_v15  ;;  %v7426_v0 = vsel %vm808_vm3, %v7423_v15, %v7425_v11 }
 0x465   : > { %7871 = vst.msk [vmem:[#allocation2 + $0x228] sm:$0xff] %vm5019_vm8, %v7806_v27  ;;  %7872 = vst.msk [vmem:[#allocation2 + $0x230] sm:$0xff] %vm5019_vm8, %v7807_v41  ;;  %v7672_v33 = vsel %vm1441_vm4, %v7669_v9, %v7671_v31  ;;  %v7674_v53 = vsel %vm1441_vm4, %v7671_v31, %v7673_v47  ;;  %8121 = vrot.lane.b32.xlu0 %v8063_v1, %s23665_s2  ;;  %v7816_v36 = vmax.f32 %v7568_v6, %v7673_v47  ;;  %v8106_v9 = vpop.permute.xlu0 %8105 }
 0x466   : > { %v7566_v30 = vmax.f32 %v21676_v39, %v7424_v18  ;;  %v7567_v8 = vmax.f32 %v7006_v52, %v7426_v0  ;;  %v8069_v57 = vrot.slane %v21726_v56, 1  ;;  %v8345_v48 = vsel %vm5019_vm8, %v21456_v61, %v8106_v9 }
 0x467   : > { %7881 = vst.msk [vmem:[#allocation2 + $0x2b8] sm:$0x3] %vm7840_vm12, %v7816_v36  ;;  %v8214_v37 = vrot.slane %v21712_v19, 2  ;;  %v8213_v21 = vrot.slane %v21710_v51, 2  ;;  %v8221_v52 = vrot.slane %v21726_v56, 2  ;;  %v8220_v6 = vrot.slane %v21714_v32, 2 }
 0x468   : > { %v7814_v25 = vmax.f32 %v7566_v30, %v7672_v33  ;;  %v7815_v34 = vmax.f32 %v7567_v8, %v7674_v53  ;;  %v8070_v50 = vsel %vm808_vm3, %v8068_v16, %v8069_v57 }
 0x469   : > { %8129 = vrot.lane.b32.xlu0 %v8070_v50, %s23665_s2  ;;  %v8114_v42 = vpop.permute.xlu0 %8113  ;;  %v8215_v11 = vsel %vm1441_vm4, %v8213_v21, %v8214_v37  ;;  %v8222_v33 = vsel %vm1441_vm4, %v8220_v6, %v8221_v52 }
 0x46a   : > { %7879 = vst.msk [vmem:[#allocation2 + $0x2a8] sm:$0xff] %vm5019_vm8, %v7814_v25  ;;  %7880 = vst.msk [vmem:[#allocation2 + $0x2b0] sm:$0xff] %vm5019_vm8, %v7815_v34 }
 0x46c   : > { %v7916_v20 = vld [vmem:[#allocation2 + $0x220] ss:$2 sm:$0xff]  ;;  %v7917_v23 = vld [vmem:[#allocation2 + $0x230] ss:$2 sm:$0x1f] }
 0x46d   : > { %v7955_v22 = vadd.f32 %v21705_v28, %v7916_v20  ;;  %v7956_v43 = vadd.f32 %v21705_v28, %v7917_v23 }
 0x46f   : > { %v8108_v39 = vpop.permute.xlu1 %8107  ;;  %v21748_v35 = vmax.f32 %v7955_v22, 0.0  ;;  %v21772_v27 = vmax.f32 %v7956_v43, 0.0 }
 0x470   : > { %v8346_v62 = vsel %vm5019_vm8, %v21458_v13, %v8108_v39  ;;  %v8349_v13 = vsel %vm5019_vm8, %v21478_v44, %v8114_v42 }
 0x471   : > { %v8064_v10 = vrot.slane %v21748_v35, 1  ;;  %v7920_v29 = vld [vmem:[#allocation2 + $0x2a0] ss:$2 sm:$0xff]  ;;  %v7921_v5 = vld [vmem:[#allocation2 + $0x2b0] ss:$2 sm:$0x1f] }
 0x472   : > { %v7959_v14 = vadd.f32 %v21705_v28, %v7920_v29  ;;  %v8216_v47 = vrot.slane %v21748_v35, 2  ;;  %v7960_v41 = vadd.f32 %v21705_v28, %v7921_v5  ;;  %v8066_v53 = vrot.slane %v21772_v27, 1 }
 0x473   : > { %v8258_v2 = vpop.permute.xlu1 %8257  ;;  %v8065_v26 = vsel %vm808_vm3, %v8062_v17, %v8064_v10  ;;  %v8218_v20 = vrot.slane %v21772_v27, 2 }
 0x474   : > { %v8377_v24 = vsel %vm6163_vm10, %v8345_v48, %v8258_v2  ;;  %8123 = vrot.lane.b32.xlu1 %v8065_v26, %s23665_s2  ;;  %v21758_v38 = vmax.f32 %v7959_v14, 0.0  ;;  %v8217_v18 = vsel %vm1441_vm4, %v8214_v37, %v8216_v47  ;;  %v21792_v36 = vmax.f32 %v7960_v41, 0.0 }
 0x475   : > { %v8116_v49 = vpop.permute.xlu0 %8115  ;;  %14662 = vmatprep.mubr.msk.f32.mxu0 %vm6240_vm11, %v8377_v24  ;;  %v8219_v29 = vsel %vm1441_vm4, %v8216_v47, %v8218_v20 }
 0x476   : > { %v8071_v61 = vrot.slane %v21758_v38, 1  ;;  %v8350_v1 = vsel %vm5019_vm8, %v21489_v3, %v8116_v49  ;;  %v8223_v44 = vrot.slane %v21758_v38, 2  ;;  %v8073_v25 = vrot.slane %v21792_v36, 1 }
 0x477   : > { %v8260_v55 = vpop.permute.xlu1 %8259  ;;  %v8225_v14 = vrot.slane %v21792_v36, 2 }
 0x478   : > { %v8378_v17 = vsel %vm6163_vm10, %v8346_v62, %v8260_v55  ;;  %8273 = vrot.lane.b32.xlu1 %v8215_v11, %s23666_s19  ;;  %v8072_v7 = vsel %vm808_vm3, %v8069_v57, %v8071_v61  ;;  %v8224_v8 = vsel %vm1441_vm4, %v8221_v52, %v8223_v44  ;;  %v8067_v57 = vsel %vm808_vm3, %v8064_v10, %v8066_v53 }
 0x479   : > { %8131 = vrot.lane.b32.xlu0 %v8072_v7, %s23665_s2  ;;  %v8266_v15 = vpop.permute.xlu0 %8265  ;;  %14663 = vmatmul.mubr.msk.f32.vlgmr.msra.gmra.mrb[100].mxu0 %vm6240_vm11, %v8378_v17  ;;  %v8074_v39 = vsel %vm808_vm3, %v8071_v61, %v8073_v25  ;;  %v8226_v24 = vsel %vm1441_vm4, %v8223_v44, %v8225_v14 }
 0x47a   : > { %v8381_v31 = vsel %vm6163_vm10, %v8349_v13, %v8266_v15  ;;  %15805 = vmatpush3.bf16.msra.mxu0 %v21143_v46 }
 0x47b   : > { %14692 = vmatprep.mubr.msk.f32.mxu1 %vm6240_vm11, %v8381_v31  ;;  %v8268_v16 = vpop.permute.xlu1 %8267  ;;  %15807 = vmatprep.subr.bf16.mxu0 %v21223_v54 }
 0x47c   : > { %v8382_v0 = vsel %vm6163_vm10, %v8350_v1, %v8268_v16  ;;  %8275 = vrot.lane.b32.xlu1 %v8217_v18, %s23666_s19 }
 0x47d   : > { %8281 = vrot.lane.b32.xlu0 %v8222_v33, %s23666_s19  ;;  %v8110_v3 = vpop.permute.xlu0 %8109  ;;  %14693 = vmatmul.mubr.msk.f32.vlgmr.msra.gmra.mrb[100].mxu1 %vm6240_vm11, %v8382_v0 }
 0x47e   : > { %15809 = vmatpush3.bf16.msra.mxu0 %v21223_v54  ;;  %15829 = vmatpush3.bf16.msra.mxu1 %v21143_v46  ;;  %v8347_v50 = vsel %vm5019_vm8, %v21505_v4, %v8110_v3 }
 0x47f   : > { %v8112_v30 = vpop.permute.xlu1 %8111  ;;  %15811 = vmatprep.subr.bf16.mxu0 %v21235_v40  ;;  %15831 = vmatprep.subr.bf16.mxu1 %v21223_v54 }
 0x480   : > { %8283 = vrot.lane.b32.xlu1 %v8224_v8, %s23666_s19  ;;  %v8348_v4 = vsel %vm5019_vm8, %v21532_v58, %v8112_v30 }
 0x481   : > { %8125 = vrot.lane.b32.xlu0 %v8067_v57, %s23665_s2  ;;  %v8118_v34 = vpop.permute.xlu0 %8117 }
 0x482   : > { %15813 = vmatpush3.bf16.msra.mxu0 %v21235_v40  ;;  %15833 = vmatpush3.bf16.msra.mxu1 %v21223_v54  ;;  %v8351_v48 = vsel %vm5019_vm8, %v21523_v63, %v8118_v34 }
 0x483   : > { %v8262_v9 = vpop.permute.xlu1 %8261  ;;  %15815 = vmatprep.subr.bf16.mxu0 %v21276_v12  ;;  %15835 = vmatprep.subr.bf16.mxu1 %v21235_v40 }
 0x484   : > { %v8379_v22 = vsel %vm6163_vm10, %v8347_v50, %v8262_v9  ;;  %8127 = vrot.lane.b32.xlu1 %v8066_v53, %s23665_s2 }
 0x485   : > { %8133 = vrot.lane.b32.xlu0 %v8074_v39, %s23665_s2  ;;  %v8120_v42 = vpop.permute.xlu0 %8119  ;;  %14665 = vmatprep.mubr.msk.f32.mxu0 %vm6240_vm11, %v8379_v22 }
 0x486   : > { %15817 = vmatpush3.bf16.msra.mxu0 %v21276_v12  ;;  %15837 = vmatpush3.bf16.msra.mxu1 %v21235_v40  ;;  %v8352_v26 = vsel %vm5019_vm8, %v21546_v60, %v8120_v42 }
 0x487   : > { %v8264_v10 = vpop.permute.xlu1 %8263  ;;  %15819 = vmatprep.subr.bf16.mxu0 %v21318_v59  ;;  %15839 = vmatprep.subr.bf16.mxu1 %v21276_v12 }
 0x488   : > { %v8380_v23 = vsel %vm6163_vm10, %v8348_v4, %v8264_v10  ;;  %8277 = vrot.lane.b32.xlu1 %v8219_v29, %s23666_s19 }
 0x489   : > { %8135 = vrot.lane.b32.xlu0 %v8073_v25, %s23665_s2  ;;  %v8270_v2 = vpop.permute.xlu0 %8269  ;;  %14666 = vmatmul.mubr.msk.f32.gmra.mrb[102].mxu0 %vm6240_vm11, %v8380_v23 }
 0x48a   : > { %v8383_v58 = vsel %vm6163_vm10, %v8351_v48, %v8270_v2  ;;  %15821 = vmatpush3.bf16.msra.mxu0 %v21318_v59  ;;  %15841 = vmatpush3.bf16.msra.mxu1 %v21276_v12 }
 0x48b   : > { %14695 = vmatprep.mubr.msk.f32.mxu1 %vm6240_vm11, %v8383_v58  ;;  %v8272_v37 = vpop.permute.xlu1 %8271  ;;  %15823 = vmatprep.subr.bf16.mxu0 %v21327_v45 }
 0x48c   : > { %v8384_v63 = vsel %vm6163_vm10, %v8352_v26, %v8272_v37  ;;  %8279 = vrot.lane.b32.xlu1 %v8218_v20, %s23666_s19  ;;  %15843 = vmatprep.subr.bf16.mxu1 %v21318_v59 }
 0x48d   : > { %8285 = vrot.lane.b32.xlu0 %v8226_v24, %s23666_s19  ;;  %14696 = vmatmul.mubr.msk.f32.gmra.mrb[102].mxu1 %vm6240_vm11, %v8384_v63  ;;  %v14532_v43 = vpop.f32.mrb[88].mxu0 }
 0x48e   : > { %15825 = vmatpush3.bf16.msra.mxu0 %v21327_v45  ;;  %15845 = vmatpush3.bf16.msra.mxu1 %v21318_v59  ;;  %v7428_v60 = vrot.slane %v14532_v43, 1  ;;  %v7676_v49 = vrot.slane %v14532_v43, 2  ;;  %v7105_v21 = vpop.f32.mrb[89].mxu0 }
 0x48f   : > { %15847 = vmatprep.subr.bf16.mxu1 %v21327_v45  ;;  %15851 = vmatprep.subr.bf16.mxu0 %v21143_v46  ;;  %v7427_v5 = vrot.slane %v7105_v21, 1  ;;  %v7675_v61 = vrot.slane %v7105_v21, 2 }
 0x490   : > { %8287 = vrot.lane.b32.xlu1 %v8225_v14, %s23666_s19 }
 0x491   : > { %v7429_v62 = vsel %vm808_vm3, %v7427_v5, %v7428_v60  ;;  %v7677_v55 = vsel %vm1441_vm4, %v7675_v61, %v7676_v49 }
 0x492   : > { %v14568_v11 = vpop.f32.mrb[88].mxu1  ;;  %15849 = vmatpush3.bf16.msra.mxu1 %v21327_v45  ;;  %v7569_v47 = vmax.f32 %v7105_v21, %v7429_v62 }
 0x493   : > { %v7443_v52 = vrot.slane %v14568_v11, 1  ;;  %v7691_v17 = vrot.slane %v14568_v11, 2  ;;  %v7234_v7 = vpop.f32.mrb[89].mxu1  ;;  %15875 = vmatprep.subr.bf16.mxu1 %v21143_v46 }
 0x494   : > { %v7442_v41 = vrot.slane %v7234_v7, 1  ;;  %v7690_v13 = vrot.slane %v7234_v7, 2  ;;  %v7817_v15 = vmax.f32 %v7569_v47, %v7677_v55 }
 0x496   : > { %v7444_v31 = vsel %vm808_vm3, %v7442_v41, %v7443_v52  ;;  %v7692_v6 = vsel %vm1441_vm4, %v7690_v13, %v7691_v17  ;;  %7882 = vst.msk [vmem:[#allocation2 + $0x300] sm:$0xff] %vm5019_vm8, %v7817_v15 }
 0x497   : > { %v7577_v1 = vmax.f32 %v7234_v7, %v7444_v31 }
 0x499   : > { %v7825_v16 = vmax.f32 %v7577_v1, %v7692_v6 }
 0x49b   : > { %7890 = vst.msk [vmem:[#allocation2 + $0x380] sm:$0xff] %vm5019_vm8, %v7825_v16 }
 0x4ad   : > { %v14535_v18 = vpop.f32.mrb[90].mxu0 }
 0x4ae   : > { %v7432_v44 = vrot.slane %v14535_v18, 1  ;;  %v7680_v0 = vrot.slane %v14535_v18, 2  ;;  %v7115_v33 = vpop.f32.mrb[91].mxu0 }
 0x4af   : > { %v7430_v53 = vrot.slane %v7115_v33, 1  ;;  %v7678_v3 = vrot.slane %v7115_v33, 2 }
 0x4b1   : > { %v7431_v30 = vsel %vm808_vm3, %v7428_v60, %v7430_v53  ;;  %v7433_v8 = vsel %vm808_vm3, %v7430_v53, %v7432_v44  ;;  %v7679_v57 = vsel %vm1441_vm4, %v7676_v49, %v7678_v3  ;;  %v7681_v25 = vsel %vm1441_vm4, %v7678_v3, %v7680_v0  ;;  %v14571_v34 = vpop.f32.mrb[90].mxu1 }
 0x4b2   : > { %v7570_v50 = vmax.f32 %v14532_v43, %v7431_v30  ;;  %v7571_v9 = vmax.f32 %v7115_v33, %v7433_v8  ;;  %v7447_v20 = vrot.slane %v14571_v34, 1  ;;  %v7695_v22 = vrot.slane %v14571_v34, 2  ;;  %v7244_v39 = vpop.f32.mrb[91].mxu1 }
 0x4b3   : > { %v7445_v42 = vrot.slane %v7244_v39, 1  ;;  %v7693_v4 = vrot.slane %v7244_v39, 2 }
 0x4b4   : > { %v7818_v10 = vmax.f32 %v7570_v50, %v7679_v57  ;;  %v7819_v29 = vmax.f32 %v7571_v9, %v7681_v25 }
 0x4b5   : > { %v7446_v23 = vsel %vm808_vm3, %v7443_v52, %v7445_v42  ;;  %v7448_v14 = vsel %vm808_vm3, %v7445_v42, %v7447_v20  ;;  %v7694_v48 = vsel %vm1441_vm4, %v7691_v17, %v7693_v4  ;;  %v7696_v2 = vsel %vm1441_vm4, %v7693_v4, %v7695_v22 }
 0x4b6   : > { %7883 = vst.msk [vmem:[#allocation2 + $0x308] sm:$0xff] %vm5019_vm8, %v7818_v10  ;;  %7884 = vst.msk [vmem:[#allocation2 + $0x310] sm:$0xff] %vm5019_vm8, %v7819_v29  ;;  %v7578_v58 = vmax.f32 %v14568_v11, %v7446_v23  ;;  %v7579_v26 = vmax.f32 %v7244_v39, %v7448_v14 }
 0x4b8   : > { %v7826_v37 = vmax.f32 %v7578_v58, %v7694_v48  ;;  %v7827_v63 = vmax.f32 %v7579_v26, %v7696_v2 }
 0x4ba   : > { %7891 = vst.msk [vmem:[#allocation2 + $0x388] sm:$0xff] %vm5019_vm8, %v7826_v37  ;;  %7892 = vst.msk [vmem:[#allocation2 + $0x390] sm:$0xff] %vm5019_vm8, %v7827_v63 }
 0x4bd   : > { %v7922_v53 = vld [vmem:[#allocation2 + $0x300] ss:$2 sm:$0xff] }
 0x4be   : > { %v7961_v57 = vadd.f32 %v21705_v28, %v7922_v53 }
 0x4c0   : > { %v21890_v50 = vmax.f32 %v7961_v57, 0.0 }
 0x4c1   : > { %v7926_v25 = vld [vmem:[#allocation2 + $0x380] ss:$2 sm:$0xff] }
 0x4c2   : > { %v7965_v9 = vadd.f32 %v21705_v28, %v7926_v25  ;;  %v8075_v48 = vrot.slane %v21890_v50, 1 }
 0x4c4   : > { %v21897_v2 = vmax.f32 %v7965_v9, 0.0 }
 0x4c6   : > { %v8082_v25 = vrot.slane %v21897_v2, 1 }
 0x4cb   : > { %v21869_v24 = vpop.f32.mrb[92].mxu0 }
 0x4cc   : > { %v7436_v43 = vrot.slane %v21869_v24, 1  ;;  %v7684_v60 = vrot.slane %v21869_v24, 2  ;;  %v7125_v49 = vpop.f32.mrb[93].mxu0 }
 0x4cd   : > { %v7434_v21 = vrot.slane %v7125_v49, 1  ;;  %v7682_v5 = vrot.slane %v7125_v49, 2 }
 0x4cf   : > { %v7435_v61 = vsel %vm808_vm3, %v7432_v44, %v7434_v21  ;;  %v7437_v62 = vsel %vm808_vm3, %v7434_v21, %v7436_v43  ;;  %v7683_v55 = vsel %vm1441_vm4, %v7680_v0, %v7682_v5  ;;  %v7685_v11 = vsel %vm1441_vm4, %v7682_v5, %v7684_v60  ;;  %v21877_v47 = vpop.f32.mrb[92].mxu1 }
 0x4d0   : > { %v7572_v52 = vmax.f32 %v14535_v18, %v7435_v61  ;;  %v7573_v17 = vmax.f32 %v7125_v49, %v7437_v62  ;;  %v7451_v7 = vrot.slane %v21877_v47, 1  ;;  %v7699_v41 = vrot.slane %v21877_v47, 2  ;;  %v7254_v13 = vpop.f32.mrb[93].mxu1 }
 0x4d1   : > { %v7449_v15 = vrot.slane %v7254_v13, 1  ;;  %v7697_v31 = vrot.slane %v7254_v13, 2 }
 0x4d2   : > { %v7820_v6 = vmax.f32 %v7572_v52, %v7683_v55  ;;  %v7821_v1 = vmax.f32 %v7573_v17, %v7685_v11 }
 0x4d3   : > { %v7450_v16 = vsel %vm808_vm3, %v7447_v20, %v7449_v15  ;;  %v7452_v44 = vsel %vm808_vm3, %v7449_v15, %v7451_v7  ;;  %v7698_v0 = vsel %vm1441_vm4, %v7695_v22, %v7697_v31  ;;  %v7700_v33 = vsel %vm1441_vm4, %v7697_v31, %v7699_v41 }
 0x4d4   : > { %7885 = vst.msk [vmem:[#allocation2 + $0x318] sm:$0xff] %vm5019_vm8, %v7820_v6  ;;  %7886 = vst.msk [vmem:[#allocation2 + $0x320] sm:$0xff] %vm5019_vm8, %v7821_v1  ;;  %v7580_v18 = vmax.f32 %v14571_v34, %v7450_v16  ;;  %v7581_v3 = vmax.f32 %v7254_v13, %v7452_v44 }
 0x4d6   : > { %v7828_v30 = vmax.f32 %v7580_v18, %v7698_v0  ;;  %v7829_v8 = vmax.f32 %v7581_v3, %v7700_v33 }
 0x4d7   : > { %v8122_v58 = vpop.permute.xlu0 %8121 }
 0x4d8   : > { %7893 = vst.msk [vmem:[#allocation2 + $0x398] sm:$0xff] %vm5019_vm8, %v7828_v30  ;;  %7894 = vst.msk [vmem:[#allocation2 + $0x3a0] sm:$0xff] %vm5019_vm8, %v7829_v8 }
 0x4db   : > { %v14541_v20 = vpop.f32.mrb[94].mxu0  ;;  %v7923_v22 = vld [vmem:[#allocation2 + $0x310] ss:$2 sm:$0xff]  ;;  %v8130_v8 = vpop.permute.xlu0 %8129 }
 0x4dc   : > { %v7440_v39 = vrot.slane %v14541_v20, 1  ;;  %v7688_v42 = vrot.slane %v14541_v20, 2  ;;  %v7135_v4 = vpop.f32.mrb[95].mxu0  ;;  %v7962_v34 = vadd.f32 %v21705_v28, %v7923_v22 }
 0x4dd   : > { %v7438_v10 = vrot.slane %v7135_v4, 1  ;;  %v7686_v29 = vrot.slane %v7135_v4, 2 }
 0x4de   : > { %v7576_v23 = vmax.f32 %v14541_v20, %v7440_v39  ;;  %v21894_v14 = vmax.f32 %v7962_v34, 0.0 }
 0x4df   : > { %v7439_v26 = vsel %vm808_vm3, %v7436_v43, %v7438_v10  ;;  %v7441_v37 = vsel %vm808_vm3, %v7438_v10, %v7440_v39  ;;  %v7687_v63 = vsel %vm1441_vm4, %v7684_v60, %v7686_v29  ;;  %v7689_v49 = vsel %vm1441_vm4, %v7686_v29, %v7688_v42  ;;  %v14577_v21 = vpop.f32.mrb[94].mxu1  ;;  %v7927_v5 = vld [vmem:[#allocation2 + $0x390] ss:$2 sm:$0xff] }
 0x4e0   : > { %v7824_v61 = vmax.f32 %v7576_v23, %v7688_v42  ;;  %v7574_v62 = vmax.f32 %v21869_v24, %v7439_v26  ;;  %v7575_v55 = vmax.f32 %v7135_v4, %v7441_v37  ;;  %v7455_v11 = vrot.slane %v14577_v21, 1  ;;  %v7264_v52 = vpop.f32.mrb[95].mxu1 }
 0x4e1   : > { %v7703_v17 = vrot.slane %v14577_v21, 2  ;;  %v7453_v13 = vrot.slane %v7264_v52, 1  ;;  %v7701_v15 = vrot.slane %v7264_v52, 2  ;;  %v8076_v31 = vrot.slane %v21894_v14, 1 }
 0x4e2   : > { %7889 = vst.msk [vmem:[#allocation2 + $0x338] sm:$0x3] %vm7840_vm12, %v7824_v61  ;;  %v7822_v43 = vmax.f32 %v7574_v62, %v7687_v63  ;;  %v7823_v6 = vmax.f32 %v7575_v55, %v7689_v49  ;;  %v7584_v60 = vmax.f32 %v14577_v21, %v7455_v11  ;;  %v7966_v1 = vadd.f32 %v21705_v28, %v7927_v5 }
 0x4e3   : > { %v7454_v16 = vsel %vm808_vm3, %v7451_v7, %v7453_v13  ;;  %v7456_v44 = vsel %vm808_vm3, %v7453_v13, %v7455_v11  ;;  %v7702_v24 = vsel %vm1441_vm4, %v7699_v41, %v7701_v15  ;;  %v7704_v0 = vsel %vm1441_vm4, %v7701_v15, %v7703_v17 }
 0x4e4   : > { %7887 = vst.msk [vmem:[#allocation2 + $0x328] sm:$0xff] %vm5019_vm8, %v7822_v43  ;;  %7888 = vst.msk [vmem:[#allocation2 + $0x330] sm:$0xff] %vm5019_vm8, %v7823_v6  ;;  %v7832_v33 = vmax.f32 %v7584_v60, %v7703_v17  ;;  %v7582_v53 = vmax.f32 %v21877_v47, %v7454_v16  ;;  %v7583_v18 = vmax.f32 %v7264_v52, %v7456_v44  ;;  %v21916_v7 = vmax.f32 %v7966_v1, 0.0 }
 0x4e5   : > { %v8077_v3 = vsel %vm808_vm3, %v8075_v48, %v8076_v31  ;;  %v8353_v47 = vsel %vm5019_vm8, %v21710_v51, %v8122_v58  ;;  %v8357_v29 = vsel %vm5019_vm8, %v21714_v32, %v8130_v8  ;;  %v8228_v62 = vrot.slane %v21894_v14, 2 }
 0x4e6   : > { %v8124_v30 = vpop.permute.xlu1 %8123  ;;  %8137 = vrot.lane.b32.xlu0 %v8077_v3, %s23665_s2  ;;  %7897 = vst.msk [vmem:[#allocation2 + $0x3b8] sm:$0x3] %vm7840_vm12, %v7832_v33  ;;  %v7830_v41 = vmax.f32 %v7582_v53, %v7702_v24  ;;  %v7831_v57 = vmax.f32 %v7583_v18, %v7704_v0  ;;  %v8083_v9 = vrot.slane %v21916_v7, 1  ;;  %v8227_v52 = vrot.slane %v21890_v50, 2 }
 0x4e7   : > { %v8354_v34 = vsel %vm5019_vm8, %v21712_v19, %v8124_v30  ;;  %v8235_v6 = vrot.slane %v21916_v7, 2 }
 0x4e8   : > { %7895 = vst.msk [vmem:[#allocation2 + $0x3a8] sm:$0xff] %vm5019_vm8, %v7830_v41  ;;  %7896 = vst.msk [vmem:[#allocation2 + $0x3b0] sm:$0xff] %vm5019_vm8, %v7831_v57  ;;  %v8084_v22 = vsel %vm808_vm3, %v8082_v25, %v8083_v9  ;;  %v8229_v43 = vsel %vm1441_vm4, %v8227_v52, %v8228_v62 }
 0x4ea   : > { %v8274_v20 = vpop.permute.xlu1 %8273  ;;  %8145 = vrot.lane.b32.xlu0 %v8084_v22, %s23665_s2 }
 0x4eb   : > { %v8385_v39 = vsel %vm6163_vm10, %v8353_v47, %v8274_v20  ;;  %v8132_v42 = vpop.permute.xlu0 %8131  ;;  %v7924_v4 = vld [vmem:[#allocation2 + $0x320] ss:$2 sm:$0xff]  ;;  %v7925_v63 = vld [vmem:[#allocation2 + $0x330] ss:$2 sm:$0x1f] }
 0x4ec   : > { %14722 = vmatprep.mubr.msk.f32.mxu0 %vm6240_vm11, %v8385_v39  ;;  %v7963_v51 = vadd.f32 %v21705_v28, %v7924_v4  ;;  %v8358_v19 = vsel %vm5019_vm8, %v21726_v56, %v8132_v42  ;;  %v7964_v56 = vadd.f32 %v21705_v28, %v7925_v63 }
 0x4ee   : > { %v8276_v10 = vpop.permute.xlu1 %8275  ;;  %v21937_v26 = vmax.f32 %v7963_v51, 0.0  ;;  %v21964_v16 = vmax.f32 %v7964_v56, 0.0 }
 0x4ef   : > { %v8386_v23 = vsel %vm6163_vm10, %v8354_v34, %v8276_v10  ;;  %v8282_v48 = vpop.permute.xlu0 %8281  ;;  %v7928_v37 = vld [vmem:[#allocation2 + $0x3a0] ss:$2 sm:$0xff]  ;;  %v7929_v17 = vld [vmem:[#allocation2 + $0x3b0] ss:$2 sm:$0x1f] }
 0x4f0   : > { %v8389_v58 = vsel %vm6163_vm10, %v8357_v29, %v8282_v48  ;;  %14723 = vmatmul.mubr.msk.f32.vlgmr.msra.gmra.mrb[104].mxu0 %vm6240_vm11, %v8386_v23  ;;  %v8078_v32 = vrot.slane %v21937_v26, 1  ;;  %v7967_v21 = vadd.f32 %v21705_v28, %v7928_v37  ;;  %v8230_v1 = vrot.slane %v21937_v26, 2 }
 0x4f1   : > { %14752 = vmatprep.mubr.msk.f32.mxu1 %vm6240_vm11, %v8389_v58  ;;  %15853 = vmatpush3.bf16.msra.mxu0 %v21143_v46  ;;  %v7968_v44 = vadd.f32 %v21705_v28, %v7929_v17  ;;  %v8080_v3 = vrot.slane %v21964_v16, 1  ;;  %v8232_v42 = vrot.slane %v21964_v16, 2 }
 0x4f2   : > { %v8284_v49 = vpop.permute.xlu1 %8283  ;;  %15855 = vmatprep.subr.bf16.mxu0 %v21223_v54  ;;  %v8079_v55 = vsel %vm808_vm3, %v8076_v31, %v8078_v32  ;;  %v21950_v11 = vmax.f32 %v7967_v21, 0.0  ;;  %v8231_v28 = vsel %vm1441_vm4, %v8228_v62, %v8230_v1 }
 0x4f3   : > { %v8390_v5 = vsel %vm6163_vm10, %v8358_v19, %v8284_v49  ;;  %v8126_v61 = vpop.permute.xlu0 %8125  ;;  %8139 = vrot.lane.b32.xlu1 %v8079_v55, %s23665_s2  ;;  %v21982_v30 = vmax.f32 %v7968_v44, 0.0  ;;  %v8233_v34 = vsel %vm1441_vm4, %v8230_v1, %v8232_v42 }
 0x4f4   : > { %14753 = vmatmul.mubr.msk.f32.vlgmr.msra.gmra.mrb[104].mxu1 %vm6240_vm11, %v8390_v5  ;;  %v8085_v15 = vrot.slane %v21950_v11, 1  ;;  %v8355_v24 = vsel %vm5019_vm8, %v21748_v35, %v8126_v61  ;;  %v8237_v35 = vrot.slane %v21950_v11, 2 }
 0x4f5   : > { %15857 = vmatpush3.bf16.msra.mxu0 %v21223_v54  ;;  %15877 = vmatpush3.bf16.msra.mxu1 %v21143_v46  ;;  %v8234_v46 = vrot.slane %v21897_v2, 2  ;;  %v8239_v10 = vrot.slane %v21982_v30, 2 }
 0x4f6   : > { %v8128_v13 = vpop.permute.xlu1 %8127  ;;  %15859 = vmatprep.subr.bf16.mxu0 %v21235_v40  ;;  %15879 = vmatprep.subr.bf16.mxu1 %v21223_v54  ;;  %v8086_v60 = vsel %vm808_vm3, %v8083_v9, %v8085_v15  ;;  %v8238_v47 = vsel %vm1441_vm4, %v8235_v6, %v8237_v35 }
 0x4f7   : > { %v8134_v31 = vpop.permute.xlu0 %8133  ;;  %8289 = vrot.lane.b32.xlu1 %v8229_v43, %s23666_s19  ;;  %8147 = vrot.lane.b32.xlu0 %v8086_v60, %s23665_s2  ;;  %v8236_v18 = vsel %vm1441_vm4, %v8234_v46, %v8235_v6  ;;  %v8240_v51 = vsel %vm1441_vm4, %v8237_v35, %v8239_v10 }
 0x4f8   : > { %v8359_v41 = vsel %vm5019_vm8, %v21758_v38, %v8134_v31 }
 0x4f9   : > { %15861 = vmatpush3.bf16.msra.mxu0 %v21235_v40  ;;  %15881 = vmatpush3.bf16.msra.mxu1 %v21223_v54  ;;  %v8356_v54 = vsel %vm5019_vm8, %v21772_v27, %v8128_v13  ;;  %v8081_v27 = vsel %vm808_vm3, %v8078_v32, %v8080_v3 }
 0x4fa   : > { %v8278_v0 = vpop.permute.xlu1 %8277  ;;  %15863 = vmatprep.subr.bf16.mxu0 %v21276_v12  ;;  %15883 = vmatprep.subr.bf16.mxu1 %v21235_v40 }
 0x4fb   : > { %v8387_v33 = vsel %vm6163_vm10, %v8355_v24, %v8278_v0  ;;  %v8136_v53 = vpop.permute.xlu0 %8135  ;;  %8291 = vrot.lane.b32.xlu1 %v8231_v28, %s23666_s19  ;;  %8297 = vrot.lane.b32.xlu0 %v8236_v18, %s23666_s19 }
 0x4fc   : > { %14725 = vmatprep.mubr.msk.f32.mxu0 %vm6240_vm11, %v8387_v33  ;;  %v8360_v38 = vsel %vm5019_vm8, %v21792_v36, %v8136_v53  ;;  %v9741_v36 = vld [vmem:[%s23594_s7] sm:$0xff] }
 0x4fd   : > { %15865 = vmatpush3.bf16.msra.mxu0 %v21276_v12  ;;  %15885 = vmatpush3.bf16.msra.mxu1 %v21235_v40  ;;  %v8087_v40 = vrot.slane %v21982_v30, 1 }
 0x4fe   : > { %v8280_v8 = vpop.permute.xlu1 %8279  ;;  %15867 = vmatprep.subr.bf16.mxu0 %v21318_v59  ;;  %15887 = vmatprep.subr.bf16.mxu1 %v21276_v12 }
 0x4ff   : > { %v8388_v57 = vsel %vm6163_vm10, %v8356_v54, %v8280_v8  ;;  %v8286_v25 = vpop.permute.xlu0 %8285  ;;  %8299 = vrot.lane.b32.xlu1 %v8238_v47, %s23666_s19  ;;  %8141 = vrot.lane.b32.xlu0 %v8081_v27, %s23665_s2  ;;  %v8088_v39 = vsel %vm808_vm3, %v8085_v15, %v8087_v40 }
 0x500   : > { %v8391_v9 = vsel %vm6163_vm10, %v8359_v41, %v8286_v25  ;;  %14726 = vmatmul.mubr.msk.f32.gmra.mrb[106].mxu0 %vm6240_vm11, %v8388_v57 }
 0x501   : > { %14755 = vmatprep.mubr.msk.f32.mxu1 %vm6240_vm11, %v8391_v9  ;;  %15869 = vmatpush3.bf16.msra.mxu0 %v21318_v59 }
 0x502   : > { %v8288_v20 = vpop.permute.xlu1 %8287  ;;  %15889 = vmatpush3.bf16.msra.mxu1 %v21276_v12  ;;  %15871 = vmatprep.subr.bf16.mxu0 %v21327_v45  ;;  %v9742_v12 = vld [vmem:[%s23594_s7 + $0x8] sm:$0xff] }
 0x503   : > { %v8392_v22 = vsel %vm6163_vm10, %v8360_v38, %v8288_v20  ;;  %15891 = vmatprep.subr.bf16.mxu1 %v21318_v59  ;;  %8143 = vrot.lane.b32.xlu1 %v8080_v3, %s23665_s2  ;;  %v22022_v4 = vpack.c.bf16 %v9742_v12, %v9741_v36 }
 0x504   : > { %14756 = vmatmul.mubr.msk.f32.gmra.mrb[106].mxu1 %vm6240_vm11, %v8392_v22  ;;  %8149 = vrot.lane.b32.xlu0 %v8088_v39, %s23665_s2 }
 0x505   : > { %15873 = vmatpush3.bf16.msra.mxu0 %v21327_v45 }
 0x506   : > { %15893 = vmatpush3.bf16.msra.mxu1 %v21318_v59  ;;  %15899 = vmatprep.subr.bf16.mxu0 %v22022_v4 }
 0x507   : > { %15895 = vmatprep.subr.bf16.mxu1 %v21327_v45  ;;  %8293 = vrot.lane.b32.xlu1 %v8233_v34, %s23666_s19  ;;  %v22060_v34 = vld [vmem:[%s23667_s6] ss:$0 sm:$0xff]  ;;  %s16722_s6 = smov 127  }
 0x508   : > { %8151 = vrot.lane.b32.xlu0 %v8087_v40, %s23665_s2 }
 0x50a   : > { %15897 = vmatpush3.bf16.msra.mxu1 %v21327_v45 }
 0x50b   : > { %15923 = vmatprep.subr.bf16.mxu1 %v22022_v4  ;;  %8295 = vrot.lane.b32.xlu1 %v8232_v42, %s23666_s19 }
 0x50c   : > { %8301 = vrot.lane.b32.xlu0 %v8240_v51, %s23666_s19  ;;  %v14604_v59 = vpop.f32.mrb[96].mxu0 }
 0x50d   : > { %v9222_v29 = vrot.slane %v14604_v59, 1  ;;  %v9342_v23 = vrot.slane %v14604_v59, 2  ;;  %v8491_v48 = vpop.f32.mrb[97].mxu0 }
 0x50e   : > { %v9221_v58 = vrot.slane %v8491_v48, 1  ;;  %v9341_v37 = vrot.slane %v8491_v48, 2 }
 0x50f   : > { %8303 = vrot.lane.b32.xlu1 %v8239_v10, %s23666_s19 }
 0x510   : > { %v9223_v63 = vsel %vm808_vm3, %v9221_v58, %v9222_v29  ;;  %v9343_v19 = vsel %vm1441_vm4, %v9341_v37, %v9342_v23  ;;  %v14634_v45 = vpop.f32.mrb[96].mxu1 }
 0x511   : > { %v9309_v49 = vmax.f32 %v8491_v48, %v9223_v63  ;;  %v9229_v32 = vrot.slane %v14634_v45, 1  ;;  %v9349_v21 = vrot.slane %v14634_v45, 2  ;;  %v8588_v5 = vpop.f32.mrb[97].mxu1 }
 0x512   : > { %v9228_v61 = vrot.slane %v8588_v5, 1  ;;  %v9348_v62 = vrot.slane %v8588_v5, 2 }
 0x513   : > { %v9429_v55 = vmax.f32 %v9309_v49, %v9343_v19 }
 0x514   : > { %v9230_v56 = vsel %vm808_vm3, %v9228_v61, %v9229_v32  ;;  %v9350_v52 = vsel %vm1441_vm4, %v9348_v62, %v9349_v21 }
 0x515   : > { %9461 = vst.msk [vmem:[#allocation2] sm:$0xff] %vm5019_vm8, %v9429_v55  ;;  %v9313_v17 = vmax.f32 %v8588_v5, %v9230_v56 }
 0x517   : > { %v9433_v13 = vmax.f32 %v9313_v17, %v9350_v52 }
 0x519   : > { %9466 = vst.msk [vmem:[#allocation2 + $0x80] sm:$0xff] %vm5019_vm8, %v9433_v13 }
 0x51c   : > { %v14607_v15 = vpop.f32.mrb[98].mxu0 }
 0x51d   : > { %v9226_v31 = vrot.slane %v14607_v15, 1  ;;  %v9346_v43 = vrot.slane %v14607_v15, 2  ;;  %v8501_v6 = vpop.f32.mrb[99].mxu0 }
 0x51e   : > { %v9224_v60 = vrot.slane %v8501_v6, 1  ;;  %v9344_v1 = vrot.slane %v8501_v6, 2 }
 0x51f   : > { %v9312_v44 = vmax.f32 %v14607_v15, %v9226_v31 }
 0x520   : > { %v9225_v46 = vsel %vm808_vm3, %v9222_v29, %v9224_v60  ;;  %v9227_v24 = vsel %vm808_vm3, %v9224_v60, %v9226_v31  ;;  %v9345_v0 = vsel %vm1441_vm4, %v9342_v23, %v9344_v1  ;;  %v9347_v33 = vsel %vm1441_vm4, %v9344_v1, %v9346_v43  ;;  %v14637_v53 = vpop.f32.mrb[98].mxu1 }
 0x521   : > { %v9432_v18 = vmax.f32 %v9312_v44, %v9346_v43  ;;  %v9310_v28 = vmax.f32 %v14604_v59, %v9225_v46  ;;  %v9311_v35 = vmax.f32 %v8501_v6, %v9227_v24  ;;  %v9233_v3 = vrot.slane %v14637_v53, 1  ;;  %v8598_v54 = vpop.f32.mrb[99].mxu1 }
 0x522   : > { %v9353_v8 = vrot.slane %v14637_v53, 2  ;;  %v9231_v41 = vrot.slane %v8598_v54, 1  ;;  %v9351_v57 = vrot.slane %v8598_v54, 2 }
 0x523   : > { %9465 = vst.msk [vmem:[#allocation2 + $0x18] sm:$0x1] %vm9464_vm13, %v9432_v18  ;;  %v9430_v25 = vmax.f32 %v9310_v28, %v9345_v0  ;;  %v9431_v9 = vmax.f32 %v9311_v35, %v9347_v33  ;;  %v9316_v47 = vmax.f32 %v14637_v53, %v9233_v3 }
 0x524   : > { %v9232_v27 = vsel %vm808_vm3, %v9229_v32, %v9231_v41  ;;  %v9234_v40 = vsel %vm808_vm3, %v9231_v41, %v9233_v3  ;;  %v9352_v38 = vsel %vm1441_vm4, %v9349_v21, %v9351_v57  ;;  %v9354_v20 = vsel %vm1441_vm4, %v9351_v57, %v9353_v8 }
 0x525   : > { %9462 = vst.msk [vmem:[#allocation2 + $0x8] sm:$0xff] %vm5019_vm8, %v9430_v25  ;;  %9463 = vst.msk [vmem:[#allocation2 + $0x10] sm:$0xff] %vm5019_vm8, %v9431_v9  ;;  %v9436_v22 = vmax.f32 %v9316_v47, %v9353_v8  ;;  %v9314_v39 = vmax.f32 %v14634_v45, %v9232_v27  ;;  %v9315_v42 = vmax.f32 %v8598_v54, %v9234_v40 }
 0x527   : > { %9469 = vst.msk [vmem:[#allocation2 + $0x98] sm:$0x1] %vm9464_vm13, %v9436_v22  ;;  %v9434_v36 = vmax.f32 %v9314_v39, %v9352_v38  ;;  %v9435_v12 = vmax.f32 %v9315_v42, %v9354_v20 }
 0x529   : > { %9467 = vst.msk [vmem:[#allocation2 + $0x88] sm:$0xff] %vm5019_vm8, %v9434_v36  ;;  %9468 = vst.msk [vmem:[#allocation2 + $0x90] sm:$0xff] %vm5019_vm8, %v9435_v12 }
 0x52c   : > { %v9495_v10 = vld [vmem:[#allocation2 + $0x10] ss:$2 sm:$0x1f]  ;;  %v9494_v51 = vld [vmem:[#allocation2] ss:$2 sm:$0xff] }
 0x52d   : > { %v9518_v59 = vadd.f32 %v22060_v34, %v9495_v10  ;;  %v9517_v29 = vadd.f32 %v22060_v34, %v9494_v51 }
 0x52f   : > { %v22064_v23 = vmax.f32 %v9518_v59, 0.0  ;;  %v22068_v19 = vmax.f32 %v9517_v29, 0.0 }
 0x530   : > { %v9497_v48 = vld [vmem:[#allocation2 + $0x90] ss:$2 sm:$0x1f]  ;;  %v9496_v58 = vld [vmem:[#allocation2 + $0x80] ss:$2 sm:$0xff] }
 0x531   : > { %v9566_v37 = vrot.slane %v22064_v23, 1  ;;  %v9520_v63 = vadd.f32 %v22060_v34, %v9497_v48  ;;  %v9519_v45 = vadd.f32 %v22060_v34, %v9496_v58  ;;  %v9638_v32 = vrot.slane %v22064_v23, 2 }
 0x532   : > { %v9637_v5 = vrot.slane %v22068_v19, 2  ;;  %v9565_v61 = vrot.slane %v22068_v19, 1 }
 0x533   : > { %9591 = vrot.lane.b32.xlu1 %v9566_v37, %s23665_s2  ;;  %v22072_v49 = vmax.f32 %v9520_v63, 0.0  ;;  %v22078_v62 = vmax.f32 %v9519_v45, 0.0 }
 0x534   : > { %v9639_v55 = vsel %vm1441_vm4, %v9637_v5, %v9638_v32  ;;  %v9567_v56 = vsel %vm808_vm3, %v9565_v61, %v9566_v37 }
 0x535   : > { %v9569_v21 = vrot.slane %v22072_v49, 1  ;;  %v9568_v52 = vrot.slane %v22078_v62, 1  ;;  %v9641_v17 = vrot.slane %v22072_v49, 2  ;;  %v9640_v15 = vrot.slane %v22078_v62, 2 }
 0x537   : > { %9663 = vrot.lane.b32.xlu1 %v9638_v32, %s23666_s19  ;;  %9595 = vrot.lane.b32.xlu0 %v9569_v21, %s23665_s2  ;;  %v9570_v13 = vsel %vm808_vm3, %v9568_v52, %v9569_v21  ;;  %v9642_v31 = vsel %vm1441_vm4, %v9640_v15, %v9641_v17 }
 0x53b   : > { %9661 = vrot.lane.b32.xlu1 %v9639_v55, %s23666_s19  ;;  %9589 = vrot.lane.b32.xlu0 %v9567_v56, %s23665_s2 }
 0x53f   : > { %9667 = vrot.lane.b32.xlu1 %v9641_v17, %s23666_s19  ;;  %9593 = vrot.lane.b32.xlu0 %v9570_v13, %s23665_s2 }
 0x543   : > { %9665 = vrot.lane.b32.xlu0 %v9642_v31, %s23666_s19 }
 0x54c   : > { %v14664_v43 = vpop.f32.mrb[100].mxu0 }
 0x54d   : > { %v9236_v6 = vrot.slane %v14664_v43, 1  ;;  %v9356_v60 = vrot.slane %v14664_v43, 2  ;;  %v8685_v1 = vpop.f32.mrb[101].mxu0 }
 0x54e   : > { %v9235_v44 = vrot.slane %v8685_v1, 1  ;;  %v9355_v46 = vrot.slane %v8685_v1, 2 }
 0x550   : > { %v9237_v24 = vsel %vm808_vm3, %v9235_v44, %v9236_v6  ;;  %v9357_v0 = vsel %vm1441_vm4, %v9355_v46, %v9356_v60  ;;  %v14694_v33 = vpop.f32.mrb[100].mxu1 }
 0x551   : > { %v9317_v53 = vmax.f32 %v8685_v1, %v9237_v24  ;;  %v9243_v18 = vrot.slane %v14694_v33, 1  ;;  %v9363_v28 = vrot.slane %v14694_v33, 2  ;;  %v8782_v35 = vpop.f32.mrb[101].mxu1 }
 0x552   : > { %v9242_v3 = vrot.slane %v8782_v35, 1  ;;  %v9362_v54 = vrot.slane %v8782_v35, 2 }
 0x553   : > { %v9437_v8 = vmax.f32 %v9317_v53, %v9357_v0 }
 0x554   : > { %v9244_v41 = vsel %vm808_vm3, %v9242_v3, %v9243_v18  ;;  %v9364_v57 = vsel %vm1441_vm4, %v9362_v54, %v9363_v28 }
 0x555   : > { %9470 = vst.msk [vmem:[#allocation2 + $0x100] sm:$0xff] %vm5019_vm8, %v9437_v8  ;;  %v9321_v25 = vmax.f32 %v8782_v35, %v9244_v41  ;;  %v9744_v35 = vld [vmem:[%s23594_s7 + $0x18] sm:$0xff] }
 0x557   : > { %v9441_v9 = vmax.f32 %v9321_v25, %v9364_v57 }
 0x558   : > { %v8138_v59 = vpop.permute.xlu0 %8137 }
 0x559   : > { %9474 = vst.msk [vmem:[#allocation2 + $0x180] sm:$0xff] %vm5019_vm8, %v9441_v9  ;;  %v8361_v46 = vsel %vm5019_vm8, %v21890_v50, %v8138_v59 }
 0x55c   : > { %v14667_v47 = vpop.f32.mrb[102].mxu0 }
 0x55d   : > { %v9240_v27 = vrot.slane %v14667_v47, 1  ;;  %v9360_v40 = vrot.slane %v14667_v47, 2  ;;  %v8695_v38 = vpop.f32.mrb[103].mxu0 }
 0x55e   : > { %v9238_v20 = vrot.slane %v8695_v38, 1  ;;  %v9358_v22 = vrot.slane %v8695_v38, 2 }
 0x55f   : > { %v9320_v39 = vmax.f32 %v14667_v47, %v9240_v27 }
 0x560   : > { %v9239_v42 = vsel %vm808_vm3, %v9236_v6, %v9238_v20  ;;  %v9241_v36 = vsel %vm808_vm3, %v9238_v20, %v9240_v27  ;;  %v9359_v12 = vsel %vm1441_vm4, %v9356_v60, %v9358_v22  ;;  %v9361_v10 = vsel %vm1441_vm4, %v9358_v22, %v9360_v40  ;;  %v14697_v51 = vpop.f32.mrb[102].mxu1  ;;  %v8146_v6 = vpop.permute.xlu0 %8145  ;;  %v9745_v20 = vld [vmem:[%s23594_s7 + $0x20] sm:$0xff]  ;;  %v9746_v22 = vld [vmem:[%s23594_s7 + $0x28] sm:$0xff] }
 0x561   : > { %v9440_v29 = vmax.f32 %v9320_v39, %v9360_v40  ;;  %v9318_v48 = vmax.f32 %v14664_v43, %v9239_v42  ;;  %v9319_v58 = vmax.f32 %v8695_v38, %v9241_v36  ;;  %v9247_v37 = vrot.slane %v14697_v51, 1  ;;  %v8792_v63 = vpop.f32.mrb[103].mxu1 }
 0x562   : > { %v9367_v45 = vrot.slane %v14697_v51, 2  ;;  %v9245_v32 = vrot.slane %v8792_v63, 1  ;;  %v9365_v21 = vrot.slane %v8792_v63, 2  ;;  %v8365_v54 = vsel %vm5019_vm8, %v21897_v2, %v8146_v6 }
 0x563   : > { %9473 = vst.msk [vmem:[#allocation2 + $0x118] sm:$0x1] %vm9464_vm13, %v9440_v29  ;;  %v9438_v5 = vmax.f32 %v9318_v48, %v9359_v12  ;;  %v9439_v61 = vmax.f32 %v9319_v58, %v9361_v10  ;;  %v9324_v55 = vmax.f32 %v14697_v51, %v9247_v37  ;;  %v22157_v29 = vpack.c.bf16 %v9746_v22, %v9745_v20 }
 0x564   : > { %v9246_v56 = vsel %vm808_vm3, %v9243_v18, %v9245_v32  ;;  %v9248_v52 = vsel %vm808_vm3, %v9245_v32, %v9247_v37  ;;  %v9366_v17 = vsel %vm1441_vm4, %v9363_v28, %v9365_v21  ;;  %v9368_v13 = vsel %vm1441_vm4, %v9365_v21, %v9367_v45  ;;  %v9748_v37 = vld [vmem:[%s23594_s7 + $0x38] sm:$0xff] }
 0x565   : > { %9471 = vst.msk [vmem:[#allocation2 + $0x108] sm:$0xff] %vm5019_vm8, %v9438_v5  ;;  %9472 = vst.msk [vmem:[#allocation2 + $0x110] sm:$0xff] %vm5019_vm8, %v9439_v61  ;;  %v9444_v15 = vmax.f32 %v9324_v55, %v9367_v45  ;;  %v9322_v31 = vmax.f32 %v14694_v33, %v9246_v56  ;;  %v9323_v43 = vmax.f32 %v8792_v63, %v9248_v52  ;;  %v8140_v44 = vpop.permute.xlu1 %8139  ;;  %v9743_v33 = vld [vmem:[%s23594_s7 + $0x10] sm:$0xff]  ;;  %v9749_v55 = vld [vmem:[%s23594_s7 + $0x40] sm:$0xff] }
 0x566   : > { %v8362_v8 = vsel %vm5019_vm8, %v21894_v14, %v8140_v44  ;;  %v22132_v9 = vpack.c.bf16 %v9744_v35, %v9743_v33  ;;  %v9750_v56 = vld [vmem:[%s23594_s7 + $0x48] sm:$0xff] }
 0x567   : > { %9477 = vst.msk [vmem:[#allocation2 + $0x198] sm:$0x1] %vm9464_vm13, %v9444_v15  ;;  %v9442_v60 = vmax.f32 %v9322_v31, %v9366_v17  ;;  %v9443_v1 = vmax.f32 %v9323_v43, %v9368_v13 }
 0x569   : > { %9475 = vst.msk [vmem:[#allocation2 + $0x188] sm:$0xff] %vm5019_vm8, %v9442_v60  ;;  %9476 = vst.msk [vmem:[#allocation2 + $0x190] sm:$0xff] %vm5019_vm8, %v9443_v1  ;;  %v8290_v24 = vpop.permute.xlu1 %8289  ;;  %v8148_v0 = vpop.permute.xlu0 %8147  ;;  %v22198_v60 = vpack.c.bf16 %v9750_v56, %v9749_v55  ;;  %v9751_v1 = vld [vmem:[%s23594_s7 + $0x50] sm:$0xff] }
 0x56a   : > { %v8393_v53 = vsel %vm6163_vm10, %v8361_v46, %v8290_v24  ;;  %v8366_v36 = vsel %vm5019_vm8, %v21916_v7, %v8148_v0  ;;  %v9747_v7 = vld [vmem:[%s23594_s7 + $0x30] sm:$0xff] }
 0x56b   : > { %14782 = vmatprep.mubr.msk.f32.mxu0 %vm6240_vm11, %v8393_v53  ;;  %v22177_v61 = vpack.c.bf16 %v9748_v37, %v9747_v7 }
 0x56c   : > { %v9499_v18 = vld [vmem:[#allocation2 + $0x110] ss:$2 sm:$0x1f]  ;;  %v9498_v28 = vld [vmem:[#allocation2 + $0x100] ss:$2 sm:$0xff] }
 0x56d   : > { %v9522_v3 = vadd.f32 %v22060_v34, %v9499_v18  ;;  %v9521_v50 = vadd.f32 %v22060_v34, %v9498_v28  ;;  %v8292_v41 = vpop.permute.xlu1 %8291  ;;  %v8298_v57 = vpop.permute.xlu0 %8297 }
 0x56e   : > { %v8394_v47 = vsel %vm6163_vm10, %v8362_v8, %v8292_v41  ;;  %v8397_v27 = vsel %vm6163_vm10, %v8365_v54, %v8298_v57 }
 0x56f   : > { %v22130_v25 = vmax.f32 %v9522_v3, 0.0  ;;  %14783 = vmatmul.mubr.msk.f32.vlgmr.msra.gmra.mrb[108].mxu0 %vm6240_vm11, %v8394_v47  ;;  %14812 = vmatprep.mubr.msk.f32.mxu1 %vm6240_vm11, %v8397_v27  ;;  %v22146_v39 = vmax.f32 %v9521_v50, 0.0 }
 0x570   : > { %v9501_v40 = vld [vmem:[#allocation2 + $0x190] ss:$2 sm:$0x1f]  ;;  %v9500_v38 = vld [vmem:[#allocation2 + $0x180] ss:$2 sm:$0xff]  ;;  %15901 = vmatpush3.bf16.msra.mxu0 %v22022_v4 }
 0x571   : > { %v9572_v2 = vrot.slane %v22130_v25, 1  ;;  %v9524_v14 = vadd.f32 %v22060_v34, %v9501_v40  ;;  %v9523_v42 = vadd.f32 %v22060_v34, %v9500_v38  ;;  %v8300_v12 = vpop.permute.xlu1 %8299  ;;  %v8142_v10 = vpop.permute.xlu0 %8141  ;;  %15903 = vmatprep.subr.bf16.mxu0 %v22132_v9  ;;  %v9644_v48 = vrot.slane %v22130_v25, 2 }
 0x572   : > { %v8398_v59 = vsel %vm6163_vm10, %v8366_v36, %v8300_v12  ;;  %v9643_v63 = vrot.slane %v22146_v39, 2  ;;  %v9571_v45 = vrot.slane %v22146_v39, 1  ;;  %v8363_v15 = vsel %vm5019_vm8, %v21937_v26, %v8142_v10  ;;  %v9752_v26 = vld [vmem:[%s23594_s7 + $0x58] sm:$0xff] }
 0x573   : > { %9599 = vrot.lane.b32.xlu1 %v9572_v2, %s23665_s2  ;;  %v22153_v51 = vmax.f32 %v9524_v14, 0.0  ;;  %14813 = vmatmul.mubr.msk.f32.vlgmr.msra.gmra.mrb[108].mxu1 %vm6240_vm11, %v8398_v59  ;;  %v22170_v32 = vmax.f32 %v9523_v42, 0.0  ;;  %v22218_v28 = vpack.c.bf16 %v9752_v26, %v9751_v1 }
 0x574   : > { %15905 = vmatpush3.bf16.msra.mxu0 %v22132_v9  ;;  %15925 = vmatpush3.bf16.msra.mxu1 %v22022_v4  ;;  %v9645_v52 = vsel %vm1441_vm4, %v9643_v63, %v9644_v48  ;;  %v9573_v17 = vsel %vm808_vm3, %v9571_v45, %v9572_v2 }
 0x575   : > { %v9575_v58 = vrot.slane %v22153_v51, 1  ;;  %v8144_v21 = vpop.permute.xlu1 %8143  ;;  %15907 = vmatprep.subr.bf16.mxu0 %v22157_v29  ;;  %15927 = vmatprep.subr.bf16.mxu1 %v22132_v9  ;;  %v9574_v13 = vrot.slane %v22170_v32, 1  ;;  %v9647_v44 = vrot.slane %v22153_v51, 2  ;;  %v9646_v24 = vrot.slane %v22170_v32, 2 }
 0x576   : > { %v8150_v5 = vpop.permute.xlu0 %8149  ;;  %v8364_v0 = vsel %vm5019_vm8, %v21964_v16, %v8144_v21 }
 0x577   : > { %9671 = vrot.lane.b32.xlu1 %v9644_v48, %s23666_s19  ;;  %9603 = vrot.lane.b32.xlu0 %v9575_v58, %s23665_s2  ;;  %v9576_v46 = vsel %vm808_vm3, %v9574_v13, %v9575_v58  ;;  %v8367_v33 = vsel %vm5019_vm8, %v21950_v11, %v8150_v5  ;;  %v9648_v11 = vsel %vm1441_vm4, %v9646_v24, %v9647_v44 }
 0x578   : > { %15909 = vmatpush3.bf16.msra.mxu0 %v22157_v29  ;;  %15929 = vmatpush3.bf16.msra.mxu1 %v22132_v9 }
 0x579   : > { %v8294_v31 = vpop.permute.xlu1 %8293  ;;  %15911 = vmatprep.subr.bf16.mxu0 %v22177_v61  ;;  %15931 = vmatprep.subr.bf16.mxu1 %v22157_v29 }
 0x57a   : > { %v8152_v43 = vpop.permute.xlu0 %8151  ;;  %v8395_v6 = vsel %vm6163_vm10, %v8363_v15, %v8294_v31 }
 0x57b   : > { %9669 = vrot.lane.b32.xlu1 %v9645_v52, %s23666_s19  ;;  %9597 = vrot.lane.b32.xlu0 %v9573_v17, %s23665_s2  ;;  %v8368_v16 = vsel %vm5019_vm8, %v21982_v30, %v8152_v43 }
 0x57c   : > { %14785 = vmatprep.mubr.msk.f32.mxu0 %vm6240_vm11, %v8395_v6  ;;  %15913 = vmatpush3.bf16.msra.mxu0 %v22177_v61 }
 0x57d   : > { %15933 = vmatpush3.bf16.msra.mxu1 %v22157_v29  ;;  %v8296_v53 = vpop.permute.xlu1 %8295  ;;  %15915 = vmatprep.subr.bf16.mxu0 %v22198_v60 }
 0x57e   : > { %v8302_v18 = vpop.permute.xlu0 %8301  ;;  %v8396_v35 = vsel %vm6163_vm10, %v8364_v0, %v8296_v53  ;;  %15935 = vmatprep.subr.bf16.mxu1 %v22177_v61 }
 0x57f   : > { %9675 = vrot.lane.b32.xlu1 %v9647_v44, %s23666_s19  ;;  %9601 = vrot.lane.b32.xlu0 %v9576_v46, %s23665_s2  ;;  %v8399_v3 = vsel %vm6163_vm10, %v8367_v33, %v8302_v18 }
 0x580   : > { %14786 = vmatmul.mubr.msk.f32.gmra.mrb[110].mxu0 %vm6240_vm11, %v8396_v35  ;;  %14815 = vmatprep.mubr.msk.f32.mxu1 %vm6240_vm11, %v8399_v3 }
 0x581   : > { %15917 = vmatpush3.bf16.msra.mxu0 %v22198_v60  ;;  %15937 = vmatpush3.bf16.msra.mxu1 %v22177_v61  ;;  %v8304_v50 = vpop.permute.xlu1 %8303 }
 0x582   : > { %15919 = vmatprep.subr.bf16.mxu0 %v22218_v28  ;;  %v8400_v54 = vsel %vm6163_vm10, %v8368_v16, %v8304_v50  ;;  %15939 = vmatprep.subr.bf16.mxu1 %v22198_v60 }
 0x583   : > { %9673 = vrot.lane.b32.xlu0 %v9648_v11, %s23666_s19  ;;  %14816 = vmatmul.mubr.msk.f32.gmra.mrb[110].mxu1 %vm6240_vm11, %v8400_v54 }
 0x585   : > { %15921 = vmatpush3.bf16.msra.mxu0 %v22218_v28  ;;  %15941 = vmatpush3.bf16.msra.mxu1 %v22198_v60 }
 0x586   : > { %15943 = vmatprep.subr.bf16.mxu1 %v22218_v28  ;;  %15947 = vmatprep.subr.bf16.mxu0 %v22022_v4 }
 0x589   : > { %15945 = vmatpush3.bf16.msra.mxu1 %v22218_v28 }
 0x58a   : > { %15971 = vmatprep.subr.bf16.mxu1 %v22022_v4 }
 0x5a5   : > { %v9592_v30 = vpop.permute.xlu1 %9591 }
 0x5a6   : > { %v9710_v40 = vsel %vm5019_vm8, %v22064_v23, %v9592_v30 }
 0x5a9   : > { %v9664_v8 = vpop.permute.xlu1 %9663  ;;  %v9596_v41 = vpop.permute.xlu0 %9595 }
 0x5aa   : > { %v9726_v2 = vsel %vm6163_vm10, %v9710_v40, %v9664_v8  ;;  %v9712_v23 = vsel %vm5019_vm8, %v22072_v49, %v9596_v41 }
 0x5ad   : > { %v9662_v57 = vpop.permute.xlu1 %9661  ;;  %v9590_v47 = vpop.permute.xlu0 %9589 }
 0x5ae   : > { %v9709_v27 = vsel %vm5019_vm8, %v22068_v19, %v9590_v47 }
 0x5af   : > { %v9725_v38 = vsel %vm6163_vm10, %v9709_v27, %v9662_v57 }
 0x5b0   : > { %14842 = vmatprep.mubr.msk.f32.mxu0 %vm6240_vm11, %v9725_v38 }
 0x5b1   : > { %14843 = vmatmul.mubr.msk.f32.vlgmr.msra.gmra.mrb[112].mxu0 %vm6240_vm11, %v9726_v2  ;;  %v9594_v14 = vpop.permute.xlu0 %9593  ;;  %v9668_v20 = vpop.permute.xlu1 %9667 }
 0x5b2   : > { %15949 = vmatpush3.bf16.msra.mxu0 %v22022_v4  ;;  %v9711_v19 = vsel %vm5019_vm8, %v22078_v62, %v9594_v14  ;;  %v9728_v36 = vsel %vm6163_vm10, %v9712_v23, %v9668_v20 }
 0x5b3   : > { %15951 = vmatprep.subr.bf16.mxu0 %v22132_v9 }
 0x5b5   : > { %v9666_v22 = vpop.permute.xlu0 %9665 }
 0x5b6   : > { %v9727_v42 = vsel %vm6163_vm10, %v9711_v19, %v9666_v22  ;;  %15953 = vmatpush3.bf16.msra.mxu0 %v22132_v9 }
 0x5b7   : > { %14869 = vmatprep.mubr.msk.f32.mxu1 %vm6240_vm11, %v9727_v42  ;;  %15955 = vmatprep.subr.bf16.mxu0 %v22157_v29 }
 0x5b8   : > { %14870 = vmatmul.mubr.msk.f32.vlgmr.msra.gmra.mrb[112].mxu1 %vm6240_vm11, %v9728_v36 }
 0x5b9   : > { %15973 = vmatpush3.bf16.msra.mxu1 %v22022_v4 }
 0x5ba   : > { %15957 = vmatpush3.bf16.msra.mxu0 %v22157_v29  ;;  %15975 = vmatprep.subr.bf16.mxu1 %v22132_v9 }
 0x5bb   : > { %15959 = vmatprep.subr.bf16.mxu0 %v22177_v61 }
 0x5bd   : > { %15977 = vmatpush3.bf16.msra.mxu1 %v22132_v9 }
 0x5be   : > { %15961 = vmatpush3.bf16.msra.mxu0 %v22177_v61  ;;  %15979 = vmatprep.subr.bf16.mxu1 %v22157_v29 }
 0x5bf   : > { %15963 = vmatprep.subr.bf16.mxu0 %v22198_v60 }
 0x5c1   : > { %15981 = vmatpush3.bf16.msra.mxu1 %v22157_v29 }
 0x5c2   : > { %15965 = vmatpush3.bf16.msra.mxu0 %v22198_v60  ;;  %15983 = vmatprep.subr.bf16.mxu1 %v22177_v61 }
 0x5c3   : > { %v14724_v49 = vpop.f32.mrb[104].mxu0  ;;  %15967 = vmatprep.subr.bf16.mxu0 %v22218_v28 }
 0x5c4   : > { %v9250_v62 = vrot.slane %v14724_v49, 1  ;;  %v9370_v12 = vrot.slane %v14724_v49, 2  ;;  %v8879_v10 = vpop.f32.mrb[105].mxu0 }
 0x5c5   : > { %v9249_v59 = vrot.slane %v8879_v10, 1  ;;  %v9369_v48 = vrot.slane %v8879_v10, 2  ;;  %15985 = vmatpush3.bf16.msra.mxu1 %v22177_v61 }
 0x5c6   : > { %15969 = vmatpush3.bf16.msra.mxu0 %v22218_v28  ;;  %15987 = vmatprep.subr.bf16.mxu1 %v22198_v60 }
 0x5c7   : > { %v9251_v58 = vsel %vm808_vm3, %v9249_v59, %v9250_v62  ;;  %v9371_v7 = vsel %vm1441_vm4, %v9369_v48, %v9370_v12  ;;  %v14754_v37 = vpop.f32.mrb[104].mxu1  ;;  %15995 = vmatprep.subr.bf16.mxu0 %v22022_v4 }
 0x5c8   : > { %v9325_v63 = vmax.f32 %v8879_v10, %v9251_v58  ;;  %v9257_v45 = vrot.slane %v14754_v37, 1  ;;  %v9377_v21 = vrot.slane %v14754_v37, 2  ;;  %v8976_v5 = vpop.f32.mrb[105].mxu1 }
 0x5c9   : > { %v9256_v55 = vrot.slane %v8976_v5, 1  ;;  %v9376_v56 = vrot.slane %v8976_v5, 2  ;;  %15989 = vmatpush3.bf16.msra.mxu1 %v22198_v60 }
 0x5ca   : > { %v9445_v52 = vmax.f32 %v9325_v63, %v9371_v7  ;;  %15991 = vmatprep.subr.bf16.mxu1 %v22218_v28 }
 0x5cb   : > { %v9258_v17 = vsel %vm808_vm3, %v9256_v55, %v9257_v45  ;;  %v9378_v13 = vsel %vm1441_vm4, %v9376_v56, %v9377_v21 }
 0x5cc   : > { %9478 = vst.msk [vmem:[#allocation2 + $0x200] sm:$0xff] %vm5019_vm8, %v9445_v52  ;;  %v9329_v15 = vmax.f32 %v8976_v5, %v9258_v17 }
 0x5cd   : > { %15993 = vmatpush3.bf16.msra.mxu1 %v22218_v28 }
 0x5ce   : > { %v9449_v31 = vmax.f32 %v9329_v15, %v9378_v13  ;;  %16019 = vmatprep.subr.bf16.mxu1 %v22022_v4 }
 0x5d0   : > { %9482 = vst.msk [vmem:[#allocation2 + $0x280] sm:$0xff] %vm5019_vm8, %v9449_v31 }
 0x5d3   : > { %v14727_v43 = vpop.f32.mrb[106].mxu0 }
 0x5d4   : > { %v9254_v6 = vrot.slane %v14727_v43, 1  ;;  %v9374_v1 = vrot.slane %v14727_v43, 2  ;;  %v8889_v26 = vpop.f32.mrb[107].mxu0 }
 0x5d5   : > { %v9252_v44 = vrot.slane %v8889_v26, 1  ;;  %v9372_v46 = vrot.slane %v8889_v26, 2 }
 0x5d6   : > { %v9328_v24 = vmax.f32 %v14727_v43, %v9254_v6 }
 0x5d7   : > { %v9253_v0 = vsel %vm808_vm3, %v9250_v62, %v9252_v44  ;;  %v9255_v33 = vsel %vm808_vm3, %v9252_v44, %v9254_v6  ;;  %v9373_v53 = vsel %vm1441_vm4, %v9370_v12, %v9372_v46  ;;  %v9375_v18 = vsel %vm1441_vm4, %v9372_v46, %v9374_v1  ;;  %v14757_v35 = vpop.f32.mrb[106].mxu1 }
 0x5d8   : > { %v9448_v3 = vmax.f32 %v9328_v24, %v9374_v1  ;;  %v9326_v11 = vmax.f32 %v14724_v49, %v9253_v0  ;;  %v9327_v16 = vmax.f32 %v8889_v26, %v9255_v33  ;;  %v9261_v50 = vrot.slane %v14757_v35, 1  ;;  %v8986_v54 = vpop.f32.mrb[107].mxu1 }
 0x5d9   : > { %v9381_v30 = vrot.slane %v14757_v35, 2  ;;  %v9259_v8 = vrot.slane %v8986_v54, 1  ;;  %v9379_v41 = vrot.slane %v8986_v54, 2 }
 0x5da   : > { %9481 = vst.msk [vmem:[#allocation2 + $0x218] sm:$0x1] %vm9464_vm13, %v9448_v3  ;;  %v9446_v57 = vmax.f32 %v9326_v11, %v9373_v53  ;;  %v9447_v47 = vmax.f32 %v9327_v16, %v9375_v18  ;;  %v9332_v27 = vmax.f32 %v14757_v35, %v9261_v50 }
 0x5db   : > { %v9260_v40 = vsel %vm808_vm3, %v9257_v45, %v9259_v8  ;;  %v9262_v38 = vsel %vm808_vm3, %v9259_v8, %v9261_v50  ;;  %v9380_v2 = vsel %vm1441_vm4, %v9377_v21, %v9379_v41  ;;  %v9382_v14 = vsel %vm1441_vm4, %v9379_v41, %v9381_v30 }
 0x5dc   : > { %9479 = vst.msk [vmem:[#allocation2 + $0x208] sm:$0xff] %vm5019_vm8, %v9446_v57  ;;  %9480 = vst.msk [vmem:[#allocation2 + $0x210] sm:$0xff] %vm5019_vm8, %v9447_v47  ;;  %v9452_v20 = vmax.f32 %v9332_v27, %v9381_v30  ;;  %v9330_v19 = vmax.f32 %v14754_v37, %v9260_v40  ;;  %v9331_v22 = vmax.f32 %v8986_v54, %v9262_v38 }
 0x5de   : > { %9485 = vst.msk [vmem:[#allocation2 + $0x298] sm:$0x1] %vm9464_vm13, %v9452_v20  ;;  %v9450_v23 = vmax.f32 %v9330_v19, %v9380_v2  ;;  %v9451_v42 = vmax.f32 %v9331_v22, %v9382_v14 }
 0x5e0   : > { %9483 = vst.msk [vmem:[#allocation2 + $0x288] sm:$0xff] %vm5019_vm8, %v9450_v23  ;;  %9484 = vst.msk [vmem:[#allocation2 + $0x290] sm:$0xff] %vm5019_vm8, %v9451_v42 }
 0x5e3   : > { %v9503_v36 = vld [vmem:[#allocation2 + $0x210] ss:$2 sm:$0x1f]  ;;  %v9502_v49 = vld [vmem:[#allocation2 + $0x200] ss:$2 sm:$0xff] }
 0x5e4   : > { %v9526_v62 = vadd.f32 %v22060_v34, %v9503_v36  ;;  %v9525_v10 = vadd.f32 %v22060_v34, %v9502_v49 }
 0x5e5   : > { %v9600_v12 = vpop.permute.xlu1 %9599 }
 0x5e6   : > { %v22304_v59 = vmax.f32 %v9526_v62, 0.0  ;;  %v22308_v21 = vmax.f32 %v9525_v10, 0.0  ;;  %v9714_v1 = vsel %vm5019_vm8, %v22130_v25, %v9600_v12 }
 0x5e7   : > { %v9505_v48 = vld [vmem:[#allocation2 + $0x290] ss:$2 sm:$0x1f]  ;;  %v9504_v58 = vld [vmem:[#allocation2 + $0x280] ss:$2 sm:$0xff] }
 0x5e8   : > { %v9578_v7 = vrot.slane %v22304_v59, 1  ;;  %v9528_v37 = vadd.f32 %v22060_v34, %v9505_v48  ;;  %v9527_v5 = vadd.f32 %v22060_v34, %v9504_v58  ;;  %v9650_v56 = vrot.slane %v22304_v59, 2 }
 0x5e9   : > { %v9672_v63 = vpop.permute.xlu1 %9671  ;;  %v9604_v45 = vpop.permute.xlu0 %9603  ;;  %v9649_v15 = vrot.slane %v22308_v21, 2  ;;  %v9577_v31 = vrot.slane %v22308_v21, 1 }
 0x5ea   : > { %9607 = vrot.lane.b32.xlu1 %v9578_v7, %s23665_s2  ;;  %v22312_v55 = vmax.f32 %v9528_v37, 0.0  ;;  %v22318_v43 = vmax.f32 %v9527_v5, 0.0  ;;  %v9730_v44 = vsel %vm6163_vm10, %v9714_v1, %v9672_v63  ;;  %v9716_v11 = vsel %vm5019_vm8, %v22153_v51, %v9604_v45 }
 0x5eb   : > { %v9651_v24 = vsel %vm1441_vm4, %v9649_v15, %v9650_v56 }
 0x5ec   : > { %v9581_v52 = vrot.slane %v22312_v55, 1  ;;  %v9580_v0 = vrot.slane %v22318_v43, 1  ;;  %v9653_v33 = vrot.slane %v22312_v55, 2  ;;  %v9652_v3 = vrot.slane %v22318_v43, 2 }
 0x5ed   : > { %v9670_v17 = vpop.permute.xlu1 %9669  ;;  %v9598_v13 = vpop.permute.xlu0 %9597 }
 0x5ee   : > { %v9713_v6 = vsel %vm5019_vm8, %v22146_v39, %v9598_v13  ;;  %9679 = vrot.lane.b32.xlu1 %v9650_v56, %s23666_s19  ;;  %9611 = vrot.lane.b32.xlu0 %v9581_v52, %s23665_s2  ;;  %v9579_v39 = vsel %vm808_vm3, %v9577_v31, %v9578_v7  ;;  %v9582_v35 = vsel %vm808_vm3, %v9580_v0, %v9581_v52 }
 0x5ef   : > { %v9729_v26 = vsel %vm6163_vm10, %v9713_v6, %v9670_v17 }
 0x5f0   : > { %14896 = vmatprep.mubr.msk.f32.mxu0 %vm6240_vm11, %v9729_v26 }
 0x5f1   : > { %14897 = vmatmul.mubr.msk.f32.vlgmr.msra.gmra.mrb[114].mxu0 %vm6240_vm11, %v9730_v44  ;;  %v9602_v46 = vpop.permute.xlu0 %9601  ;;  %v9676_v25 = vpop.permute.xlu1 %9675 }
 0x5f2   : > { %9677 = vrot.lane.b32.xlu1 %v9651_v24, %s23666_s19  ;;  %9605 = vrot.lane.b32.xlu0 %v9579_v39, %s23665_s2  ;;  %v9715_v53 = vsel %vm5019_vm8, %v22170_v32, %v9602_v46  ;;  %v9732_v50 = vsel %vm6163_vm10, %v9716_v11, %v9676_v25  ;;  %v9654_v32 = vsel %vm1441_vm4, %v9652_v3, %v9653_v33 }
 0x5f3   : > { %15997 = vmatpush3.bf16.msra.mxu0 %v22022_v4 }
 0x5f4   : > { %15999 = vmatprep.subr.bf16.mxu0 %v22132_v9 }
 0x5f5   : > { %v9674_v18 = vpop.permute.xlu0 %9673 }
 0x5f6   : > { %v9731_v16 = vsel %vm6163_vm10, %v9715_v53, %v9674_v18  ;;  %9683 = vrot.lane.b32.xlu1 %v9653_v33, %s23666_s19  ;;  %9609 = vrot.lane.b32.xlu0 %v9582_v35, %s23665_s2 }
 0x5f7   : > { %14923 = vmatprep.mubr.msk.f32.mxu1 %vm6240_vm11, %v9731_v16  ;;  %16001 = vmatpush3.bf16.msra.mxu0 %v22132_v9 }
 0x5f8   : > { %14924 = vmatmul.mubr.msk.f32.vlgmr.msra.gmra.mrb[114].mxu1 %vm6240_vm11, %v9732_v50  ;;  %16003 = vmatprep.subr.bf16.mxu0 %v22157_v29 }
 0x5f9   : > { %16021 = vmatpush3.bf16.msra.mxu1 %v22022_v4 }
 0x5fa   : > { %9681 = vrot.lane.b32.xlu0 %v9654_v32, %s23666_s19  ;;  %16023 = vmatprep.subr.bf16.mxu1 %v22132_v9 }
 0x5fb   : > { %16005 = vmatpush3.bf16.msra.mxu0 %v22157_v29 }
 0x5fc   : > { %16007 = vmatprep.subr.bf16.mxu0 %v22177_v61 }
 0x5fd   : > { %16025 = vmatpush3.bf16.msra.mxu1 %v22132_v9 }
 0x5fe   : > { %16027 = vmatprep.subr.bf16.mxu1 %v22157_v29 }
 0x5ff   : > { %16009 = vmatpush3.bf16.msra.mxu0 %v22177_v61 }
 0x600   : > { %16011 = vmatprep.subr.bf16.mxu0 %v22198_v60 }
 0x601   : > { %16029 = vmatpush3.bf16.msra.mxu1 %v22157_v29 }
 0x602   : > { %16031 = vmatprep.subr.bf16.mxu1 %v22177_v61 }
 0x603   : > { %16013 = vmatpush3.bf16.msra.mxu0 %v22198_v60 }
 0x604   : > { %16015 = vmatprep.subr.bf16.mxu0 %v22218_v28 }
 0x605   : > { %16033 = vmatpush3.bf16.msra.mxu1 %v22177_v61 }
 0x606   : > { %16035 = vmatprep.subr.bf16.mxu1 %v22198_v60 }
 0x607   : > { %16017 = vmatpush3.bf16.msra.mxu0 %v22218_v28 }
 0x608   : > { %16043 = vmatprep.subr.bf16.mxu0 %v22022_v4 }
 0x609   : > { %16037 = vmatpush3.bf16.msra.mxu1 %v22198_v60 }
 0x60a   : > { %16039 = vmatprep.subr.bf16.mxu1 %v22218_v28 }
 0x60d   : > { %16041 = vmatpush3.bf16.msra.mxu1 %v22218_v28 }
 0x60e   : > { %16067 = vmatprep.subr.bf16.mxu1 %v22022_v4 }
 0x642   : > { %v14784_v51 = vpop.f32.mrb[108].mxu0 }
 0x643   : > { %v9264_v54 = vrot.slane %v14784_v51, 1  ;;  %v9384_v30 = vrot.slane %v14784_v51, 2  ;;  %v9073_v8 = vpop.f32.mrb[109].mxu0 }
 0x644   : > { %v9263_v41 = vrot.slane %v9073_v8, 1  ;;  %v9383_v57 = vrot.slane %v9073_v8, 2 }
 0x646   : > { %v9265_v47 = vsel %vm808_vm3, %v9263_v41, %v9264_v54  ;;  %v9385_v27 = vsel %vm1441_vm4, %v9383_v57, %v9384_v30  ;;  %v14814_v40 = vpop.f32.mrb[108].mxu1 }
 0x647   : > { %v9333_v38 = vmax.f32 %v9073_v8, %v9265_v47  ;;  %v9271_v2 = vrot.slane %v14814_v40, 1  ;;  %v9391_v14 = vrot.slane %v14814_v40, 2  ;;  %v9170_v20 = vpop.f32.mrb[109].mxu1 }
 0x648   : > { %v9270_v19 = vrot.slane %v9170_v20, 1  ;;  %v9390_v22 = vrot.slane %v9170_v20, 2 }
 0x649   : > { %v9453_v23 = vmax.f32 %v9333_v38, %v9385_v27 }
 0x64a   : > { %v9272_v42 = vsel %vm808_vm3, %v9270_v19, %v9271_v2  ;;  %v9392_v36 = vsel %vm1441_vm4, %v9390_v22, %v9391_v14 }
 0x64b   : > { %9486 = vst.msk [vmem:[#allocation2 + $0x300] sm:$0xff] %vm5019_vm8, %v9453_v23  ;;  %v9337_v49 = vmax.f32 %v9170_v20, %v9272_v42 }
 0x64d   : > { %v9457_v62 = vmax.f32 %v9337_v49, %v9392_v36 }
 0x64f   : > { %9490 = vst.msk [vmem:[#allocation2 + $0x380] sm:$0xff] %vm5019_vm8, %v9457_v62 }
 0x653   : > { %v14787_v12 = vpop.f32.mrb[110].mxu0 }
 0x654   : > { %v9268_v10 = vrot.slane %v14787_v12, 1  ;;  %v9388_v48 = vrot.slane %v14787_v12, 2  ;;  %v9083_v58 = vpop.f32.mrb[111].mxu0 }
 0x655   : > { %v9266_v7 = vrot.slane %v9083_v58, 1  ;;  %v9386_v37 = vrot.slane %v9083_v58, 2 }
 0x656   : > { %v9336_v63 = vmax.f32 %v14787_v12, %v9268_v10  ;;  %v14817_v17 = vpop.f32.mrb[110].mxu1 }
 0x657   : > { %v9267_v45 = vsel %vm808_vm3, %v9264_v54, %v9266_v7  ;;  %v9269_v5 = vsel %vm808_vm3, %v9266_v7, %v9268_v10  ;;  %v9387_v56 = vsel %vm1441_vm4, %v9384_v30, %v9386_v37  ;;  %v9389_v52 = vsel %vm1441_vm4, %v9386_v37, %v9388_v48  ;;  %v9180_v1 = vpop.f32.mrb[111].mxu1 }
 0x658   : > { %v9456_v13 = vmax.f32 %v9336_v63, %v9388_v48  ;;  %v9334_v15 = vmax.f32 %v14784_v51, %v9267_v45  ;;  %v9335_v31 = vmax.f32 %v9083_v58, %v9269_v5  ;;  %v9275_v6 = vrot.slane %v14817_v17, 1 }
 0x659   : > { %v9395_v26 = vrot.slane %v14817_v17, 2  ;;  %v9273_v44 = vrot.slane %v9180_v1, 1  ;;  %v9393_v46 = vrot.slane %v9180_v1, 2 }
 0x65a   : > { %9489 = vst.msk [vmem:[#allocation2 + $0x318] sm:$0x1] %vm9464_vm13, %v9456_v13  ;;  %v9454_v24 = vmax.f32 %v9334_v15, %v9387_v56  ;;  %v9455_v39 = vmax.f32 %v9335_v31, %v9389_v52  ;;  %v9340_v0 = vmax.f32 %v14817_v17, %v9275_v6  ;;  %v16719_v13 = vmov 0.0|0.0  }
 0x65b   : > { %v9274_v25 = vsel %vm808_vm3, %v9271_v2, %v9273_v44  ;;  %v9276_v33 = vsel %vm808_vm3, %v9273_v44, %v9275_v6  ;;  %v9394_v53 = vsel %vm1441_vm4, %v9391_v14, %v9393_v46  ;;  %v9396_v18 = vsel %vm1441_vm4, %v9393_v46, %v9395_v26 }
 0x65c   : > { %v9608_v35 = vpop.permute.xlu1 %9607  ;;  %9487 = vst.msk [vmem:[#allocation2 + $0x308] sm:$0xff] %vm5019_vm8, %v9454_v24  ;;  %9488 = vst.msk [vmem:[#allocation2 + $0x310] sm:$0xff] %vm5019_vm8, %v9455_v39  ;;  %v9460_v3 = vmax.f32 %v9340_v0, %v9395_v26  ;;  %v9338_v11 = vmax.f32 %v14814_v40, %v9274_v25  ;;  %v9339_v16 = vmax.f32 %v9180_v1, %v9276_v33 }
 0x65d   : > { %v9718_v40 = vsel %vm5019_vm8, %v22304_v59, %v9608_v35 }
 0x65e   : > { %9493 = vst.msk [vmem:[#allocation2 + $0x398] sm:$0x1] %vm9464_vm13, %v9460_v3  ;;  %v9458_v50 = vmax.f32 %v9338_v11, %v9394_v53  ;;  %v9459_v32 = vmax.f32 %v9339_v16, %v9396_v18 }
 0x660   : > { %v9680_v51 = vpop.permute.xlu1 %9679  ;;  %v9612_v54 = vpop.permute.xlu0 %9611  ;;  %9491 = vst.msk [vmem:[#allocation2 + $0x388] sm:$0xff] %vm5019_vm8, %v9458_v50  ;;  %9492 = vst.msk [vmem:[#allocation2 + $0x390] sm:$0xff] %vm5019_vm8, %v9459_v32 }
 0x661   : > { %v9734_v14 = vsel %vm6163_vm10, %v9718_v40, %v9680_v51  ;;  %v9720_v48 = vsel %vm5019_vm8, %v22312_v55, %v9612_v54  ;;  %v22476_v51 = vld [vmem:[%s23595_s8] ss:$0 sm:$0xff] }
 0x663   : > { %v9507_v41 = vld [vmem:[#allocation2 + $0x310] ss:$2 sm:$0x1f]  ;;  %v9506_v57 = vld [vmem:[#allocation2 + $0x300] ss:$2 sm:$0xff] }
 0x664   : > { %v9678_v30 = vpop.permute.xlu1 %9677  ;;  %v9606_v8 = vpop.permute.xlu0 %9605  ;;  %v9530_v27 = vadd.f32 %v22060_v34, %v9507_v41  ;;  %v9529_v2 = vadd.f32 %v22060_v34, %v9506_v57 }
 0x665   : > { %v9717_v47 = vsel %vm5019_vm8, %v22308_v21, %v9606_v8 }
 0x666   : > { %v9733_v38 = vsel %vm6163_vm10, %v9717_v47, %v9678_v30  ;;  %v22403_v20 = vmax.f32 %v9530_v27, 0.0  ;;  %v22409_v42 = vmax.f32 %v9529_v2, 0.0 }
 0x667   : > { %14950 = vmatprep.mubr.msk.f32.mxu0 %vm6240_vm11, %v9733_v38  ;;  %v9509_v22 = vld [vmem:[#allocation2 + $0x390] ss:$2 sm:$0x1f]  ;;  %v9508_v21 = vld [vmem:[#allocation2 + $0x380] ss:$2 sm:$0xff] }
 0x668   : > { %14951 = vmatmul.mubr.msk.f32.vlgmr.msra.gmra.mrb[116].mxu0 %vm6240_vm11, %v9734_v14  ;;  %v9610_v19 = vpop.permute.xlu0 %9609  ;;  %v9584_v23 = vrot.slane %v22403_v20, 1  ;;  %v9532_v59 = vadd.f32 %v22060_v34, %v9509_v22  ;;  %v9684_v36 = vpop.permute.xlu1 %9683  ;;  %v9531_v49 = vadd.f32 %v22060_v34, %v9508_v21  ;;  %v9656_v7 = vrot.slane %v22403_v20, 2 }
 0x669   : > { %16045 = vmatpush3.bf16.msra.mxu0 %v22022_v4  ;;  %v9719_v62 = vsel %vm5019_vm8, %v22318_v43, %v9610_v19  ;;  %v9736_v37 = vsel %vm6163_vm10, %v9720_v48, %v9684_v36  ;;  %v9655_v34 = vrot.slane %v22409_v42, 2  ;;  %v9583_v55 = vrot.slane %v22409_v42, 1 }
 0x66a   : > { %16047 = vmatprep.subr.bf16.mxu0 %v22132_v9  ;;  %9615 = vrot.lane.b32.xlu1 %v9584_v23, %s23665_s2  ;;  %v22416_v10 = vmax.f32 %v9532_v59, 0.0  ;;  %v22431_v43 = vmax.f32 %v9531_v49, 0.0 }
 0x66b   : > { %v9657_v45 = vsel %vm1441_vm4, %v9655_v34, %v9656_v7  ;;  %v9585_v5 = vsel %vm808_vm3, %v9583_v55, %v9584_v23 }
 0x66c   : > { %v9682_v12 = vpop.permute.xlu0 %9681  ;;  %v9587_v63 = vrot.slane %v22416_v10, 1  ;;  %v9586_v56 = vrot.slane %v22431_v43, 1  ;;  %v9658_v17 = vrot.slane %v22431_v43, 2 }
 0x66d   : > { %v9735_v58 = vsel %vm6163_vm10, %v9719_v62, %v9682_v12  ;;  %16049 = vmatpush3.bf16.msra.mxu0 %v22132_v9 }
 0x66e   : > { %14977 = vmatprep.mubr.msk.f32.mxu1 %vm6240_vm11, %v9735_v58  ;;  %16051 = vmatprep.subr.bf16.mxu0 %v22157_v29  ;;  %v9588_v52 = vsel %vm808_vm3, %v9586_v56, %v9587_v63 }
 0x66f   : > { %9687 = vrot.lane.b32.xlu1 %v9656_v7, %s23666_s19  ;;  %14978 = vmatmul.mubr.msk.f32.vlgmr.msra.gmra.mrb[116].mxu1 %vm6240_vm11, %v9736_v37 }
 0x670   : > { %9619 = vrot.lane.b32.xlu0 %v9587_v63, %s23665_s2  ;;  %16069 = vmatpush3.bf16.msra.mxu1 %v22022_v4  ;;  %v9659_v4 = vrot.slane %v22416_v10, 2 }
 0x671   : > { %16053 = vmatpush3.bf16.msra.mxu0 %v22157_v29  ;;  %16071 = vmatprep.subr.bf16.mxu1 %v22132_v9 }
 0x672   : > { %16055 = vmatprep.subr.bf16.mxu0 %v22177_v61 }
 0x673   : > { %9685 = vrot.lane.b32.xlu1 %v9657_v45, %s23666_s19 }
 0x674   : > { %9613 = vrot.lane.b32.xlu0 %v9585_v5, %s23665_s2  ;;  %16073 = vmatpush3.bf16.msra.mxu1 %v22132_v9  ;;  %v9660_v9 = vsel %vm1441_vm4, %v9658_v17, %v9659_v4 }
 0x675   : > { %16057 = vmatpush3.bf16.msra.mxu0 %v22177_v61  ;;  %16075 = vmatprep.subr.bf16.mxu1 %v22157_v29 }
 0x676   : > { %16059 = vmatprep.subr.bf16.mxu0 %v22198_v60 }
 0x677   : > { %9691 = vrot.lane.b32.xlu1 %v9659_v4, %s23666_s19 }
 0x678   : > { %9617 = vrot.lane.b32.xlu0 %v9588_v52, %s23665_s2  ;;  %16077 = vmatpush3.bf16.msra.mxu1 %v22157_v29 }
 0x679   : > { %16061 = vmatpush3.bf16.msra.mxu0 %v22198_v60  ;;  %16079 = vmatprep.subr.bf16.mxu1 %v22177_v61 }
 0x67a   : > { %16063 = vmatprep.subr.bf16.mxu0 %v22218_v28 }
 0x67c   : > { %9689 = vrot.lane.b32.xlu0 %v9660_v9, %s23666_s19  ;;  %16081 = vmatpush3.bf16.msra.mxu1 %v22177_v61 }
 0x67d   : > { %16065 = vmatpush3.bf16.msra.mxu0 %v22218_v28  ;;  %16083 = vmatprep.subr.bf16.mxu1 %v22198_v60 }
 0x67e   : > { %16090 = vmatprep.subr.bf16.mxu0 %v16719_v13 }
 0x680   : > { %16085 = vmatpush3.bf16.msra.mxu1 %v22198_v60 }
 0x681   : > { %16087 = vmatprep.subr.bf16.mxu1 %v22218_v28 }
 0x684   : > { %16089 = vmatpush3.bf16.msra.mxu1 %v22218_v28  ;;  %v14844_v29 = vpop.f32.mrb[112].mxu0 }
 0x685   : > { %16108 = vmatprep.subr.bf16.mxu1 %v16719_v13  ;;  %v10418_v15 = vrot.slane %v14844_v29, 1  ;;  %v10474_v31 = vrot.slane %v14844_v29, 2  ;;  %v9825_v6 = vpop.f32.mrb[113].mxu0 }
 0x686   : > { %v10417_v61 = vrot.slane %v9825_v6, 1  ;;  %v10473_v1 = vrot.slane %v9825_v6, 2 }
 0x687   : > { %v10458_v26 = vmax.f32 %v14844_v29, %v10418_v15 }
 0x688   : > { %v10419_v44 = vsel %vm808_vm3, %v10417_v61, %v10418_v15  ;;  %v10475_v46 = vsel %vm1441_vm4, %v10473_v1, %v10474_v31 }
 0x689   : > { %v10514_v24 = vmax.f32 %v10458_v26, %v10474_v31  ;;  %v10457_v39 = vmax.f32 %v9825_v6, %v10419_v44 }
 0x68b   : > { %10530 = vst.msk [vmem:[#allocation2 + $0x8] sm:$0x1] %vm9464_vm13, %v10514_v24  ;;  %v10513_v60 = vmax.f32 %v10457_v39, %v10475_v46  ;;  %v14871_v0 = vpop.f32.mrb[112].mxu1 }
 0x68c   : > { %v10421_v28 = vrot.slane %v14871_v0, 1  ;;  %v10477_v25 = vrot.slane %v14871_v0, 2  ;;  %v9906_v33 = vpop.f32.mrb[113].mxu1 }
 0x68d   : > { %10529 = vst.msk [vmem:[#allocation2] sm:$0xff] %vm5019_vm8, %v10513_v60  ;;  %v10420_v53 = vrot.slane %v9906_v33, 1  ;;  %v10476_v18 = vrot.slane %v9906_v33, 2 }
 0x68e   : > { %v10460_v35 = vmax.f32 %v14871_v0, %v10421_v28 }
 0x68f   : > { %v10422_v3 = vsel %vm808_vm3, %v10420_v53, %v10421_v28  ;;  %v10478_v11 = vsel %vm1441_vm4, %v10476_v18, %v10477_v25  ;;  %v10664_v28 = vld [vmem:[%s23596_s9] sm:$0xff] }
 0x690   : > { %v10516_v16 = vmax.f32 %v10460_v35, %v10477_v25  ;;  %v10459_v50 = vmax.f32 %v9906_v33, %v10422_v3  ;;  %v10665_v25 = vld [vmem:[%s23596_s9 + $0x8] sm:$0xff] }
 0x691   : > { %v22523_v35 = vpack.c.bf16 %v10665_v25, %v10664_v28 }
 0x692   : > { %10532 = vst.msk [vmem:[#allocation2 + $0x88] sm:$0x1] %vm9464_vm13, %v10516_v16  ;;  %v10515_v32 = vmax.f32 %v10459_v50, %v10478_v11  ;;  %v10666_v16 = vld [vmem:[%s23596_s9 + $0x10] sm:$0xff]  ;;  %v10667_v50 = vld [vmem:[%s23596_s9 + $0x18] sm:$0xff] }
 0x694   : > { %10531 = vst.msk [vmem:[#allocation2 + $0x80] sm:$0xff] %vm5019_vm8, %v10515_v32  ;;  %v10545_v54 = vld [vmem:[#allocation2] ss:$2 sm:$0x1f] }
 0x695   : > { %v10560_v30 = vadd.f32 %v22476_v51, %v10545_v54  ;;  %v16721_v54 = vmov 0.0  }
 0x697   : > { %v22480_v8 = vmax.f32 %v10560_v30, 0.0  ;;  %v10668_v30 = vld [vmem:[%s23596_s9 + $0x20] sm:$0xff] }
 0x699   : > { %v10584_v41 = vrot.slane %v22480_v8, 1  ;;  %v10616_v27 = vrot.slane %v22480_v8, 2 }
 0x69b   : > { %10592 = vrot.lane.b32.xlu0 %v10584_v41, %s23665_s2  ;;  %v10546_v57 = vld [vmem:[#allocation2 + $0x80] ss:$2 sm:$0x1f] }
 0x69c   : > { %v10561_v47 = vadd.f32 %v22476_v51, %v10546_v57  ;;  %v10669_v41 = vld [vmem:[%s23596_s9 + $0x28] sm:$0xff] }
 0x69e   : > { %v22486_v40 = vmax.f32 %v10561_v47, 0.0 }
 0x69f   : > { %10624 = vrot.lane.b32.xlu0 %v10616_v27, %s23666_s19 }
 0x6a0   : > { %v10585_v38 = vrot.slane %v22486_v40, 1  ;;  %v10617_v2 = vrot.slane %v22486_v40, 2 }
 0x6a2   : > { %10594 = vrot.lane.b32.xlu1 %v10585_v38, %s23665_s2 }
 0x6a6   : > { %10626 = vrot.lane.b32.xlu1 %v10617_v2, %s23666_s19 }
 0x6c4   : > { %v14898_v14 = vpop.f32.mrb[114].mxu0 }
 0x6c5   : > { %v10424_v19 = vrot.slane %v14898_v14, 1  ;;  %v10480_v22 = vrot.slane %v14898_v14, 2  ;;  %v9987_v21 = vpop.f32.mrb[115].mxu0 }
 0x6c6   : > { %v10423_v23 = vrot.slane %v9987_v21, 1  ;;  %v10479_v59 = vrot.slane %v9987_v21, 2 }
 0x6c7   : > { %v10462_v36 = vmax.f32 %v14898_v14, %v10424_v19  ;;  %v22555_v14 = vpack.c.bf16 %v10669_v41, %v10668_v30 }
 0x6c8   : > { %v10425_v49 = vsel %vm808_vm3, %v10423_v23, %v10424_v19  ;;  %v10481_v62 = vsel %vm1441_vm4, %v10479_v59, %v10480_v22  ;;  %v10673_v23 = vld [vmem:[%s23596_s9 + $0x48] sm:$0xff] }
 0x6c9   : > { %v10518_v12 = vmax.f32 %v10462_v36, %v10480_v22  ;;  %v10461_v48 = vmax.f32 %v9987_v21, %v10425_v49  ;;  %v10672_v21 = vld [vmem:[%s23596_s9 + $0x40] sm:$0xff]  ;;  %v10674_v36 = vld [vmem:[%s23596_s9 + $0x50] sm:$0xff]  ;;  %v10675_v49 = vld [vmem:[%s23596_s9 + $0x58] sm:$0xff] }
 0x6ca   : > { %v22584_v59 = vpack.c.bf16 %v10673_v23, %v10672_v21 }
 0x6cb   : > { %10534 = vst.msk [vmem:[#allocation2 + $0x108] sm:$0x1] %vm9464_vm13, %v10518_v12  ;;  %v10517_v58 = vmax.f32 %v10461_v48, %v10481_v62  ;;  %v14925_v7 = vpop.f32.mrb[114].mxu1  ;;  %v22596_v62 = vpack.c.bf16 %v10675_v49, %v10674_v36 }
 0x6cc   : > { %v10427_v37 = vrot.slane %v14925_v7, 1  ;;  %v10483_v63 = vrot.slane %v14925_v7, 2  ;;  %v10068_v34 = vpop.f32.mrb[115].mxu1 }
 0x6cd   : > { %10533 = vst.msk [vmem:[#allocation2 + $0x100] sm:$0xff] %vm5019_vm8, %v10517_v58  ;;  %v10426_v55 = vrot.slane %v10068_v34, 1  ;;  %v10482_v45 = vrot.slane %v10068_v34, 2 }
 0x6ce   : > { %v10464_v5 = vmax.f32 %v14925_v7, %v10427_v37 }
 0x6cf   : > { %v10428_v56 = vsel %vm808_vm3, %v10426_v55, %v10427_v37  ;;  %v10484_v4 = vsel %vm1441_vm4, %v10482_v45, %v10483_v63 }
 0x6d0   : > { %v10520_v52 = vmax.f32 %v10464_v5, %v10483_v63  ;;  %v10463_v17 = vmax.f32 %v10068_v34, %v10428_v56 }
 0x6d2   : > { %10536 = vst.msk [vmem:[#allocation2 + $0x188] sm:$0x1] %vm9464_vm13, %v10520_v52  ;;  %v10519_v9 = vmax.f32 %v10463_v17, %v10484_v4 }
 0x6d4   : > { %10535 = vst.msk [vmem:[#allocation2 + $0x180] sm:$0xff] %vm5019_vm8, %v10519_v9  ;;  %v10547_v29 = vld [vmem:[#allocation2 + $0x100] ss:$2 sm:$0x1f] }
 0x6d5   : > { %v10562_v15 = vadd.f32 %v22476_v51, %v10547_v29 }
 0x6d7   : > { %v22502_v31 = vmax.f32 %v10562_v15, 0.0 }
 0x6d9   : > { %v10586_v6 = vrot.slane %v22502_v31, 1  ;;  %v10618_v44 = vrot.slane %v22502_v31, 2 }
 0x6db   : > { %10596 = vrot.lane.b32.xlu0 %v10586_v6, %s23665_s2  ;;  %v10548_v61 = vld [vmem:[#allocation2 + $0x180] ss:$2 sm:$0x1f] }
 0x6dc   : > { %v10563_v1 = vadd.f32 %v22476_v51, %v10548_v61  ;;  %v9616_v26 = vpop.permute.xlu1 %9615 }
 0x6dd   : > { %v9722_v3 = vsel %vm5019_vm8, %v22403_v20, %v9616_v26  ;;  %v22538_v20 = vpack.c.bf16 %v10667_v50, %v10666_v16 }
 0x6de   : > { %v22508_v46 = vmax.f32 %v10563_v1, 0.0 }
 0x6df   : > { %10628 = vrot.lane.b32.xlu0 %v10618_v44, %s23666_s19 }
 0x6e0   : > { %v10587_v24 = vrot.slane %v22508_v46, 1  ;;  %v10619_v0 = vrot.slane %v22508_v46, 2 }
 0x6e1   : > { %v9688_v39 = vpop.permute.xlu1 %9687 }
 0x6e2   : > { %v9620_v60 = vpop.permute.xlu0 %9619  ;;  %10598 = vrot.lane.b32.xlu1 %v10587_v24, %s23665_s2  ;;  %v9738_v32 = vsel %vm6163_vm10, %v9722_v3, %v9688_v39 }
 0x6e3   : > { %v9724_v38 = vsel %vm5019_vm8, %v22416_v10, %v9620_v60  ;;  %v10671_v10 = vld [vmem:[%s23596_s9 + $0x38] sm:$0xff] }
 0x6e5   : > { %v9686_v33 = vpop.permute.xlu1 %9685 }
 0x6e6   : > { %v9614_v53 = vpop.permute.xlu0 %9613  ;;  %10630 = vrot.lane.b32.xlu1 %v10619_v0, %s23666_s19 }
 0x6e7   : > { %v9721_v18 = vsel %vm5019_vm8, %v22409_v42, %v9614_v53 }
 0x6e8   : > { %v9737_v11 = vsel %vm6163_vm10, %v9721_v18, %v9686_v33 }
 0x6e9   : > { %15004 = vmatprep.mubr.msk.f32.mxu0 %vm6240_vm11, %v9737_v11  ;;  %v9692_v57 = vpop.permute.xlu1 %9691 }
 0x6ea   : > { %15005 = vmatmul.mubr.msk.f32.vlgmr.msra.gmra.mrb[118].mxu0 %vm6240_vm11, %v9738_v32  ;;  %v9618_v42 = vpop.permute.xlu0 %9617  ;;  %v9740_v19 = vsel %vm6163_vm10, %v9724_v38, %v9692_v57 }
 0x6eb   : > { %16092 = vmatpush3.bf16.msra.mxu0 %v22523_v35  ;;  %15058 = vmatprep.mubr.msk.f32.mxu0 %vm16720_vm14, %v16721_v54  ;;  %v9723_v47 = vsel %vm5019_vm8, %v22431_v43, %v9618_v42  ;;  %v10670_v43 = vld [vmem:[%s23596_s9 + $0x30] sm:$0xff] }
 0x6ec   : > { %16093 = vmatprep.subr.bf16.mxu0 %v16719_v13  ;;  %v22572_v22 = vpack.c.bf16 %v10671_v10, %v10670_v43 }
 0x6ee   : > { %v9690_v27 = vpop.permute.xlu0 %9689 }
 0x6ef   : > { %v9739_v2 = vsel %vm6163_vm10, %v9723_v47, %v9690_v27  ;;  %16095 = vmatpush3.bf16.msra.mxu0 %v22538_v20 }
 0x6f0   : > { %15031 = vmatprep.mubr.msk.f32.mxu1 %vm6240_vm11, %v9739_v2  ;;  %16096 = vmatprep.subr.bf16.mxu0 %v16719_v13 }
 0x6f1   : > { %15032 = vmatmul.mubr.msk.f32.vlgmr.msra.gmra.mrb[118].mxu1 %vm6240_vm11, %v9740_v19 }
 0x6f2   : > { %16110 = vmatpush3.bf16.msra.mxu1 %v22523_v35  ;;  %15085 = vmatprep.mubr.msk.f32.mxu1 %vm16720_vm14, %v16721_v54 }
 0x6f3   : > { %16098 = vmatpush3.bf16.msra.mxu0 %v22555_v14  ;;  %16111 = vmatprep.subr.bf16.mxu1 %v16719_v13 }
 0x6f4   : > { %16099 = vmatprep.subr.bf16.mxu0 %v16719_v13 }
 0x6f6   : > { %16113 = vmatpush3.bf16.msra.mxu1 %v22538_v20 }
 0x6f7   : > { %16101 = vmatpush3.bf16.msra.mxu0 %v22572_v22  ;;  %16114 = vmatprep.subr.bf16.mxu1 %v16719_v13 }
 0x6f8   : > { %16102 = vmatprep.subr.bf16.mxu0 %v16719_v13 }
 0x6fa   : > { %16116 = vmatpush3.bf16.msra.mxu1 %v22555_v14 }
 0x6fb   : > { %16104 = vmatpush3.bf16.msra.mxu0 %v22584_v59  ;;  %16117 = vmatprep.subr.bf16.mxu1 %v16719_v13 }
 0x6fc   : > { %16105 = vmatprep.subr.bf16.mxu0 %v16719_v13 }
 0x6fe   : > { %16119 = vmatpush3.bf16.msra.mxu1 %v22572_v22 }
 0x6ff   : > { %16107 = vmatpush3.bf16.msra.mxu0 %v22596_v62  ;;  %16120 = vmatprep.subr.bf16.mxu1 %v16719_v13 }
 0x700   : > { %16126 = vmatprep.subr.bf16.mxu0 %v16719_v13 }
 0x702   : > { %16122 = vmatpush3.bf16.msra.mxu1 %v22584_v59 }
 0x703   : > { %16123 = vmatprep.subr.bf16.mxu1 %v16719_v13 }
 0x706   : > { %16125 = vmatpush3.bf16.msra.mxu1 %v22596_v62 }
 0x707   : > { %16144 = vmatprep.subr.bf16.mxu1 %v16719_v13 }
 0x70d   : > { %v10593_v12 = vpop.permute.xlu0 %10592 }
 0x70e   : > { %v10648_v48 = vsel %vm5019_vm8, %v22480_v8, %v10593_v12 }
 0x711   : > { %v10625_v58 = vpop.permute.xlu0 %10624 }
 0x712   : > { %v10656_v7 = vsel %vm6163_vm10, %v10648_v48, %v10625_v58 }
 0x713   : > { %15059 = vmatmul.mubr.msk.f32.vlgmr.msra.gmra.mrb[120].mxu0 %vm6240_vm11, %v10656_v7 }
 0x714   : > { %v10595_v37 = vpop.permute.xlu1 %10594  ;;  %16128 = vmatpush3.bf16.msra.mxu0 %v22523_v35  ;;  %15112 = vmatprep.mubr.msk.f32.mxu0 %vm16720_vm14, %v16721_v54 }
 0x715   : > { %16129 = vmatprep.subr.bf16.mxu0 %v16719_v13  ;;  %v10649_v63 = vsel %vm5019_vm8, %v22486_v40, %v10595_v37 }
 0x718   : > { %v10627_v34 = vpop.permute.xlu1 %10626  ;;  %16131 = vmatpush3.bf16.msra.mxu0 %v22538_v20 }
 0x719   : > { %v10657_v8 = vsel %vm6163_vm10, %v10649_v63, %v10627_v34  ;;  %16132 = vmatprep.subr.bf16.mxu0 %v16719_v13 }
 0x71a   : > { %15086 = vmatmul.mubr.msk.f32.vlgmr.msra.gmra.mrb[120].mxu1 %vm6240_vm11, %v10657_v8 }
 0x71b   : > { %16146 = vmatpush3.bf16.msra.mxu1 %v22523_v35  ;;  %15139 = vmatprep.mubr.msk.f32.mxu1 %vm16720_vm14, %v16721_v54 }
 0x71c   : > { %16134 = vmatpush3.bf16.msra.mxu0 %v22555_v14  ;;  %16147 = vmatprep.subr.bf16.mxu1 %v16719_v13 }
 0x71d   : > { %16135 = vmatprep.subr.bf16.mxu0 %v16719_v13 }
 0x71f   : > { %16149 = vmatpush3.bf16.msra.mxu1 %v22538_v20 }
 0x720   : > { %16137 = vmatpush3.bf16.msra.mxu0 %v22572_v22  ;;  %16150 = vmatprep.subr.bf16.mxu1 %v16719_v13 }
 0x721   : > { %16138 = vmatprep.subr.bf16.mxu0 %v16719_v13 }
 0x723   : > { %16152 = vmatpush3.bf16.msra.mxu1 %v22555_v14 }
 0x724   : > { %16140 = vmatpush3.bf16.msra.mxu0 %v22584_v59  ;;  %16153 = vmatprep.subr.bf16.mxu1 %v16719_v13 }
 0x725   : > { %16141 = vmatprep.subr.bf16.mxu0 %v16719_v13 }
 0x727   : > { %16155 = vmatpush3.bf16.msra.mxu1 %v22572_v22 }
 0x728   : > { %16143 = vmatpush3.bf16.msra.mxu0 %v22596_v62  ;;  %16156 = vmatprep.subr.bf16.mxu1 %v16719_v13 }
 0x729   : > { %16162 = vmatprep.subr.bf16.mxu0 %v16719_v13 }
 0x72b   : > { %16158 = vmatpush3.bf16.msra.mxu1 %v22584_v59 }
 0x72c   : > { %16159 = vmatprep.subr.bf16.mxu1 %v16719_v13 }
 0x72f   : > { %16161 = vmatpush3.bf16.msra.mxu1 %v22596_v62 }
 0x730   : > { %16180 = vmatprep.subr.bf16.mxu1 %v16719_v13 }
 0x73b   : > { %v14952_v40 = vpop.f32.mrb[116].mxu0 }
 0x73c   : > { %v10430_v55 = vrot.slane %v14952_v40, 1  ;;  %v10486_v45 = vrot.slane %v14952_v40, 2  ;;  %v10149_v5 = vpop.f32.mrb[117].mxu0 }
 0x73d   : > { %v10429_v56 = vrot.slane %v10149_v5, 1  ;;  %v10485_v4 = vrot.slane %v10149_v5, 2 }
 0x73e   : > { %v10466_v52 = vmax.f32 %v14952_v40, %v10430_v55 }
 0x73f   : > { %v10431_v17 = vsel %vm808_vm3, %v10429_v56, %v10430_v55  ;;  %v10487_v9 = vsel %vm1441_vm4, %v10485_v4, %v10486_v45 }
 0x740   : > { %v10522_v29 = vmax.f32 %v10466_v52, %v10486_v45  ;;  %v10465_v15 = vmax.f32 %v10149_v5, %v10431_v17 }
 0x742   : > { %10538 = vst.msk [vmem:[#allocation2 + $0x208] sm:$0x1] %vm9464_vm13, %v10522_v29  ;;  %v10521_v6 = vmax.f32 %v10465_v15, %v10487_v9  ;;  %v14979_v61 = vpop.f32.mrb[116].mxu1 }
 0x743   : > { %v10433_v1 = vrot.slane %v14979_v61, 1  ;;  %v10489_v26 = vrot.slane %v14979_v61, 2  ;;  %v10230_v44 = vpop.f32.mrb[117].mxu1 }
 0x744   : > { %10537 = vst.msk [vmem:[#allocation2 + $0x200] sm:$0xff] %vm5019_vm8, %v10521_v6  ;;  %v10432_v24 = vrot.slane %v10230_v44, 1  ;;  %v10488_v39 = vrot.slane %v10230_v44, 2 }
 0x745   : > { %v10468_v60 = vmax.f32 %v14979_v61, %v10433_v1 }
 0x746   : > { %v10434_v0 = vsel %vm808_vm3, %v10432_v24, %v10433_v1  ;;  %v10490_v28 = vsel %vm1441_vm4, %v10488_v39, %v10489_v26 }
 0x747   : > { %v10524_v25 = vmax.f32 %v10468_v60, %v10489_v26  ;;  %v10467_v33 = vmax.f32 %v10230_v44, %v10434_v0 }
 0x749   : > { %10540 = vst.msk [vmem:[#allocation2 + $0x288] sm:$0x1] %vm9464_vm13, %v10524_v25  ;;  %v10523_v53 = vmax.f32 %v10467_v33, %v10490_v28 }
 0x74b   : > { %10539 = vst.msk [vmem:[#allocation2 + $0x280] sm:$0xff] %vm5019_vm8, %v10523_v53  ;;  %v10549_v18 = vld [vmem:[#allocation2 + $0x200] ss:$2 sm:$0x1f] }
 0x74c   : > { %v10564_v3 = vadd.f32 %v22476_v51, %v10549_v18 }
 0x74d   : > { %v10597_v11 = vpop.permute.xlu0 %10596 }
 0x74e   : > { %v22652_v16 = vmax.f32 %v10564_v3, 0.0  ;;  %v10650_v32 = vsel %vm5019_vm8, %v22502_v31, %v10597_v11 }
 0x750   : > { %v10588_v50 = vrot.slane %v22652_v16, 1  ;;  %v10620_v27 = vrot.slane %v22652_v16, 2 }
 0x751   : > { %v10629_v42 = vpop.permute.xlu0 %10628 }
 0x752   : > { %v10658_v30 = vsel %vm6163_vm10, %v10650_v32, %v10629_v42  ;;  %10600 = vrot.lane.b32.xlu0 %v10588_v50, %s23665_s2  ;;  %v10550_v41 = vld [vmem:[#allocation2 + $0x280] ss:$2 sm:$0x1f] }
 0x753   : > { %15113 = vmatmul.mubr.msk.f32.vlgmr.msra.gmra.mrb[122].mxu0 %vm6240_vm11, %v10658_v30  ;;  %v10565_v57 = vadd.f32 %v22476_v51, %v10550_v41 }
 0x754   : > { %v10599_v47 = vpop.permute.xlu1 %10598  ;;  %16164 = vmatpush3.bf16.msra.mxu0 %v22523_v35  ;;  %15166 = vmatprep.mubr.msk.f32.mxu0 %vm16720_vm14, %v16721_v54 }
 0x755   : > { %v22665_v38 = vmax.f32 %v10565_v57, 0.0  ;;  %16165 = vmatprep.subr.bf16.mxu0 %v16719_v13  ;;  %v10651_v2 = vsel %vm5019_vm8, %v22508_v46, %v10599_v47 }
 0x756   : > { %10632 = vrot.lane.b32.xlu0 %v10620_v27, %s23666_s19 }
 0x757   : > { %v10589_v31 = vrot.slane %v22665_v38, 1  ;;  %v10621_v10 = vrot.slane %v22665_v38, 2 }
 0x758   : > { %v10631_v19 = vpop.permute.xlu1 %10630  ;;  %16167 = vmatpush3.bf16.msra.mxu0 %v22538_v20 }
 0x759   : > { %v10659_v43 = vsel %vm6163_vm10, %v10651_v2, %v10631_v19  ;;  %10602 = vrot.lane.b32.xlu1 %v10589_v31, %s23665_s2  ;;  %16168 = vmatprep.subr.bf16.mxu0 %v16719_v13 }
 0x75a   : > { %15140 = vmatmul.mubr.msk.f32.vlgmr.msra.gmra.mrb[122].mxu1 %vm6240_vm11, %v10659_v43 }
 0x75b   : > { %16182 = vmatpush3.bf16.msra.mxu1 %v22523_v35  ;;  %15193 = vmatprep.mubr.msk.f32.mxu1 %vm16720_vm14, %v16721_v54 }
 0x75c   : > { %16170 = vmatpush3.bf16.msra.mxu0 %v22555_v14  ;;  %16183 = vmatprep.subr.bf16.mxu1 %v16719_v13 }
 0x75d   : > { %10634 = vrot.lane.b32.xlu1 %v10621_v10, %s23666_s19  ;;  %16171 = vmatprep.subr.bf16.mxu0 %v16719_v13 }
 0x75f   : > { %16185 = vmatpush3.bf16.msra.mxu1 %v22538_v20 }
 0x760   : > { %16173 = vmatpush3.bf16.msra.mxu0 %v22572_v22  ;;  %16186 = vmatprep.subr.bf16.mxu1 %v16719_v13 }
 0x761   : > { %16174 = vmatprep.subr.bf16.mxu0 %v16719_v13 }
 0x763   : > { %16188 = vmatpush3.bf16.msra.mxu1 %v22555_v14 }
 0x764   : > { %16176 = vmatpush3.bf16.msra.mxu0 %v22584_v59  ;;  %16189 = vmatprep.subr.bf16.mxu1 %v16719_v13 }
 0x765   : > { %16177 = vmatprep.subr.bf16.mxu0 %v16719_v13 }
 0x767   : > { %16191 = vmatpush3.bf16.msra.mxu1 %v22572_v22 }
 0x768   : > { %16179 = vmatpush3.bf16.msra.mxu0 %v22596_v62  ;;  %16192 = vmatprep.subr.bf16.mxu1 %v16719_v13 }
 0x769   : > { %16198 = vmatprep.subr.bf16.mxu0 %v16719_v13 }
 0x76b   : > { %16194 = vmatpush3.bf16.msra.mxu1 %v22584_v59 }
 0x76c   : > { %16195 = vmatprep.subr.bf16.mxu1 %v16719_v13 }
 0x76f   : > { %16197 = vmatpush3.bf16.msra.mxu1 %v22596_v62 }
 0x770   : > { %16216 = vmatprep.subr.bf16.mxu1 %v16719_v13 }
 0x7bd   : > { %v15006_v46 = vpop.f32.mrb[118].mxu0 }
 0x7be   : > { %v10436_v21 = vrot.slane %v15006_v46, 1  ;;  %v10492_v23 = vrot.slane %v15006_v46, 2  ;;  %v10311_v36 = vpop.f32.mrb[119].mxu0 }
 0x7bf   : > { %v10435_v49 = vrot.slane %v10311_v36, 1  ;;  %v10491_v12 = vrot.slane %v10311_v36, 2 }
 0x7c0   : > { %v10470_v48 = vmax.f32 %v15006_v46, %v10436_v21 }
 0x7c1   : > { %v10437_v58 = vsel %vm808_vm3, %v10435_v49, %v10436_v21  ;;  %v10493_v7 = vsel %vm1441_vm4, %v10491_v12, %v10492_v23 }
 0x7c2   : > { %v10526_v37 = vmax.f32 %v10470_v48, %v10492_v23  ;;  %v10469_v63 = vmax.f32 %v10311_v36, %v10437_v58  ;;  %v11363_v48 = vld [vmem:[%s23598_s11] sm:$0xff]  ;;  %v11364_v58 = vld [vmem:[%s23598_s11 + $0x8] sm:$0xff] }
 0x7c4   : > { %10542 = vst.msk [vmem:[#allocation2 + $0x308] sm:$0x1] %vm9464_vm13, %v10526_v37  ;;  %v10525_v34 = vmax.f32 %v10469_v63, %v10493_v7  ;;  %v15033_v8 = vpop.f32.mrb[118].mxu1  ;;  %v10601_v40 = vpop.permute.xlu0 %10600  ;;  %v22798_v7 = vpack.c.bf16 %v11364_v58, %v11363_v48 }
 0x7c5   : > { %v10439_v55 = vrot.slane %v15033_v8, 1  ;;  %v10495_v45 = vrot.slane %v15033_v8, 2  ;;  %v10392_v5 = vpop.f32.mrb[119].mxu1  ;;  %v10652_v29 = vsel %vm5019_vm8, %v22652_v16, %v10601_v40 }
 0x7c6   : > { %10541 = vst.msk [vmem:[#allocation2 + $0x300] sm:$0xff] %vm5019_vm8, %v10525_v34  ;;  %v10438_v56 = vrot.slane %v10392_v5, 1  ;;  %v10494_v4 = vrot.slane %v10392_v5, 2  ;;  %v11365_v34 = vld [vmem:[%s23598_s11 + $0x10] sm:$0xff] }
 0x7c7   : > { %v10472_v52 = vmax.f32 %v15033_v8, %v10439_v55  ;;  %v11366_v8 = vld [vmem:[%s23598_s11 + $0x18] sm:$0xff] }
 0x7c8   : > { %v10440_v17 = vsel %vm808_vm3, %v10438_v56, %v10439_v55  ;;  %v10496_v9 = vsel %vm1441_vm4, %v10494_v4, %v10495_v45  ;;  %v10633_v15 = vpop.permute.xlu0 %10632  ;;  %v11368_v56 = vld [vmem:[%s23598_s11 + $0x28] sm:$0xff]  ;;  %vm12079_vm3 = vcmask 1045509   ;;  %vm12082_vm4 = vcmask 1046534  }
 0x7c9   : > { %v10528_v6 = vmax.f32 %v10472_v52, %v10495_v45  ;;  %v10471_v61 = vmax.f32 %v10392_v5, %v10440_v17  ;;  %v10660_v1 = vsel %vm6163_vm10, %v10652_v29, %v10633_v15  ;;  %v22811_v45 = vpack.c.bf16 %v11366_v8, %v11365_v34  ;;  %v11367_v5 = vld [vmem:[%s23598_s11 + $0x20] sm:$0xff]  ;;  %v11369_v29 = vld [vmem:[%s23598_s11 + $0x30] sm:$0xff]  ;;  %v11370_v15 = vld [vmem:[%s23598_s11 + $0x38] sm:$0xff] }
 0x7ca   : > { %15167 = vmatmul.mubr.msk.f32.vlgmr.msra.gmra.mrb[124].mxu0 %vm6240_vm11, %v10660_v1  ;;  %v22825_v17 = vpack.c.bf16 %v11368_v56, %v11367_v5  ;;  %v11372_v1 = vld [vmem:[%s23598_s11 + $0x48] sm:$0xff] }
 0x7cb   : > { %10544 = vst.msk [vmem:[#allocation2 + $0x388] sm:$0x1] %vm9464_vm13, %v10528_v6  ;;  %v10527_v26 = vmax.f32 %v10471_v61, %v10496_v9  ;;  %v10603_v44 = vpop.permute.xlu1 %10602  ;;  %16200 = vmatpush3.bf16.msra.mxu0 %v22523_v35  ;;  %15220 = vmatprep.mubr.msk.f32.mxu0 %vm16720_vm14, %v16721_v54  ;;  %v22841_v6 = vpack.c.bf16 %v11370_v15, %v11369_v29  ;;  %v11371_v61 = vld [vmem:[%s23598_s11 + $0x40] sm:$0xff] }
 0x7cc   : > { %16201 = vmatprep.subr.bf16.mxu0 %v16719_v13  ;;  %v10653_v60 = vsel %vm5019_vm8, %v22665_v38, %v10603_v44  ;;  %v11373_v44 = vld [vmem:[%s23598_s11 + $0x50] sm:$0xff] }
 0x7cd   : > { %10543 = vst.msk [vmem:[#allocation2 + $0x380] sm:$0xff] %vm5019_vm8, %v10527_v26  ;;  %v10551_v24 = vld [vmem:[#allocation2 + $0x300] ss:$2 sm:$0x1f]  ;;  %v22853_v26 = vpack.c.bf16 %v11372_v1, %v11371_v61 }
 0x7ce   : > { %v10566_v39 = vadd.f32 %v22476_v51, %v10551_v24  ;;  %v11374_v24 = vld [vmem:[%s23598_s11 + $0x58] sm:$0xff] }
 0x7cf   : > { %v10635_v0 = vpop.permute.xlu1 %10634  ;;  %16203 = vmatpush3.bf16.msra.mxu0 %v22538_v20 }
 0x7d0   : > { %v10661_v28 = vsel %vm6163_vm10, %v10653_v60, %v10635_v0  ;;  %v22722_v25 = vmax.f32 %v10566_v39, 0.0  ;;  %16204 = vmatprep.subr.bf16.mxu0 %v16719_v13  ;;  %v22865_v39 = vpack.c.bf16 %v11374_v24, %v11373_v44 }
 0x7d1   : > { %15194 = vmatmul.mubr.msk.f32.vlgmr.msra.gmra.mrb[124].mxu1 %vm6240_vm11, %v10661_v28 }
 0x7d2   : > { %v10590_v33 = vrot.slane %v22722_v25, 1  ;;  %16218 = vmatpush3.bf16.msra.mxu1 %v22523_v35  ;;  %15247 = vmatprep.mubr.msk.f32.mxu1 %vm16720_vm14, %v16721_v54  ;;  %v10622_v3 = vrot.slane %v22722_v25, 2 }
 0x7d3   : > { %16206 = vmatpush3.bf16.msra.mxu0 %v22555_v14  ;;  %16219 = vmatprep.subr.bf16.mxu1 %v16719_v13 }
 0x7d4   : > { %10604 = vrot.lane.b32.xlu0 %v10590_v33, %s23665_s2  ;;  %v10552_v53 = vld [vmem:[#allocation2 + $0x380] ss:$2 sm:$0x1f]  ;;  %16207 = vmatprep.subr.bf16.mxu0 %v16719_v13 }
 0x7d5   : > { %v10567_v18 = vadd.f32 %v22476_v51, %v10552_v53 }
 0x7d6   : > { %16221 = vmatpush3.bf16.msra.mxu1 %v22538_v20  ;;  %v22760_v20 = vld [vmem:[%s23597_s10] ss:$0 sm:$0xff] }
 0x7d7   : > { %v22737_v11 = vmax.f32 %v10567_v18, 0.0  ;;  %16209 = vmatpush3.bf16.msra.mxu0 %v22572_v22  ;;  %16222 = vmatprep.subr.bf16.mxu1 %v16719_v13 }
 0x7d8   : > { %10636 = vrot.lane.b32.xlu0 %v10622_v3, %s23666_s19  ;;  %16210 = vmatprep.subr.bf16.mxu0 %v16719_v13 }
 0x7d9   : > { %v10591_v35 = vrot.slane %v22737_v11, 1  ;;  %v10623_v51 = vrot.slane %v22737_v11, 2 }
 0x7da   : > { %16224 = vmatpush3.bf16.msra.mxu1 %v22555_v14 }
 0x7db   : > { %10606 = vrot.lane.b32.xlu1 %v10591_v35, %s23665_s2  ;;  %16212 = vmatpush3.bf16.msra.mxu0 %v22584_v59 }
 0x7dc   : > { %16225 = vmatprep.subr.bf16.mxu1 %v16719_v13  ;;  %16213 = vmatprep.subr.bf16.mxu0 %v16719_v13 }
 0x7de   : > { %16227 = vmatpush3.bf16.msra.mxu1 %v22572_v22 }
 0x7df   : > { %10638 = vrot.lane.b32.xlu1 %v10623_v51, %s23666_s19  ;;  %16215 = vmatpush3.bf16.msra.mxu0 %v22596_v62 }
 0x7e0   : > { %16228 = vmatprep.subr.bf16.mxu1 %v16719_v13  ;;  %16234 = vmatprep.subr.bf16.mxu0 %v16719_v13 }
 0x7e2   : > { %16230 = vmatpush3.bf16.msra.mxu1 %v22584_v59 }
 0x7e3   : > { %16231 = vmatprep.subr.bf16.mxu1 %v16719_v13 }
 0x7e6   : > { %16233 = vmatpush3.bf16.msra.mxu1 %v22596_v62  ;;  %v10752_v14 = vpop.f32.mrb[120].mxu0 }
 0x7e7   : > { %16252 = vmatprep.subr.bf16.mxu1 %v16719_v13  ;;  %v10753_v22 = vadd.f32 %v22760_v20, %v10752_v14  ;;  %v15060_v16 = vpop.f32.mrb[121].mxu0 }
 0x7e9   : > { %v22765_v50 = vmax.f32 %v10753_v22, 0.0 }
 0x7eb   : > { %v11283_v32 = vrot.slane %v22765_v50, 1  ;;  %v11315_v41 = vrot.slane %v22765_v50, 2 }
 0x7ed   : > { %v10825_v59 = vpop.f32.mrb[120].mxu1  ;;  %11291 = vrot.lane.b32.xlu0 %v11283_v32, %s23665_s2 }
 0x7ee   : > { %v10826_v42 = vadd.f32 %v22760_v20, %v10825_v59  ;;  %v15087_v30 = vpop.f32.mrb[121].mxu1 }
 0x7f0   : > { %v22771_v57 = vmax.f32 %v10826_v42, 0.0 }
 0x7f1   : > { %11323 = vrot.lane.b32.xlu0 %v11315_v41, %s23666_s19 }
 0x7f2   : > { %v11284_v62 = vrot.slane %v22771_v57, 1  ;;  %v11316_v47 = vrot.slane %v22771_v57, 2 }
 0x7f4   : > { %11293 = vrot.lane.b32.xlu1 %v11284_v62, %s23665_s2 }
 0x7f8   : > { %11325 = vrot.lane.b32.xlu1 %v11316_v47, %s23666_s19 }
 0x826   : > { %v10898_v27 = vpop.f32.mrb[122].mxu0 }
 0x827   : > { %v10899_v38 = vadd.f32 %v22760_v20, %v10898_v27  ;;  %v15114_v31 = vpop.f32.mrb[123].mxu0 }
 0x829   : > { %v22779_v2 = vmax.f32 %v10899_v38, 0.0 }
 0x82b   : > { %v11285_v19 = vrot.slane %v22779_v2, 1  ;;  %v11317_v21 = vrot.slane %v22779_v2, 2 }
 0x82d   : > { %v10971_v43 = vpop.f32.mrb[122].mxu1  ;;  %11295 = vrot.lane.b32.xlu0 %v11285_v19, %s23665_s2 }
 0x82e   : > { %v10972_v10 = vadd.f32 %v22760_v20, %v10971_v43  ;;  %v15141_v46 = vpop.f32.mrb[123].mxu1 }
 0x830   : > { %v22785_v23 = vmax.f32 %v10972_v10, 0.0 }
 0x831   : > { %11327 = vrot.lane.b32.xlu0 %v11317_v21, %s23666_s19 }
 0x832   : > { %v11286_v36 = vrot.slane %v22785_v23, 1  ;;  %v11318_v49 = vrot.slane %v22785_v23, 2 }
 0x834   : > { %11297 = vrot.lane.b32.xlu1 %v11286_v36, %s23665_s2 }
 0x838   : > { %11329 = vrot.lane.b32.xlu1 %v11318_v49, %s23666_s19 }
 0x846   : > { %v10605_v12 = vpop.permute.xlu0 %10604 }
 0x847   : > { %v10654_v37 = vsel %vm5019_vm8, %v22722_v25, %v10605_v12 }
 0x84a   : > { %v10637_v63 = vpop.permute.xlu0 %10636 }
 0x84b   : > { %v10662_v40 = vsel %vm6163_vm10, %v10654_v37, %v10637_v63 }
 0x84c   : > { %15221 = vmatmul.mubr.msk.f32.vlgmr.msra.gmra.mrb[126].mxu0 %vm6240_vm11, %v10662_v40 }
 0x84d   : > { %v10607_v55 = vpop.permute.xlu1 %10606  ;;  %16236 = vmatpush3.bf16.msra.mxu0 %v22798_v7  ;;  %15274 = vmatprep.mubr.msk.f32.mxu0 %vm16720_vm14, %v16721_v54 }
 0x84e   : > { %16237 = vmatprep.subr.bf16.mxu0 %v16719_v13  ;;  %v10655_v4 = vsel %vm5019_vm8, %v22737_v11, %v10607_v55 }
 0x851   : > { %v10639_v52 = vpop.permute.xlu1 %10638  ;;  %16239 = vmatpush3.bf16.msra.mxu0 %v22811_v45 }
 0x852   : > { %v10663_v9 = vsel %vm6163_vm10, %v10655_v4, %v10639_v52  ;;  %16240 = vmatprep.subr.bf16.mxu0 %v16719_v13 }
 0x853   : > { %15248 = vmatmul.mubr.msk.f32.vlgmr.msra.gmra.mrb[126].mxu1 %vm6240_vm11, %v10663_v9 }
 0x854   : > { %16254 = vmatpush3.bf16.msra.mxu1 %v22798_v7  ;;  %15301 = vmatprep.mubr.msk.f32.mxu1 %vm16720_vm14, %v16721_v54 }
 0x855   : > { %16242 = vmatpush3.bf16.msra.mxu0 %v22825_v17  ;;  %16255 = vmatprep.subr.bf16.mxu1 %v16719_v13 }
 0x856   : > { %16243 = vmatprep.subr.bf16.mxu0 %v16719_v13 }
 0x858   : > { %16257 = vmatpush3.bf16.msra.mxu1 %v22811_v45 }
 0x859   : > { %16245 = vmatpush3.bf16.msra.mxu0 %v22841_v6  ;;  %16258 = vmatprep.subr.bf16.mxu1 %v16719_v13 }
 0x85a   : > { %16246 = vmatprep.subr.bf16.mxu0 %v16719_v13 }
 0x85c   : > { %16260 = vmatpush3.bf16.msra.mxu1 %v22825_v17 }
 0x85d   : > { %16248 = vmatpush3.bf16.msra.mxu0 %v22853_v26  ;;  %16261 = vmatprep.subr.bf16.mxu1 %v16719_v13 }
 0x85e   : > { %16249 = vmatprep.subr.bf16.mxu0 %v16719_v13 }
 0x85f   : > { %v11292_v60 = vpop.permute.xlu0 %11291 }
 0x860   : > { %16263 = vmatpush3.bf16.msra.mxu1 %v22841_v6  ;;  %v11347_v0 = vsel %vm5019_vm8, %v22765_v50, %v11292_v60 }
 0x861   : > { %16251 = vmatpush3.bf16.msra.mxu0 %v22865_v39  ;;  %16264 = vmatprep.subr.bf16.mxu1 %v16719_v13 }
 0x862   : > { %16270 = vmatprep.subr.bf16.mxu0 %v16719_v13 }
 0x863   : > { %v11324_v28 = vpop.permute.xlu0 %11323 }
 0x864   : > { %16266 = vmatpush3.bf16.msra.mxu1 %v22853_v26  ;;  %v11355_v25 = vsel %vm6163_vm10, %v11347_v0, %v11324_v28 }
 0x865   : > { %16267 = vmatprep.subr.bf16.mxu1 %v16719_v13  ;;  %15275 = vmatmul.mubr.msk.f32.vlgmr.msra.gmra.mrb[128].mxu0 %vm6240_vm11, %v11355_v25 }
 0x866   : > { %v11294_v33 = vpop.permute.xlu1 %11293  ;;  %16272 = vmatpush3.bf16.msra.mxu0 %v22798_v7  ;;  %15328 = vmatprep.mubr.msk.f32.mxu0 %vm16720_vm14, %v16721_v54 }
 0x867   : > { %16273 = vmatprep.subr.bf16.mxu0 %v16719_v13  ;;  %v11348_v53 = vsel %vm5019_vm8, %v22771_v57, %v11294_v33 }
 0x868   : > { %16269 = vmatpush3.bf16.msra.mxu1 %v22865_v39 }
 0x869   : > { %16288 = vmatprep.subr.bf16.mxu1 %v16719_v13 }
 0x86a   : > { %v11326_v18 = vpop.permute.xlu1 %11325  ;;  %16275 = vmatpush3.bf16.msra.mxu0 %v22811_v45 }
 0x86b   : > { %v11356_v3 = vsel %vm6163_vm10, %v11348_v53, %v11326_v18  ;;  %16276 = vmatprep.subr.bf16.mxu0 %v16719_v13 }
 0x86c   : > { %15302 = vmatmul.mubr.msk.f32.vlgmr.msra.gmra.mrb[128].mxu1 %vm6240_vm11, %v11356_v3 }
 0x86d   : > { %16290 = vmatpush3.bf16.msra.mxu1 %v22798_v7  ;;  %15355 = vmatprep.mubr.msk.f32.mxu1 %vm16720_vm14, %v16721_v54 }
 0x86e   : > { %16278 = vmatpush3.bf16.msra.mxu0 %v22825_v17  ;;  %16291 = vmatprep.subr.bf16.mxu1 %v16719_v13 }
 0x86f   : > { %16279 = vmatprep.subr.bf16.mxu0 %v16719_v13 }
 0x871   : > { %16293 = vmatpush3.bf16.msra.mxu1 %v22811_v45 }
 0x872   : > { %16281 = vmatpush3.bf16.msra.mxu0 %v22841_v6  ;;  %16294 = vmatprep.subr.bf16.mxu1 %v16719_v13 }
 0x873   : > { %16282 = vmatprep.subr.bf16.mxu0 %v16719_v13 }
 0x875   : > { %16296 = vmatpush3.bf16.msra.mxu1 %v22825_v17 }
 0x876   : > { %16284 = vmatpush3.bf16.msra.mxu0 %v22853_v26  ;;  %16297 = vmatprep.subr.bf16.mxu1 %v16719_v13 }
 0x877   : > { %16285 = vmatprep.subr.bf16.mxu0 %v16719_v13 }
 0x879   : > { %16299 = vmatpush3.bf16.msra.mxu1 %v22841_v6 }
 0x87a   : > { %16287 = vmatpush3.bf16.msra.mxu0 %v22865_v39  ;;  %16300 = vmatprep.subr.bf16.mxu1 %v16719_v13 }
 0x87b   : > { %16306 = vmatprep.subr.bf16.mxu0 %v16719_v13 }
 0x87d   : > { %16302 = vmatpush3.bf16.msra.mxu1 %v22853_v26 }
 0x87e   : > { %16303 = vmatprep.subr.bf16.mxu1 %v16719_v13 }
 0x881   : > { %16305 = vmatpush3.bf16.msra.mxu1 %v22865_v39 }
 0x882   : > { %16324 = vmatprep.subr.bf16.mxu1 %v16719_v13 }
 0x89d   : > { %v11044_v11 = vpop.f32.mrb[124].mxu0 }
 0x89e   : > { %v11045_v35 = vadd.f32 %v22760_v20, %v11044_v11  ;;  %v15168_v51 = vpop.f32.mrb[125].mxu0 }
 0x89f   : > { %v11296_v14 = vpop.permute.xlu0 %11295 }
 0x8a0   : > { %v11271_v22 = vmax.f32 %v11045_v35, 0.0  ;;  %v11349_v50 = vsel %vm5019_vm8, %v22779_v2, %v11296_v14 }
 0x8a2   : > { %v11287_v16 = vrot.slane %v11271_v22, 1  ;;  %v11319_v57 = vrot.slane %v11271_v22, 2 }
 0x8a3   : > { %v11328_v32 = vpop.permute.xlu0 %11327 }
 0x8a4   : > { %v11357_v59 = vsel %vm6163_vm10, %v11349_v50, %v11328_v32  ;;  %v11117_v42 = vpop.f32.mrb[124].mxu1  ;;  %11299 = vrot.lane.b32.xlu0 %v11287_v16, %s23665_s2 }
 0x8a5   : > { %v11118_v30 = vadd.f32 %v22760_v20, %v11117_v42  ;;  %v15195_v41 = vpop.f32.mrb[125].mxu1  ;;  %15329 = vmatmul.mubr.msk.f32.vlgmr.msra.gmra.mrb[130].mxu0 %vm6240_vm11, %v11357_v59 }
 0x8a6   : > { %v11298_v62 = vpop.permute.xlu1 %11297  ;;  %16308 = vmatpush3.bf16.msra.mxu0 %v22798_v7  ;;  %15382 = vmatprep.mubr.msk.f32.mxu0 %vm16720_vm14, %v16721_v54  ;;  %v11993_v41 = vld [vmem:[%s23600_s13 + $0x48] sm:$0xff] }
 0x8a7   : > { %v11272_v47 = vmax.f32 %v11118_v30, 0.0  ;;  %16309 = vmatprep.subr.bf16.mxu0 %v16719_v13  ;;  %v11350_v38 = vsel %vm5019_vm8, %v22785_v23, %v11298_v62  ;;  %v11985_v30 = vld [vmem:[%s23600_s13 + $0x8] sm:$0xff] }
 0x8a8   : > { %11331 = vrot.lane.b32.xlu0 %v11319_v57, %s23666_s19  ;;  %v11987_v57 = vld [vmem:[%s23600_s13 + $0x18] sm:$0xff]  ;;  %v16378_v62 = vpack.c.bf16 %v11993_v41, %v11985_v30 }
 0x8a9   : > { %v11288_v27 = vrot.slane %v11272_v47, 1  ;;  %v11320_v19 = vrot.slane %v11272_v47, 2 }
 0x8aa   : > { %v11330_v31 = vpop.permute.xlu1 %11329  ;;  %16311 = vmatpush3.bf16.msra.mxu0 %v22811_v45 }
 0x8ab   : > { %v11358_v2 = vsel %vm6163_vm10, %v11350_v38, %v11330_v31  ;;  %11301 = vrot.lane.b32.xlu1 %v11288_v27, %s23665_s2  ;;  %16312 = vmatprep.subr.bf16.mxu0 %v16719_v13  ;;  %v11984_v27 = vld [vmem:[%s23600_s13] sm:$0xff] }
 0x8ac   : > { %15356 = vmatmul.mubr.msk.f32.vlgmr.msra.gmra.mrb[130].mxu1 %vm6240_vm11, %v11358_v2  ;;  %v11992_v38 = vld [vmem:[%s23600_s13 + $0x40] sm:$0xff] }
 0x8ad   : > { %16326 = vmatpush3.bf16.msra.mxu1 %v22798_v7  ;;  %15409 = vmatprep.mubr.msk.f32.mxu1 %vm16720_vm14, %v16721_v54  ;;  %v16380_v2 = vpack.c.bf16 %v11992_v38, %v11984_v27  ;;  %v12004_v27 = vld [vmem:[%s23600_s13 + $0xa0] sm:$0xff] }
 0x8ae   : > { %16314 = vmatpush3.bf16.msra.mxu0 %v22825_v17  ;;  %16327 = vmatprep.subr.bf16.mxu1 %v16719_v13  ;;  %v12012_v38 = vld [vmem:[%s23600_s13 + $0xe0] sm:$0xff] }
 0x8af   : > { %11333 = vrot.lane.b32.xlu1 %v11320_v19, %s23666_s19  ;;  %16315 = vmatprep.subr.bf16.mxu0 %v16719_v13  ;;  %v11986_v19 = vld [vmem:[%s23600_s13 + $0x10] sm:$0xff] }
 0x8b1   : > { %16329 = vmatpush3.bf16.msra.mxu1 %v22811_v45 }
 0x8b2   : > { %16317 = vmatpush3.bf16.msra.mxu0 %v22841_v6  ;;  %16330 = vmatprep.subr.bf16.mxu1 %v16719_v13 }
 0x8b3   : > { %16318 = vmatprep.subr.bf16.mxu0 %v16719_v13 }
 0x8b5   : > { %16332 = vmatpush3.bf16.msra.mxu1 %v22825_v17 }
 0x8b6   : > { %16320 = vmatpush3.bf16.msra.mxu0 %v22853_v26  ;;  %16333 = vmatprep.subr.bf16.mxu1 %v16719_v13 }
 0x8b7   : > { %16321 = vmatprep.subr.bf16.mxu0 %v16719_v13 }
 0x8b9   : > { %16335 = vmatpush3.bf16.msra.mxu1 %v22841_v6 }
 0x8ba   : > { %16323 = vmatpush3.bf16.msra.mxu0 %v22865_v39  ;;  %16336 = vmatprep.subr.bf16.mxu1 %v16719_v13 }
 0x8bb   : > { %16342 = vmatprep.subr.bf16.mxu0 %v16719_v13 }
 0x8bd   : > { %16338 = vmatpush3.bf16.msra.mxu1 %v22853_v26 }
 0x8be   : > { %16339 = vmatprep.subr.bf16.mxu1 %v16719_v13 }
 0x8c1   : > { %16341 = vmatpush3.bf16.msra.mxu1 %v22865_v39 }
 0x8c2   : > { %16360 = vmatprep.subr.bf16.mxu1 %v16719_v13 }
 0x916   : > { %v11300_v43 = vpop.permute.xlu0 %11299 }
 0x917   : > { %v11351_v10 = vsel %vm5019_vm8, %v11271_v22, %v11300_v43  ;;  %v11994_v43 = vld [vmem:[%s23600_s13 + $0x50] sm:$0xff] }
 0x91a   : > { %v11332_v46 = vpop.permute.xlu0 %11331 }
 0x91b   : > { %v11359_v21 = vsel %vm6163_vm10, %v11351_v10, %v11332_v46  ;;  %v12001_v10 = vld [vmem:[%s23600_s13 + $0x88] sm:$0xff]  ;;  %v16388_v46 = vpack.c.bf16 %v11994_v43, %v11986_v19  ;;  %v12006_v43 = vld [vmem:[%s23600_s13 + $0xb0] sm:$0xff] }
 0x91c   : > { %15383 = vmatmul.mubr.msk.f32.vlgmr.msra.gmra.mrb[132].mxu0 %vm6240_vm11, %v11359_v21  ;;  %v12009_v21 = vld [vmem:[%s23600_s13 + $0xc8] sm:$0xff] }
 0x91d   : > { %v11302_v23 = vpop.permute.xlu1 %11301  ;;  %16344 = vmatpush3.bf16.msra.mxu0 %v22798_v7  ;;  %15436 = vmatprep.mubr.msk.f32.mxu0 %vm16720_vm14, %v16721_v54 }
 0x91e   : > { %16345 = vmatprep.subr.bf16.mxu0 %v16719_v13  ;;  %v11352_v48 = vsel %vm5019_vm8, %v11272_v47, %v11302_v23  ;;  %v11995_v47 = vld [vmem:[%s23600_s13 + $0x58] sm:$0xff] }
 0x91f   : > { %v11190_v36 = vpop.f32.mrb[126].mxu0  ;;  %v16386_v31 = vpack.c.bf16 %v11995_v47, %v11987_v57  ;;  %v12003_v23 = vld [vmem:[%s23600_s13 + $0x98] sm:$0xff] }
 0x920   : > { %v11191_v49 = vadd.f32 %v22760_v20, %v11190_v36  ;;  %v15222_v12 = vpop.f32.mrb[127].mxu0  ;;  %v12011_v36 = vld [vmem:[%s23600_s13 + $0xd8] sm:$0xff] }
 0x921   : > { %v11334_v58 = vpop.permute.xlu1 %11333  ;;  %16347 = vmatpush3.bf16.msra.mxu0 %v22811_v45  ;;  %v16390_v12 = vpack.c.bf16 %v12011_v36, %v12003_v23  ;;  %v12398_v23 = vld [vmem:[%s23602_s15 + $0x88] sm:$0xff]  ;;  %v12429_v36 = vld [vmem:[%s23602_s15 + $0x180] sm:$0xff] }
 0x922   : > { %v11273_v37 = vmax.f32 %v11191_v49, 0.0  ;;  %v11360_v63 = vsel %vm6163_vm10, %v11352_v48, %v11334_v58  ;;  %16348 = vmatprep.subr.bf16.mxu0 %v16719_v13  ;;  %v16382_v49 = vpack.c.bf16 %v12009_v21, %v12001_v10  ;;  %v12000_v48 = vld [vmem:[%s23600_s13 + $0x80] sm:$0xff]  ;;  %v12014_v10 = vld [vmem:[%s23600_s13 + $0xf0] sm:$0xff] }
 0x923   : > { %15410 = vmatmul.mubr.msk.f32.vlgmr.msra.gmra.mrb[132].mxu1 %vm6240_vm11, %v11360_v63  ;;  %v12008_v58 = vld [vmem:[%s23600_s13 + $0xc0] sm:$0xff] }
 0x924   : > { %v11289_v34 = vrot.slane %v11273_v37, 1  ;;  %16362 = vmatpush3.bf16.msra.mxu1 %v22798_v7  ;;  %15463 = vmatprep.mubr.msk.f32.mxu1 %vm16720_vm14, %v16721_v54  ;;  %v11321_v5 = vrot.slane %v11273_v37, 2  ;;  %v16384_v63 = vpack.c.bf16 %v12008_v58, %v12000_v48  ;;  %v16408_v48 = vpack.c.bf16 %v12014_v10, %v12006_v43  ;;  %v12381_v58 = vld [vmem:[%s23602_s15] sm:$0xff]  ;;  %v12408_v43 = vld [vmem:[%s23602_s15 + $0xd8] sm:$0xff]  ;;  %v12439_v10 = vld [vmem:[%s23602_s15 + $0x1d0] sm:$0xff] }
 0x925   : > { %16350 = vmatpush3.bf16.msra.mxu0 %v22825_v17  ;;  %16363 = vmatprep.subr.bf16.mxu1 %v16719_v13 }
 0x926   : > { %v11263_v8 = vpop.f32.mrb[126].mxu1  ;;  %11303 = vrot.lane.b32.xlu0 %v11289_v34, %s23665_s2  ;;  %16351 = vmatprep.subr.bf16.mxu0 %v16719_v13  ;;  %v12010_v34 = vld [vmem:[%s23600_s13 + $0xd0] sm:$0xff] }
 0x927   : > { %v11264_v40 = vadd.f32 %v22760_v20, %v11263_v8  ;;  %v15249_v55 = vpop.f32.mrb[127].mxu1  ;;  %v11989_v8 = vld [vmem:[%s23600_s13 + $0x28] sm:$0xff] }
 0x928   : > { %16365 = vmatpush3.bf16.msra.mxu1 %v22811_v45  ;;  %v22994_v45 = vld [vmem:[%s23599_s12] sm:$0x1] }
 0x929   : > { %v11274_v56 = vmax.f32 %v11264_v40, 0.0  ;;  %16353 = vmatpush3.bf16.msra.mxu0 %v22841_v6  ;;  %16366 = vmatprep.subr.bf16.mxu1 %v16719_v13  ;;  %v11997_v40 = vld [vmem:[%s23600_s13 + $0x68] sm:$0xff] }
 0x92a   : > { %11335 = vrot.lane.b32.xlu0 %v11321_v5, %s23666_s19  ;;  %16354 = vmatprep.subr.bf16.mxu0 %v16719_v13  ;;  %v16394_v5 = vpack.c.bf16 %v11997_v40, %v11989_v8  ;;  %v12413_v8 = vld [vmem:[%s23602_s15 + $0x100] sm:$0xff]  ;;  %v12414_v40 = vld [vmem:[%s23602_s15 + $0x108] sm:$0xff] }
 0x92b   : > { %v11290_v7 = vrot.slane %v11274_v56, 1  ;;  %v11322_v20 = vrot.slane %v11274_v56, 2 }
 0x92c   : > { %16368 = vmatpush3.bf16.msra.mxu1 %v22825_v17 }
 0x92d   : > { %11305 = vrot.lane.b32.xlu1 %v11290_v7, %s23665_s2  ;;  %16356 = vmatpush3.bf16.msra.mxu0 %v22853_v26  ;;  %v11999_v7 = vld [vmem:[%s23600_s13 + $0x78] sm:$0xff]  ;;  %s542_s2 = sand.u32 1, %s16704_s25  }
 0x92e   : > { %16369 = vmatprep.subr.bf16.mxu1 %v16719_v13  ;;  %16357 = vmatprep.subr.bf16.mxu0 %v16719_v13  ;;  %s12891_s5 = sshll.u32 %s542_s2, 3  ;;  %s12815_s23 = scalar_lea.sflag [#allocation4], %s542_s2 }
 0x930   : > { %16371 = vmatpush3.bf16.msra.mxu1 %v22841_v6 }
 0x931   : > { %11337 = vrot.lane.b32.xlu1 %v11322_v20, %s23666_s19  ;;  %16359 = vmatpush3.bf16.msra.mxu0 %v22865_v39  ;;  %s544_s19 = scalar_lea.vmem [#allocation3], %s12891_s5 }
 0x932   : > { %16372 = vmatprep.subr.bf16.mxu1 %v16719_v13  ;;  %16379 = vmatprep.subr.bf16.mxu0 %v16378_v62  ;;  %s12828_s29 = sshll.u32 %s544_s19, 4  ;;  %s23547_s29 = int_to_ptr.vmem [resolvable:$true] %s12828_s29 }
 0x933   : > { %s16650_s21 = scalar_lea.vmem %s23547_s29, 128  ;;  %p16657_p0 = scmp.lt.s32.totalorder %s23547_s29, %s16655_s18 }
 0x934   : > { %16374 = vmatpush3.bf16.msra.mxu1 %v22853_v26  ;;  %p16651_p11 = scmp.ne.s32.totalorder %s23547_s29, %s16650_s21 }
 0x935   : > { %16375 = vmatprep.subr.bf16.mxu1 %v16719_v13 }
 0x936   : > { %p16652_p12 = pnand %p16651_p11, %p16853_p5 }
 0x938   : > { %16377 = vmatpush3.bf16.msra.mxu1 %v22865_v39  ;;  %v11445_v4 = vpop.f32.mrb[128].mxu0  ;;  %p16653_p13 = pneg %p16652_p12 }
 0x939   : > { %v11446_v52 = vadd.f32 %v11445_v4, %v22994_v45  ;;  %v15276_v17 = vpop.f32.mrb[129].mxu0  ;;  %16387 = vmatprep.subr.bf16.mxu1 %v16386_v31 }
 0x93b   : > { %v11960_v9 = vmax.f32 %v11446_v52, 0.0 }
 0x93d   : > { %11968 = vst.msk [vmem:[#allocation2] sm:$0x1] %vm9464_vm13, %v11960_v9 }
 0x93f   : > { %v11518_v29 = vpop.f32.mrb[128].mxu1 }
 0x940   : > { %v11519_v15 = vadd.f32 %v11518_v29, %v22994_v45  ;;  %v15303_v6 = vpop.f32.mrb[129].mxu1 }
 0x942   : > { %v11961_v61 = vmax.f32 %v11519_v15, 0.0 }
 0x944   : > { %11969 = vst.msk [vmem:[#allocation2 + $0x80] sm:$0x1] %vm9464_vm13, %v11961_v61 }
 0x94b   : > { %v11977_v61 = vld [vmem:[#allocation2 + $0x80] sm:$0x1] }
 0x978   : > { %v11591_v13 = vpop.f32.mrb[130].mxu0 }
 0x979   : > { %v11592_v1 = vadd.f32 %v11591_v13, %v22994_v45  ;;  %v15330_v26 = vpop.f32.mrb[131].mxu0 }
 0x97b   : > { %v11962_v44 = vmax.f32 %v11592_v1, 0.0 }
 0x97d   : > { %11970 = vst.msk [vmem:[#allocation2 + $0x100] sm:$0x1] %vm9464_vm13, %v11962_v44 }
 0x97f   : > { %v11664_v24 = vpop.f32.mrb[130].mxu1 }
 0x980   : > { %v11665_v39 = vadd.f32 %v11664_v24, %v22994_v45  ;;  %v15357_v60 = vpop.f32.mrb[131].mxu1  ;;  %v12066_v24 = vrot.slane %v11977_v61, 7  ;;  %v12402_v61 = vld [vmem:[%s23602_s15 + $0xa8] sm:$0xff] }
 0x982   : > { %v11963_v0 = vmax.f32 %v11665_v39, 0.0 }
 0x984   : > { %11971 = vst.msk [vmem:[#allocation2 + $0x180] sm:$0x1] %vm9464_vm13, %v11963_v0  ;;  %v11978_v1 = vld [vmem:[#allocation2 + $0x100] sm:$0x1] }
 0x985   : > { %v12069_v60 = vrot.slane %v11978_v1, 6  ;;  %v12434_v1 = vld [vmem:[%s23602_s15 + $0x1a8] sm:$0xff] }
 0x98b   : > { %v11979_v26 = vld [vmem:[#allocation2 + $0x180] sm:$0x1] }
 0x998   : > { %v11304_v28 = vpop.permute.xlu0 %11303 }
 0x999   : > { %v11353_v25 = vsel %vm5019_vm8, %v11273_v37, %v11304_v28  ;;  %v12002_v37 = vld [vmem:[%s23600_s13 + $0x90] sm:$0xff]  ;;  %v12072_v28 = vrot.slane %v11979_v26, 5 }
 0x99a   : > { %v16392_v55 = vpack.c.bf16 %v12010_v34, %v12002_v37  ;;  %v12382_v37 = vld [vmem:[%s23602_s15 + $0x8] sm:$0xff] }
 0x99c   : > { %v11336_v33 = vpop.permute.xlu0 %11335 }
 0x99d   : > { %v11361_v53 = vsel %vm6163_vm10, %v11353_v25, %v11336_v33  ;;  %v11976_v25 = vld [vmem:[#allocation2] sm:$0x1] }
 0x99e   : > { %15437 = vmatmul.mubr.msk.f32.vlgmr.msra.gmra.mrb[134].mxu0 %vm6240_vm11, %v11361_v53  ;;  %v12068_v53 = vsel %vm12067_vm15, %v12066_v24, %v11976_v25  ;;  %v12385_v24 = vld [vmem:[%s23602_s15 + $0x20] sm:$0xff]  ;;  %v12418_v25 = vld [vmem:[%s23602_s15 + $0x128] sm:$0xff] }
 0x99f   : > { %v11306_v18 = vpop.permute.xlu1 %11305  ;;  %12153 = vmatprep.mubr.f32.mxu0 %v16721_v54  ;;  %16381 = vmatpush1.bf16.msra.mxu0 %v16380_v2 }
 0x9a0   : > { %v11354_v3 = vsel %vm5019_vm8, %v11274_v56, %v11306_v18  ;;  %16383 = vmatprep.subr.bf16.mxu0 %v16382_v49  ;;  %v11991_v56 = vld [vmem:[%s23600_s13 + $0x38] sm:$0xff]  ;;  %v11988_v18 = vld [vmem:[%s23600_s13 + $0x20] sm:$0xff]  ;;  %v12430_v49 = vld [vmem:[%s23602_s15 + $0x188] sm:$0xff] }
 0x9a1   : > { %v16402_v20 = vpack.c.bf16 %v11999_v7, %v11991_v56  ;;  %v16442_v34 = vpack.c.bf16 %v12430_v49, %v12429_v36  ;;  %v12431_v56 = vld [vmem:[%s23602_s15 + $0x190] sm:$0xff]  ;;  %v12432_v7 = vld [vmem:[%s23602_s15 + $0x198] sm:$0xff] }
 0x9a2   : > { %v12391_v36 = vld [vmem:[%s23602_s15 + $0x50] sm:$0xff]  ;;  %v12392_v49 = vld [vmem:[%s23602_s15 + $0x58] sm:$0xff] }
 0x9a3   : > { %v11338_v11 = vpop.permute.xlu1 %11337  ;;  %16385 = vmatpush1.bf16.msra.mxu0 %v16384_v63 }
 0x9a4   : > { %v11362_v35 = vsel %vm6163_vm10, %v11354_v3, %v11338_v11  ;;  %16395 = vmatprep.subr.bf16.mxu0 %v16394_v5  ;;  %v11996_v3 = vld [vmem:[%s23600_s13 + $0x60] sm:$0xff]  ;;  %v12071_v11 = vsel %vm12070_vm0, %v12069_v60, %v12068_v53  ;;  %v12400_v5 = vld [vmem:[%s23602_s15 + $0x98] sm:$0xff] }
 0x9a5   : > { %15464 = vmatmul.mubr.msk.f32.vlgmr.msra.gmra.mrb[134].mxu1 %vm6240_vm11, %v11362_v35  ;;  %v16396_v62 = vpack.c.bf16 %v11996_v3, %v11988_v18  ;;  %v12404_v53 = vld [vmem:[%s23602_s15 + $0xb8] sm:$0xff] }
 0x9a6   : > { %12224 = vmatprep.mubr.f32.mxu1 %v16721_v54  ;;  %16389 = vmatpush1.bf16.msra.mxu1 %v16388_v46  ;;  %v12397_v46 = vld [vmem:[%s23602_s15 + $0x80] sm:$0xff]  ;;  %v12436_v18 = vld [vmem:[%s23602_s15 + $0x1b8] sm:$0xff] }
 0x9a7   : > { %16391 = vmatprep.subr.bf16.mxu1 %v16390_v12  ;;  %v16400_v12 = vpack.c.bf16 %v12012_v38, %v12004_v27  ;;  %v16410_v63 = vpack.c.bf16 %v12398_v23, %v12397_v46  ;;  %v12440_v46 = vld [vmem:[%s23602_s15 + $0x1d8] sm:$0xff] }
 0x9aa   : > { %16393 = vmatpush1.bf16.msra.mxu1 %v16392_v55  ;;  %v12399_v55 = vld [vmem:[%s23602_s15 + $0x90] sm:$0xff] }
 0x9ab   : > { %16403 = vmatprep.subr.bf16.mxu1 %v16402_v20  ;;  %v16412_v20 = vpack.c.bf16 %v12382_v37, %v12381_v58  ;;  %v12423_v58 = vld [vmem:[%s23602_s15 + $0x150] sm:$0xff]  ;;  %v12424_v37 = vld [vmem:[%s23602_s15 + $0x158] sm:$0xff] }
 0x9ef   : > { %v11737_v51 = vpop.f32.mrb[132].mxu0 }
 0x9f0   : > { %v11738_v14 = vadd.f32 %v11737_v51, %v22994_v45  ;;  %v15384_v22 = vpop.f32.mrb[133].mxu0  ;;  %v11990_v51 = vld [vmem:[%s23600_s13 + $0x30] sm:$0xff] }
 0x9f1   : > { %v12005_v22 = vld [vmem:[%s23600_s13 + $0xa8] sm:$0xff] }
 0x9f2   : > { %v11964_v16 = vmax.f32 %v11738_v14, 0.0  ;;  %v11998_v14 = vld [vmem:[%s23600_s13 + $0x70] sm:$0xff] }
 0x9f3   : > { %v16404_v47 = vpack.c.bf16 %v11998_v14, %v11990_v51  ;;  %v12388_v51 = vld [vmem:[%s23602_s15 + $0x38] sm:$0xff] }
 0x9f4   : > { %11972 = vst.msk [vmem:[#allocation2 + $0x200] sm:$0x1] %vm9464_vm13, %v11964_v16  ;;  %v12074_v16 = vsel %vm12073_vm1, %v12072_v28, %v12071_v11  ;;  %v12417_v28 = vld [vmem:[%s23602_s15 + $0x120] sm:$0xff] }
 0x9f5   : > { %v16452_v11 = vpack.c.bf16 %v12418_v25, %v12417_v28  ;;  %v12461_v28 = vld [vmem:[%s23602_s15 + $0x280] sm:$0xff]  ;;  %v12462_v25 = vld [vmem:[%s23602_s15 + $0x288] sm:$0xff] }
 0x9f6   : > { %v11810_v50 = vpop.f32.mrb[132].mxu1 }
 0x9f7   : > { %v11811_v32 = vadd.f32 %v11810_v50, %v22994_v45  ;;  %v15411_v59 = vpop.f32.mrb[133].mxu1  ;;  %v12013_v50 = vld [vmem:[%s23600_s13 + $0xe8] sm:$0xff] }
 0x9f8   : > { %v12015_v59 = vld [vmem:[%s23600_s13 + $0xf8] sm:$0xff]  ;;  %v16398_v2 = vpack.c.bf16 %v12013_v50, %v12005_v22 }
 0x9f9   : > { %v11965_v42 = vmax.f32 %v11811_v32, 0.0  ;;  %v12007_v32 = vld [vmem:[%s23600_s13 + $0xb8] sm:$0xff] }
 0x9fa   : > { %v16406_v19 = vpack.c.bf16 %v12015_v59, %v12007_v32  ;;  %v12420_v50 = vld [vmem:[%s23602_s15 + $0x138] sm:$0xff]  ;;  %v12405_v32 = vld [vmem:[%s23602_s15 + $0xc0] sm:$0xff]  ;;  %v12406_v59 = vld [vmem:[%s23602_s15 + $0xc8] sm:$0xff] }
 0x9fb   : > { %11973 = vst.msk [vmem:[#allocation2 + $0x280] sm:$0x1] %vm9464_vm13, %v11965_v42  ;;  %v11980_v44 = vld [vmem:[#allocation2 + $0x200] sm:$0x1]  ;;  %v16426_v27 = vpack.c.bf16 %v12406_v59, %v12405_v32 }
 0x9fc   : > { %v12075_v33 = vrot.slane %v11980_v44, 4 }
 0x9fe   : > { %v12077_v30 = vsel %vm12076_vm2, %v12075_v33, %v12074_v16  ;;  %v12403_v33 = vld [vmem:[%s23602_s15 + $0xb0] sm:$0xff] }
 0x9ff   : > { %v16422_v14 = vpack.c.bf16 %v12404_v53, %v12403_v33  ;;  %v12419_v16 = vld [vmem:[%s23602_s15 + $0x130] sm:$0xff]  ;;  %v12493_v33 = vld [vmem:[%s23602_s15 + $0x380] sm:$0xff]  ;;  %v16474_v53 = vpack.c.bf16 %v12462_v25, %v12461_v28  ;;  %v12482_v28 = vld [vmem:[%s23602_s15 + $0x328] sm:$0xff] }
 0xa00   : > { %v12467_v25 = vld [vmem:[%s23602_s15 + $0x2b0] sm:$0xff] }
 0xa02   : > { %v11981_v39 = vld [vmem:[#allocation2 + $0x280] sm:$0x1] }
 0xa71   : > { %v11883_v4 = vpop.f32.mrb[134].mxu0 }
 0xa72   : > { %v11884_v52 = vadd.f32 %v11883_v4, %v22994_v45  ;;  %v15438_v17 = vpop.f32.mrb[135].mxu0  ;;  %v16444_v4 = vpack.c.bf16 %v12414_v40, %v12413_v8  ;;  %v12441_v8 = vld [vmem:[%s23602_s15 + $0x1e0] sm:$0xff]  ;;  %v12442_v40 = vld [vmem:[%s23602_s15 + $0x1e8] sm:$0xff] }
 0xa73   : > { %v16414_v17 = vpack.c.bf16 %v12400_v5, %v12399_v55  ;;  %v16432_v55 = vpack.c.bf16 %v12392_v49, %v12391_v36  ;;  %v16464_v5 = vpack.c.bf16 %v12424_v37, %v12423_v58  ;;  %v12464_v36 = vld [vmem:[%s23602_s15 + $0x298] sm:$0xff]  ;;  %v12495_v49 = vld [vmem:[%s23602_s15 + $0x390] sm:$0xff] }
 0xa74   : > { %v11966_v9 = vmax.f32 %v11884_v52, 0.0  ;;  %v12384_v52 = vld [vmem:[%s23602_s15 + $0x18] sm:$0xff] }
 0xa76   : > { %11974 = vst.msk [vmem:[#allocation2 + $0x300] sm:$0x1] %vm9464_vm13, %v11966_v9  ;;  %v16446_v9 = vpack.c.bf16 %v12432_v7, %v12431_v56  ;;  %v12393_v56 = vld [vmem:[%s23602_s15 + $0x60] sm:$0xff] }
 0xa78   : > { %v11956_v29 = vpop.f32.mrb[134].mxu1 }
 0xa79   : > { %v11957_v15 = vadd.f32 %v11956_v29, %v22994_v45  ;;  %v15465_v6 = vpop.f32.mrb[135].mxu1  ;;  %v12078_v45 = vrot.slane %v11981_v39, 3  ;;  %v12415_v29 = vld [vmem:[%s23602_s15 + $0x110] sm:$0xff]  ;;  %v12386_v39 = vld [vmem:[%s23602_s15 + $0x28] sm:$0xff] }
 0xa7a   : > { %v12401_v6 = vld [vmem:[%s23602_s15 + $0xa0] sm:$0xff]  ;;  %v16420_v3 = vpack.c.bf16 %v12386_v39, %v12385_v24  ;;  %v12427_v39 = vld [vmem:[%s23602_s15 + $0x170] sm:$0xff] }
 0xa7b   : > { %v11967_v13 = vmax.f32 %v11957_v15, 0.0  ;;  %v12080_v41 = vsel %vm12079_vm3, %v12078_v45, %v12077_v30  ;;  %v12416_v15 = vld [vmem:[%s23602_s15 + $0x118] sm:$0xff]  ;;  %v16418_v60 = vpack.c.bf16 %v12402_v61, %v12401_v6  ;;  %v12435_v45 = vld [vmem:[%s23602_s15 + $0x1b0] sm:$0xff]  ;;  %v12438_v30 = vld [vmem:[%s23602_s15 + $0x1c8] sm:$0xff] }
 0xa7c   : > { %v16448_v44 = vpack.c.bf16 %v12416_v15, %v12415_v29  ;;  %v16454_v22 = vpack.c.bf16 %v12436_v18, %v12435_v45  ;;  %v12411_v29 = vld [vmem:[%s23602_s15 + $0xf0] sm:$0xff]  ;;  %v12412_v15 = vld [vmem:[%s23602_s15 + $0xf8] sm:$0xff]  ;;  %v12494_v45 = vld [vmem:[%s23602_s15 + $0x388] sm:$0xff] }
 0xa7d   : > { %11975 = vst.msk [vmem:[#allocation2 + $0x380] sm:$0x1] %vm9464_vm13, %v11967_v13  ;;  %v11982_v0 = vld [vmem:[#allocation2 + $0x300] sm:$0x1]  ;;  %v12443_v6 = vld [vmem:[%s23602_s15 + $0x1f0] sm:$0xff]  ;;  %v16438_v61 = vpack.c.bf16 %v12412_v15, %v12411_v29  ;;  %v16506_v18 = vpack.c.bf16 %v12494_v45, %v12493_v33  ;;  %v12498_v29 = vld [vmem:[%s23602_s15 + $0x3a8] sm:$0xff] }
 0xa7e   : > { %v12081_v35 = vrot.slane %v11982_v0, 2  ;;  %v12433_v13 = vld [vmem:[%s23602_s15 + $0x1a0] sm:$0xff]  ;;  %v12468_v45 = vld [vmem:[%s23602_s15 + $0x2b8] sm:$0xff] }
 0xa7f   : > { %v16450_v0 = vpack.c.bf16 %v12434_v1, %v12433_v13  ;;  %v12444_v13 = vld [vmem:[%s23602_s15 + $0x1f8] sm:$0xff]  ;;  %v12395_v1 = vld [vmem:[%s23602_s15 + $0x70] sm:$0xff] }
 0xa80   : > { %v12083_v31 = vsel %vm12082_vm4, %v12081_v35, %v12080_v41  ;;  %v12387_v35 = vld [vmem:[%s23602_s15 + $0x30] sm:$0xff] }
 0xa81   : > { %v16424_v41 = vpack.c.bf16 %v12388_v51, %v12387_v35 }
 0xa84   : > { %v11983_v42 = vld [vmem:[#allocation2 + $0x380] sm:$0x1] }
 0xa85   : > { %v12084_v57 = vrot.slane %v11983_v42, 1  ;;  %v12437_v42 = vld [vmem:[%s23602_s15 + $0x1c0] sm:$0xff] }
 0xa86   : > { %v16458_v38 = vpack.c.bf16 %v12438_v30, %v12437_v42 }
 0xa87   : > { %v12086_v21 = vsel %vm12085_vm5, %v12084_v57, %v12083_v31  ;;  %v16456_v57 = vpack.c.bf16 %v12420_v50, %v12419_v16  ;;  %v12421_v31 = vld [vmem:[%s23602_s15 + $0x140] sm:$0xff] }
 0xa88   : > { %13164 = vmatmul.mubr.msk.f32.vlgmr.msra.gmra.mrb[136].mxu0 %vm5019_vm8, %v12086_v21  ;;  %13165 = vmatmul.mubr.msk.f32.vlgmr.msra.gmra.mrb[136].mxu1 %vm5019_vm8, %v12086_v21 }
 0xa89   : > { %16397 = vmatpush1.bf16.msra.mxu0 %v16396_v62  ;;  %16405 = vmatpush1.bf16.msra.mxu1 %v16404_v47  ;;  %v12389_v62 = vld [vmem:[%s23602_s15 + $0x40] sm:$0xff]  ;;  %v12390_v47 = vld [vmem:[%s23602_s15 + $0x48] sm:$0xff] }
 0xa8a   : > { %16399 = vmatprep.subr.bf16.mxu0 %v16398_v2  ;;  %16407 = vmatprep.subr.bf16.mxu1 %v16406_v19  ;;  %v12422_v2 = vld [vmem:[%s23602_s15 + $0x148] sm:$0xff]  ;;  %v12407_v19 = vld [vmem:[%s23602_s15 + $0xd0] sm:$0xff] }
 0xa8b   : > { %12295 = vmatprep.mubr.f32.mxu0 %v16721_v54  ;;  %12366 = vmatprep.mubr.f32.mxu1 %v16721_v54  ;;  %v12383_v54 = vld [vmem:[%s23602_s15 + $0x10] sm:$0xff]  ;;  %v16460_v23 = vpack.c.bf16 %v12422_v2, %v12421_v31  ;;  %v12477_v2 = vld [vmem:[%s23602_s15 + $0x300] sm:$0xff] }
 0xa8c   : > { %v16416_v26 = vpack.c.bf16 %v12384_v52, %v12383_v54  ;;  %v12425_v54 = vld [vmem:[%s23602_s15 + $0x160] sm:$0xff]  ;;  %v12426_v52 = vld [vmem:[%s23602_s15 + $0x168] sm:$0xff] }
 0xa8d   : > { %16401 = vmatpush1.bf16.msra.mxu0 %v16400_v12  ;;  %16409 = vmatpush1.bf16.msra.mxu1 %v16408_v48  ;;  %v16430_v12 = vpack.c.bf16 %v12408_v43, %v12407_v19  ;;  %v16462_v48 = vpack.c.bf16 %v12440_v46, %v12439_v10  ;;  %v12478_v19 = vld [vmem:[%s23602_s15 + $0x308] sm:$0xff]  ;;  %v12463_v43 = vld [vmem:[%s23602_s15 + $0x290] sm:$0xff] }
 0xa8e   : > { %16411 = vmatprep.subr.bf16.mxu0 %v16410_v63  ;;  %16443 = vmatprep.subr.bf16.mxu1 %v16442_v34  ;;  %v12409_v63 = vld [vmem:[%s23602_s15 + $0xe0] sm:$0xff]  ;;  %v12410_v34 = vld [vmem:[%s23602_s15 + $0xe8] sm:$0xff] }
 0xa8f   : > { %v16434_v7 = vpack.c.bf16 %v12410_v34, %v12409_v63  ;;  %v16508_v63 = vpack.c.bf16 %v12478_v19, %v12477_v2  ;;  %v12447_v34 = vld [vmem:[%s23602_s15 + $0x210] sm:$0xff]  ;;  %v12453_v2 = vld [vmem:[%s23602_s15 + $0x240] sm:$0xff]  ;;  %v12454_v19 = vld [vmem:[%s23602_s15 + $0x248] sm:$0xff] }
 0xa90   : > { %13166 = vmatmul.mubr.msk.f32.vlgmr.msra.gmra.mrb[138].mxu0 %vm5019_vm8, %v12086_v21  ;;  %13167 = vmatmul.mubr.msk.f32.vlgmr.msra.gmra.mrb[138].mxu1 %vm5019_vm8, %v12086_v21  ;;  %v16428_v21 = vpack.c.bf16 %v12390_v47, %v12389_v62  ;;  %v12446_v62 = vld [vmem:[%s23602_s15 + $0x208] sm:$0xff] }
 0xa91   : > { %16413 = vmatpush3.bf16.msra.mxu0 %v16412_v20  ;;  %16445 = vmatpush3.bf16.msra.mxu1 %v16444_v4  ;;  %v16466_v20 = vpack.c.bf16 %v12442_v40, %v12441_v8  ;;  %v12394_v4 = vld [vmem:[%s23602_s15 + $0x68] sm:$0xff]  ;;  %v12448_v8 = vld [vmem:[%s23602_s15 + $0x218] sm:$0xff] }
 0xa92   : > { %16415 = vmatprep.subr.bf16.mxu0 %v16414_v17  ;;  %16447 = vmatprep.subr.bf16.mxu1 %v16446_v9  ;;  %v16436_v17 = vpack.c.bf16 %v12394_v4, %v12393_v56  ;;  %v16468_v9 = vpack.c.bf16 %v12426_v52, %v12425_v54  ;;  %v12465_v4 = vld [vmem:[%s23602_s15 + $0x2a0] sm:$0xff] }
 0xa95   : > { %16417 = vmatpush3.bf16.msra.mxu0 %v16416_v26  ;;  %16449 = vmatpush3.bf16.msra.mxu1 %v16448_v44  ;;  %v12396_v26 = vld [vmem:[%s23602_s15 + $0x78] sm:$0xff]  ;;  %v16470_v44 = vpack.c.bf16 %v12444_v13, %v12443_v6 }
 0xa96   : > { %16419 = vmatprep.subr.bf16.mxu0 %v16418_v60  ;;  %16451 = vmatprep.subr.bf16.mxu1 %v16450_v0  ;;  %v16440_v24 = vpack.c.bf16 %v12396_v26, %v12395_v1  ;;  %v12428_v60 = vld [vmem:[%s23602_s15 + $0x178] sm:$0xff]  ;;  %v12449_v1 = vld [vmem:[%s23602_s15 + $0x220] sm:$0xff]  ;;  %v12450_v26 = vld [vmem:[%s23602_s15 + $0x228] sm:$0xff] }
 0xa97   : > { %v16472_v0 = vpack.c.bf16 %v12428_v60, %v12427_v39 }
 0xa99   : > { %16421 = vmatpush3.bf16.msra.mxu0 %v16420_v3  ;;  %16453 = vmatpush3.bf16.msra.mxu1 %v16452_v11  ;;  %v12018_v3 = vlaneseq }
 0xa9a   : > { %16423 = vmatprep.subr.bf16.mxu0 %v16422_v14  ;;  %16455 = vmatprep.subr.bf16.mxu1 %v16454_v22  ;;  %v23335_v14 = vld [vmem:[%s23601_s14] sm:$0xff] }
 0xa9b   : > { %v23328_v11 = vshrl.u32 %v12018_v3, 7  ;;  %v12500_v3 = vld [vmem:[%s23602_s15 + $0x3b8] sm:$0xff] }
 0xa9d   : > { %16425 = vmatpush3.bf16.msra.mxu0 %v16424_v41  ;;  %16457 = vmatpush3.bf16.msra.mxu1 %v16456_v57  ;;  %v12020_v35 = vsub.s32 0, %v23328_v11  ;;  %v12028_v51 = vsub.s32 2, %v23328_v11  ;;  %v12024_v22 = vsub.s32 1, %v23328_v11  ;;  %v12032_v16 = vsub.s32 3, %v23328_v11  ;;  %v12445_v57 = vld [vmem:[%s23602_s15 + $0x200] sm:$0xff] }
 0xa9e   : > { %16427 = vmatprep.subr.bf16.mxu0 %v16426_v27  ;;  %16459 = vmatprep.subr.bf16.mxu1 %v16458_v38  ;;  %v16476_v37 = vpack.c.bf16 %v12446_v62, %v12445_v57  ;;  %v12469_v57 = vld [vmem:[%s23602_s15 + $0x2c0] sm:$0xff]  ;;  %v12470_v62 = vld [vmem:[%s23602_s15 + $0x2c8] sm:$0xff] }
 0xa9f   : > { %v12021_v50 = vrot.slane %v23335_v14, %v12020_v35  ;;  %v12029_v32 = vrot.slane %v23335_v14, %v12028_v51  ;;  %v12025_v59 = vrot.slane %v23335_v14, %v12024_v22  ;;  %v12033_v42 = vrot.slane %v23335_v14, %v12032_v16 }
 0xaa0   : > { %v16484_v22 = vpack.c.bf16 %v12450_v26, %v12449_v1  ;;  %v12489_v1 = vld [vmem:[%s23602_s15 + $0x360] sm:$0xff]  ;;  %v12490_v26 = vld [vmem:[%s23602_s15 + $0x368] sm:$0xff] }
 0xaa1   : > { %16429 = vmatpush3.bf16.msra.mxu0 %v16428_v21  ;;  %16461 = vmatpush3.bf16.msra.mxu1 %v16460_v23  ;;  %v12040_v21 = vsub.s32 5, %v23328_v11  ;;  %v12048_v23 = vsub.s32 7, %v23328_v11 }
 0xaa2   : > { %16431 = vmatprep.subr.bf16.mxu0 %v16430_v12  ;;  %16463 = vmatprep.subr.bf16.mxu1 %v16462_v48  ;;  %v12496_v12 = vld [vmem:[%s23602_s15 + $0x398] sm:$0xff] }
 0xaa3   : > { %v16510_v56 = vpack.c.bf16 %v12496_v12, %v12495_v49  ;;  %v12041_v54 = vrot.slane %v23335_v14, %v12040_v21  ;;  %v12049_v52 = vrot.slane %v23335_v14, %v12048_v23  ;;  %v12486_v21 = vld [vmem:[%s23602_s15 + $0x348] sm:$0xff]  ;;  %v12471_v23 = vld [vmem:[%s23602_s15 + $0x2d0] sm:$0xff]  ;;  %v12504_v12 = vld [vmem:[%s23602_s15 + $0x3d8] sm:$0xff] }
 0xaa4   : > { %v12503_v49 = vld [vmem:[%s23602_s15 + $0x3d0] sm:$0xff] }
 0xaa5   : > { %16433 = vmatpush3.bf16.msra.mxu0 %v16432_v55  ;;  %16465 = vmatpush3.bf16.msra.mxu1 %v16464_v5  ;;  %v16478_v5 = vpack.c.bf16 %v12464_v36, %v12463_v43  ;;  %v16490_v43 = vpack.c.bf16 %v12470_v62, %v12469_v57  ;;  %v12472_v36 = vld [vmem:[%s23602_s15 + $0x2d8] sm:$0xff] }
 0xaa6   : > { %16435 = vmatprep.subr.bf16.mxu0 %v16434_v7  ;;  %16467 = vmatprep.subr.bf16.mxu1 %v16466_v20  ;;  %v12479_v7 = vld [vmem:[%s23602_s15 + $0x310] sm:$0xff]  ;;  %v12480_v20 = vld [vmem:[%s23602_s15 + $0x318] sm:$0xff] }
 0xaa7   : > { %v16512_v13 = vpack.c.bf16 %v12480_v20, %v12479_v7  ;;  %v12505_v7 = vld [vmem:[%s23602_s15 + $0x3e0] sm:$0xff]  ;;  %v12506_v20 = vld [vmem:[%s23602_s15 + $0x3e8] sm:$0xff] }
 0xaa9   : > { %16437 = vmatpush3.bf16.msra.mxu0 %v16436_v17  ;;  %16469 = vmatpush3.bf16.msra.mxu1 %v16468_v9  ;;  %v12466_v17 = vld [vmem:[%s23602_s15 + $0x2a8] sm:$0xff]  ;;  %v12497_v9 = vld [vmem:[%s23602_s15 + $0x3a0] sm:$0xff] }
 0xaaa   : > { %16439 = vmatprep.subr.bf16.mxu0 %v16438_v61  ;;  %16471 = vmatprep.subr.bf16.mxu1 %v16470_v44  ;;  %v16480_v61 = vpack.c.bf16 %v12448_v8, %v12447_v34  ;;  %v16482_v39 = vpack.c.bf16 %v12466_v17, %v12465_v4  ;;  %v16514_v60 = vpack.c.bf16 %v12498_v29, %v12497_v9  ;;  %v12036_v4 = vsub.s32 4, %v23328_v11  ;;  %v12457_v17 = vld [vmem:[%s23602_s15 + $0x260] sm:$0xff]  ;;  %v12458_v9 = vld [vmem:[%s23602_s15 + $0x268] sm:$0xff] }
 0xaab   : > { %v16494_v34 = vpack.c.bf16 %v12472_v36, %v12471_v23  ;;  %v16526_v8 = vpack.c.bf16 %v12504_v12, %v12503_v49  ;;  %v12044_v29 = vsub.s32 6, %v23328_v11  ;;  %v12476_v11 = vld [vmem:[%s23602_s15 + $0x2f8] sm:$0xff]  ;;  %v16723_v36 = vmov 0  }
 0xaac   : > { %16587 = vset.pattern.permute.xlu0 %v16723_v36 }
 0xaad   : > { %16441 = vmatpush3.bf16.msra.mxu0 %v16440_v24  ;;  %16473 = vmatpush3.bf16.msra.mxu1 %v16472_v0  ;;  %v12481_v0 = vld [vmem:[%s23602_s15 + $0x320] sm:$0xff] }
 0xaae   : > { %16475 = vmatprep.subr.bf16.mxu0 %v16474_v53  ;;  %16507 = vmatprep.subr.bf16.mxu1 %v16506_v18  ;;  %v12499_v18 = vld [vmem:[%s23602_s15 + $0x3b0] sm:$0xff]  ;;  %v16516_v16 = vpack.c.bf16 %v12482_v28, %v12481_v0  ;;  %v16500_v0 = vpack.c.bf16 %v12458_v9, %v12457_v17  ;;  %v16532_v28 = vpack.c.bf16 %v12490_v26, %v12489_v1 }
 0xb5b   : > { %v12155_v30 = vpop.f32.mrb[136].mxu0  ;;  %v12226_v41 = vpop.f32.mrb[136].mxu1 }
 0xb5c   : > { %v12156_v47 = vadd.f32 %v12155_v30, %v12021_v50  ;;  %v12227_v27 = vadd.f32 %v12226_v41, %v12029_v32  ;;  %v12157_v38 = vpop.f32.mrb[137].mxu0  ;;  %v12228_v31 = vpop.f32.mrb[137].mxu1  ;;  %v12451_v50 = vld [vmem:[%s23602_s15 + $0x230] sm:$0xff]  ;;  %v12452_v32 = vld [vmem:[%s23602_s15 + $0x238] sm:$0xff] }
 0xb5d   : > { %v12158_v10 = vadd.f32 %v12157_v38, %v12025_v59  ;;  %v12229_v46 = vadd.f32 %v12228_v31, %v12033_v42  ;;  %v16486_v59 = vpack.c.bf16 %v12468_v45, %v12467_v25  ;;  %v16518_v42 = vpack.c.bf16 %v12500_v3, %v12499_v18  ;;  %v12483_v30 = vld [vmem:[%s23602_s15 + $0x330] sm:$0xff]  ;;  %v12484_v41 = vld [vmem:[%s23602_s15 + $0x338] sm:$0xff] }
 0xb5e   : > { %v12373_v40 = vmax.f32 %v12156_v47, 0.0  ;;  %v12375_v55 = vmax.f32 %v12227_v27, 0.0  ;;  %v12501_v47 = vld [vmem:[%s23602_s15 + $0x3c0] sm:$0xff]  ;;  %v12502_v27 = vld [vmem:[%s23602_s15 + $0x3c8] sm:$0xff]  ;;  %v16488_v38 = vpack.c.bf16 %v12452_v32, %v12451_v50  ;;  %v16520_v31 = vpack.c.bf16 %v12484_v41, %v12483_v30  ;;  %v12459_v25 = vld [vmem:[%s23602_s15 + $0x270] sm:$0xff] }
 0xb5f   : > { %v12374_v48 = vmax.f32 %v12158_v10, 0.0  ;;  %v12376_v58 = vmax.f32 %v12229_v46, 0.0  ;;  %v16522_v10 = vpack.c.bf16 %v12502_v27, %v12501_v47  ;;  %v12485_v46 = vld [vmem:[%s23602_s15 + $0x340] sm:$0xff]  ;;  %v12460_v18 = vld [vmem:[%s23602_s15 + $0x278] sm:$0xff]  ;;  %v12491_v3 = vld [vmem:[%s23602_s15 + $0x370] sm:$0xff] }
 0xb60   : > { %v13168_v30 = vld [vmem:[%s23603_s16] ss:$0 sm:$0xff] }
 0xb61   : > { %12580 = vmatprep.mubr.f32.mxu0 %v12374_v48  ;;  %12650 = vmatprep.mubr.f32.mxu1 %v12376_v58  ;;  %v16492_v48 = vpack.c.bf16 %v12454_v19, %v12453_v2  ;;  %v16524_v58 = vpack.c.bf16 %v12486_v21, %v12485_v46 }
 0xb62   : > { %12581 = vmatmul.mubr.f32.vlgmr.msra.gmra.mrb[140].mxu0 %v12373_v40  ;;  %12651 = vmatmul.mubr.f32.vlgmr.msra.gmra.mrb[140].mxu1 %v12375_v55  ;;  %v12487_v40 = vld [vmem:[%s23602_s15 + $0x350] sm:$0xff]  ;;  %v12488_v55 = vld [vmem:[%s23602_s15 + $0x358] sm:$0xff] }
 0xb63   : > { %v23395_v15 = vpop.f32.mrb[138].mxu0  ;;  %v23397_v6 = vpop.f32.mrb[138].mxu1  ;;  %16477 = vmatpush3.bf16.msra.mxu0 %v16476_v37  ;;  %16509 = vmatpush3.bf16.msra.mxu1 %v16508_v63  ;;  %v12455_v37 = vld [vmem:[%s23602_s15 + $0x250] sm:$0xff]  ;;  %v12456_v63 = vld [vmem:[%s23602_s15 + $0x258] sm:$0xff] }
 0xb64   : > { %v12299_v44 = vpop.f32.mrb[139].mxu0  ;;  %v12370_v24 = vpop.f32.mrb[139].mxu1  ;;  %16479 = vmatprep.subr.bf16.mxu0 %v16478_v5  ;;  %16511 = vmatprep.subr.bf16.mxu1 %v16510_v56  ;;  %v12473_v5 = vld [vmem:[%s23602_s15 + $0x2e0] sm:$0xff]  ;;  %v12474_v56 = vld [vmem:[%s23602_s15 + $0x2e8] sm:$0xff] }
 0xb65   : > { %v12300_v33 = vadd.f32 %v12299_v44, %v12041_v54  ;;  %v12371_v53 = vadd.f32 %v12370_v24, %v12049_v52  ;;  %v16496_v54 = vpack.c.bf16 %v12456_v63, %v12455_v37  ;;  %v16528_v52 = vpack.c.bf16 %v12488_v55, %v12487_v40  ;;  %v12475_v44 = vld [vmem:[%s23602_s15 + $0x2f0] sm:$0xff] }
 0xb66   : > { %v12507_v24 = vld [vmem:[%s23602_s15 + $0x3f0] sm:$0xff] }
 0xb67   : > { %v12378_v35 = vmax.f32 %v12300_v33, 0.0  ;;  %v12380_v51 = vmax.f32 %v12371_v53, 0.0  ;;  %16481 = vmatpush3.bf16.msra.mxu0 %v16480_v61  ;;  %16513 = vmatpush3.bf16.msra.mxu1 %v16512_v13  ;;  %v16498_v61 = vpack.c.bf16 %v12474_v56, %v12473_v5  ;;  %v16530_v13 = vpack.c.bf16 %v12506_v20, %v12505_v7 }
 0xb68   : > { %16483 = vmatprep.subr.bf16.mxu0 %v16482_v39  ;;  %16515 = vmatprep.subr.bf16.mxu1 %v16514_v60  ;;  %v12508_v39 = vld [vmem:[%s23602_s15 + $0x3f8] sm:$0xff]  ;;  %v12037_v60 = vrot.slane %v23335_v14, %v12036_v4  ;;  %v12045_v33 = vrot.slane %v23335_v14, %v12044_v29  ;;  %v16502_v53 = vpack.c.bf16 %v12476_v11, %v12475_v44 }
 0xb69   : > { %12720 = vmatprep.mubr.f32.mxu0 %v12378_v35  ;;  %12790 = vmatprep.mubr.f32.mxu1 %v12380_v51  ;;  %v16534_v45 = vpack.c.bf16 %v12508_v39, %v12507_v24  ;;  %v12492_v35 = vld [vmem:[%s23602_s15 + $0x378] sm:$0xff]  ;;  %v16504_v51 = vpack.c.bf16 %v12460_v18, %v12459_v25 }
 0xb6a   : > { %v16536_v14 = vpack.c.bf16 %v12492_v35, %v12491_v3 }
 0xb6b   : > { %16485 = vmatpush3.bf16.msra.mxu0 %v16484_v22  ;;  %16517 = vmatpush3.bf16.msra.mxu1 %v16516_v16  ;;  %v12298_v22 = vadd.f32 %v23395_v15, %v12037_v60  ;;  %v12369_v16 = vadd.f32 %v23397_v6, %v12045_v33 }
 0xb6c   : > { %16487 = vmatprep.subr.bf16.mxu0 %v16486_v59  ;;  %16519 = vmatprep.subr.bf16.mxu1 %v16518_v42 }
 0xb6d   : > { %v12377_v50 = vmax.f32 %v12298_v22, 0.0  ;;  %v12379_v32 = vmax.f32 %v12369_v16, 0.0 }
 0xb6f   : > { %16489 = vmatpush3.bf16.msra.mxu0 %v16488_v38  ;;  %16521 = vmatpush3.bf16.msra.mxu1 %v16520_v31 }
 0xb70   : > { %16491 = vmatprep.subr.bf16.mxu0 %v16490_v43  ;;  %16523 = vmatprep.subr.bf16.mxu1 %v16522_v10 }
 0xb73   : > { %16493 = vmatpush3.bf16.msra.mxu0 %v16492_v48  ;;  %16525 = vmatpush3.bf16.msra.mxu1 %v16524_v58 }
 0xb74   : > { %16495 = vmatprep.subr.bf16.mxu0 %v16494_v34  ;;  %16527 = vmatprep.subr.bf16.mxu1 %v16526_v8 }
 0xb77   : > { %16497 = vmatpush3.bf16.msra.mxu0 %v16496_v54  ;;  %16529 = vmatpush3.bf16.msra.mxu1 %v16528_v52 }
 0xb78   : > { %16499 = vmatprep.subr.bf16.mxu0 %v16498_v61  ;;  %16531 = vmatprep.subr.bf16.mxu1 %v16530_v13 }
 0xb7b   : > { %16501 = vmatpush3.bf16.msra.mxu0 %v16500_v0  ;;  %16533 = vmatpush3.bf16.msra.mxu1 %v16532_v28 }
 0xb7c   : > { %16503 = vmatprep.subr.bf16.mxu0 %v16502_v53  ;;  %16535 = vmatprep.subr.bf16.mxu1 %v16534_v45 }
 0xb7f   : > { %16505 = vmatpush3.bf16.msra.mxu0 %v16504_v51  ;;  %16537 = vmatpush3.bf16.msra.mxu1 %v16536_v14 }
 0xb82   : > { %12721 = vmatmul.mubr.f32.vlgmr.msra.gmra.mrb[142].mxu0 %v12377_v50  ;;  %12791 = vmatmul.mubr.f32.vlgmr.msra.gmra.mrb[142].mxu1 %v12379_v32 }
 0xc35   : > { %v13958_v59 = vpop.f32.mrb[140].mxu0  ;;  %v13993_v42 = vpop.f32.mrb[140].mxu1 }
 0xc36   : > { %v13959_v41 = vpop.f32.mrb[141].mxu0  ;;  %v13994_v57 = vpop.f32.mrb[141].mxu1 }
 0xc37   : > { %v13960_v62 = vadd.f32 %v13959_v41, %v13958_v59  ;;  %v13995_v15 = vadd.f32 %v13994_v57, %v13993_v42 }
 0xc39   : > { %v12583_v47 = vadd.f32 %v13960_v62, %v13168_v30 }
 0xc3b   : > { %v12653_v6 = vadd.f32 %v13995_v15, %v12583_v47 }
 0xc55   : > { %v14028_v27 = vpop.f32.mrb[142].mxu0  ;;  %v14063_v38 = vpop.f32.mrb[142].mxu1 }
 0xc56   : > { %v14029_v31 = vpop.f32.mrb[143].mxu0  ;;  %v14064_v2 = vpop.f32.mrb[143].mxu1 }
 0xc57   : > { %v14030_v19 = vadd.f32 %v14029_v31, %v14028_v27  ;;  %v14065_v43 = vadd.f32 %v14064_v2, %v14063_v38 }
 0xc59   : > { %v12723_v10 = vadd.f32 %v14030_v19, %v12653_v6 }
 0xc5b   : > { %v12793_v46 = vadd.f32 %v14065_v43, %v12723_v10 }
 0xc5d   : > { %12797 = vrot.lane.b32.xlu0 %v12793_v46, %s16722_s6  ;;  %s16656_s6 = scalar_lea.vmem %s16655_s18, 256 }
 0xc5e   : > { %p16658_p1 = scmp.lt.s32.totalorder %s16656_s6, %s16650_s21 }
 0xc60   : > { %p16659_p2 = por %p16658_p1, %p16657_p0 }
 0xc62   : > { %p16660_p3 = pnand %p16659_p2, %p16653_p13 }
 0xccf   : > { %v12798_v21 = vpop.permute.xlu0 %12797 }
 0xcd0   : > { %v12801_v23 = vsel %vm12800_vm6, %v12798_v21, 0.0 }
 0xcd1   : > { %12802 = vadd.xlane.f32.xlu1 %v12801_v23 }
 0xd5e   : > { %v12803_v49 = vpop.xlane.xlu1 %12802 }
 0xd5f   : > { %v12805_v12 = vmul.f32 0.33333334, %v12803_v49 }
 0xd61   : > { %v12806_v48 = vsub.f32 %v12793_v46, %v12805_v12 }
 0xd63   : > { %12809 = vperm.xlu0 %16587, %v12806_v48  }
 0xde2   : > { %v12810_v58 = vpop.permute.xlu0 %12809 }
 0xde3   : > { %v12812_v37 = vadd.f32 %v12810_v58, %v12793_v46 }
 0xde5   : > { %12813 = vst [vmem:[%s544_s19] sm:$0xff] %v12812_v37 }
 0xde6   : > { %16663 = shalt.err (!%p16660_p3)
}
 0xde7   : > { %s16664_s2 = scalar_lea.hbm %s23545_s22, 128  ;;  %s16668_s19 = scalar_lea.hbm %s23604_s17, 256 }
 0xde8   : > { %p16665_p4 = scmp.ne.s32.totalorder %s23545_s22, %s16664_s2  ;;  %p16669_p9 = scmp.lt.u32.totalorder %s23545_s22, %s23604_s17 }
 0xde9   : > { %p16670_p10 = scmp.lt.u32.totalorder %s16668_s19, %s16664_s2  ;;  %p16672_p12 = scmp.lt.u32.totalorder %s16664_s2, %s23545_s22 }
 0xdea   : > { %p16666_p7 = pnand %p16665_p4, %p16853_p5 }
 0xdeb   : > { %p16671_p11 = por %p16670_p10, %p16669_p9 }
 0xdec   : > { %p16667_p8 = pneg %p16666_p7 }
 0xded   : > { %p16673_p13 = por %p16672_p12, %p16671_p11 }
 0xdef   : > { %p16674_p0 = pnand %p16673_p13, %p16667_p8 }
 0xdf1   : > { %16677 = shalt.err (!%p16674_p0)
}
 0xdf2   : > { %16538 = dma.vmem_to_hbm [thread:$0]  (%p16853_p5), %s23547_s29, 128, %s23545_s22, %s12815_s23  }
 0xdf3 PF: > { %p16544_p1 = scmp.ge.s32.totalorder %s16712_s27, 2  ;;  %s12840_s21 = sand.u32 1, %s16700_s24  }
 0xdf4   : > { %s12841_s28 = scalar_lea.sflag [#allocation4], %s12840_s21 }
 0xdf5   : > { %p16541_p2 = pnand %p16544_p1, %p16857_p6 }
 0xdf7   : > { %16695 = dma.done.wait (!%p16541_p2), %s12841_s28, 128  }
 0xdf8   : > { %16697 = vsyncadd (!%p16541_p2), %s12841_s28, 4294967168  ;;  %s23668_s18 = sld [smem:[#allocation6_spill]]  ;;  %p27_p3 = scmp.ge.s32.totalorder %s16840_s0, 4  }
 0xdf9   : > { %s23669_s24 = smov %s16704_s25  ;;  %s23670_s25 = smov %s16708_s26 }
 0xdfa   : > { %s23672_s27 = smov %s16840_s0  ;;  %29 = sbr.rel (!%p27_p3) target bundleno = 11 (0xb), region = 186 }
 0xdfe   : > { %s23671_s26 = smov %s23668_s18 }
 0xe01   :  { %12846 = vsyncpa [#allocation4], 1 }
 0xe02   :  { %12848 = vsyncpa [#allocation4 + $0x1], 1 }

</bundles_post_ra>
